<compile_context>
chip_gen: v7x
topology: tpu7x:2x2x1
jax: 0.10.0
libtpu: 0.0.40
codegen_flags: <defaults>
</compile_context>

<pallas_src>
import functools

import jax
import jax.numpy as jnp
from jax.experimental import pallas as pl
from jax.experimental.pallas import tpu as pltpu

_EPS = 1e-5
_LANE = 128
_TARGET_ROWS = 1024                     # rows per tile for the flattened passes

_CompilerParams = getattr(pltpu, "CompilerParams", None) or getattr(
    pltpu, "TPUCompilerParams")


def _default_vmem_limit():
    """~3/4 of physical VMEM: ~96 MiB on v5e/v6e (128 MiB), ~48 MiB on v7x (64 MiB)."""
    try:
        cap = int(getattr(pltpu.get_tpu_info(), "vmem_capacity_bytes", 0))
    except Exception:
        cap = 0
    if cap <= 0:
        cap = 64 * 1024 * 1024          # conservative fallback (v7x-sized)
    return min((cap * 3) // 4, 96 * 1024 * 1024)


_VMEM_LIMIT = _default_vmem_limit()


def _cparams(n_axes):
    return _CompilerParams(dimension_semantics=("parallel",) * n_axes,
                           vmem_limit_bytes=_VMEM_LIMIT)


def _round_up(x, m):
    return ((x + m - 1) // m) * m


def _row_tile(rows, target=_TARGET_ROWS):
    """Largest divisor of `rows` that is <= target and a multiple of 8."""
    # TODO(synk): pad + mask the last tile instead of requiring an exact divisor
    # so awkward N*H*W cannot degenerate to tiny tiles or a single giant block.
    for t in range(min(rows, target), 7, -1):
        if rows % t == 0 and t % 8 == 0:
            return t
    return rows  # single block; block == full array is always legal


def _pad_last(x, target):
    pad = target - x.shape[-1]
    if pad == 0:
        return x
    return jnp.pad(x, [(0, 0)] * (x.ndim - 1) + [(0, pad)])


def _pad2(w, rows, cols):
    return jnp.pad(w, ((0, rows - w.shape[0]), (0, cols - w.shape[1])))


# --------------------------------------------------------------------------- #
# Pass 0: per-tile (sum, sum^2) of (bf16) x for bn1.
# --------------------------------------------------------------------------- #
def _stats_kernel(x_ref, st_ref):
    x = x_ref[...].astype(jnp.float32)
    s = jnp.sum(x, axis=0, keepdims=True)
    q = jnp.sum(x * x, axis=0, keepdims=True)
    st_ref[...] = jnp.concatenate([s, q], axis=0)


def _channel_stats(x_flat):
    rows, ch = x_flat.shape
    br = _row_tile(rows)
    nb = rows // br
    # TODO(synk): fold the NCHW->NHWC transpose + channel pad/cast into this pass
    # to drop one x-sized HBM round trip.
    return pl.pallas_call(
        _stats_kernel,
        out_shape=jax.ShapeDtypeStruct((nb, 2, ch), jnp.float32),
        grid=(nb,),
        in_specs=[pl.BlockSpec((br, ch), lambda i: (i, 0))],
        out_specs=pl.BlockSpec((None, 2, ch), lambda i: (i, 0, 0)),
        compiler_params=_cparams(1),
    )(x_flat)


def _bn_scale_shift(stats, gamma_p, beta_p, count):
    """Finalize per-channel scale/shift from tiled (sum, sum^2) partials."""
    s = jnp.sum(stats[:, 0, :], axis=0)
    q = jnp.sum(stats[:, 1, :], axis=0)
    mean = s / count
    var = jnp.maximum(q / count - mean * mean, 0.0)      # biased variance
    scale = gamma_p * jax.lax.rsqrt(var + _EPS)          # padded gammas are 0
    shift = beta_p - mean * scale
    return scale.reshape(1, -1), shift.reshape(1, -1)


# --------------------------------------------------------------------------- #
# Pass 1: bn1 -> relu -> conv1 (1x1).  Emits bn2 partial stats.  On the
#         projection path with stride==1 the conv4 shortcut is fused here
#         (emit relu(bn1(x)) @ w4); with stride>1 out1 is emitted (bf16).
# --------------------------------------------------------------------------- #
def _make_bn_conv1_kernel(mode):
    f32, bf16 = jnp.float32, jnp.bfloat16

    def body(x_ref, sc_ref, sh_ref, w1_ref, y_ref, st_ref):
        out1 = jnp.maximum(x_ref[...].astype(f32) * sc_ref[...] + sh_ref[...], 0.0)
        o1b = out1.astype(bf16)
        y = jnp.dot(o1b, w1_ref[...], preferred_element_type=f32)
        yb = y.astype(bf16)
        y_ref[...] = yb
        yf = yb.astype(f32)            # stats from the values the consumer sees
        st_ref[...] = jnp.concatenate(
            [jnp.sum(yf, axis=0, keepdims=True),
             jnp.sum(yf * yf, axis=0, keepdims=True)], axis=0)
        return o1b

    if mode == "proj_fused":
        def kernel(x_ref, sc_ref, sh_ref, w1_ref, w4_ref, y_ref, r_ref, st_ref):
            o1b = body(x_ref, sc_ref, sh_ref, w1_ref, y_ref, st_ref)
            r_ref[...] = jnp.dot(o1b, w4_ref[...],
                                 preferred_element_type=f32).astype(bf16)
    elif mode == "out1":
        def kernel(x_ref, sc_ref, sh_ref, w1_ref, y_ref, o1_ref, st_ref):
            o1_ref[...] = body(x_ref, sc_ref, sh_ref, w1_ref, y_ref, st_ref)
    else:
        def kernel(x_ref, sc_ref, sh_ref, w1_ref, y_ref, st_ref):
            body(x_ref, sc_ref, sh_ref, w1_ref, y_ref, st_ref)
    return kernel


def _bn_conv1(x_flat, scale1, shift1, w1, w4, mode):
    rows, cin_p = x_flat.shape
    cmid_p = w1.shape[1]
    br = _row_tile(rows)
    nb = rows // br

    in_specs = [pl.BlockSpec((br, cin_p), lambda i: (i, 0)),
                pl.BlockSpec((1, cin_p), lambda i: (0, 0)),
                pl.BlockSpec((1, cin_p), lambda i: (0, 0)),
                pl.BlockSpec((cin_p, cmid_p), lambda i: (0, 0))]
    args = [x_flat, scale1, shift1, w1]

    out_shape = [jax.ShapeDtypeStruct((rows, cmid_p), jnp.bfloat16)]
    out_specs = [pl.BlockSpec((br, cmid_p), lambda i: (i, 0))]
    if mode == "proj_fused":
        cout_p = w4.shape[1]
        in_specs.append(pl.BlockSpec((cin_p, cout_p), lambda i: (0, 0)))
        args.append(w4)
        out_shape.append(jax.ShapeDtypeStruct((rows, cout_p), jnp.bfloat16))
        out_specs.append(pl.BlockSpec((br, cout_p), lambda i: (i, 0)))
    elif mode == "out1":
        out_shape.append(jax.ShapeDtypeStruct((rows, cin_p), jnp.bfloat16))
        out_specs.append(pl.BlockSpec((br, cin_p), lambda i: (i, 0)))
    out_shape.append(jax.ShapeDtypeStruct((nb, 2, cmid_p), jnp.float32))
    out_specs.append(pl.BlockSpec((None, 2, cmid_p), lambda i: (i, 0, 0)))

    res = pl.pallas_call(
        _make_bn_conv1_kernel(mode),
        out_shape=tuple(out_shape),
        grid=(nb,),
        in_specs=in_specs,
        out_specs=tuple(out_specs),
        compiler_params=_cparams(1),
    )(*args)

    if mode == "plain":
        y_flat, stats = res
        extra = None
    else:
        y_flat, extra, stats = res
    return y_flat, extra, stats


# --------------------------------------------------------------------------- #
# Pass 2: bn2 -> relu -> conv2 (3x3, stride, pad=1).  One grid step per image
#         (images are independent -> no halo).  Emits bn3 partial stats.
# --------------------------------------------------------------------------- #
def _make_conv2_kernel(stride, H, W, Ho, Wo):
    f32, bf16 = jnp.float32, jnp.bfloat16

    if stride == 1:
        # Fast path: packed-K column taps (one K=3*cp matmul per row tap) and a
        # single f32 accumulator updated with leading-axis slice adds.
        def kernel(y_ref, sc_ref, sh_ref, w_ref, t_ref, st_ref, cpad_ref, acc_ref):
            cp = y_ref.shape[-1]
            z = jnp.maximum(y_ref[...].astype(f32) * sc_ref[...] + sh_ref[...], 0.0)
            zb = z.astype(bf16)                                   # (H, W, cp)

            # W-padded scratch: zero only the border columns, reuse for zl / zr.
            zcol = jnp.zeros((H, 1, cp), bf16)
            cpad_ref[:, 0:1, :] = zcol
            cpad_ref[:, W + 1:W + 2, :] = zcol
            cpad_ref[:, 1:W + 1, :] = zb
            zl = cpad_ref[:, 0:W, :]                              # z[:, x-1, :]
            zr = cpad_ref[:, 2:W + 2, :]                          # z[:, x+1, :]

            # Lane-aligned K packing: [kx=0 | kx=1 | kx=2] channels.
            packed = jnp.concatenate([zl, zb, zr], axis=-1)       # (H, W, 3cp)
            p2 = packed.reshape(H * W, 3 * cp)

            # ky = 1 (center row tap) covers every output row.
            acc_ref[...] = jnp.dot(
                p2, w_ref[1], preferred_element_type=f32).reshape(H, W, cp)
            if H > 1:
                # ky = 0: z rows 0..H-2 feed output rows 1..H-1.
                u0 = jnp.dot(packed[:H - 1].reshape((H - 1) * W, 3 * cp),
                             w_ref[0],
                             preferred_element_type=f32).reshape(H - 1, W, cp)
                acc_ref[1:H, :, :] = acc_ref[1:H, :, :] + u0
                # ky = 2: z rows 1..H-1 feed output rows 0..H-2.
                u2 = jnp.dot(packed[1:].reshape((H - 1) * W, 3 * cp),
                             w_ref[2],
                             preferred_element_type=f32).reshape(H - 1, W, cp)
                acc_ref[0:H - 1, :, :] = acc_ref[0:H - 1, :, :] + u2

            tb = acc_ref[...].astype(bf16)
            t_ref[...] = tb
            tf = tb.astype(f32).reshape(Ho * Wo, cp)
            st_ref[...] = jnp.concatenate(
                [jnp.sum(tf, axis=0, keepdims=True),
                 jnp.sum(tf * tf, axis=0, keepdims=True)], axis=0)
        return kernel

    # Strided path: small per-image padded scratch + strided ref reads (9 taps).
    def kernel(y_ref, sc_ref, sh_ref, w_ref, t_ref, st_ref, pad_ref):
        cp = y_ref.shape[-1]
        z = jnp.maximum(y_ref[...].astype(f32) * sc_ref[...] + sh_ref[...], 0.0)
        zb = z.astype(bf16)
        zr_ = jnp.zeros((1, W + 2, cp), bf16)
        zc_ = jnp.zeros((H + 2, 1, cp), bf16)
        pad_ref[0:1, :, :] = zr_
        pad_ref[H + 1:H + 2, :, :] = zr_
        pad_ref[:, 0:1, :] = zc_
        pad_ref[:, W + 1:W + 2, :] = zc_
        pad_ref[1:H + 1, 1:W + 1, :] = zb
        acc = None
        for ky in range(3):
            for kx in range(3):
                patch = pad_ref[pl.ds(ky, Ho, stride=stride),
                                pl.ds(kx, Wo, stride=stride), :]
                term = jnp.dot(patch.reshape(Ho * Wo, cp), w_ref[ky, kx, :, :],
                               preferred_element_type=f32)
                acc = term if acc is None else acc + term
        tb = acc.reshape(Ho, Wo, cp).astype(bf16)
        t_ref[...] = tb
        tf = tb.astype(f32).reshape(Ho * Wo, cp)
        st_ref[...] = jnp.concatenate(
            [jnp.sum(tf, axis=0, keepdims=True),
             jnp.sum(tf * tf, axis=0, keepdims=True)], axis=0)
    return kernel


def _conv2(y4, scale2, shift2, w2, stride):
    n, H, W, cp = y4.shape
    Ho = (H - 1) // stride + 1
    Wo = (W - 1) // stride + 1
    if stride == 1:
        w_spec = pl.BlockSpec((3, 3 * cp, cp), lambda b: (0, 0, 0))
        scratch = [pltpu.VMEM((H, W + 2, cp), jnp.bfloat16),
                   pltpu.VMEM((H, W, cp), jnp.float32)]
    else:
        w_spec = pl.BlockSpec((3, 3, cp, cp), lambda b: (0, 0, 0, 0))
        scratch = [pltpu.VMEM((H + 2, W + 2, cp), jnp.bfloat16)]
    # TODO(synk): tile along H with a 1-row halo (grid=(n, H//th)) so large
    # feature maps fit v7x's 64 MiB VMEM and the grid shards across its 2 TCs.
    return pl.pallas_call(
        _make_conv2_kernel(stride, H, W, Ho, Wo),
        out_shape=(jax.ShapeDtypeStruct((n, Ho, Wo, cp), jnp.bfloat16),
                   jax.ShapeDtypeStruct((n, 2, cp), jnp.float32)),
        grid=(n,),
        in_specs=[pl.BlockSpec((None, H, W, cp), lambda b: (b, 0, 0, 0)),
                  pl.BlockSpec((1, cp), lambda b: (0, 0)),
                  pl.BlockSpec((1, cp), lambda b: (0, 0)),
                  w_spec],
        out_specs=(pl.BlockSpec((None, Ho, Wo, cp), lambda b: (b, 0, 0, 0)),
                   pl.BlockSpec((None, 2, cp), lambda b: (b, 0, 0))),
        scratch_shapes=scratch,
        compiler_params=_cparams(1),
    )(y4, scale2, shift2, w2)


# --------------------------------------------------------------------------- #
# Pass 3: bn3 -> relu -> conv3 (1x1) + residual (bf16 identity / projected
#         shortcut, or conv4 on the strided projection path).
# --------------------------------------------------------------------------- #
def _make_bn_conv3_kernel(project):
    f32, bf16 = jnp.float32, jnp.bfloat16

    def main_path(t_ref, sc_ref, sh_ref, w3_ref):
        z = jnp.maximum(t_ref[...].astype(f32) * sc_ref[...] + sh_ref[...], 0.0)
        return jnp.dot(z.astype(bf16), w3_ref[...], preferred_element_type=f32)

    if project:
        def kernel(t_ref, sc_ref, sh_ref, w3_ref, r_ref, w4_ref, o_ref):
            out = main_path(t_ref, sc_ref, sh_ref, w3_ref)
            out = out + jnp.dot(r_ref[...], w4_ref[...],
                                preferred_element_type=f32)
            o_ref[...] = out
    else:
        def kernel(t_ref, sc_ref, sh_ref, w3_ref, r_ref, o_ref):
            out = main_path(t_ref, sc_ref, sh_ref, w3_ref)
            o_ref[...] = out + r_ref[...].astype(f32)
    return kernel


def _bn_conv3(t_flat, scale3, shift3, w3, r_flat, w4, project):
    rows, cmid_p = t_flat.shape
    cout_p = w3.shape[1]
    cres = r_flat.shape[1]
    br = _row_tile(rows)
    nb = rows // br
    # TODO(synk): pipeline_mode=pl.Buffered(1) on the constant weight blocks
    # would reclaim one redundant VMEM buffer per weight.
    in_specs = [pl.BlockSpec((br, cmid_p), lambda i: (i, 0)),
                pl.BlockSpec((1, cmid_p), lambda i: (0, 0)),
                pl.BlockSpec((1, cmid_p), lambda i: (0, 0)),
                pl.BlockSpec((cmid_p, cout_p), lambda i: (0, 0)),
                pl.BlockSpec((br, cres), lambda i: (i, 0))]
    args = [t_flat, scale3, shift3, w3, r_flat]
    if project:
        in_specs.append(pl.BlockSpec((cres, cout_p), lambda i: (0, 0)))
        args.append(w4)
    return pl.pallas_call(
        _make_bn_conv3_kernel(project),
        out_shape=jax.ShapeDtypeStruct((rows, cout_p), jnp.float32),
        grid=(nb,),
        in_specs=in_specs,
        out_specs=pl.BlockSpec((br, cout_p), lambda i: (i, 0)),
        compiler_params=_cparams(1),
    )(*args)


# --------------------------------------------------------------------------- #
# Wrapper: layout conversion, channel padding, weight reshaping, pass chaining.
# --------------------------------------------------------------------------- #
@functools.partial(jax.jit, static_argnames=("stride",))
def residual_block_forward(x_nchw, params, *, stride=1):
    n, cin, H, W = x_nchw.shape
    cmid = params["conv1"].shape[0]
    cout = params["conv3"].shape[0]
    Ho = (H - 1) // stride + 1
    Wo = (W - 1) // stride + 1
    project = (cin != cout) or (stride != 1)

    cin_p = _round_up(cin, _LANE)
    cmid_p = _round_up(cmid, _LANE)
    cout_p = _round_up(cout, _LANE)
    bf16 = jnp.bfloat16

    # NCHW -> NHWC in bf16, channels zero-padded to a lane multiple: every pass
    # reads/writes lane-dense, half-width HBM slabs.
    x = jnp.transpose(x_nchw, (0, 2, 3, 1)).astype(bf16)
    x = _pad_last(x, cin_p)
    x_flat = x.reshape(n * H * W, cin_p)

    # PyTorch OIHW weights -> lane-padded matmul layouts in bf16.
    w1 = _pad2(params["conv1"].reshape(cmid, cin).T, cin_p, cmid_p).astype(bf16)
    w2 = jnp.transpose(params["conv2"], (2, 3, 1, 0))                  # (3,3,in,out)
    w2 = jnp.pad(w2, ((0, 0), (0, 0), (0, cmid_p - cmid),
                      (0, cmid_p - cmid))).astype(bf16)
    if stride == 1:
        # Packed-K layout: one K=3*cmid_p matmul per row tap fills the 256-deep
        # MXUs on v6e/v7x instead of three half-depth K=cmid_p matmuls.
        w2 = w2.reshape(3, 3 * cmid_p, cmid_p)
    w3 = _pad2(params["conv3"].reshape(cout, cmid).T, cmid_p, cout_p).astype(bf16)
    w4 = (_pad2(params["conv4"].reshape(cout, cin).T, cin_p, cout_p).astype(bf16)
          if project else None)

    g1 = _pad_last(params["bn1_g"], cin_p)
    b1 = _pad_last(params["bn1_b"], cin_p)
    g2 = _pad_last(params["bn2_g"], cmid_p)
    b2 = _pad_last(params["bn2_b"], cmid_p)
    g3 = _pad_last(params["bn3_g"], cmid_p)
    b3 = _pad_last(params["bn3_b"], cmid_p)

    # ---- Pass 0: bn1 statistics ------------------------------------------- #
    stats1 = _channel_stats(x_flat)
    scale1, shift1 = _bn_scale_shift(stats1, g1, b1, n * H * W)

    # ---- Pass 1: bn1 -> relu -> conv1 (+ fused conv4 / out1, bn2 stats) ---- #
    if project and stride == 1:
        mode1 = "proj_fused"      # conv4 shortcut folded into this pass
    elif project:
        mode1 = "out1"            # stride>1: out1 needed for the strided conv4
    else:
        mode1 = "plain"
    y_flat, extra, stats2 = _bn_conv1(x_flat, scale1, shift1, w1, w4, mode1)
    scale2, shift2 = _bn_scale_shift(stats2, g2, b2, n * H * W)

    # ---- Pass 2: bn2 -> relu -> conv2 (+ bn3 stats) ------------------------ #
    t4, stats3 = _conv2(y_flat.reshape(n, H, W, cmid_p), scale2, shift2, w2,
                        stride)
    scale3, shift3 = _bn_scale_shift(stats3, g3, b3, n * Ho * Wo)

    # ---- residual source ---------------------------------------------------- #
    if not project:
        r_flat = x_flat                          # identity: stride==1, cin==cout
        pass3_project = False
    elif stride == 1:
        r_flat = extra                           # conv4(out1), already projected
        pass3_project = False
    else:
        # TODO(synk): subsample inside Pass 3 via a strided index map instead of
        # this extra XLA gather round trip of out1.
        out1_4 = extra.reshape(n, H, W, cin_p)[:, ::stride, ::stride, :]
        r_flat = out1_4.reshape(n * Ho * Wo, cin_p)
        pass3_project = True

    # ---- Pass 3: bn3 -> relu -> conv3 + residual ----------------------------- #
    out_flat = _bn_conv3(t4.reshape(n * Ho * Wo, cmid_p), scale3, shift3, w3,
                         r_flat, w4 if pass3_project else None, pass3_project)
    out = out_flat.reshape(n, Ho, Wo, cout_p)[..., :cout]
    return jnp.transpose(out, (0, 3, 1, 2))                  # NHWC -> NCHW


# --------------------------------------------------------------------------- #
# Deterministic parameter initialization (shapes from ResidualBlock.__init__)
# --------------------------------------------------------------------------- #
def init_params(key, ch_in, ch_out):
    ch_mid = ch_in // 4
    ks = jax.random.split(key, 10)
    return {
        "bn1_g": 1.0 + 0.1 * jax.random.normal(ks[0], (ch_in,), jnp.float32),
        "bn1_b": 0.1 * jax.random.normal(ks[1], (ch_in,), jnp.float32),
        "conv1": 0.2 * jax.random.normal(ks[2], (ch_mid, ch_in, 1, 1), jnp.float32),
        "bn2_g": 1.0 + 0.1 * jax.random.normal(ks[3], (ch_mid,), jnp.float32),
        "bn2_b": 0.1 * jax.random.normal(ks[4], (ch_mid,), jnp.float32),
        "conv2": 0.2 * jax.random.normal(ks[5], (ch_mid, ch_mid, 3, 3), jnp.float32),
        "bn3_g": 1.0 + 0.1 * jax.random.normal(ks[6], (ch_mid,), jnp.float32),
        "bn3_b": 0.1 * jax.random.normal(ks[7], (ch_mid,), jnp.float32),
        "conv3": 0.2 * jax.random.normal(ks[8], (ch_out, ch_mid, 1, 1), jnp.float32),
        "conv4": 0.2 * jax.random.normal(ks[9], (ch_out, ch_in, 1, 1), jnp.float32),
    }


# --------------------------------------------------------------------------- #
# Pure-JAX reference (NCHW) for correctness checking
# --------------------------------------------------------------------------- #
def reference_forward(x, p, ch_in, ch_out, stride=1):
    eps = 1e-5

    def bn(t, g, b):
        mean = jnp.mean(t, axis=(0, 2, 3), keepdims=True)
        var = jnp.mean(jnp.square(t - mean), axis=(0, 2, 3), keepdims=True)
        return (t - mean) * jax.lax.rsqrt(var + eps) * g.reshape(1, -1, 1, 1) \
            + b.reshape(1, -1, 1, 1)

    def conv(t, w, s=1, pad=0):
        return jax.lax.conv_general_dilated(
            t, w, (s, s), [(pad, pad), (pad, pad)],
            dimension_numbers=("NCHW", "OIHW", "NCHW"))

    out1 = jnp.maximum(bn(x, p["bn1_g"], p["bn1_b"]), 0.0)
    out = conv(out1, p["conv1"])
    out = jnp.maximum(bn(out, p["bn2_g"], p["bn2_b"]), 0.0)
    out = conv(out, p["conv2"], s=stride, pad=1)
    out = jnp.maximum(bn(out, p["bn3_g"], p["bn3_b"]), 0.0)
    out = conv(out, p["conv3"])
    if ch_in != ch_out or stride != 1:
        res = conv(out1, p["conv4"], s=stride)
    else:
        res = x
    return out + res


# --------------------------------------------------------------------------- #
if __name__ == "__main__":
    N, H, W = 2, 16, 16
    key = jax.random.PRNGKey(0)

    # (name, ch_in, ch_out, stride): exercises both the conv4-projection and
    # identity shortcut paths (stride==1 so the compiled fast path is used).
    configs = [("projection", 8, 16, 1), ("identity", 8, 8, 1)]

    for name, ch_in, ch_out, stride in configs:
        key, kx, kp = jax.random.split(key, 3)
        x = jax.random.normal(kx, (N, ch_in, H, W), jnp.float32)
        params = init_params(kp, ch_in, ch_out)

        out = jax.block_until_ready(
            residual_block_forward(x, params, stride=stride))
        ref = jax.block_until_ready(
            reference_forward(x, params, ch_in, ch_out, stride))

        assert out.shape == ref.shape, (name, out.shape, ref.shape)
        err = float(jnp.max(jnp.abs(out - ref)))
        # 4e-2 covers bf16 matmul operands + bf16 inter-pass activation storage.
        assert jnp.allclose(out, ref, atol=4e-2, rtol=4e-2), (name, err)

    print("KERNEL_OK")
</pallas_src>

<mosaic_0001>
module attributes {stable_mosaic.version = 11 : i64} {
  func.func @_stats_kernel(%arg0: i32, %arg1: memref<512x128xbf16, #tpu.memory_space<vmem>>, %arg2: memref<1x2x128xf32, #tpu.memory_space<vmem>>) attributes {dimension_semantics = [#tpu.dimension_semantics<parallel>], iteration_bounds = array<i64: 1>, scalar_prefetch = 0 : i64, scratch_operands = 0 : i64, tpu.core_type = #tpu.core_type<tc>, window_params = [{transform_indices = @transform_0, window_bounds = array<i64: 512, 128>}, {transform_indices = @transform_1, window_bounds = array<i64: 1, 2, 128>}]} {
    %c0 = arith.constant 0 : index
    %c0_0 = arith.constant 0 : index
    %0 = vector.load %arg1[%c0, %c0_0] : memref<512x128xbf16, #tpu.memory_space<vmem>>, vector<512x128xbf16>
    %1 = arith.extf %0 : vector<512x128xbf16> to vector<512x128xf32>
    %cst = arith.constant dense<0.000000e+00> : vector<128xf32>
    %2 = vector.multi_reduction <add>, %1, %cst [0] : vector<512x128xf32> to vector<128xf32>
    %3 = vector.shape_cast %2 : vector<128xf32> to vector<1x128xf32>
    %4 = arith.mulf %1, %1 : vector<512x128xf32>
    %cst_1 = arith.constant dense<0.000000e+00> : vector<128xf32>
    %5 = vector.multi_reduction <add>, %4, %cst_1 [0] : vector<512x128xf32> to vector<128xf32>
    %6 = vector.shape_cast %5 : vector<128xf32> to vector<1x128xf32>
    %7 = tpu.concatenate %3, %6 in 0 : vector<1x128xf32>, vector<1x128xf32> -> vector<2x128xf32>
    %c0_2 = arith.constant 0 : index
    %c0_3 = arith.constant 0 : index
    %c0_4 = arith.constant 0 : index
    %8 = vector.load %arg2[%c0_2, %c0_3, %c0_4] : memref<1x2x128xf32, #tpu.memory_space<vmem>>, vector<1x2x128xf32>
    %9 = vector.shape_cast %8 : vector<1x2x128xf32> to vector<2x128xf32>
    %10 = vector.shape_cast %7 : vector<2x128xf32> to vector<1x2x128xf32>
    tpu.vector_store %arg2[%c0_2, %c0_3, %c0_4], %10 {strides = array<i32>} : memref<1x2x128xf32, #tpu.memory_space<vmem>>, vector<1x2x128xf32>,
    return
  }
  func.func @transform_0(%arg0: i32) -> (i32, i32) {
    %c0_i32 = arith.constant 0 : i32
    %c0_i32_0 = arith.constant 0 : i32
    return %arg0, %c0_i32 : i32, i32
  }
  func.func @transform_1(%arg0: i32) -> (i32, i32, i32) {
    %c0_i32 = arith.constant 0 : i32
    %c0_i32_0 = arith.constant 0 : i32
    %c0_i32_1 = arith.constant 0 : i32
    return %arg0, %c0_i32, %c0_i32_0 : i32, i32, i32
  }
}

module attributes {stable_mosaic.version = 11 : i64} {
  func.func @kernel(%arg0: i32, %arg1: memref<1x16x16x128xbf16, #tpu.memory_space<vmem>>, %arg2: memref<1x128xf32, #tpu.memory_space<vmem>>, %arg3: memref<1x128xf32, #tpu.memory_space<vmem>>, %arg4: memref<3x384x128xbf16, #tpu.memory_space<vmem>>, %arg5: memref<1x16x16x128xbf16, #tpu.memory_space<vmem>>, %arg6: memref<1x2x128xf32, #tpu.memory_space<vmem>>, %arg7: memref<16x18x128xbf16, #tpu.memory_space<vmem>>, %arg8: memref<16x16x128xf32, #tpu.memory_space<vmem>>) attributes {dimension_semantics = [#tpu.dimension_semantics<parallel>], iteration_bounds = array<i64: 2>, scalar_prefetch = 0 : i64, scratch_operands = 2 : i64, tpu.core_type = #tpu.core_type<tc>, window_params = [{transform_indices = @transform_0, window_bounds = array<i64: 1, 16, 16, 128>}, {pipeline_mode = #tpu.pipeline_mode<synchronous>, transform_indices = @transform_1, window_bounds = array<i64: 1, 128>}, {pipeline_mode = #tpu.pipeline_mode<synchronous>, transform_indices = @transform_2, window_bounds = array<i64: 1, 128>}, {pipeline_mode = #tpu.pipeline_mode<synchronous>, transform_indices = @transform_3, window_bounds = array<i64: 3, 384, 128>}, {transform_indices = @transform_4, window_bounds = array<i64: 1, 16, 16, 128>}, {transform_indices = @transform_5, window_bounds = array<i64: 1, 2, 128>}]} {
    %c0 = arith.constant 0 : index
    %c0_0 = arith.constant 0 : index
    %c0_1 = arith.constant 0 : index
    %c0_2 = arith.constant 0 : index
    %0 = vector.load %arg1[%c0, %c0_0, %c0_1, %c0_2] : memref<1x16x16x128xbf16, #tpu.memory_space<vmem>>, vector<1x16x16x128xbf16>
    %1 = vector.shape_cast %0 : vector<1x16x16x128xbf16> to vector<16x16x128xbf16>
    %2 = arith.extf %1 : vector<16x16x128xbf16> to vector<16x16x128xf32>
    %c0_3 = arith.constant 0 : index
    %c0_4 = arith.constant 0 : index
    %3 = vector.load %arg2[%c0_3, %c0_4] : memref<1x128xf32, #tpu.memory_space<vmem>>, vector<1x128xf32>
    %4 = vector.shape_cast %3 : vector<1x128xf32> to vector<1x1x128xf32>
    %5 = vector.broadcast %4 : vector<1x1x128xf32> to vector<16x16x128xf32>
    %6 = arith.mulf %2, %5 : vector<16x16x128xf32>
    %c0_5 = arith.constant 0 : index
    %c0_6 = arith.constant 0 : index
    %7 = vector.load %arg3[%c0_5, %c0_6] : memref<1x128xf32, #tpu.memory_space<vmem>>, vector<1x128xf32>
    %8 = vector.shape_cast %7 : vector<1x128xf32> to vector<1x1x128xf32>
    %9 = vector.broadcast %8 : vector<1x1x128xf32> to vector<16x16x128xf32>
    %10 = arith.addf %6, %9 : vector<16x16x128xf32>
    %cst = arith.constant 0.000000e+00 : f32
    %11 = vector.broadcast %cst : f32 to vector<16x16x128xf32>
    %12 = arith.maximumf %10, %11 : vector<16x16x128xf32>
    %13 = arith.truncf %12 : vector<16x16x128xf32> to vector<16x16x128xbf16>
    %cst_7 = arith.constant 0.000000e+00 : bf16
    %14 = vector.broadcast %cst_7 : bf16 to vector<16x1x128xbf16>
    %c0_8 = arith.constant 0 : index
    %c0_9 = arith.constant 0 : index
    %c0_10 = arith.constant 0 : index
    %15 = vector.load %arg7[%c0_8, %c0_9, %c0_10] : memref<16x18x128xbf16, #tpu.memory_space<vmem>>, vector<16x1x128xbf16>
    tpu.vector_store %arg7[%c0_8, %c0_9, %c0_10], %14 {strides = array<i32>} : memref<16x18x128xbf16, #tpu.memory_space<vmem>>, vector<16x1x128xbf16>,
    %c0_11 = arith.constant 0 : index
    %c17 = arith.constant 17 : index
    %c0_12 = arith.constant 0 : index
    %16 = vector.load %arg7[%c0_11, %c17, %c0_12] : memref<16x18x128xbf16, #tpu.memory_space<vmem>>, vector<16x1x128xbf16>
    tpu.vector_store %arg7[%c0_11, %c17, %c0_12], %14 {strides = array<i32>} : memref<16x18x128xbf16, #tpu.memory_space<vmem>>, vector<16x1x128xbf16>,
    %c0_13 = arith.constant 0 : index
    %c1 = arith.constant 1 : index
    %c0_14 = arith.constant 0 : index
    %17 = vector.load %arg7[%c0_13, %c1, %c0_14] : memref<16x18x128xbf16, #tpu.memory_space<vmem>>, vector<16x16x128xbf16>
    tpu.vector_store %arg7[%c0_13, %c1, %c0_14], %13 {strides = array<i32>} : memref<16x18x128xbf16, #tpu.memory_space<vmem>>, vector<16x16x128xbf16>,
    %c0_15 = arith.constant 0 : index
    %c0_16 = arith.constant 0 : index
    %c0_17 = arith.constant 0 : index
    %18 = vector.load %arg7[%c0_15, %c0_16, %c0_17] : memref<16x18x128xbf16, #tpu.memory_space<vmem>>, vector<16x16x128xbf16>
    %c0_18 = arith.constant 0 : index
    %c2 = arith.constant 2 : index
    %c0_19 = arith.constant 0 : index
    %19 = vector.load %arg7[%c0_18, %c2, %c0_19] : memref<16x18x128xbf16, #tpu.memory_space<vmem>>, vector<16x16x128xbf16>
    %20 = tpu.concatenate %18, %13, %19 in 2 : vector<16x16x128xbf16>, vector<16x16x128xbf16>, vector<16x16x128xbf16> -> vector<16x16x384xbf16>
    %21 = vector.shape_cast %20 : vector<16x16x384xbf16> to vector<256x384xbf16>
    %c1_20 = arith.constant 1 : index
    %c0_21 = arith.constant 0 : index
    %c0_22 = arith.constant 0 : index
    %22 = vector.load %arg4[%c1_20, %c0_21, %c0_22] : memref<3x384x128xbf16, #tpu.memory_space<vmem>>, vector<1x384x128xbf16>
    %23 = vector.shape_cast %22 : vector<1x384x128xbf16> to vector<384x128xbf16>
    %cst_23 = arith.constant dense<0.000000e+00> : vector<256x128xf32>
    %24 = tpu.matmul %21, %23, %cst_23 {dimension_numbers = #tpu.dot_dimension_numbers<[1], [0], [0], [1], [0, 0, 1, 1], [], []>} : vector<256x384xbf16>, vector<384x128xbf16>, vector<256x128xf32> -> vector<256x128xf32>
    %25 = vector.shape_cast %24 : vector<256x128xf32> to vector<16x16x128xf32>
    %c0_24 = arith.constant 0 : index
    %c0_25 = arith.constant 0 : index
    %c0_26 = arith.constant 0 : index
    %26 = vector.load %arg8[%c0_24, %c0_25, %c0_26] : memref<16x16x128xf32, #tpu.memory_space<vmem>>, vector<16x16x128xf32>
    tpu.vector_store %arg8[%c0_24, %c0_25, %c0_26], %25 {strides = array<i32>} : memref<16x16x128xf32, #tpu.memory_space<vmem>>, vector<16x16x128xf32>,
    %27 = vector.extract_strided_slice %20 {offsets = [0, 0, 0], sizes = [15, 16, 384], strides = [1, 1, 1]} : vector<16x16x384xbf16> to vector<15x16x384xbf16>
    %28 = vector.shape_cast %27 : vector<15x16x384xbf16> to vector<240x384xbf16>
    %c0_27 = arith.constant 0 : index
    %c0_28 = arith.constant 0 : index
    %c0_29 = arith.constant 0 : index
    %29 = vector.load %arg4[%c0_27, %c0_28, %c0_29] : memref<3x384x128xbf16, #tpu.memory_space<vmem>>, vector<1x384x128xbf16>
    %30 = vector.shape_cast %29 : vector<1x384x128xbf16> to vector<384x128xbf16>
    %cst_30 = arith.constant dense<0.000000e+00> : vector<240x128xf32>
    %31 = tpu.matmul %28, %30, %cst_30 {dimension_numbers = #tpu.dot_dimension_numbers<[1], [0], [0], [1], [0, 0, 1, 1], [], []>} : vector<240x384xbf16>, vector<384x128xbf16>, vector<240x128xf32> -> vector<240x128xf32>
    %32 = vector.shape_cast %31 : vector<240x128xf32> to vector<15x16x128xf32>
    %c1_31 = arith.constant 1 : index
    %c0_32 = arith.constant 0 : index
    %c0_33 = arith.constant 0 : index
    %33 = vector.load %arg8[%c1_31, %c0_32, %c0_33] : memref<16x16x128xf32, #tpu.memory_space<vmem>>, vector<15x16x128xf32>
    %34 = arith.addf %33, %32 : vector<15x16x128xf32>
    %c1_34 = arith.constant 1 : index
    %c0_35 = arith.constant 0 : index
    %c0_36 = arith.constant 0 : index
    %35 = vector.load %arg8[%c1_34, %c0_35, %c0_36] : memref<16x16x128xf32, #tpu.memory_space<vmem>>, vector<15x16x128xf32>
    tpu.vector_store %arg8[%c1_34, %c0_35, %c0_36], %34 {strides = array<i32>} : memref<16x16x128xf32, #tpu.memory_space<vmem>>, vector<15x16x128xf32>,
    %36 = vector.extract_strided_slice %20 {offsets = [1, 0, 0], sizes = [15, 16, 384], strides = [1, 1, 1]} : vector<16x16x384xbf16> to vector<15x16x384xbf16>
    %37 = vector.shape_cast %36 : vector<15x16x384xbf16> to vector<240x384xbf16>
    %c2_37 = arith.constant 2 : index
    %c0_38 = arith.constant 0 : index
    %c0_39 = arith.constant 0 : index
    %38 = vector.load %arg4[%c2_37, %c0_38, %c0_39] : memref<3x384x128xbf16, #tpu.memory_space<vmem>>, vector<1x384x128xbf16>
    %39 = vector.shape_cast %38 : vector<1x384x128xbf16> to vector<384x128xbf16>
    %cst_40 = arith.constant dense<0.000000e+00> : vector<240x128xf32>
    %40 = tpu.matmul %37, %39, %cst_40 {dimension_numbers = #tpu.dot_dimension_numbers<[1], [0], [0], [1], [0, 0, 1, 1], [], []>} : vector<240x384xbf16>, vector<384x128xbf16>, vector<240x128xf32> -> vector<240x128xf32>
    %41 = vector.shape_cast %40 : vector<240x128xf32> to vector<15x16x128xf32>
    %c0_41 = arith.constant 0 : index
    %c0_42 = arith.constant 0 : index
    %c0_43 = arith.constant 0 : index
    %42 = vector.load %arg8[%c0_41, %c0_42, %c0_43] : memref<16x16x128xf32, #tpu.memory_space<vmem>>, vector<15x16x128xf32>
    %43 = arith.addf %42, %41 : vector<15x16x128xf32>
    %c0_44 = arith.constant 0 : index
    %c0_45 = arith.constant 0 : index
    %c0_46 = arith.constant 0 : index
    %44 = vector.load %arg8[%c0_44, %c0_45, %c0_46] : memref<16x16x128xf32, #tpu.memory_space<vmem>>, vector<15x16x128xf32>
    tpu.vector_store %arg8[%c0_44, %c0_45, %c0_46], %43 {strides = array<i32>} : memref<16x16x128xf32, #tpu.memory_space<vmem>>, vector<15x16x128xf32>,
    %c0_47 = arith.constant 0 : index
    %c0_48 = arith.constant 0 : index
    %c0_49 = arith.constant 0 : index
    %45 = vector.load %arg8[%c0_47, %c0_48, %c0_49] : memref<16x16x128xf32, #tpu.memory_space<vmem>>, vector<16x16x128xf32>
    %46 = arith.truncf %45 : vector<16x16x128xf32> to vector<16x16x128xbf16>
    %c0_50 = arith.constant 0 : index
    %c0_51 = arith.constant 0 : index
    %c0_52 = arith.constant 0 : index
    %c0_53 = arith.constant 0 : index
    %47 = vector.load %arg5[%c0_50, %c0_51, %c0_52, %c0_53] : memref<1x16x16x128xbf16, #tpu.memory_space<vmem>>, vector<1x16x16x128xbf16>
    %48 = vector.shape_cast %47 : vector<1x16x16x128xbf16> to vector<16x16x128xbf16>
    %49 = vector.shape_cast %46 : vector<16x16x128xbf16> to vector<1x16x16x128xbf16>
    tpu.vector_store %arg5[%c0_50, %c0_51, %c0_52, %c0_53], %49 {strides = array<i32>} : memref<1x16x16x128xbf16, #tpu.memory_space<vmem>>, vector<1x16x16x128xbf16>,
    %50 = arith.extf %46 : vector<16x16x128xbf16> to vector<16x16x128xf32>
    %51 = vector.shape_cast %50 : vector<16x16x128xf32> to vector<256x128xf32>
    %cst_54 = arith.constant dense<0.000000e+00> : vector<128xf32>
    %52 = vector.multi_reduction <add>, %51, %cst_54 [0] : vector<256x128xf32> to vector<128xf32>
    %53 = vector.shape_cast %52 : vector<128xf32> to vector<1x128xf32>
    %54 = arith.mulf %51, %51 : vector<256x128xf32>
    %cst_55 = arith.constant dense<0.000000e+00> : vector<128xf32>
    %55 = vector.multi_reduction <add>, %54, %cst_55 [0] : vector<256x128xf32> to vector<128xf32>
    %56 = vector.shape_cast %55 : vector<128xf32> to vector<1x128xf32>
    %57 = tpu.concatenate %53, %56 in 0 : vector<1x128xf32>, vector<1x128xf32> -> vector<2x128xf32>
    %c0_56 = arith.constant 0 : index
    %c0_57 = arith.constant 0 : index
    %c0_58 = arith.constant 0 : index
    %58 = vector.load %arg6[%c0_56, %c0_57, %c0_58] : memref<1x2x128xf32, #tpu.memory_space<vmem>>, vector<1x2x128xf32>
    %59 = vector.shape_cast %58 : vector<1x2x128xf32> to vector<2x128xf32>
    %60 = vector.shape_cast %57 : vector<2x128xf32> to vector<1x2x128xf32>
    tpu.vector_store %arg6[%c0_56, %c0_57, %c0_58], %60 {strides = array<i32>} : memref<1x2x128xf32, #tpu.memory_space<vmem>>, vector<1x2x128xf32>,
    return
  }
  func.func @transform_0(%arg0: i32) -> (i32, i32, i32, i32) {
    %c0_i32 = arith.constant 0 : i32
    %c0_i32_0 = arith.constant 0 : i32
    %c0_i32_1 = arith.constant 0 : i32
    %c0_i32_2 = arith.constant 0 : i32
    return %arg0, %c0_i32, %c0_i32_0, %c0_i32_1 : i32, i32, i32, i32
  }
  func.func @transform_1(%arg0: i32) -> (i32, i32) {
    %c0_i32 = arith.constant 0 : i32
    %c0_i32_0 = arith.constant 0 : i32
    %c0_i32_1 = arith.constant 0 : i32
    return %c0_i32, %c0_i32_0 : i32, i32
  }
  func.func @transform_2(%arg0: i32) -> (i32, i32) {
    %c0_i32 = arith.constant 0 : i32
    %c0_i32_0 = arith.constant 0 : i32
    %c0_i32_1 = arith.constant 0 : i32
    return %c0_i32, %c0_i32_0 : i32, i32
  }
  func.func @transform_3(%arg0: i32) -> (i32, i32, i32) {
    %c0_i32 = arith.constant 0 : i32
    %c0_i32_0 = arith.constant 0 : i32
    %c0_i32_1 = arith.constant 0 : i32
    %c0_i32_2 = arith.constant 0 : i32
    return %c0_i32, %c0_i32_0, %c0_i32_1 : i32, i32, i32
  }
  func.func @transform_4(%arg0: i32) -> (i32, i32, i32, i32) {
    %c0_i32 = arith.constant 0 : i32
    %c0_i32_0 = arith.constant 0 : i32
    %c0_i32_1 = arith.constant 0 : i32
    %c0_i32_2 = arith.constant 0 : i32
    return %arg0, %c0_i32, %c0_i32_0, %c0_i32_1 : i32, i32, i32, i32
  }
  func.func @transform_5(%arg0: i32) -> (i32, i32, i32) {
    %c0_i32 = arith.constant 0 : i32
    %c0_i32_0 = arith.constant 0 : i32
    %c0_i32_1 = arith.constant 0 : i32
    return %arg0, %c0_i32, %c0_i32_0 : i32, i32, i32
  }
}

module attributes {stable_mosaic.version = 11 : i64} {
  func.func @kernel(%arg0: i32, %arg1: memref<512x128xbf16, #tpu.memory_space<vmem>>, %arg2: memref<1x128xf32, #tpu.memory_space<vmem>>, %arg3: memref<1x128xf32, #tpu.memory_space<vmem>>, %arg4: memref<128x128xbf16, #tpu.memory_space<vmem>>, %arg5: memref<128x128xbf16, #tpu.memory_space<vmem>>, %arg6: memref<512x128xbf16, #tpu.memory_space<vmem>>, %arg7: memref<512x128xbf16, #tpu.memory_space<vmem>>, %arg8: memref<1x2x128xf32, #tpu.memory_space<vmem>>) attributes {dimension_semantics = [#tpu.dimension_semantics<parallel>], iteration_bounds = array<i64: 1>, scalar_prefetch = 0 : i64, scratch_operands = 0 : i64, tpu.core_type = #tpu.core_type<tc>, window_params = [{transform_indices = @transform_0, window_bounds = array<i64: 512, 128>}, {pipeline_mode = #tpu.pipeline_mode<synchronous>, transform_indices = @transform_1, window_bounds = array<i64: 1, 128>}, {pipeline_mode = #tpu.pipeline_mode<synchronous>, transform_indices = @transform_2, window_bounds = array<i64: 1, 128>}, {pipeline_mode = #tpu.pipeline_mode<synchronous>, transform_indices = @transform_3, window_bounds = array<i64: 128, 128>}, {pipeline_mode = #tpu.pipeline_mode<synchronous>, transform_indices = @transform_4, window_bounds = array<i64: 128, 128>}, {transform_indices = @transform_5, window_bounds = array<i64: 512, 128>}, {transform_indices = @transform_6, window_bounds = array<i64: 512, 128>}, {transform_indices = @transform_7, window_bounds = array<i64: 1, 2, 128>}]} {
    %c0 = arith.constant 0 : index
    %c0_0 = arith.constant 0 : index
    %0 = vector.load %arg1[%c0, %c0_0] : memref<512x128xbf16, #tpu.memory_space<vmem>>, vector<512x128xbf16>
    %1 = arith.extf %0 : vector<512x128xbf16> to vector<512x128xf32>
    %c0_1 = arith.constant 0 : index
    %c0_2 = arith.constant 0 : index
    %2 = vector.load %arg2[%c0_1, %c0_2] : memref<1x128xf32, #tpu.memory_space<vmem>>, vector<1x128xf32>
    %3 = vector.broadcast %2 : vector<1x128xf32> to vector<512x128xf32>
    %4 = arith.mulf %1, %3 : vector<512x128xf32>
    %c0_3 = arith.constant 0 : index
    %c0_4 = arith.constant 0 : index
    %5 = vector.load %arg3[%c0_3, %c0_4] : memref<1x128xf32, #tpu.memory_space<vmem>>, vector<1x128xf32>
    %6 = vector.broadcast %5 : vector<1x128xf32> to vector<512x128xf32>
    %7 = arith.addf %4, %6 : vector<512x128xf32>
    %cst = arith.constant 0.000000e+00 : f32
    %8 = vector.broadcast %cst : f32 to vector<512x128xf32>
    %9 = arith.maximumf %7, %8 : vector<512x128xf32>
    %10 = arith.truncf %9 : vector<512x128xf32> to vector<512x128xbf16>
    %c0_5 = arith.constant 0 : index
    %c0_6 = arith.constant 0 : index
    %11 = vector.load %arg4[%c0_5, %c0_6] : memref<128x128xbf16, #tpu.memory_space<vmem>>, vector<128x128xbf16>
    %cst_7 = arith.constant dense<0.000000e+00> : vector<512x128xf32>
    %12 = tpu.matmul %10, %11, %cst_7 {dimension_numbers = #tpu.dot_dimension_numbers<[1], [0], [0], [1], [0, 0, 1, 1], [], []>} : vector<512x128xbf16>, vector<128x128xbf16>, vector<512x128xf32> -> vector<512x128xf32>
    %13 = arith.truncf %12 : vector<512x128xf32> to vector<512x128xbf16>
    %c0_8 = arith.constant 0 : index
    %c0_9 = arith.constant 0 : index
    %14 = vector.load %arg6[%c0_8, %c0_9] : memref<512x128xbf16, #tpu.memory_space<vmem>>, vector<512x128xbf16>
    tpu.vector_store %arg6[%c0_8, %c0_9], %13 {strides = array<i32>} : memref<512x128xbf16, #tpu.memory_space<vmem>>, vector<512x128xbf16>,
    %15 = arith.extf %13 : vector<512x128xbf16> to vector<512x128xf32>
    %cst_10 = arith.constant dense<0.000000e+00> : vector<128xf32>
    %16 = vector.multi_reduction <add>, %15, %cst_10 [0] : vector<512x128xf32> to vector<128xf32>
    %17 = vector.shape_cast %16 : vector<128xf32> to vector<1x128xf32>
    %18 = arith.mulf %15, %15 : vector<512x128xf32>
    %cst_11 = arith.constant dense<0.000000e+00> : vector<128xf32>
    %19 = vector.multi_reduction <add>, %18, %cst_11 [0] : vector<512x128xf32> to vector<128xf32>
    %20 = vector.shape_cast %19 : vector<128xf32> to vector<1x128xf32>
    %21 = tpu.concatenate %17, %20 in 0 : vector<1x128xf32>, vector<1x128xf32> -> vector<2x128xf32>
    %c0_12 = arith.constant 0 : index
    %c0_13 = arith.constant 0 : index
    %c0_14 = arith.constant 0 : index
    %22 = vector.load %arg8[%c0_12, %c0_13, %c0_14] : memref<1x2x128xf32, #tpu.memory_space<vmem>>, vector<1x2x128xf32>
    %23 = vector.shape_cast %22 : vector<1x2x128xf32> to vector<2x128xf32>
    %24 = vector.shape_cast %21 : vector<2x128xf32> to vector<1x2x128xf32>
    tpu.vector_store %arg8[%c0_12, %c0_13, %c0_14], %24 {strides = array<i32>} : memref<1x2x128xf32, #tpu.memory_space<vmem>>, vector<1x2x128xf32>,
    %c0_15 = arith.constant 0 : index
    %c0_16 = arith.constant 0 : index
    %25 = vector.load %arg5[%c0_15, %c0_16] : memref<128x128xbf16, #tpu.memory_space<vmem>>, vector<128x128xbf16>
    %cst_17 = arith.constant dense<0.000000e+00> : vector<512x128xf32>
    %26 = tpu.matmul %10, %25, %cst_17 {dimension_numbers = #tpu.dot_dimension_numbers<[1], [0], [0], [1], [0, 0, 1, 1], [], []>} : vector<512x128xbf16>, vector<128x128xbf16>, vector<512x128xf32> -> vector<512x128xf32>
    %27 = arith.truncf %26 : vector<512x128xf32> to vector<512x128xbf16>
    %c0_18 = arith.constant 0 : index
    %c0_19 = arith.constant 0 : index
    %28 = vector.load %arg7[%c0_18, %c0_19] : memref<512x128xbf16, #tpu.memory_space<vmem>>, vector<512x128xbf16>
    tpu.vector_store %arg7[%c0_18, %c0_19], %27 {strides = array<i32>} : memref<512x128xbf16, #tpu.memory_space<vmem>>, vector<512x128xbf16>,
    return
  }
  func.func @transform_0(%arg0: i32) -> (i32, i32) {
    %c0_i32 = arith.constant 0 : i32
    %c0_i32_0 = arith.constant 0 : i32
    return %arg0, %c0_i32 : i32, i32
  }
  func.func @transform_1(%arg0: i32) -> (i32, i32) {
    %c0_i32 = arith.constant 0 : i32
    %c0_i32_0 = arith.constant 0 : i32
    %c0_i32_1 = arith.constant 0 : i32
    return %c0_i32, %c0_i32_0 : i32, i32
  }
  func.func @transform_2(%arg0: i32) -> (i32, i32) {
    %c0_i32 = arith.constant 0 : i32
    %c0_i32_0 = arith.constant 0 : i32
    %c0_i32_1 = arith.constant 0 : i32
    return %c0_i32, %c0_i32_0 : i32, i32
  }
  func.func @transform_3(%arg0: i32) -> (i32, i32) {
    %c0_i32 = arith.constant 0 : i32
    %c0_i32_0 = arith.constant 0 : i32
    %c0_i32_1 = arith.constant 0 : i32
    return %c0_i32, %c0_i32_0 : i32, i32
  }
  func.func @transform_4(%arg0: i32) -> (i32, i32) {
    %c0_i32 = arith.constant 0 : i32
    %c0_i32_0 = arith.constant 0 : i32
    %c0_i32_1 = arith.constant 0 : i32
    return %c0_i32, %c0_i32_0 : i32, i32
  }
  func.func @transform_5(%arg0: i32) -> (i32, i32) {
    %c0_i32 = arith.constant 0 : i32
    %c0_i32_0 = arith.constant 0 : i32
    return %arg0, %c0_i32 : i32, i32
  }
  func.func @transform_6(%arg0: i32) -> (i32, i32) {
    %c0_i32 = arith.constant 0 : i32
    %c0_i32_0 = arith.constant 0 : i32
    return %arg0, %c0_i32 : i32, i32
  }
  func.func @transform_7(%arg0: i32) -> (i32, i32, i32) {
    %c0_i32 = arith.constant 0 : i32
    %c0_i32_0 = arith.constant 0 : i32
    %c0_i32_1 = arith.constant 0 : i32
    return %arg0, %c0_i32, %c0_i32_0 : i32, i32, i32
  }
}

module attributes {stable_mosaic.version = 11 : i64} {
  func.func @kernel(%arg0: i32, %arg1: memref<512x128xbf16, #tpu.memory_space<vmem>>, %arg2: memref<1x128xf32, #tpu.memory_space<vmem>>, %arg3: memref<1x128xf32, #tpu.memory_space<vmem>>, %arg4: memref<128x128xbf16, #tpu.memory_space<vmem>>, %arg5: memref<512x128xbf16, #tpu.memory_space<vmem>>, %arg6: memref<512x128xf32, #tpu.memory_space<vmem>>) attributes {dimension_semantics = [#tpu.dimension_semantics<parallel>], iteration_bounds = array<i64: 1>, scalar_prefetch = 0 : i64, scratch_operands = 0 : i64, tpu.core_type = #tpu.core_type<tc>, window_params = [{transform_indices = @transform_0, window_bounds = array<i64: 512, 128>}, {pipeline_mode = #tpu.pipeline_mode<synchronous>, transform_indices = @transform_1, window_bounds = array<i64: 1, 128>}, {pipeline_mode = #tpu.pipeline_mode<synchronous>, transform_indices = @transform_2, window_bounds = array<i64: 1, 128>}, {pipeline_mode = #tpu.pipeline_mode<synchronous>, transform_indices = @transform_3, window_bounds = array<i64: 128, 128>}, {transform_indices = @transform_4, window_bounds = array<i64: 512, 128>}, {transform_indices = @transform_5, window_bounds = array<i64: 512, 128>}]} {
    %c0 = arith.constant 0 : index
    %c0_0 = arith.constant 0 : index
    %0 = vector.load %arg1[%c0, %c0_0] : memref<512x128xbf16, #tpu.memory_space<vmem>>, vector<512x128xbf16>
    %1 = arith.extf %0 : vector<512x128xbf16> to vector<512x128xf32>
    %c0_1 = arith.constant 0 : index
    %c0_2 = arith.constant 0 : index
    %2 = vector.load %arg2[%c0_1, %c0_2] : memref<1x128xf32, #tpu.memory_space<vmem>>, vector<1x128xf32>
    %3 = vector.broadcast %2 : vector<1x128xf32> to vector<512x128xf32>
    %4 = arith.mulf %1, %3 : vector<512x128xf32>
    %c0_3 = arith.constant 0 : index
    %c0_4 = arith.constant 0 : index
    %5 = vector.load %arg3[%c0_3, %c0_4] : memref<1x128xf32, #tpu.memory_space<vmem>>, vector<1x128xf32>
    %6 = vector.broadcast %5 : vector<1x128xf32> to vector<512x128xf32>
    %7 = arith.addf %4, %6 : vector<512x128xf32>
    %cst = arith.constant 0.000000e+00 : f32
    %8 = vector.broadcast %cst : f32 to vector<512x128xf32>
    %9 = arith.maximumf %7, %8 : vector<512x128xf32>
    %10 = arith.truncf %9 : vector<512x128xf32> to vector<512x128xbf16>
    %c0_5 = arith.constant 0 : index
    %c0_6 = arith.constant 0 : index
    %11 = vector.load %arg4[%c0_5, %c0_6] : memref<128x128xbf16, #tpu.memory_space<vmem>>, vector<128x128xbf16>
    %cst_7 = arith.constant dense<0.000000e+00> : vector<512x128xf32>
    %12 = tpu.matmul %10, %11, %cst_7 {dimension_numbers = #tpu.dot_dimension_numbers<[1], [0], [0], [1], [0, 0, 1, 1], [], []>} : vector<512x128xbf16>, vector<128x128xbf16>, vector<512x128xf32> -> vector<512x128xf32>
    %c0_8 = arith.constant 0 : index
    %c0_9 = arith.constant 0 : index
    %13 = vector.load %arg5[%c0_8, %c0_9] : memref<512x128xbf16, #tpu.memory_space<vmem>>, vector<512x128xbf16>
    %14 = arith.extf %13 : vector<512x128xbf16> to vector<512x128xf32>
    %15 = arith.addf %12, %14 : vector<512x128xf32>
    %c0_10 = arith.constant 0 : index
    %c0_11 = arith.constant 0 : index
    %16 = vector.load %arg6[%c0_10, %c0_11] : memref<512x128xf32, #tpu.memory_space<vmem>>, vector<512x128xf32>
    tpu.vector_store %arg6[%c0_10, %c0_11], %15 {strides = array<i32>} : memref<512x128xf32, #tpu.memory_space<vmem>>, vector<512x128xf32>,
    return
  }
  func.func @transform_0(%arg0: i32) -> (i32, i32) {
    %c0_i32 = arith.constant 0 : i32
    %c0_i32_0 = arith.constant 0 : i32
    return %arg0, %c0_i32 : i32, i32
  }
  func.func @transform_1(%arg0: i32) -> (i32, i32) {
    %c0_i32 = arith.constant 0 : i32
    %c0_i32_0 = arith.constant 0 : i32
    %c0_i32_1 = arith.constant 0 : i32
    return %c0_i32, %c0_i32_0 : i32, i32
  }
  func.func @transform_2(%arg0: i32) -> (i32, i32) {
    %c0_i32 = arith.constant 0 : i32
    %c0_i32_0 = arith.constant 0 : i32
    %c0_i32_1 = arith.constant 0 : i32
    return %c0_i32, %c0_i32_0 : i32, i32
  }
  func.func @transform_3(%arg0: i32) -> (i32, i32) {
    %c0_i32 = arith.constant 0 : i32
    %c0_i32_0 = arith.constant 0 : i32
    %c0_i32_1 = arith.constant 0 : i32
    return %c0_i32, %c0_i32_0 : i32, i32
  }
  func.func @transform_4(%arg0: i32) -> (i32, i32) {
    %c0_i32 = arith.constant 0 : i32
    %c0_i32_0 = arith.constant 0 : i32
    return %arg0, %c0_i32 : i32, i32
  }
  func.func @transform_5(%arg0: i32) -> (i32, i32) {
    %c0_i32 = arith.constant 0 : i32
    %c0_i32_0 = arith.constant 0 : i32
    return %arg0, %c0_i32 : i32, i32
  }
}

</mosaic_0001>

<bundles_post_ra>
// kernel: residual_block_forward.4
= control target key start
LH: loop header
LB: loop body
LE: loop exit
PB: predicated region body
PF: predicated region fallthrough
CT: control target
= control target key end

     0   :  { %vm338_vm0 = vcmask 1040384   ;;  %s613_s0 = inlined_call_operand.vmem [shape: bf16[512,128], index: 0, kind: input, shape index: {}]   ;;  %s614_s1 = inlined_call_operand.vmem [shape: f32[1,2,128], index: 1, kind: output, shape index: {}]  }
   0x1   :  { %v346_v0 = vld [vmem:[%s613_s0] sm:$0xff]   ;;  %v473_v1 = vld [vmem:[%s613_s0 + $0x8] sm:$0xff]   ;;  %v474_v6 = vld [vmem:[%s613_s0 + $0x10] sm:$0xff]  }
   0x2   :  { %v347_v2 = vunpack.c.l.bf16 %v346_v0  ;;  %v348_v3 = vunpack.c.h.bf16 %v346_v0  ;;  %v351_v4 = vunpack.c.l.bf16 %v473_v1  ;;  %v352_v7 = vunpack.c.h.bf16 %v473_v1  ;;  %v475_v11 = vld [vmem:[%s613_s0 + $0x18] sm:$0xff]   ;;  %v476_v16 = vld [vmem:[%s613_s0 + $0x20] sm:$0xff]   ;;  %v477_v21 = vld [vmem:[%s613_s0 + $0x28] sm:$0xff]  }
   0x3   :  { %v355_v9 = vunpack.c.l.bf16 %v474_v6  ;;  %v356_v12 = vunpack.c.h.bf16 %v474_v6  ;;  %v359_v14 = vunpack.c.l.bf16 %v475_v11  ;;  %v360_v17 = vunpack.c.h.bf16 %v475_v11  ;;  %v478_v29 = vld [vmem:[%s613_s0 + $0x30] sm:$0xff]   ;;  %v479_v38 = vld [vmem:[%s613_s0 + $0x38] sm:$0xff]   ;;  %v480_v47 = vld [vmem:[%s613_s0 + $0x40] sm:$0xff]  }
   0x4   :  { %v136_v5 = vadd.f32 %v348_v3, %v347_v2  ;;  %v363_v19 = vunpack.c.l.bf16 %v476_v16  ;;  %v364_v22 = vunpack.c.h.bf16 %v476_v16  ;;  %v205_v24 = vmul.f32 %v347_v2, %v347_v2  ;;  %v481_v56 = vld [vmem:[%s613_s0 + $0x48] sm:$0xff]   ;;  %v482_v1 = vld [vmem:[%s613_s0 + $0x50] sm:$0xff]  }
   0x5   :  { %v206_v25 = vmul.f32 %v348_v3, %v348_v3  ;;  %v367_v26 = vunpack.c.l.bf16 %v477_v21  ;;  %v207_v28 = vmul.f32 %v351_v4, %v351_v4  ;;  %v368_v30 = vunpack.c.h.bf16 %v477_v21 }
   0x6   :  { %v137_v8 = vadd.f32 %v351_v4, %v136_v5  ;;  %v208_v32 = vmul.f32 %v352_v7, %v352_v7  ;;  %v371_v34 = vunpack.c.l.bf16 %v478_v29  ;;  %v209_v36 = vmul.f32 %v355_v9, %v355_v9 }
   0x7   :  { %v269_v33 = vadd.f32 %v206_v25, %v205_v24  ;;  %v372_v39 = vunpack.c.h.bf16 %v478_v29  ;;  %v210_v41 = vmul.f32 %v356_v12, %v356_v12  ;;  %v375_v43 = vunpack.c.l.bf16 %v479_v38 }
   0x8   :  { %v138_v10 = vadd.f32 %v352_v7, %v137_v8  ;;  %v211_v45 = vmul.f32 %v359_v14, %v359_v14  ;;  %v376_v48 = vunpack.c.h.bf16 %v479_v38  ;;  %v212_v50 = vmul.f32 %v360_v17, %v360_v17 }
   0x9   :  { %v270_v37 = vadd.f32 %v269_v33, %v207_v28  ;;  %v379_v52 = vunpack.c.l.bf16 %v480_v47  ;;  %v213_v54 = vmul.f32 %v363_v19, %v363_v19  ;;  %v380_v57 = vunpack.c.h.bf16 %v480_v47  ;;  %v485_v28 = vld [vmem:[%s613_s0 + $0x68] sm:$0xff]  }
   0xa   :  { %v139_v13 = vadd.f32 %v355_v9, %v138_v10  ;;  %v214_v59 = vmul.f32 %v364_v22, %v364_v22  ;;  %v383_v61 = vunpack.c.l.bf16 %v481_v56  ;;  %v215_v63 = vmul.f32 %v367_v26, %v367_v26  ;;  %v483_v10 = vld [vmem:[%s613_s0 + $0x58] sm:$0xff]  }
   0xb   :  { %v271_v42 = vadd.f32 %v270_v37, %v208_v32  ;;  %v384_v2 = vunpack.c.h.bf16 %v481_v56  ;;  %v216_v4 = vmul.f32 %v368_v30, %v368_v30  ;;  %v387_v6 = vunpack.c.l.bf16 %v482_v1  ;;  %v486_v37 = vld [vmem:[%s613_s0 + $0x70] sm:$0xff]  }
   0xc   :  { %v140_v15 = vadd.f32 %v356_v12, %v139_v13  ;;  %v217_v8 = vmul.f32 %v371_v34, %v371_v34  ;;  %v388_v11 = vunpack.c.h.bf16 %v482_v1  ;;  %v218_v13 = vmul.f32 %v372_v39, %v372_v39 }
   0xd   :  { %v272_v46 = vadd.f32 %v271_v42, %v209_v36  ;;  %v399_v33 = vunpack.c.l.bf16 %v485_v28  ;;  %v400_v38 = vunpack.c.h.bf16 %v485_v28  ;;  %v403_v42 = vunpack.c.l.bf16 %v486_v37 }
   0xe   :  { %v141_v18 = vadd.f32 %v359_v14, %v140_v15  ;;  %v391_v15 = vunpack.c.l.bf16 %v483_v10  ;;  %v404_v47 = vunpack.c.h.bf16 %v486_v37 }
   0xf   :  { %v273_v51 = vadd.f32 %v272_v46, %v210_v41  ;;  %v487_v46 = vld [vmem:[%s613_s0 + $0x78] sm:$0xff]  }
  0x10   :  { %v142_v20 = vadd.f32 %v360_v17, %v141_v18  ;;  %v219_v17 = vmul.f32 %v375_v43, %v375_v43  ;;  %v408_v56 = vunpack.c.h.bf16 %v487_v46 }
  0x11   :  { %v274_v55 = vadd.f32 %v273_v51, %v211_v45  ;;  %v407_v51 = vunpack.c.l.bf16 %v487_v46 }
  0x12   :  { %v143_v23 = vadd.f32 %v363_v19, %v142_v20  ;;  %v484_v19 = vld [vmem:[%s613_s0 + $0x60] sm:$0xff]   ;;  %v392_v20 = vunpack.c.h.bf16 %v483_v10 }
  0x13   :  { %v275_v60 = vadd.f32 %v274_v55, %v212_v50  ;;  %v395_v24 = vunpack.c.l.bf16 %v484_v19  ;;  %v396_v29 = vunpack.c.h.bf16 %v484_v19  ;;  %v488_v55 = vld [vmem:[%s613_s0 + $0x80] sm:$0xff]  }
  0x14   :  { %v144_v27 = vadd.f32 %v364_v22, %v143_v23  ;;  %v220_v22 = vmul.f32 %v376_v48, %v376_v48  ;;  %v412_v1 = vunpack.c.h.bf16 %v488_v55 }
  0x15   :  { %v276_v0 = vadd.f32 %v275_v60, %v213_v54  ;;  %v411_v60 = vunpack.c.l.bf16 %v488_v55 }
  0x16   :  { %v145_v31 = vadd.f32 %v367_v26, %v144_v27  ;;  %v221_v26 = vmul.f32 %v379_v52, %v379_v52 }
  0x17   :  { %v277_v5 = vadd.f32 %v276_v0, %v214_v59  ;;  %v489_v0 = vld [vmem:[%s613_s0 + $0x88] sm:$0xff]  }
  0x18   :  { %v146_v35 = vadd.f32 %v368_v30, %v145_v31  ;;  %v222_v31 = vmul.f32 %v380_v57, %v380_v57  ;;  %v416_v10 = vunpack.c.h.bf16 %v489_v0 }
  0x19   :  { %v278_v9 = vadd.f32 %v277_v5, %v215_v63  ;;  %v415_v5 = vunpack.c.l.bf16 %v489_v0 }
  0x1a   :  { %v147_v40 = vadd.f32 %v371_v34, %v146_v35  ;;  %v223_v35 = vmul.f32 %v383_v61, %v383_v61 }
  0x1b   :  { %v279_v14 = vadd.f32 %v278_v9, %v216_v4  ;;  %v490_v9 = vld [vmem:[%s613_s0 + $0x90] sm:$0xff]  }
  0x1c   :  { %v148_v44 = vadd.f32 %v372_v39, %v147_v40  ;;  %v224_v40 = vmul.f32 %v384_v2, %v384_v2  ;;  %v420_v19 = vunpack.c.h.bf16 %v490_v9 }
  0x1d   :  { %v280_v18 = vadd.f32 %v279_v14, %v217_v8  ;;  %v419_v14 = vunpack.c.l.bf16 %v490_v9 }
  0x1e   :  { %v149_v49 = vadd.f32 %v375_v43, %v148_v44  ;;  %v225_v44 = vmul.f32 %v387_v6, %v387_v6 }
  0x1f   :  { %v281_v23 = vadd.f32 %v280_v18, %v218_v13  ;;  %v491_v18 = vld [vmem:[%s613_s0 + $0x98] sm:$0xff]  }
  0x20   :  { %v150_v53 = vadd.f32 %v376_v48, %v149_v49  ;;  %v226_v49 = vmul.f32 %v388_v11, %v388_v11  ;;  %v424_v28 = vunpack.c.h.bf16 %v491_v18 }
  0x21   :  { %v282_v27 = vadd.f32 %v281_v23, %v219_v17  ;;  %v423_v23 = vunpack.c.l.bf16 %v491_v18 }
  0x22   :  { %v151_v58 = vadd.f32 %v379_v52, %v150_v53  ;;  %v227_v53 = vmul.f32 %v391_v15, %v391_v15 }
  0x23   :  { %v283_v32 = vadd.f32 %v282_v27, %v220_v22  ;;  %v492_v27 = vld [vmem:[%s613_s0 + $0xa0] sm:$0xff]  }
  0x24   :  { %v152_v62 = vadd.f32 %v380_v57, %v151_v58  ;;  %v228_v58 = vmul.f32 %v392_v20, %v392_v20  ;;  %v428_v37 = vunpack.c.h.bf16 %v492_v27 }
  0x25   :  { %v284_v36 = vadd.f32 %v283_v32, %v221_v26  ;;  %v427_v32 = vunpack.c.l.bf16 %v492_v27 }
  0x26   :  { %v153_v3 = vadd.f32 %v383_v61, %v152_v62  ;;  %v229_v62 = vmul.f32 %v395_v24, %v395_v24 }
  0x27   :  { %v285_v41 = vadd.f32 %v284_v36, %v222_v31  ;;  %v493_v36 = vld [vmem:[%s613_s0 + $0xa8] sm:$0xff]  }
  0x28   :  { %v154_v7 = vadd.f32 %v384_v2, %v153_v3  ;;  %v230_v3 = vmul.f32 %v396_v29, %v396_v29  ;;  %v432_v46 = vunpack.c.h.bf16 %v493_v36 }
  0x29   :  { %v286_v45 = vadd.f32 %v285_v41, %v223_v35  ;;  %v431_v41 = vunpack.c.l.bf16 %v493_v36 }
  0x2a   :  { %v155_v12 = vadd.f32 %v387_v6, %v154_v7  ;;  %v231_v7 = vmul.f32 %v399_v33, %v399_v33 }
  0x2b   :  { %v287_v50 = vadd.f32 %v286_v45, %v224_v40  ;;  %v494_v45 = vld [vmem:[%s613_s0 + $0xb0] sm:$0xff]  }
  0x2c   :  { %v156_v16 = vadd.f32 %v388_v11, %v155_v12  ;;  %v232_v12 = vmul.f32 %v400_v38, %v400_v38  ;;  %v436_v55 = vunpack.c.h.bf16 %v494_v45 }
  0x2d   :  { %v288_v54 = vadd.f32 %v287_v50, %v225_v44  ;;  %v435_v50 = vunpack.c.l.bf16 %v494_v45 }
  0x2e   :  { %v157_v21 = vadd.f32 %v391_v15, %v156_v16  ;;  %v233_v16 = vmul.f32 %v403_v42, %v403_v42 }
  0x2f   :  { %v289_v59 = vadd.f32 %v288_v54, %v226_v49  ;;  %v495_v54 = vld [vmem:[%s613_s0 + $0xb8] sm:$0xff]  }
  0x30   :  { %v158_v25 = vadd.f32 %v392_v20, %v157_v21  ;;  %v234_v21 = vmul.f32 %v404_v47, %v404_v47  ;;  %v440_v0 = vunpack.c.h.bf16 %v495_v54 }
  0x31   :  { %v290_v63 = vadd.f32 %v289_v59, %v227_v53  ;;  %v439_v59 = vunpack.c.l.bf16 %v495_v54 }
  0x32   :  { %v159_v30 = vadd.f32 %v395_v24, %v158_v25  ;;  %v235_v25 = vmul.f32 %v407_v51, %v407_v51 }
  0x33   :  { %v291_v4 = vadd.f32 %v290_v63, %v228_v58  ;;  %v496_v63 = vld [vmem:[%s613_s0 + $0xc0] sm:$0xff]  }
  0x34   :  { %v160_v34 = vadd.f32 %v396_v29, %v159_v30  ;;  %v236_v30 = vmul.f32 %v408_v56, %v408_v56  ;;  %v444_v9 = vunpack.c.h.bf16 %v496_v63 }
  0x35   :  { %v292_v8 = vadd.f32 %v291_v4, %v229_v62  ;;  %v443_v4 = vunpack.c.l.bf16 %v496_v63 }
  0x36   :  { %v161_v39 = vadd.f32 %v399_v33, %v160_v34  ;;  %v237_v34 = vmul.f32 %v411_v60, %v411_v60 }
  0x37   :  { %v293_v13 = vadd.f32 %v292_v8, %v230_v3  ;;  %v497_v8 = vld [vmem:[%s613_s0 + $0xc8] sm:$0xff]  }
  0x38   :  { %v162_v43 = vadd.f32 %v400_v38, %v161_v39  ;;  %v238_v39 = vmul.f32 %v412_v1, %v412_v1  ;;  %v448_v18 = vunpack.c.h.bf16 %v497_v8 }
  0x39   :  { %v294_v17 = vadd.f32 %v293_v13, %v231_v7  ;;  %v447_v13 = vunpack.c.l.bf16 %v497_v8 }
  0x3a   :  { %v163_v48 = vadd.f32 %v403_v42, %v162_v43  ;;  %v239_v43 = vmul.f32 %v415_v5, %v415_v5 }
  0x3b   :  { %v295_v22 = vadd.f32 %v294_v17, %v232_v12  ;;  %v498_v17 = vld [vmem:[%s613_s0 + $0xd0] sm:$0xff]  }
  0x3c   :  { %v164_v52 = vadd.f32 %v404_v47, %v163_v48  ;;  %v240_v48 = vmul.f32 %v416_v10, %v416_v10  ;;  %v452_v27 = vunpack.c.h.bf16 %v498_v17 }
  0x3d   :  { %v296_v26 = vadd.f32 %v295_v22, %v233_v16  ;;  %v451_v22 = vunpack.c.l.bf16 %v498_v17 }
  0x3e   :  { %v165_v57 = vadd.f32 %v407_v51, %v164_v52  ;;  %v241_v52 = vmul.f32 %v419_v14, %v419_v14 }
  0x3f   :  { %v297_v31 = vadd.f32 %v296_v26, %v234_v21  ;;  %v499_v26 = vld [vmem:[%s613_s0 + $0xd8] sm:$0xff]  }
  0x40   :  { %v166_v61 = vadd.f32 %v408_v56, %v165_v57  ;;  %v242_v57 = vmul.f32 %v420_v19, %v420_v19  ;;  %v456_v36 = vunpack.c.h.bf16 %v499_v26 }
  0x41   :  { %v298_v35 = vadd.f32 %v297_v31, %v235_v25  ;;  %v455_v31 = vunpack.c.l.bf16 %v499_v26 }
  0x42   :  { %v167_v2 = vadd.f32 %v411_v60, %v166_v61  ;;  %v243_v61 = vmul.f32 %v423_v23, %v423_v23 }
  0x43   :  { %v299_v40 = vadd.f32 %v298_v35, %v236_v30  ;;  %v500_v35 = vld [vmem:[%s613_s0 + $0xe0] sm:$0xff]  }
  0x44   :  { %v168_v6 = vadd.f32 %v412_v1, %v167_v2  ;;  %v244_v2 = vmul.f32 %v424_v28, %v424_v28  ;;  %v460_v45 = vunpack.c.h.bf16 %v500_v35 }
  0x45   :  { %v300_v44 = vadd.f32 %v299_v40, %v237_v34  ;;  %v459_v40 = vunpack.c.l.bf16 %v500_v35 }
  0x46   :  { %v169_v11 = vadd.f32 %v415_v5, %v168_v6  ;;  %v245_v6 = vmul.f32 %v427_v32, %v427_v32 }
  0x47   :  { %v301_v49 = vadd.f32 %v300_v44, %v238_v39  ;;  %v501_v44 = vld [vmem:[%s613_s0 + $0xe8] sm:$0xff]  }
  0x48   :  { %v170_v15 = vadd.f32 %v416_v10, %v169_v11  ;;  %v246_v11 = vmul.f32 %v428_v37, %v428_v37  ;;  %v464_v54 = vunpack.c.h.bf16 %v501_v44 }
  0x49   :  { %v302_v53 = vadd.f32 %v301_v49, %v239_v43  ;;  %v463_v49 = vunpack.c.l.bf16 %v501_v44 }
  0x4a   :  { %v171_v20 = vadd.f32 %v419_v14, %v170_v15  ;;  %v247_v15 = vmul.f32 %v431_v41, %v431_v41 }
  0x4b   :  { %v303_v58 = vadd.f32 %v302_v53, %v240_v48  ;;  %v502_v53 = vld [vmem:[%s613_s0 + $0xf0] sm:$0xff]  }
  0x4c   :  { %v172_v24 = vadd.f32 %v420_v19, %v171_v20  ;;  %v248_v20 = vmul.f32 %v432_v46, %v432_v46 }
  0x4d   :  { %v304_v62 = vadd.f32 %v303_v58, %v241_v52  ;;  %v467_v58 = vunpack.c.l.bf16 %v502_v53 }
  0x4e   :  { %v173_v29 = vadd.f32 %v423_v23, %v172_v24  ;;  %v249_v24 = vmul.f32 %v435_v50, %v435_v50 }
  0x4f   :  { %v305_v3 = vadd.f32 %v304_v62, %v242_v57  ;;  %v468_v62 = vunpack.c.h.bf16 %v502_v53 }
  0x50   :  { %v174_v33 = vadd.f32 %v424_v28, %v173_v29  ;;  %v250_v29 = vmul.f32 %v436_v55, %v436_v55 }
  0x51   :  { %v306_v7 = vadd.f32 %v305_v3, %v243_v61 }
  0x52   :  { %v175_v38 = vadd.f32 %v427_v32, %v174_v33  ;;  %v251_v33 = vmul.f32 %v439_v59, %v439_v59 }
  0x53   :  { %v307_v12 = vadd.f32 %v306_v7, %v244_v2  ;;  %v503_v2 = vld [vmem:[%s613_s0 + $0xf8] sm:$0xff]   ;;  %v260_v7 = vmul.f32 %v456_v36, %v456_v36 }
  0x54   :  { %v176_v42 = vadd.f32 %v428_v37, %v175_v38  ;;  %v252_v38 = vmul.f32 %v440_v0, %v440_v0 }
  0x55   :  { %v308_v16 = vadd.f32 %v307_v12, %v245_v6  ;;  %v471_v6 = vunpack.c.l.bf16 %v503_v2  ;;  %v472_v12 = vunpack.c.h.bf16 %v503_v2 }
  0x56   :  { %v177_v47 = vadd.f32 %v431_v41, %v176_v42  ;;  %v253_v42 = vmul.f32 %v443_v4, %v443_v4 }
  0x57   :  { %v309_v21 = vadd.f32 %v308_v16, %v246_v11  ;;  %v263_v16 = vmul.f32 %v463_v49, %v463_v49  ;;  %v267_v26 = vmul.f32 %v471_v6, %v471_v6 }
  0x58   :  { %v178_v51 = vadd.f32 %v432_v46, %v177_v47  ;;  %v254_v47 = vmul.f32 %v444_v9, %v444_v9 }
  0x59   :  { %v310_v25 = vadd.f32 %v309_v21, %v247_v15  ;;  %v265_v21 = vmul.f32 %v467_v58, %v467_v58 }
  0x5a   :  { %v179_v56 = vadd.f32 %v435_v50, %v178_v51  ;;  %v255_v51 = vmul.f32 %v447_v13, %v447_v13 }
  0x5b   :  { %v311_v30 = vadd.f32 %v310_v25, %v248_v20 }
  0x5c   :  { %v180_v60 = vadd.f32 %v436_v55, %v179_v56  ;;  %v256_v56 = vmul.f32 %v448_v18, %v448_v18 }
  0x5d   :  { %v312_v34 = vadd.f32 %v311_v30, %v249_v24 }
  0x5e   :  { %v181_v1 = vadd.f32 %v439_v59, %v180_v60  ;;  %v257_v60 = vmul.f32 %v451_v22, %v451_v22 }
  0x5f   :  { %v313_v39 = vadd.f32 %v312_v34, %v250_v29 }
  0x60   :  { %v182_v5 = vadd.f32 %v440_v0, %v181_v1  ;;  %v258_v0 = vmul.f32 %v452_v27, %v452_v27 }
  0x61   :  { %v314_v43 = vadd.f32 %v313_v39, %v251_v33 }
  0x62   :  { %v183_v10 = vadd.f32 %v443_v4, %v182_v5  ;;  %v259_v4 = vmul.f32 %v455_v31, %v455_v31 }
  0x63   :  { %v315_v48 = vadd.f32 %v314_v43, %v252_v38 }
  0x64   :  { %v184_v14 = vadd.f32 %v444_v9, %v183_v10  ;;  %v261_v10 = vmul.f32 %v459_v40, %v459_v40 }
  0x65   :  { %v316_v52 = vadd.f32 %v315_v48, %v253_v42 }
  0x66   :  { %v185_v19 = vadd.f32 %v447_v13, %v184_v14  ;;  %v262_v13 = vmul.f32 %v460_v45, %v460_v45 }
  0x67   :  { %v317_v57 = vadd.f32 %v316_v52, %v254_v47 }
  0x68   :  { %v186_v23 = vadd.f32 %v448_v18, %v185_v19  ;;  %v264_v18 = vmul.f32 %v464_v54, %v464_v54 }
  0x69   :  { %v318_v61 = vadd.f32 %v317_v57, %v255_v51 }
  0x6a   :  { %v187_v28 = vadd.f32 %v451_v22, %v186_v23  ;;  %v266_v23 = vmul.f32 %v468_v62, %v468_v62 }
  0x6b   :  { %v319_v1 = vadd.f32 %v318_v61, %v256_v56 }
  0x6c   :  { %v188_v32 = vadd.f32 %v452_v27, %v187_v28  ;;  %v268_v28 = vmul.f32 %v472_v12, %v472_v12 }
  0x6d   :  { %v320_v5 = vadd.f32 %v319_v1, %v257_v60 }
  0x6e   :  { %v189_v37 = vadd.f32 %v455_v31, %v188_v32 }
  0x6f   :  { %v321_v8 = vadd.f32 %v320_v5, %v258_v0 }
  0x70   :  { %v190_v41 = vadd.f32 %v456_v36, %v189_v37 }
  0x71   :  { %v322_v11 = vadd.f32 %v321_v8, %v259_v4 }
  0x72   :  { %v191_v46 = vadd.f32 %v459_v40, %v190_v41 }
  0x73   :  { %v323_v14 = vadd.f32 %v322_v11, %v260_v7 }
  0x74   :  { %v192_v50 = vadd.f32 %v460_v45, %v191_v46 }
  0x75   :  { %v324_v17 = vadd.f32 %v323_v14, %v261_v10 }
  0x76   :  { %v193_v55 = vadd.f32 %v463_v49, %v192_v50 }
  0x77   :  { %v325_v19 = vadd.f32 %v324_v17, %v262_v13 }
  0x78   :  { %v194_v59 = vadd.f32 %v464_v54, %v193_v55 }
  0x79   :  { %v326_v22 = vadd.f32 %v325_v19, %v263_v16 }
  0x7a   :  { %v195_v63 = vadd.f32 %v467_v58, %v194_v59 }
  0x7b   :  { %v327_v24 = vadd.f32 %v326_v22, %v264_v18 }
  0x7c   :  { %v196_v3 = vadd.f32 %v468_v62, %v195_v63 }
  0x7d   :  { %v328_v27 = vadd.f32 %v327_v24, %v265_v21 }
  0x7e   :  { %v197_v9 = vadd.f32 %v471_v6, %v196_v3 }
  0x7f   :  { %v329_v29 = vadd.f32 %v328_v27, %v266_v23 }
  0x80   :  { %v198_v15 = vadd.f32 %v472_v12, %v197_v9 }
  0x81   :  { %v330_v31 = vadd.f32 %v329_v29, %v267_v26 }
  0x82   :  { %v199_v20 = vrot.slane %v198_v15, 4 }
  0x83   :  { %v331_v32 = vadd.f32 %v330_v31, %v268_v28 }
  0x84   :  { %v200_v25 = vadd.f32 %v199_v20, %v198_v15 }
  0x85   :  { %v332_v34 = vrot.slane %v331_v32, 4 }
  0x86   :  { %v201_v30 = vrot.slane %v200_v25, 2 }
  0x87   :  { %v333_v35 = vadd.f32 %v332_v34, %v331_v32 }
  0x88   :  { %v202_v33 = vadd.f32 %v201_v30, %v200_v25 }
  0x89   :  { %v334_v37 = vrot.slane %v333_v35, 2 }
  0x8a   :  { %v203_v36 = vrot.slane %v202_v33, 1 }
  0x8b   :  { %v335_v38 = vadd.f32 %v334_v37, %v333_v35 }
  0x8c   :  { %v204_v39 = vadd.f32 %v203_v36, %v202_v33 }
  0x8d   :  { %v336_v40 = vrot.slane %v335_v38, 1 }
  0x8f   :  { %v337_v41 = vadd.f32 %v336_v40, %v335_v38 }
  0x91   :  { %v339_v42 = vsel %vm338_vm0, %v204_v39, %v337_v41 }
  0x92   :  { %340 = vst [vmem:[%s614_s1] sm:$0x3] %v339_v42 }

// kernel: residual_block_forward.7
= control target key start
LH: loop header
LB: loop body
LE: loop exit
PB: predicated region body
PF: predicated region fallthrough
CT: control target
= control target key end

     0   :  { %s1993_s3 = inlined_call_operand.vmem [shape: bf16[128,128], index: 3, kind: input, shape index: {}]   ;;  %s1994_s0 = inlined_call_operand.vmem [shape: bf16[512,128], index: 0, kind: input, shape index: {}]   ;;  %s1995_s1 = inlined_call_operand.vmem [shape: f32[1,128], index: 1, kind: input, shape index: {}]   ;;  %s1996_s2 = inlined_call_operand.vmem [shape: f32[1,128], index: 2, kind: input, shape index: {}]   ;;  %s1997_s4 = inlined_call_operand.vmem [shape: bf16[512,128], index: 4, kind: input, shape index: {}]   ;;  %s1998_s5 = inlined_call_operand.vmem [shape: f32[512,128], index: 5, kind: output, shape index: {}]  }
   0x1   :  { %v1400_v0 = vld [vmem:[%s1993_s3] sm:$0xff]   ;;  %v1401_v1 = vld [vmem:[%s1993_s3 + $0x8] sm:$0xff]   ;;  %v1402_v2 = vld [vmem:[%s1993_s3 + $0x10] sm:$0xff]  }
   0x2   :  { %1304 = vmatprep.subr.bf16.mxu0 %v1400_v0  ;;  %1384 = vmatprep.subr.bf16.mxu1 %v1400_v0  ;;  %v1403_v3 = vld [vmem:[%s1993_s3 + $0x18] sm:$0xff]   ;;  %v947_v4 = vld [vmem:[%s1994_s0] sm:$0xff]   ;;  %v1202_v9 = vld [vmem:[%s1994_s0 + $0x8] sm:$0xff]  }
   0x3   :  { %1305 = vmatpush3.bf16.msra.mxu0 %v1400_v0  ;;  %1392 = vmatpush3.bf16.msra.mxu1 %v1400_v0  ;;  %v1456_v5 = vld [vmem:[%s1995_s1] ss:$0 sm:$0xff]  ;;  %v948_v6 = vunpack.c.l.bf16 %v947_v4  ;;  %v949_v7 = vunpack.c.h.bf16 %v947_v4  ;;  %v1218_v10 = vld [vmem:[%s1994_s0 + $0x88] sm:$0xff]   ;;  %v952_v14 = vunpack.c.l.bf16 %v1202_v9  ;;  %v953_v15 = vunpack.c.h.bf16 %v1202_v9  ;;  %v1203_v16 = vld [vmem:[%s1994_s0 + $0x10] sm:$0xff]  }
   0x4   :  { %1306 = vmatprep.subr.bf16.mxu0 %v1401_v1  ;;  %1385 = vmatprep.subr.bf16.mxu1 %v1401_v1  ;;  %v1217_v8 = vld [vmem:[%s1994_s0 + $0x80] sm:$0xff]   ;;  %v1016_v19 = vunpack.c.l.bf16 %v1218_v10  ;;  %v1017_v20 = vunpack.c.h.bf16 %v1218_v10  ;;  %v956_v25 = vunpack.c.l.bf16 %v1203_v16  ;;  %v1219_v38 = vld [vmem:[%s1994_s0 + $0x90] sm:$0xff]   ;;  %v1405_v39 = vld [vmem:[%s1993_s3 + $0x28] sm:$0xff]   ;;  %v957_v48 = vunpack.c.h.bf16 %v1203_v16 }
   0x5   :  { %v1470_v11 = vld [vmem:[%s1996_s2] ss:$0 sm:$0xff]  ;;  %v1012_v12 = vunpack.c.l.bf16 %v1217_v8  ;;  %v1013_v13 = vunpack.c.h.bf16 %v1217_v8  ;;  %v156_v17 = vmul.f32 %v948_v6, %v1456_v5  ;;  %v157_v18 = vmul.f32 %v949_v7, %v1456_v5  ;;  %v1204_v44 = vld [vmem:[%s1994_s0 + $0x18] sm:$0xff]   ;;  %v1406_v58 = vld [vmem:[%s1993_s3 + $0x30] sm:$0xff]  }
   0x6   :  { %v1404_v21 = vld [vmem:[%s1993_s3 + $0x20] sm:$0xff]   ;;  %v158_v24 = vmul.f32 %v952_v14, %v1456_v5  ;;  %v159_v28 = vmul.f32 %v953_v15, %v1456_v5  ;;  %v190_v29 = vmul.f32 %v1016_v19, %v1456_v5  ;;  %v191_v33 = vmul.f32 %v1017_v20, %v1456_v5  ;;  %v1220_v53 = vld [vmem:[%s1994_s0 + $0x98] sm:$0xff]  }
   0x7   :  { %1307 = vmatpush3.bf16.msra.mxu0 %v1401_v1  ;;  %1393 = vmatpush3.bf16.msra.mxu1 %v1401_v1  ;;  %v188_v22 = vmul.f32 %v1012_v12, %v1456_v5  ;;  %v189_v23 = vmul.f32 %v1013_v13, %v1456_v5  ;;  %v227_v26 = vadd.f32 %v1470_v11, %v156_v17  ;;  %v1020_v52 = vunpack.c.l.bf16 %v1219_v38  ;;  %v1407_v14 = vld [vmem:[%s1993_s3 + $0x38] sm:$0xff]   ;;  %v1221_v19 = vld [vmem:[%s1994_s0 + $0xa0] sm:$0xff]  }
   0x8   :  { %1308 = vmatprep.subr.bf16.mxu0 %v1402_v2  ;;  %1386 = vmatprep.subr.bf16.mxu1 %v1402_v2  ;;  %v228_v27 = vadd.f32 %v1470_v11, %v157_v18  ;;  %v229_v32 = vadd.f32 %v1470_v11, %v158_v24  ;;  %v230_v36 = vadd.f32 %v1470_v11, %v159_v28  ;;  %v1021_v56 = vunpack.c.h.bf16 %v1219_v38  ;;  %v1206_v28 = vld [vmem:[%s1994_s0 + $0x28] sm:$0xff]  }
   0x9   :  { %v259_v30 = vadd.f32 %v1470_v11, %v188_v22  ;;  %v260_v31 = vadd.f32 %v1470_v11, %v189_v23  ;;  %v291_v34 = vmax.f32 %v227_v26, 0.0  ;;  %v261_v37 = vadd.f32 %v1470_v11, %v190_v29 }
   0xa   :  { %v292_v35 = vmax.f32 %v228_v27, 0.0  ;;  %v293_v42 = vmax.f32 %v229_v32, 0.0  ;;  %v262_v43 = vadd.f32 %v1470_v11, %v191_v33  ;;  %v294_v46 = vmax.f32 %v230_v36, 0.0  ;;  %v1222_v33 = vld [vmem:[%s1994_s0 + $0xa8] sm:$0xff]  }
   0xb   :  { %1309 = vmatpush3.bf16.msra.mxu0 %v1402_v2  ;;  %1394 = vmatpush3.bf16.msra.mxu1 %v1402_v2  ;;  %v323_v40 = vmax.f32 %v259_v30, 0.0  ;;  %v324_v41 = vmax.f32 %v260_v31, 0.0  ;;  %v325_v47 = vmax.f32 %v261_v37, 0.0  ;;  %v160_v51 = vmul.f32 %v956_v25, %v1456_v5 }
   0xc   :  { %1310 = vmatprep.subr.bf16.mxu0 %v1403_v3  ;;  %1387 = vmatprep.subr.bf16.mxu1 %v1403_v3  ;;  %v355_v45 = vpack.c.bf16 %v292_v35, %v291_v34  ;;  %v326_v50 = vmax.f32 %v262_v43, 0.0  ;;  %v1507_v54 = vpack.c.bf16 %v294_v46, %v293_v42  ;;  %v161_v55 = vmul.f32 %v957_v48, %v1456_v5  ;;  %v1207_v42 = vld [vmem:[%s1994_s0 + $0x30] sm:$0xff]  }
   0xd   :  { %v371_v49 = vpack.c.bf16 %v324_v41, %v323_v40  ;;  %v960_v57 = vunpack.c.l.bf16 %v1204_v44  ;;  %v231_v60 = vadd.f32 %v1470_v11, %v160_v51  ;;  %v192_v61 = vmul.f32 %v1020_v52, %v1456_v5 }
   0xe   :  { %v1513_v59 = vpack.c.bf16 %v326_v50, %v325_v47  ;;  %v961_v62 = vunpack.c.h.bf16 %v1204_v44  ;;  %1320 = vmatprep.mubr.bf16.mxu0 %v355_v45  ;;  %v232_v63 = vadd.f32 %v1470_v11, %v161_v55  ;;  %v193_v0 = vmul.f32 %v1021_v56, %v1456_v5 }
   0xf   :  { %1311 = vmatpush3.bf16.msra.mxu0 %v1403_v3  ;;  %1395 = vmatpush3.bf16.msra.mxu1 %v1403_v3  ;;  %v162_v1 = vmul.f32 %v960_v57, %v1456_v5  ;;  %v1024_v2 = vunpack.c.l.bf16 %v1220_v53  ;;  %v1205_v3 = vld [vmem:[%s1994_s0 + $0x20] sm:$0xff]   ;;  %v295_v4 = vmax.f32 %v231_v60, 0.0  ;;  %v263_v6 = vadd.f32 %v1470_v11, %v192_v61  ;;  %v1223_v61 = vld [vmem:[%s1994_s0 + $0xb0] sm:$0xff]  }
  0x10   :  { %1312 = vmatprep.subr.bf16.mxu0 %v1404_v21  ;;  %1388 = vmatprep.subr.bf16.mxu1 %v1404_v21  ;;  %v163_v7 = vmul.f32 %v961_v62, %v1456_v5  ;;  %v1025_v8 = vunpack.c.h.bf16 %v1220_v53  ;;  %v296_v9 = vmax.f32 %v232_v63, 0.0  ;;  %v264_v10 = vadd.f32 %v1470_v11, %v193_v0 }
  0x11   :  { %1352 = vmatprep.mubr.bf16.mxu1 %v371_v49  ;;  %v233_v12 = vadd.f32 %v1470_v11, %v162_v1  ;;  %v194_v13 = vmul.f32 %v1024_v2, %v1456_v5  ;;  %v327_v15 = vmax.f32 %v263_v6, 0.0  ;;  %v964_v18 = vunpack.c.l.bf16 %v1205_v3  ;;  %v1208_v2 = vld [vmem:[%s1994_s0 + $0x38] sm:$0xff]  }
  0x12   :  { %v234_v16 = vadd.f32 %v1470_v11, %v163_v7  ;;  %v195_v17 = vmul.f32 %v1025_v8, %v1456_v5  ;;  %v357_v20 = vpack.c.bf16 %v296_v9, %v295_v4  ;;  %v965_v26 = vunpack.c.h.bf16 %v1205_v3 }
  0x13   :  { %1313 = vmatpush3.bf16.msra.mxu0 %v1404_v21  ;;  %1396 = vmatpush3.bf16.msra.mxu1 %v1404_v21  ;;  %v328_v21 = vmax.f32 %v264_v10, 0.0  ;;  %v297_v22 = vmax.f32 %v233_v12, 0.0  ;;  %v265_v23 = vadd.f32 %v1470_v11, %v194_v13  ;;  %v164_v27 = vmul.f32 %v964_v18, %v1456_v5 }
  0x14   :  { %1314 = vmatprep.subr.bf16.mxu0 %v1405_v39  ;;  %1389 = vmatprep.subr.bf16.mxu1 %v1405_v39  ;;  %v298_v24 = vmax.f32 %v234_v16, 0.0  ;;  %v266_v25 = vadd.f32 %v1470_v11, %v195_v17  ;;  %v1028_v31 = vunpack.c.l.bf16 %v1221_v19  ;;  %v1029_v32 = vunpack.c.h.bf16 %v1221_v19 }
  0x15   :  { %v373_v29 = vpack.c.bf16 %v328_v21, %v327_v15  ;;  %v329_v30 = vmax.f32 %v265_v23, 0.0  ;;  %v165_v36 = vmul.f32 %v965_v26, %v1456_v5  ;;  %v235_v37 = vadd.f32 %v1470_v11, %v164_v27  ;;  %v1224_v15 = vld [vmem:[%s1994_s0 + $0xb8] sm:$0xff]  }
  0x16   :  { %v1545_v34 = vpack.c.bf16 %v298_v24, %v297_v22  ;;  %v330_v35 = vmax.f32 %v266_v25, 0.0  ;;  %v196_v38 = vmul.f32 %v1028_v31, %v1456_v5  ;;  %v968_v40 = vunpack.c.l.bf16 %v1206_v28 }
  0x17   :  { %1315 = vmatpush3.bf16.msra.mxu0 %v1405_v39  ;;  %1397 = vmatpush3.bf16.msra.mxu1 %v1405_v39  ;;  %v197_v39 = vmul.f32 %v1029_v32, %v1456_v5  ;;  %v969_v41 = vunpack.c.h.bf16 %v1206_v28  ;;  %v236_v44 = vadd.f32 %v1470_v11, %v165_v36  ;;  %v299_v45 = vmax.f32 %v235_v37, 0.0 }
  0x18   :  { %1316 = vmatprep.subr.bf16.mxu0 %v1406_v58  ;;  %1390 = vmatprep.subr.bf16.mxu1 %v1406_v58  ;;  %v374_v43 = vpack.c.bf16 %v330_v35, %v329_v30  ;;  %v1032_v46 = vunpack.c.l.bf16 %v1222_v33  ;;  %v267_v47 = vadd.f32 %v1470_v11, %v196_v38  ;;  %v166_v49 = vmul.f32 %v968_v40, %v1456_v5 }
  0x19   :  { %v268_v48 = vadd.f32 %v1470_v11, %v197_v39  ;;  %v1033_v50 = vunpack.c.h.bf16 %v1222_v33  ;;  %v300_v51 = vmax.f32 %v236_v44, 0.0  ;;  %v167_v52 = vmul.f32 %v969_v41, %v1456_v5  ;;  %v1225_v33 = vld [vmem:[%s1994_s0 + $0xc0] sm:$0xff]  }
  0x1a   :  { %v198_v53 = vmul.f32 %v1032_v46, %v1456_v5  ;;  %v972_v55 = vunpack.c.l.bf16 %v1207_v42  ;;  %v331_v56 = vmax.f32 %v267_v47, 0.0  ;;  %v973_v1 = vunpack.c.h.bf16 %v1207_v42 }
  0x1b   :  { %1317 = vmatpush3.bf16.msra.mxu0 %v1406_v58  ;;  %1398 = vmatpush3.bf16.msra.mxu1 %v1406_v58  ;;  %v332_v57 = vmax.f32 %v268_v48, 0.0  ;;  %v237_v58 = vadd.f32 %v1470_v11, %v166_v49  ;;  %v199_v60 = vmul.f32 %v1033_v50, %v1456_v5  ;;  %v359_v62 = vpack.c.bf16 %v300_v51, %v299_v45  ;;  %v1226_v51 = vld [vmem:[%s1994_s0 + $0xc8] sm:$0xff]  }
  0x1c   :  { %1318 = vmatprep.subr.bf16.mxu0 %v1407_v14  ;;  %1391 = vmatprep.subr.bf16.mxu1 %v1407_v14  ;;  %v238_v63 = vadd.f32 %v1470_v11, %v167_v52  ;;  %v269_v0 = vadd.f32 %v1470_v11, %v198_v53  ;;  %v169_v8 = vmul.f32 %v973_v1, %v1456_v5  ;;  %v1036_v9 = vunpack.c.l.bf16 %v1223_v61 }
  0x1d   :  { %v375_v3 = vpack.c.bf16 %v332_v57, %v331_v56  ;;  %v301_v4 = vmax.f32 %v237_v58, 0.0  ;;  %v270_v6 = vadd.f32 %v1470_v11, %v199_v60  ;;  %v1037_v13 = vunpack.c.h.bf16 %v1223_v61 }
  0x1e   :  { %v302_v7 = vmax.f32 %v238_v63, 0.0  ;;  %v240_v17 = vadd.f32 %v1470_v11, %v169_v8  ;;  %v200_v18 = vmul.f32 %v1036_v9, %v1456_v5  ;;  %v977_v19 = vunpack.c.h.bf16 %v1208_v2 }
  0x1f   :  { %1319 = vmatpush3.bf16.msra.mxu0 %v1407_v14  ;;  %1399 = vmatpush3.bf16.msra.mxu1 %v1407_v14  ;;  %v334_v10 = vmax.f32 %v270_v6, 0.0  ;;  %v976_v14 = vunpack.c.l.bf16 %v1208_v2  ;;  %v201_v23 = vmul.f32 %v1037_v13, %v1456_v5  ;;  %v1040_v28 = vunpack.c.l.bf16 %v1224_v15  ;;  %v1211_v2 = vld [vmem:[%s1994_s0 + $0x50] sm:$0xff]  }
  0x20   :  { %v360_v16 = vpack.c.bf16 %v302_v7, %v301_v4  ;;  %v304_v25 = vmax.f32 %v240_v17, 0.0  ;;  %v271_v26 = vadd.f32 %v1470_v11, %v200_v18  ;;  %v171_v27 = vmul.f32 %v977_v19, %v1456_v5 }
  0x21   :  { %v170_v24 = vmul.f32 %v976_v14, %v1456_v5  ;;  %v1041_v31 = vunpack.c.h.bf16 %v1224_v15  ;;  %v202_v38 = vmul.f32 %v1040_v28, %v1456_v5  ;;  %v1045_v50 = vunpack.c.h.bf16 %v1225_v33 }
  0x22   :  { %1321 = vmatmul.mubr.bf16.vlgmr.msra.gmra.mrb[0].mxu0 %v1507_v54  ;;  %1353 = vmatmul.mubr.bf16.vlgmr.msra.gmra.mrb[0].mxu1 %v1513_v59  ;;  %v168_v54 = vmul.f32 %v972_v55, %v1456_v5  ;;  %v333_v59 = vmax.f32 %v269_v0, 0.0  ;;  %v335_v36 = vmax.f32 %v271_v26, 0.0  ;;  %v242_v37 = vadd.f32 %v1470_v11, %v171_v27 }
  0x23   :  { %1324 = vmatprep.mubr.bf16.mxu0 %v357_v20  ;;  %1356 = vmatprep.mubr.bf16.mxu1 %v373_v29  ;;  %v1209_v20 = vld [vmem:[%s1994_s0 + $0x40] sm:$0xff]   ;;  %v272_v29 = vadd.f32 %v1470_v11, %v201_v23  ;;  %v241_v30 = vadd.f32 %v1470_v11, %v170_v24  ;;  %v203_v41 = vmul.f32 %v1041_v31, %v1456_v5  ;;  %v1048_v1 = vunpack.c.l.bf16 %v1226_v51 }
  0x24   :  { %v239_v12 = vadd.f32 %v1470_v11, %v168_v54  ;;  %v376_v21 = vpack.c.bf16 %v334_v10, %v333_v59  ;;  %v980_v32 = vunpack.c.l.bf16 %v1209_v20  ;;  %v981_v42 = vunpack.c.h.bf16 %v1209_v20  ;;  %v1227_v10 = vld [vmem:[%s1994_s0 + $0xd0] sm:$0xff]   ;;  %v1212_v20 = vld [vmem:[%s1994_s0 + $0x58] sm:$0xff]  }
  0x25   :  { %v336_v39 = vmax.f32 %v272_v29, 0.0  ;;  %v305_v40 = vmax.f32 %v241_v30, 0.0  ;;  %v306_v44 = vmax.f32 %v242_v37, 0.0  ;;  %v273_v45 = vadd.f32 %v1470_v11, %v202_v38 }
  0x26   :  { %v303_v22 = vmax.f32 %v239_v12, 0.0  ;;  %v172_v46 = vmul.f32 %v980_v32, %v1456_v5  ;;  %v274_v48 = vadd.f32 %v1470_v11, %v203_v41  ;;  %v173_v49 = vmul.f32 %v981_v42, %v1456_v5 }
  0x27   :  { %v377_v47 = vpack.c.bf16 %v336_v39, %v335_v36  ;;  %v362_v52 = vpack.c.bf16 %v306_v44, %v305_v40  ;;  %v337_v53 = vmax.f32 %v273_v45, 0.0  ;;  %v205_v60 = vmul.f32 %v1045_v50, %v1456_v5  ;;  %v1213_v44 = vld [vmem:[%s1994_s0 + $0x60] sm:$0xff]  }
  0x28   :  { %v361_v35 = vpack.c.bf16 %v304_v25, %v303_v22  ;;  %v243_v55 = vadd.f32 %v1470_v11, %v172_v46  ;;  %v338_v57 = vmax.f32 %v274_v48, 0.0  ;;  %v244_v58 = vadd.f32 %v1470_v11, %v173_v49 }
  0x29   :  { %v276_v6 = vadd.f32 %v1470_v11, %v205_v60  ;;  %v1049_v8 = vunpack.c.h.bf16 %v1226_v51  ;;  %v206_v9 = vmul.f32 %v1048_v1, %v1456_v5  ;;  %v988_v15 = vunpack.c.l.bf16 %v1211_v2  ;;  %v1229_v51 = vld [vmem:[%s1994_s0 + $0xe0] sm:$0xff]  }
  0x2a   :  { %1325 = vmatmul.mubr.bf16.gmra.mrb[4].mxu0 %v1545_v34  ;;  %1357 = vmatmul.mubr.bf16.gmra.mrb[4].mxu1 %v374_v43  ;;  %v1044_v34 = vunpack.c.l.bf16 %v1225_v33  ;;  %v1210_v43 = vld [vmem:[%s1994_s0 + $0x48] sm:$0xff]   ;;  %v308_v4 = vmax.f32 %v244_v58, 0.0  ;;  %v989_v19 = vunpack.c.h.bf16 %v1211_v2  ;;  %v1052_v24 = vunpack.c.l.bf16 %v1227_v10  ;;  %v1228_v33 = vld [vmem:[%s1994_s0 + $0xd8] sm:$0xff]  }
  0x2b   :  { %1328 = vmatprep.mubr.bf16.mxu0 %v359_v62  ;;  %1360 = vmatprep.mubr.bf16.mxu1 %v375_v3  ;;  %v984_v61 = vunpack.c.l.bf16 %v1210_v43  ;;  %v307_v62 = vmax.f32 %v243_v55, 0.0  ;;  %v985_v0 = vunpack.c.h.bf16 %v1210_v43  ;;  %v378_v3 = vpack.c.bf16 %v338_v57, %v337_v53  ;;  %v1214_v2 = vld [vmem:[%s1994_s0 + $0x68] sm:$0xff]  }
  0x2c   :  { %v204_v56 = vmul.f32 %v1044_v34, %v1456_v5  ;;  %v340_v13 = vmax.f32 %v276_v6, 0.0  ;;  %v207_v17 = vmul.f32 %v1049_v8, %v1456_v5  ;;  %v277_v18 = vadd.f32 %v1470_v11, %v206_v9 }
  0x2d   :  { %v174_v54 = vmul.f32 %v984_v61, %v1456_v5  ;;  %v175_v59 = vmul.f32 %v985_v0, %v1456_v5  ;;  %v363_v12 = vpack.c.bf16 %v308_v4, %v307_v62  ;;  %v176_v23 = vmul.f32 %v988_v15, %v1456_v5 }
  0x2e   :  { %v275_v63 = vadd.f32 %v1470_v11, %v204_v56  ;;  %v278_v26 = vadd.f32 %v1470_v11, %v207_v17  ;;  %v341_v27 = vmax.f32 %v277_v18, 0.0  ;;  %v177_v28 = vmul.f32 %v989_v19, %v1456_v5  ;;  %v1215_v19 = vld [vmem:[%s1994_s0 + $0x70] sm:$0xff]  }
  0x2f   :  { %v245_v14 = vadd.f32 %v1470_v11, %v174_v54  ;;  %v247_v29 = vadd.f32 %v1470_v11, %v176_v23  ;;  %v1053_v30 = vunpack.c.h.bf16 %v1227_v10  ;;  %v208_v31 = vmul.f32 %v1052_v24, %v1456_v5 }
  0x30   :  { %v339_v7 = vmax.f32 %v275_v63, 0.0  ;;  %v992_v32 = vunpack.c.l.bf16 %v1212_v20  ;;  %v342_v36 = vmax.f32 %v278_v26, 0.0  ;;  %v248_v37 = vadd.f32 %v1470_v11, %v177_v28  ;;  %v1231_v28 = vld [vmem:[%s1994_s0 + $0xf0] sm:$0xff]  }
  0x31   :  { %v309_v22 = vmax.f32 %v245_v14, 0.0  ;;  %v993_v38 = vunpack.c.h.bf16 %v1212_v20  ;;  %v311_v39 = vmax.f32 %v247_v29, 0.0  ;;  %v209_v40 = vmul.f32 %v1053_v30, %v1456_v5 }
  0x32   :  { %1329 = vmatmul.mubr.bf16.gmra.mrb[8].mxu0 %v360_v16  ;;  %1361 = vmatmul.mubr.bf16.gmra.mrb[8].mxu1 %v376_v21  ;;  %v246_v16 = vadd.f32 %v1470_v11, %v175_v59  ;;  %v379_v21 = vpack.c.bf16 %v340_v13, %v339_v7  ;;  %v279_v41 = vadd.f32 %v1470_v11, %v208_v31  ;;  %v312_v46 = vmax.f32 %v248_v37, 0.0  ;;  %v1230_v7 = vld [vmem:[%s1994_s0 + $0xe8] sm:$0xff]  }
  0x33   :  { %1332 = vmatprep.mubr.bf16.mxu0 %v361_v35  ;;  %1364 = vmatprep.mubr.bf16.mxu1 %v377_v47  ;;  %v178_v42 = vmul.f32 %v992_v32, %v1456_v5  ;;  %v380_v45 = vpack.c.bf16 %v342_v36, %v341_v27  ;;  %v179_v34 = vmul.f32 %v993_v38, %v1456_v5  ;;  %v1056_v43 = vunpack.c.l.bf16 %v1228_v33  ;;  %v1216_v38 = vld [vmem:[%s1994_s0 + $0x78] sm:$0xff]  }
  0x34   :  { %v310_v25 = vmax.f32 %v246_v16, 0.0  ;;  %v280_v47 = vadd.f32 %v1470_v11, %v209_v40  ;;  %v343_v48 = vmax.f32 %v279_v41, 0.0  ;;  %v1057_v50 = vunpack.c.h.bf16 %v1228_v33 }
  0x35   :  { %v249_v49 = vadd.f32 %v1470_v11, %v178_v42  ;;  %v365_v53 = vpack.c.bf16 %v312_v46, %v311_v39  ;;  %v210_v55 = vmul.f32 %v1056_v43, %v1456_v5  ;;  %v996_v56 = vunpack.c.l.bf16 %v1213_v44 }
  0x36   :  { %v364_v35 = vpack.c.bf16 %v310_v25, %v309_v22  ;;  %v344_v57 = vmax.f32 %v280_v47, 0.0  ;;  %v211_v60 = vmul.f32 %v1057_v50, %v1456_v5  ;;  %v997_v61 = vunpack.c.h.bf16 %v1213_v44  ;;  %v1232_v50 = vld [vmem:[%s1994_s0 + $0xf8] sm:$0xff]  }
  0x37   :  { %v313_v58 = vmax.f32 %v249_v49, 0.0  ;;  %v281_v63 = vadd.f32 %v1470_v11, %v210_v55  ;;  %v180_v0 = vmul.f32 %v996_v56, %v1456_v5  ;;  %v1060_v1 = vunpack.c.l.bf16 %v1229_v51 }
  0x38   :  { %v282_v4 = vadd.f32 %v1470_v11, %v211_v60  ;;  %v181_v6 = vmul.f32 %v997_v61, %v1456_v5  ;;  %v1061_v54 = vunpack.c.h.bf16 %v1229_v51  ;;  %v1000_v14 = vunpack.c.l.bf16 %v1214_v2 }
  0x39   :  { %v345_v59 = vmax.f32 %v281_v63, 0.0  ;;  %v251_v8 = vadd.f32 %v1470_v11, %v180_v0  ;;  %v212_v9 = vmul.f32 %v1060_v1, %v1456_v5  ;;  %v1001_v17 = vunpack.c.h.bf16 %v1214_v2 }
  0x3a   :  { %1333 = vmatmul.mubr.bf16.gmra.mrb[12].mxu0 %v362_v52  ;;  %1365 = vmatmul.mubr.bf16.gmra.mrb[12].mxu1 %v378_v3  ;;  %v250_v52 = vadd.f32 %v1470_v11, %v179_v34  ;;  %v381_v3 = vpack.c.bf16 %v344_v57, %v343_v48  ;;  %v346_v10 = vmax.f32 %v282_v4, 0.0  ;;  %v213_v13 = vmul.f32 %v1061_v54, %v1456_v5 }
  0x3b   :  { %1336 = vmatprep.mubr.bf16.mxu0 %v363_v12  ;;  %1368 = vmatprep.mubr.bf16.mxu1 %v379_v21  ;;  %v252_v12 = vadd.f32 %v1470_v11, %v181_v6  ;;  %v283_v16 = vadd.f32 %v1470_v11, %v212_v9  ;;  %v1064_v18 = vunpack.c.l.bf16 %v1230_v7  ;;  %v315_v20 = vmax.f32 %v251_v8, 0.0 }
  0x3c   :  { %v314_v62 = vmax.f32 %v250_v52, 0.0  ;;  %v284_v22 = vadd.f32 %v1470_v11, %v213_v13  ;;  %v182_v23 = vmul.f32 %v1000_v14, %v1456_v5  ;;  %v183_v25 = vmul.f32 %v1001_v17, %v1456_v5 }
  0x3d   :  { %v316_v21 = vmax.f32 %v252_v12, 0.0  ;;  %v347_v24 = vmax.f32 %v283_v16, 0.0  ;;  %v1065_v26 = vunpack.c.h.bf16 %v1230_v7  ;;  %v214_v27 = vmul.f32 %v1064_v18, %v1456_v5 }
  0x3e   :  { %v366_v15 = vpack.c.bf16 %v314_v62, %v313_v58  ;;  %v382_v29 = vpack.c.bf16 %v346_v10, %v345_v59  ;;  %v348_v30 = vmax.f32 %v284_v22, 0.0  ;;  %v253_v31 = vadd.f32 %v1470_v11, %v182_v23 }
  0x3f   :  { %v1004_v32 = vunpack.c.l.bf16 %v1215_v19  ;;  %v254_v33 = vadd.f32 %v1470_v11, %v183_v25  ;;  %v285_v36 = vadd.f32 %v1470_v11, %v214_v27  ;;  %v1005_v37 = vunpack.c.h.bf16 %v1215_v19 }
  0x40   :  { %v367_v39 = vpack.c.bf16 %v316_v21, %v315_v20  ;;  %v383_v40 = vpack.c.bf16 %v348_v30, %v347_v24  ;;  %v1068_v42 = vunpack.c.l.bf16 %v1231_v28  ;;  %v317_v44 = vmax.f32 %v253_v31, 0.0  ;;  %v1075_v20 = vld [vmem:[%s1997_s4] sm:$0xff]  }
  0x41   :  { %v184_v41 = vmul.f32 %v1004_v32, %v1456_v5  ;;  %v185_v34 = vmul.f32 %v1005_v37, %v1456_v5  ;;  %v1069_v47 = vunpack.c.h.bf16 %v1231_v28  ;;  %v1008_v49 = vunpack.c.l.bf16 %v1216_v38  ;;  %v1248_v21 = vld [vmem:[%s1997_s4 + $0x80] sm:$0xff]  }
  0x42   :  { %1337 = vmatmul.mubr.bf16.gmra.mrb[16].mxu0 %v364_v35  ;;  %1369 = vmatmul.mubr.bf16.gmra.mrb[16].mxu1 %v380_v45  ;;  %v215_v35 = vmul.f32 %v1065_v26, %v1456_v5  ;;  %v318_v45 = vmax.f32 %v254_v33, 0.0  ;;  %v216_v48 = vmul.f32 %v1068_v42, %v1456_v5  ;;  %v349_v51 = vmax.f32 %v285_v36, 0.0  ;;  %v1251_v42 = vld [vmem:[%s1997_s4 + $0x98] sm:$0xff]  }
  0x43   :  { %1340 = vmatprep.mubr.bf16.mxu0 %v365_v53  ;;  %1372 = vmatprep.mubr.bf16.mxu1 %v381_v3  ;;  %v255_v43 = vadd.f32 %v1470_v11, %v184_v41  ;;  %v256_v52 = vadd.f32 %v1470_v11, %v185_v34  ;;  %v1009_v55 = vunpack.c.h.bf16 %v1216_v38  ;;  %v217_v57 = vmul.f32 %v1069_v47, %v1456_v5  ;;  %v1235_v41 = vld [vmem:[%s1997_s4 + $0x18] sm:$0xff]   ;;  %v1250_v47 = vld [vmem:[%s1997_s4 + $0x90] sm:$0xff]  }
  0x44   :  { %v286_v46 = vadd.f32 %v1470_v11, %v215_v35  ;;  %v287_v58 = vadd.f32 %v1470_v11, %v216_v48  ;;  %v186_v60 = vmul.f32 %v1008_v49, %v1456_v5  ;;  %v1072_v63 = vunpack.c.l.bf16 %v1232_v50 }
  0x45   :  { %v319_v56 = vmax.f32 %v255_v43, 0.0  ;;  %v320_v61 = vmax.f32 %v256_v52, 0.0  ;;  %v187_v62 = vmul.f32 %v1009_v55, %v1456_v5  ;;  %v368_v0 = vpack.c.bf16 %v318_v45, %v317_v44  ;;  %v1234_v43 = vld [vmem:[%s1997_s4 + $0x10] sm:$0xff]  }
  0x46   :  { %v350_v53 = vmax.f32 %v286_v46, 0.0  ;;  %v288_v1 = vadd.f32 %v1470_v11, %v217_v57  ;;  %v351_v2 = vmax.f32 %v287_v58, 0.0  ;;  %v1073_v3 = vunpack.c.h.bf16 %v1232_v50 }
  0x47   :  { %v257_v6 = vadd.f32 %v1470_v11, %v186_v60  ;;  %v258_v54 = vadd.f32 %v1470_v11, %v187_v62  ;;  %v218_v7 = vmul.f32 %v1072_v63, %v1456_v5  ;;  %v369_v59 = vpack.c.bf16 %v320_v61, %v319_v56 }
  0x48   :  { %v384_v4 = vpack.c.bf16 %v350_v53, %v349_v51  ;;  %v352_v8 = vmax.f32 %v288_v1, 0.0  ;;  %v219_v9 = vmul.f32 %v1073_v3, %v1456_v5  ;;  %v1233_v5 = vld [vmem:[%s1997_s4 + $0x8] sm:$0xff]   ;;  %v1076_v24 = vunpack.c.l.bf16 %v1075_v20 }
  0x49   :  { %v289_v10 = vadd.f32 %v1470_v11, %v218_v7  ;;  %v321_v14 = vmax.f32 %v257_v6, 0.0  ;;  %v1080_v22 = vunpack.c.l.bf16 %v1233_v5  ;;  %v1140_v25 = vunpack.c.l.bf16 %v1248_v21  ;;  %v1253_v7 = vld [vmem:[%s1997_s4 + $0xa8] sm:$0xff]  }
  0x4a   :  { %1341 = vmatmul.mubr.bf16.gmra.mrb[20].mxu0 %v366_v15  ;;  %1373 = vmatmul.mubr.bf16.gmra.mrb[20].mxu1 %v382_v29  ;;  %v385_v12 = vpack.c.bf16 %v352_v8, %v351_v2  ;;  %v290_v13 = vadd.f32 %v1470_v11, %v219_v9  ;;  %v322_v15 = vmax.f32 %v258_v54, 0.0  ;;  %v1249_v11 = vld [vmem:[%s1997_s4 + $0x88] sm:$0xff]   ;;  %v1081_v26 = vunpack.c.h.bf16 %v1233_v5 }
  0x4b   :  { %1344 = vmatprep.mubr.bf16.mxu0 %v367_v39  ;;  %1376 = vmatprep.mubr.bf16.mxu1 %v383_v40  ;;  %v353_v16 = vmax.f32 %v289_v10, 0.0  ;;  %v1144_v23 = vunpack.c.l.bf16 %v1249_v11  ;;  %v1145_v27 = vunpack.c.h.bf16 %v1249_v11  ;;  %v1077_v30 = vunpack.c.h.bf16 %v1075_v20  ;;  %v1237_v54 = vld [vmem:[%s1997_s4 + $0x28] sm:$0xff]  }
  0x4c   :  { %v354_v17 = vmax.f32 %v290_v13, 0.0  ;;  %v370_v18 = vpack.c.bf16 %v322_v15, %v321_v14  ;;  %v1141_v31 = vunpack.c.h.bf16 %v1248_v21  ;;  %v1088_v50 = vunpack.c.l.bf16 %v1235_v41  ;;  %v1252_v13 = vld [vmem:[%s1997_s4 + $0xa0] sm:$0xff]  }
  0x4d   :  { %v1152_v51 = vunpack.c.l.bf16 %v1251_v42  ;;  %v1084_v53 = vunpack.c.l.bf16 %v1234_v43  ;;  %v1148_v52 = vunpack.c.l.bf16 %v1250_v47  ;;  %v1089_v55 = vunpack.c.h.bf16 %v1235_v41 }
  0x4e   :  { %v386_v19 = vpack.c.bf16 %v354_v17, %v353_v16  ;;  %v1153_v56 = vunpack.c.h.bf16 %v1251_v42  ;;  %v1085_v60 = vunpack.c.h.bf16 %v1234_v43  ;;  %v1149_v61 = vunpack.c.h.bf16 %v1250_v47 }
  0x4f   :  { %v1096_v16 = vunpack.c.l.bf16 %v1237_v54  ;;  %v1160_v17 = vunpack.c.l.bf16 %v1253_v7  ;;  %v1097_v5 = vunpack.c.h.bf16 %v1237_v54  ;;  %v1161_v11 = vunpack.c.h.bf16 %v1253_v7 }
  0x52   :  { %1345 = vmatmul.mubr.bf16.gmra.mrb[24].mxu0 %v368_v0  ;;  %1377 = vmatmul.mubr.bf16.gmra.mrb[24].mxu1 %v384_v4 }
  0x53   :  { %1348 = vmatprep.mubr.bf16.mxu0 %v369_v59  ;;  %1380 = vmatprep.mubr.bf16.mxu1 %v385_v12  ;;  %v1236_v12 = vld [vmem:[%s1997_s4 + $0x20] sm:$0xff]  }
  0x5a   :  { %1349 = vmatmul.mubr.bf16.gmra.mrb[28].mxu0 %v370_v18  ;;  %1381 = vmatmul.mubr.bf16.gmra.mrb[28].mxu1 %v386_v19  ;;  %v1092_v18 = vunpack.c.l.bf16 %v1236_v12  ;;  %v1156_v19 = vunpack.c.l.bf16 %v1252_v13 }
  0xf5   :  { %v1322_v28 = vpop.f32.mrb[0].mxu0  ;;  %v1354_v29 = vpop.f32.mrb[0].mxu1 }
  0xf6   :  { %v622_v32 = vadd.f32 %v1322_v28, %v1080_v22  ;;  %v750_v33 = vadd.f32 %v1354_v29, %v1144_v23  ;;  %v613_v35 = vpop.f32.mrb[1].mxu0  ;;  %v741_v36 = vpop.f32.mrb[1].mxu1  ;;  %v1093_v22 = vunpack.c.h.bf16 %v1236_v12  ;;  %v1157_v23 = vunpack.c.h.bf16 %v1252_v13 }
  0xf7   :  { %v614_v37 = vadd.f32 %v1076_v24, %v613_v35  ;;  %v742_v38 = vadd.f32 %v1140_v25, %v741_v36  ;;  %v1323_v39 = vpop.f32.mrb[2].mxu0  ;;  %v1355_v40 = vpop.f32.mrb[2].mxu1 }
  0xf8   :  { %870 = vst [vmem:[%s1998_s5 + $0x10] sm:$0xff] %v622_v32  ;;  %902 = vst [vmem:[%s1998_s5 + $0x110] sm:$0xff] %v750_v33  ;;  %v625_v44 = vadd.f32 %v1323_v39, %v1081_v26  ;;  %v753_v45 = vadd.f32 %v1355_v40, %v1145_v27  ;;  %v616_v46 = vpop.f32.mrb[3].mxu0  ;;  %v744_v34 = vpop.f32.mrb[3].mxu1  ;;  %v1239_v32 = vld [vmem:[%s1997_s4 + $0x38] sm:$0xff]   ;;  %v1238_v39 = vld [vmem:[%s1997_s4 + $0x30] sm:$0xff]  }
  0xf9   :  { %868 = vst [vmem:[%s1998_s5] sm:$0xff] %v614_v37  ;;  %900 = vst [vmem:[%s1998_s5 + $0x100] sm:$0xff] %v742_v38  ;;  %v617_v48 = vadd.f32 %v1077_v30, %v616_v46  ;;  %v745_v49 = vadd.f32 %v1141_v31, %v744_v34  ;;  %v1255_v33 = vld [vmem:[%s1997_s4 + $0xb8] sm:$0xff]   ;;  %v1254_v40 = vld [vmem:[%s1997_s4 + $0xb0] sm:$0xff]   ;;  %v1100_v46 = vunpack.c.l.bf16 %v1238_v39  ;;  %v1105_v43 = vunpack.c.h.bf16 %v1239_v32 }
  0xfa   :  { %871 = vst [vmem:[%s1998_s5 + $0x18] sm:$0xff] %v625_v44  ;;  %903 = vst [vmem:[%s1998_s5 + $0x118] sm:$0xff] %v753_v45  ;;  %v1104_v44 = vunpack.c.l.bf16 %v1239_v32  ;;  %v1168_v45 = vunpack.c.l.bf16 %v1255_v33  ;;  %v1164_v34 = vunpack.c.l.bf16 %v1254_v40  ;;  %v1169_v47 = vunpack.c.h.bf16 %v1255_v33 }
  0xfb   :  { %869 = vst [vmem:[%s1998_s5 + $0x8] sm:$0xff] %v617_v48  ;;  %901 = vst [vmem:[%s1998_s5 + $0x108] sm:$0xff] %v745_v49 }
  0xfd   :  { %v1326_v57 = vpop.f32.mrb[4].mxu0  ;;  %v1358_v58 = vpop.f32.mrb[4].mxu1 }
  0xfe   :  { %v638_v62 = vadd.f32 %v1326_v57, %v1088_v50  ;;  %v766_v63 = vadd.f32 %v1358_v58, %v1152_v51  ;;  %v629_v0 = vpop.f32.mrb[5].mxu0  ;;  %v757_v1 = vpop.f32.mrb[5].mxu1  ;;  %v1101_v50 = vunpack.c.h.bf16 %v1238_v39  ;;  %v1165_v51 = vunpack.c.h.bf16 %v1254_v40 }
  0xff   :  { %v630_v2 = vadd.f32 %v1084_v53, %v629_v0  ;;  %v758_v3 = vadd.f32 %v1148_v52, %v757_v1  ;;  %v1327_v4 = vpop.f32.mrb[6].mxu0  ;;  %v1359_v6 = vpop.f32.mrb[6].mxu1 }
 0x100   :  { %874 = vst [vmem:[%s1998_s5 + $0x30] sm:$0xff] %v638_v62  ;;  %906 = vst [vmem:[%s1998_s5 + $0x130] sm:$0xff] %v766_v63  ;;  %v641_v59 = vadd.f32 %v1327_v4, %v1089_v55  ;;  %v769_v8 = vadd.f32 %v1359_v6, %v1153_v56  ;;  %v632_v9 = vpop.f32.mrb[7].mxu0  ;;  %v760_v10 = vpop.f32.mrb[7].mxu1  ;;  %v1241_v62 = vld [vmem:[%s1997_s4 + $0x48] sm:$0xff]   ;;  %v1240_v4 = vld [vmem:[%s1997_s4 + $0x40] sm:$0xff]  }
 0x101   :  { %872 = vst [vmem:[%s1998_s5 + $0x20] sm:$0xff] %v630_v2  ;;  %904 = vst [vmem:[%s1998_s5 + $0x120] sm:$0xff] %v758_v3  ;;  %v633_v14 = vadd.f32 %v1085_v60, %v632_v9  ;;  %v761_v15 = vadd.f32 %v1149_v61, %v760_v10  ;;  %v1257_v63 = vld [vmem:[%s1997_s4 + $0xc8] sm:$0xff]   ;;  %v1256_v6 = vld [vmem:[%s1997_s4 + $0xc0] sm:$0xff]   ;;  %v1108_v9 = vunpack.c.l.bf16 %v1240_v4  ;;  %v1113_v12 = vunpack.c.h.bf16 %v1241_v62 }
 0x102   :  { %875 = vst [vmem:[%s1998_s5 + $0x38] sm:$0xff] %v641_v59  ;;  %907 = vst [vmem:[%s1998_s5 + $0x138] sm:$0xff] %v769_v8  ;;  %v1112_v59 = vunpack.c.l.bf16 %v1241_v62  ;;  %v1176_v8 = vunpack.c.l.bf16 %v1257_v63  ;;  %v1172_v10 = vunpack.c.l.bf16 %v1256_v6  ;;  %v1177_v13 = vunpack.c.h.bf16 %v1257_v63 }
 0x103   :  { %873 = vst [vmem:[%s1998_s5 + $0x28] sm:$0xff] %v633_v14  ;;  %905 = vst [vmem:[%s1998_s5 + $0x128] sm:$0xff] %v761_v15 }
 0x105   :  { %v1330_v20 = vpop.f32.mrb[8].mxu0  ;;  %v1362_v21 = vpop.f32.mrb[8].mxu1 }
 0x106   :  { %v654_v24 = vadd.f32 %v1330_v20, %v1096_v16  ;;  %v782_v25 = vadd.f32 %v1362_v21, %v1160_v17  ;;  %v645_v26 = vpop.f32.mrb[9].mxu0  ;;  %v773_v27 = vpop.f32.mrb[9].mxu1  ;;  %v1109_v16 = vunpack.c.h.bf16 %v1240_v4  ;;  %v1173_v17 = vunpack.c.h.bf16 %v1256_v6 }
 0x107   :  { %v646_v28 = vadd.f32 %v1092_v18, %v645_v26  ;;  %v774_v29 = vadd.f32 %v1156_v19, %v773_v27  ;;  %v1331_v30 = vpop.f32.mrb[10].mxu0  ;;  %v1363_v31 = vpop.f32.mrb[10].mxu1 }
 0x108   :  { %878 = vst [vmem:[%s1998_s5 + $0x50] sm:$0xff] %v654_v24  ;;  %910 = vst [vmem:[%s1998_s5 + $0x150] sm:$0xff] %v782_v25  ;;  %v657_v35 = vadd.f32 %v1331_v30, %v1097_v5  ;;  %v785_v36 = vadd.f32 %v1363_v31, %v1161_v11  ;;  %v648_v37 = vpop.f32.mrb[11].mxu0  ;;  %v776_v38 = vpop.f32.mrb[11].mxu1  ;;  %v1243_v24 = vld [vmem:[%s1997_s4 + $0x58] sm:$0xff]   ;;  %v1242_v30 = vld [vmem:[%s1997_s4 + $0x50] sm:$0xff]  }
 0x109   :  { %876 = vst [vmem:[%s1998_s5 + $0x40] sm:$0xff] %v646_v28  ;;  %908 = vst [vmem:[%s1998_s5 + $0x140] sm:$0xff] %v774_v29  ;;  %v649_v41 = vadd.f32 %v1093_v22, %v648_v37  ;;  %v777_v42 = vadd.f32 %v1157_v23, %v776_v38  ;;  %v1259_v25 = vld [vmem:[%s1997_s4 + $0xd8] sm:$0xff]   ;;  %v1258_v31 = vld [vmem:[%s1997_s4 + $0xd0] sm:$0xff]   ;;  %v1116_v37 = vunpack.c.l.bf16 %v1242_v30  ;;  %v1121_v39 = vunpack.c.h.bf16 %v1243_v24 }
 0x10a   :  { %879 = vst [vmem:[%s1998_s5 + $0x58] sm:$0xff] %v657_v35  ;;  %911 = vst [vmem:[%s1998_s5 + $0x158] sm:$0xff] %v785_v36  ;;  %v1120_v35 = vunpack.c.l.bf16 %v1243_v24  ;;  %v1184_v36 = vunpack.c.l.bf16 %v1259_v25  ;;  %v1180_v38 = vunpack.c.l.bf16 %v1258_v31  ;;  %v1185_v40 = vunpack.c.h.bf16 %v1259_v25 }
 0x10b   :  { %877 = vst [vmem:[%s1998_s5 + $0x48] sm:$0xff] %v649_v41  ;;  %909 = vst [vmem:[%s1998_s5 + $0x148] sm:$0xff] %v777_v42 }
 0x10d   :  { %v1334_v48 = vpop.f32.mrb[12].mxu0  ;;  %v1366_v49 = vpop.f32.mrb[12].mxu1 }
 0x10e   :  { %v670_v53 = vadd.f32 %v1334_v48, %v1104_v44  ;;  %v798_v52 = vadd.f32 %v1366_v49, %v1168_v45  ;;  %v661_v55 = vpop.f32.mrb[13].mxu0  ;;  %v789_v56 = vpop.f32.mrb[13].mxu1  ;;  %v1117_v44 = vunpack.c.h.bf16 %v1242_v30  ;;  %v1181_v45 = vunpack.c.h.bf16 %v1258_v31 }
 0x10f   :  { %v662_v57 = vadd.f32 %v1100_v46, %v661_v55  ;;  %v790_v58 = vadd.f32 %v1164_v34, %v789_v56  ;;  %v1335_v60 = vpop.f32.mrb[14].mxu0  ;;  %v1367_v61 = vpop.f32.mrb[14].mxu1 }
 0x110   :  { %882 = vst [vmem:[%s1998_s5 + $0x70] sm:$0xff] %v670_v53  ;;  %914 = vst [vmem:[%s1998_s5 + $0x170] sm:$0xff] %v798_v52  ;;  %v673_v0 = vadd.f32 %v1335_v60, %v1105_v43  ;;  %v801_v1 = vadd.f32 %v1367_v61, %v1169_v47  ;;  %v664_v2 = vpop.f32.mrb[15].mxu0  ;;  %v792_v3 = vpop.f32.mrb[15].mxu1  ;;  %v1245_v53 = vld [vmem:[%s1997_s4 + $0x68] sm:$0xff]   ;;  %v1244_v60 = vld [vmem:[%s1997_s4 + $0x60] sm:$0xff]  }
 0x111   :  { %880 = vst [vmem:[%s1998_s5 + $0x60] sm:$0xff] %v662_v57  ;;  %912 = vst [vmem:[%s1998_s5 + $0x160] sm:$0xff] %v790_v58  ;;  %v665_v54 = vadd.f32 %v1101_v50, %v664_v2  ;;  %v793_v7 = vadd.f32 %v1165_v51, %v792_v3  ;;  %v1261_v52 = vld [vmem:[%s1997_s4 + $0xe8] sm:$0xff]   ;;  %v1260_v61 = vld [vmem:[%s1997_s4 + $0xe0] sm:$0xff]   ;;  %v1124_v2 = vunpack.c.l.bf16 %v1244_v60  ;;  %v1129_v4 = vunpack.c.h.bf16 %v1245_v53 }
 0x112   :  { %883 = vst [vmem:[%s1998_s5 + $0x78] sm:$0xff] %v673_v0  ;;  %915 = vst [vmem:[%s1998_s5 + $0x178] sm:$0xff] %v801_v1  ;;  %v1128_v0 = vunpack.c.l.bf16 %v1245_v53  ;;  %v1192_v1 = vunpack.c.l.bf16 %v1261_v52  ;;  %v1188_v3 = vunpack.c.l.bf16 %v1260_v61  ;;  %v1193_v6 = vunpack.c.h.bf16 %v1261_v52 }
 0x113   :  { %881 = vst [vmem:[%s1998_s5 + $0x68] sm:$0xff] %v665_v54  ;;  %913 = vst [vmem:[%s1998_s5 + $0x168] sm:$0xff] %v793_v7 }
 0x115   :  { %v1338_v14 = vpop.f32.mrb[16].mxu0  ;;  %v1370_v15 = vpop.f32.mrb[16].mxu1 }
 0x116   :  { %v686_v18 = vadd.f32 %v1338_v14, %v1112_v59  ;;  %v814_v19 = vadd.f32 %v1370_v15, %v1176_v8  ;;  %v677_v5 = vpop.f32.mrb[17].mxu0  ;;  %v805_v11 = vpop.f32.mrb[17].mxu1  ;;  %v1125_v59 = vunpack.c.h.bf16 %v1244_v60  ;;  %v1189_v8 = vunpack.c.h.bf16 %v1260_v61 }
 0x117   :  { %v678_v20 = vadd.f32 %v1108_v9, %v677_v5  ;;  %v806_v21 = vadd.f32 %v1172_v10, %v805_v11  ;;  %v1339_v22 = vpop.f32.mrb[18].mxu0  ;;  %v1371_v23 = vpop.f32.mrb[18].mxu1 }
 0x118   :  { %886 = vst [vmem:[%s1998_s5 + $0x90] sm:$0xff] %v686_v18  ;;  %918 = vst [vmem:[%s1998_s5 + $0x190] sm:$0xff] %v814_v19  ;;  %v689_v26 = vadd.f32 %v1339_v22, %v1113_v12  ;;  %v817_v27 = vadd.f32 %v1371_v23, %v1177_v13  ;;  %v680_v28 = vpop.f32.mrb[19].mxu0  ;;  %v808_v29 = vpop.f32.mrb[19].mxu1  ;;  %v1247_v18 = vld [vmem:[%s1997_s4 + $0x78] sm:$0xff]   ;;  %v1246_v22 = vld [vmem:[%s1997_s4 + $0x70] sm:$0xff]  }
 0x119   :  { %884 = vst [vmem:[%s1998_s5 + $0x80] sm:$0xff] %v678_v20  ;;  %916 = vst [vmem:[%s1998_s5 + $0x180] sm:$0xff] %v806_v21  ;;  %v681_v32 = vadd.f32 %v1109_v16, %v680_v28  ;;  %v809_v33 = vadd.f32 %v1173_v17, %v808_v29  ;;  %v1263_v19 = vld [vmem:[%s1997_s4 + $0xf8] sm:$0xff]   ;;  %v1262_v23 = vld [vmem:[%s1997_s4 + $0xf0] sm:$0xff]   ;;  %v1132_v28 = vunpack.c.l.bf16 %v1246_v22  ;;  %v1137_v30 = vunpack.c.h.bf16 %v1247_v18 }
 0x11a   :  { %887 = vst [vmem:[%s1998_s5 + $0x98] sm:$0xff] %v689_v26  ;;  %919 = vst [vmem:[%s1998_s5 + $0x198] sm:$0xff] %v817_v27  ;;  %v1136_v26 = vunpack.c.l.bf16 %v1247_v18  ;;  %v1200_v27 = vunpack.c.l.bf16 %v1263_v19  ;;  %v1196_v29 = vunpack.c.l.bf16 %v1262_v23  ;;  %v1201_v31 = vunpack.c.h.bf16 %v1263_v19 }
 0x11b   :  { %885 = vst [vmem:[%s1998_s5 + $0x88] sm:$0xff] %v681_v32  ;;  %917 = vst [vmem:[%s1998_s5 + $0x188] sm:$0xff] %v809_v33 }
 0x11d   :  { %v1342_v41 = vpop.f32.mrb[20].mxu0  ;;  %v1374_v42 = vpop.f32.mrb[20].mxu1 }
 0x11e   :  { %v702_v46 = vadd.f32 %v1342_v41, %v1120_v35  ;;  %v830_v34 = vadd.f32 %v1374_v42, %v1184_v36  ;;  %v693_v43 = vpop.f32.mrb[21].mxu0  ;;  %v821_v47 = vpop.f32.mrb[21].mxu1  ;;  %v1133_v35 = vunpack.c.h.bf16 %v1246_v22  ;;  %v1197_v36 = vunpack.c.h.bf16 %v1262_v23 }
 0x11f   :  { %v694_v48 = vadd.f32 %v1116_v37, %v693_v43  ;;  %v822_v49 = vadd.f32 %v1180_v38, %v821_v47  ;;  %v1343_v50 = vpop.f32.mrb[22].mxu0  ;;  %v1375_v51 = vpop.f32.mrb[22].mxu1 }
 0x120   :  { %890 = vst [vmem:[%s1998_s5 + $0xb0] sm:$0xff] %v702_v46  ;;  %922 = vst [vmem:[%s1998_s5 + $0x1b0] sm:$0xff] %v830_v34  ;;  %v705_v55 = vadd.f32 %v1343_v50, %v1121_v39  ;;  %v833_v56 = vadd.f32 %v1375_v51, %v1185_v40  ;;  %v696_v57 = vpop.f32.mrb[23].mxu0  ;;  %v824_v58 = vpop.f32.mrb[23].mxu1 }
 0x121   :  { %888 = vst [vmem:[%s1998_s5 + $0xa0] sm:$0xff] %v694_v48  ;;  %920 = vst [vmem:[%s1998_s5 + $0x1a0] sm:$0xff] %v822_v49  ;;  %v697_v62 = vadd.f32 %v1117_v44, %v696_v57  ;;  %v825_v63 = vadd.f32 %v1181_v45, %v824_v58 }
 0x122   :  { %891 = vst [vmem:[%s1998_s5 + $0xb8] sm:$0xff] %v705_v55  ;;  %923 = vst [vmem:[%s1998_s5 + $0x1b8] sm:$0xff] %v833_v56 }
 0x123   :  { %889 = vst [vmem:[%s1998_s5 + $0xa8] sm:$0xff] %v697_v62  ;;  %921 = vst [vmem:[%s1998_s5 + $0x1a8] sm:$0xff] %v825_v63 }
 0x125   :  { %v1346_v54 = vpop.f32.mrb[24].mxu0  ;;  %v1378_v7 = vpop.f32.mrb[24].mxu1 }
 0x126   :  { %v718_v9 = vadd.f32 %v1346_v54, %v1128_v0  ;;  %v846_v10 = vadd.f32 %v1378_v7, %v1192_v1  ;;  %v709_v12 = vpop.f32.mrb[25].mxu0  ;;  %v837_v13 = vpop.f32.mrb[25].mxu1 }
 0x127   :  { %v710_v14 = vadd.f32 %v1124_v2, %v709_v12  ;;  %v838_v15 = vadd.f32 %v1188_v3, %v837_v13  ;;  %v1347_v16 = vpop.f32.mrb[26].mxu0  ;;  %v1379_v17 = vpop.f32.mrb[26].mxu1 }
 0x128   :  { %894 = vst [vmem:[%s1998_s5 + $0xd0] sm:$0xff] %v718_v9  ;;  %926 = vst [vmem:[%s1998_s5 + $0x1d0] sm:$0xff] %v846_v10  ;;  %v721_v5 = vadd.f32 %v1347_v16, %v1129_v4  ;;  %v849_v11 = vadd.f32 %v1379_v17, %v1193_v6  ;;  %v712_v20 = vpop.f32.mrb[27].mxu0  ;;  %v840_v21 = vpop.f32.mrb[27].mxu1 }
 0x129   :  { %892 = vst [vmem:[%s1998_s5 + $0xc0] sm:$0xff] %v710_v14  ;;  %924 = vst [vmem:[%s1998_s5 + $0x1c0] sm:$0xff] %v838_v15  ;;  %v713_v24 = vadd.f32 %v1125_v59, %v712_v20  ;;  %v841_v25 = vadd.f32 %v1189_v8, %v840_v21 }
 0x12a   :  { %895 = vst [vmem:[%s1998_s5 + $0xd8] sm:$0xff] %v721_v5  ;;  %927 = vst [vmem:[%s1998_s5 + $0x1d8] sm:$0xff] %v849_v11 }
 0x12b   :  { %893 = vst [vmem:[%s1998_s5 + $0xc8] sm:$0xff] %v713_v24  ;;  %925 = vst [vmem:[%s1998_s5 + $0x1c8] sm:$0xff] %v841_v25 }
 0x12d   :  { %v1350_v32 = vpop.f32.mrb[28].mxu0  ;;  %v1382_v33 = vpop.f32.mrb[28].mxu1 }
 0x12e   :  { %v734_v37 = vadd.f32 %v1350_v32, %v1136_v26  ;;  %v862_v38 = vadd.f32 %v1382_v33, %v1200_v27  ;;  %v725_v39 = vpop.f32.mrb[29].mxu0  ;;  %v853_v40 = vpop.f32.mrb[29].mxu1 }
 0x12f   :  { %v726_v41 = vadd.f32 %v1132_v28, %v725_v39  ;;  %v854_v42 = vadd.f32 %v1196_v29, %v853_v40  ;;  %v1351_v44 = vpop.f32.mrb[30].mxu0  ;;  %v1383_v45 = vpop.f32.mrb[30].mxu1 }
 0x130   :  { %898 = vst [vmem:[%s1998_s5 + $0xf0] sm:$0xff] %v734_v37  ;;  %930 = vst [vmem:[%s1998_s5 + $0x1f0] sm:$0xff] %v862_v38  ;;  %v737_v46 = vadd.f32 %v1351_v44, %v1137_v30  ;;  %v865_v34 = vadd.f32 %v1383_v45, %v1201_v31  ;;  %v728_v43 = vpop.f32.mrb[31].mxu0  ;;  %v856_v47 = vpop.f32.mrb[31].mxu1 }
 0x131   :  { %896 = vst [vmem:[%s1998_s5 + $0xe0] sm:$0xff] %v726_v41  ;;  %928 = vst [vmem:[%s1998_s5 + $0x1e0] sm:$0xff] %v854_v42  ;;  %v729_v48 = vadd.f32 %v1133_v35, %v728_v43  ;;  %v857_v49 = vadd.f32 %v1197_v36, %v856_v47 }
 0x132   :  { %899 = vst [vmem:[%s1998_s5 + $0xf8] sm:$0xff] %v737_v46  ;;  %931 = vst [vmem:[%s1998_s5 + $0x1f8] sm:$0xff] %v865_v34 }
 0x133   :  { %897 = vst [vmem:[%s1998_s5 + $0xe8] sm:$0xff] %v729_v48  ;;  %929 = vst [vmem:[%s1998_s5 + $0x1e8] sm:$0xff] %v857_v49 }

// kernel: residual_block_forward.5
= control target key start
LH: loop header
LB: loop body
LE: loop exit
PB: predicated region body
PF: predicated region fallthrough
CT: control target
= control target key end

     0   :  { %vm1329_vm0 = vcmask 1040384   ;;  %s3605_s3 = inlined_call_operand.vmem [shape: bf16[128,128], index: 3, kind: input, shape index: {}]   ;;  %s3606_s4 = inlined_call_operand.vmem [shape: bf16[128,128], index: 4, kind: input, shape index: {}]   ;;  %s3607_s0 = inlined_call_operand.vmem [shape: bf16[512,128], index: 0, kind: input, shape index: {}]   ;;  %s3608_s1 = inlined_call_operand.vmem [shape: f32[1,128], index: 1, kind: input, shape index: {}]   ;;  %s3609_s2 = inlined_call_operand.vmem [shape: f32[1,128], index: 2, kind: input, shape index: {}]   ;;  %s3610_s5 = inlined_call_operand.vmem [shape: bf16[512,128], index: 5, kind: output, shape index: {0}]   ;;  %s3611_s6 = inlined_call_operand.vmem [shape: bf16[512,128], index: 6, kind: output, shape index: {1}]   ;;  %s3612_s7 = inlined_call_operand.vmem [shape: f32[1,2,128], index: 7, kind: output, shape index: {2}]  }
   0x1   :  { %v3072_v0 = vld [vmem:[%s3605_s3] sm:$0xff]   ;;  %v3073_v1 = vld [vmem:[%s3605_s3 + $0x8] sm:$0xff]   ;;  %v3074_v2 = vld [vmem:[%s3605_s3 + $0x10] sm:$0xff]  }
   0x2   :  { %2912 = vmatprep.subr.bf16.mxu0 %v3072_v0  ;;  %v3078_v3 = vld [vmem:[%s3606_s4] sm:$0xff]   ;;  %v3075_v4 = vld [vmem:[%s3605_s3 + $0x18] sm:$0xff]   ;;  %v3080_v5 = vld [vmem:[%s3606_s4 + $0x8] sm:$0xff]  }
   0x3   :  { %2913 = vmatpush3.bf16.msra.mxu0 %v3072_v0  ;;  %2992 = vmatprep.subr.bf16.mxu1 %v3078_v3  ;;  %v3082_v6 = vld [vmem:[%s3606_s4 + $0x10] sm:$0xff]   ;;  %v3076_v7 = vld [vmem:[%s3605_s3 + $0x20] sm:$0xff]   ;;  %v2739_v12 = vld [vmem:[%s3607_s0 + $0x8] sm:$0xff]  }
   0x4   :  { %2914 = vmatprep.subr.bf16.mxu0 %v3073_v1  ;;  %2993 = vmatpush3.bf16.msra.mxu1 %v3078_v3  ;;  %v2292_v8 = vld [vmem:[%s3607_s0] sm:$0xff]   ;;  %v2297_v16 = vunpack.c.l.bf16 %v2739_v12  ;;  %v2298_v17 = vunpack.c.h.bf16 %v2739_v12  ;;  %v3083_v18 = vld [vmem:[%s3606_s4 + $0x18] sm:$0xff]   ;;  %v2740_v19 = vld [vmem:[%s3607_s0 + $0x10] sm:$0xff]  }
   0x5   :  { %2994 = vmatprep.subr.bf16.mxu1 %v3080_v5  ;;  %v3158_v9 = vld [vmem:[%s3608_s1] ss:$0 sm:$0xff]  ;;  %v2293_v10 = vunpack.c.l.bf16 %v2292_v8  ;;  %v2294_v11 = vunpack.c.h.bf16 %v2292_v8  ;;  %v2301_v20 = vunpack.c.l.bf16 %v2740_v19  ;;  %v2302_v21 = vunpack.c.h.bf16 %v2740_v19  ;;  %v3077_v22 = vld [vmem:[%s3605_s3 + $0x28] sm:$0xff]   ;;  %v2741_v30 = vld [vmem:[%s3607_s0 + $0x18] sm:$0xff]  }
   0x6   :  { %v3166_v13 = vld [vmem:[%s3609_s2] ss:$0 sm:$0xff]  ;;  %v161_v27 = vmul.f32 %v2297_v16, %v3158_v9  ;;  %v162_v28 = vmul.f32 %v2298_v17, %v3158_v9  ;;  %v3079_v33 = vld [vmem:[%s3605_s3 + $0x30] sm:$0xff]   ;;  %v2305_v36 = vunpack.c.l.bf16 %v2741_v30  ;;  %v2306_v37 = vunpack.c.h.bf16 %v2741_v30  ;;  %v3085_v40 = vld [vmem:[%s3606_s4 + $0x28] sm:$0xff]  }
   0x7   :  { %2915 = vmatpush3.bf16.msra.mxu0 %v3073_v1  ;;  %v159_v14 = vmul.f32 %v2293_v10, %v3158_v9  ;;  %v160_v15 = vmul.f32 %v2294_v11, %v3158_v9  ;;  %v3084_v29 = vld [vmem:[%s3606_s4 + $0x20] sm:$0xff]   ;;  %v163_v31 = vmul.f32 %v2301_v20, %v3158_v9  ;;  %v164_v32 = vmul.f32 %v2302_v21, %v3158_v9  ;;  %v3081_v45 = vld [vmem:[%s3605_s3 + $0x38] sm:$0xff]   ;;  %v3086_v50 = vld [vmem:[%s3606_s4 + $0x30] sm:$0xff]  }
   0x8   :  { %2916 = vmatprep.subr.bf16.mxu0 %v3074_v2  ;;  %2995 = vmatpush3.bf16.msra.mxu1 %v3080_v5  ;;  %v2742_v35 = vld [vmem:[%s3607_s0 + $0x20] sm:$0xff]   ;;  %v232_v38 = vadd.f32 %v3166_v13, %v161_v27  ;;  %v233_v39 = vadd.f32 %v3166_v13, %v162_v28  ;;  %v165_v46 = vmul.f32 %v2305_v36, %v3158_v9  ;;  %v2743_v51 = vld [vmem:[%s3607_s0 + $0x28] sm:$0xff]   ;;  %v2744_v56 = vld [vmem:[%s3607_s0 + $0x30] sm:$0xff]  }
   0x9   :  { %2996 = vmatprep.subr.bf16.mxu1 %v3082_v6  ;;  %v230_v23 = vadd.f32 %v3166_v13, %v159_v14  ;;  %v231_v24 = vadd.f32 %v3166_v13, %v160_v15  ;;  %v234_v41 = vadd.f32 %v3166_v13, %v163_v31  ;;  %v235_v42 = vadd.f32 %v3166_v13, %v164_v32  ;;  %v3087_v62 = vld [vmem:[%s3606_s4 + $0x38] sm:$0xff]   ;;  %v2746_v15 = vld [vmem:[%s3607_s0 + $0x40] sm:$0xff]  }
   0xa   :  { %v2309_v43 = vunpack.c.l.bf16 %v2742_v35  ;;  %v2310_v44 = vunpack.c.h.bf16 %v2742_v35  ;;  %v166_v47 = vmul.f32 %v2306_v37, %v3158_v9  ;;  %v296_v48 = vmax.f32 %v232_v38, 0.0  ;;  %v2745_v11 = vld [vmem:[%s3607_s0 + $0x38] sm:$0xff]   ;;  %v2748_v35 = vld [vmem:[%s3607_s0 + $0x50] sm:$0xff]  }
   0xb   :  { %2917 = vmatpush3.bf16.msra.mxu0 %v3074_v2  ;;  %v294_v25 = vmax.f32 %v230_v23, 0.0  ;;  %v295_v26 = vmax.f32 %v231_v24, 0.0  ;;  %v297_v49 = vmax.f32 %v233_v39, 0.0  ;;  %v298_v52 = vmax.f32 %v234_v41, 0.0 }
   0xc   :  { %2918 = vmatprep.subr.bf16.mxu0 %v3075_v4  ;;  %2997 = vmatpush3.bf16.msra.mxu1 %v3082_v6  ;;  %v299_v53 = vmax.f32 %v235_v42, 0.0  ;;  %v167_v54 = vmul.f32 %v2309_v43, %v3158_v9  ;;  %v168_v55 = vmul.f32 %v2310_v44, %v3158_v9  ;;  %v236_v57 = vadd.f32 %v3166_v13, %v165_v46 }
   0xd   :  { %2998 = vmatprep.subr.bf16.mxu1 %v3083_v18  ;;  %v358_v34 = vpack.c.bf16 %v295_v26, %v294_v25  ;;  %v237_v58 = vadd.f32 %v3166_v13, %v166_v47  ;;  %v2313_v59 = vunpack.c.l.bf16 %v2743_v51  ;;  %v359_v60 = vpack.c.bf16 %v297_v49, %v296_v48 }
   0xe   :  { %v2314_v61 = vunpack.c.h.bf16 %v2743_v51  ;;  %v2317_v63 = vunpack.c.l.bf16 %v2744_v56  ;;  %v2318_v0 = vunpack.c.h.bf16 %v2744_v56  ;;  %v360_v1 = vpack.c.bf16 %v299_v53, %v298_v52 }
   0xf   :  { %2919 = vmatpush3.bf16.msra.mxu0 %v3075_v4  ;;  %2928 = vmatprep.mubr.bf16.mxu0 %v358_v34  ;;  %v238_v2 = vadd.f32 %v3166_v13, %v167_v54  ;;  %v239_v3 = vadd.f32 %v3166_v13, %v168_v55  ;;  %v300_v4 = vmax.f32 %v236_v57, 0.0  ;;  %v301_v5 = vmax.f32 %v237_v58, 0.0  ;;  %v2750_v55 = vld [vmem:[%s3607_s0 + $0x60] sm:$0xff]  }
  0x10   :  { %2920 = vmatprep.subr.bf16.mxu0 %v3076_v7  ;;  %2999 = vmatpush3.bf16.msra.mxu1 %v3083_v18  ;;  %v169_v6 = vmul.f32 %v2313_v59, %v3158_v9  ;;  %v171_v8 = vmul.f32 %v2317_v63, %v3158_v9  ;;  %v172_v10 = vmul.f32 %v2318_v0, %v3158_v9  ;;  %v2321_v17 = vunpack.c.l.bf16 %v2745_v11 }
  0x11   :  { %3000 = vmatprep.subr.bf16.mxu1 %v3084_v29  ;;  %3008 = vmatprep.mubr.bf16.mxu1 %v358_v34  ;;  %v302_v12 = vmax.f32 %v238_v2, 0.0  ;;  %v303_v14 = vmax.f32 %v239_v3, 0.0  ;;  %v361_v16 = vpack.c.bf16 %v301_v5, %v300_v4  ;;  %v2322_v18 = vunpack.c.h.bf16 %v2745_v11  ;;  %v2747_v34 = vld [vmem:[%s3607_s0 + $0x48] sm:$0xff]  }
  0x12   :  { %v240_v19 = vadd.f32 %v3166_v13, %v169_v6  ;;  %v242_v21 = vadd.f32 %v3166_v13, %v171_v8  ;;  %v2325_v24 = vunpack.c.l.bf16 %v2746_v15  ;;  %v2326_v25 = vunpack.c.h.bf16 %v2746_v15  ;;  %v2751_v11 = vld [vmem:[%s3607_s0 + $0x68] sm:$0xff]  }
  0x13   :  { %2921 = vmatpush3.bf16.msra.mxu0 %v3076_v7  ;;  %v170_v7 = vmul.f32 %v2314_v61, %v3158_v9  ;;  %v362_v23 = vpack.c.bf16 %v303_v14, %v302_v12  ;;  %v173_v26 = vmul.f32 %v2321_v17, %v3158_v9  ;;  %v174_v27 = vmul.f32 %v2322_v18, %v3158_v9  ;;  %v2752_v12 = vld [vmem:[%s3607_s0 + $0x70] sm:$0xff]  }
  0x14   :  { %2922 = vmatprep.subr.bf16.mxu0 %v3077_v22  ;;  %3001 = vmatpush3.bf16.msra.mxu1 %v3084_v29  ;;  %v304_v28 = vmax.f32 %v240_v19, 0.0  ;;  %v306_v30 = vmax.f32 %v242_v21, 0.0  ;;  %v175_v32 = vmul.f32 %v2325_v24, %v3158_v9  ;;  %v2330_v41 = vunpack.c.h.bf16 %v2747_v34 }
  0x15   :  { %3002 = vmatprep.subr.bf16.mxu1 %v3085_v40  ;;  %v241_v20 = vadd.f32 %v3166_v13, %v170_v7  ;;  %v244_v36 = vadd.f32 %v3166_v13, %v173_v26  ;;  %v245_v37 = vadd.f32 %v3166_v13, %v174_v27  ;;  %v2333_v44 = vunpack.c.l.bf16 %v2748_v35 }
  0x16   :  { %v246_v42 = vadd.f32 %v3166_v13, %v175_v32  ;;  %v178_v49 = vmul.f32 %v2330_v41, %v3158_v9  ;;  %v2341_v61 = vunpack.c.l.bf16 %v2750_v55  ;;  %v2345_v17 = vunpack.c.l.bf16 %v2751_v11 }
  0x17   :  { %2923 = vmatpush3.bf16.msra.mxu0 %v3077_v22  ;;  %v243_v22 = vadd.f32 %v3166_v13, %v172_v10  ;;  %v305_v29 = vmax.f32 %v241_v20, 0.0  ;;  %v308_v46 = vmax.f32 %v244_v36, 0.0  ;;  %v309_v47 = vmax.f32 %v245_v37, 0.0 }
  0x18   :  { %2924 = vmatprep.subr.bf16.mxu0 %v3079_v33  ;;  %3003 = vmatpush3.bf16.msra.mxu1 %v3085_v40  ;;  %v2329_v40 = vunpack.c.l.bf16 %v2747_v34  ;;  %v310_v51 = vmax.f32 %v246_v42, 0.0  ;;  %v179_v53 = vmul.f32 %v2333_v44, %v3158_v9  ;;  %v183_v8 = vmul.f32 %v2341_v61, %v3158_v9 }
  0x19   :  { %3004 = vmatprep.subr.bf16.mxu1 %v3086_v50  ;;  %v307_v31 = vmax.f32 %v243_v22, 0.0  ;;  %v363_v38 = vpack.c.bf16 %v305_v29, %v304_v28  ;;  %v365_v58 = vpack.c.bf16 %v309_v47, %v308_v46  ;;  %v2346_v18 = vunpack.c.h.bf16 %v2751_v11  ;;  %v2753_v29 = vld [vmem:[%s3607_s0 + $0x78] sm:$0xff]  }
  0x1a   :  { %v177_v48 = vmul.f32 %v2329_v40, %v3158_v9  ;;  %v250_v63 = vadd.f32 %v3166_v13, %v179_v53  ;;  %v2349_v19 = vunpack.c.l.bf16 %v2752_v12  ;;  %v254_v21 = vadd.f32 %v3166_v13, %v183_v8  ;;  %v2756_v53 = vld [vmem:[%s3607_s0 + $0x90] sm:$0xff]  }
  0x1b   :  { %2925 = vmatpush3.bf16.msra.mxu0 %v3079_v33  ;;  %v176_v33 = vmul.f32 %v2326_v25, %v3158_v9  ;;  %v364_v39 = vpack.c.bf16 %v307_v31, %v306_v30  ;;  %v185_v26 = vmul.f32 %v2345_v17, %v3158_v9  ;;  %v186_v27 = vmul.f32 %v2346_v18, %v3158_v9 }
  0x1c   :  { %2926 = vmatprep.subr.bf16.mxu0 %v3081_v45  ;;  %3005 = vmatpush3.bf16.msra.mxu1 %v3086_v50  ;;  %v2749_v50 = vld [vmem:[%s3607_s0 + $0x58] sm:$0xff]   ;;  %v248_v59 = vadd.f32 %v3166_v13, %v177_v48  ;;  %v314_v6 = vmax.f32 %v250_v63, 0.0  ;;  %v187_v28 = vmul.f32 %v2349_v19, %v3158_v9  ;;  %v318_v30 = vmax.f32 %v254_v21, 0.0  ;;  %v2755_v48 = vld [vmem:[%s3607_s0 + $0x88] sm:$0xff]  }
  0x1d   :  { %3006 = vmatprep.subr.bf16.mxu1 %v3087_v62  ;;  %v247_v43 = vadd.f32 %v3166_v13, %v176_v33  ;;  %v2337_v56 = vunpack.c.l.bf16 %v2749_v50  ;;  %v2338_v57 = vunpack.c.h.bf16 %v2749_v50  ;;  %v2754_v33 = vld [vmem:[%s3607_s0 + $0x80] sm:$0xff]   ;;  %v256_v36 = vadd.f32 %v3166_v13, %v185_v26 }
  0x1e   :  { %v312_v4 = vmax.f32 %v248_v59, 0.0  ;;  %v257_v37 = vadd.f32 %v3166_v13, %v186_v27  ;;  %v2357_v42 = vunpack.c.l.bf16 %v2754_v33  ;;  %v2365_v59 = vunpack.c.l.bf16 %v2756_v53 }
  0x1f   :  { %2927 = vmatpush3.bf16.msra.mxu0 %v3081_v45  ;;  %v2334_v45 = vunpack.c.h.bf16 %v2748_v35  ;;  %v311_v52 = vmax.f32 %v247_v43, 0.0  ;;  %v181_v2 = vmul.f32 %v2337_v56, %v3158_v9  ;;  %v182_v3 = vmul.f32 %v2338_v57, %v3158_v9 }
  0x20   :  { %3007 = vmatpush3.bf16.msra.mxu1 %v3087_v62  ;;  %v2353_v35 = vunpack.c.l.bf16 %v2753_v29  ;;  %v2358_v43 = vunpack.c.h.bf16 %v2754_v33  ;;  %v321_v46 = vmax.f32 %v257_v37, 0.0  ;;  %v2366_v63 = vunpack.c.h.bf16 %v2756_v53 }
  0x21   :  { %v180_v54 = vmul.f32 %v2334_v45, %v3158_v9  ;;  %v366_v62 = vpack.c.bf16 %v311_v52, %v310_v51  ;;  %v252_v14 = vadd.f32 %v3166_v13, %v181_v2  ;;  %v253_v15 = vadd.f32 %v3166_v13, %v182_v3 }
  0x22   :  { %2929 = vmatmul.mubr.bf16.vlgmr.msra.gmra.mrb[0].mxu0 %v359_v60  ;;  %v189_v44 = vmul.f32 %v2353_v35, %v3158_v9  ;;  %v320_v45 = vmax.f32 %v256_v36, 0.0  ;;  %v191_v51 = vmul.f32 %v2357_v42, %v3158_v9  ;;  %v192_v52 = vmul.f32 %v2358_v43, %v3158_v9 }
  0x23   :  { %2932 = vmatprep.mubr.bf16.mxu0 %v360_v1  ;;  %3009 = vmatmul.mubr.bf16.vlgmr.msra.gmra.mrb[0].mxu1 %v359_v60  ;;  %v249_v60 = vadd.f32 %v3166_v13, %v178_v49  ;;  %v251_v0 = vadd.f32 %v3166_v13, %v180_v54  ;;  %v316_v24 = vmax.f32 %v252_v14, 0.0  ;;  %v317_v25 = vmax.f32 %v253_v15, 0.0 }
  0x24   :  { %3012 = vmatprep.mubr.bf16.mxu1 %v360_v1  ;;  %v2342_v1 = vunpack.c.h.bf16 %v2750_v55  ;;  %v260_v54 = vadd.f32 %v3166_v13, %v189_v44  ;;  %v2361_v55 = vunpack.c.l.bf16 %v2755_v48  ;;  %v371_v56 = vpack.c.bf16 %v321_v46, %v320_v45 }
  0x25   :  { %v313_v5 = vmax.f32 %v249_v60, 0.0  ;;  %v315_v7 = vmax.f32 %v251_v0, 0.0  ;;  %v369_v34 = vpack.c.bf16 %v317_v25, %v316_v24  ;;  %v262_v61 = vadd.f32 %v3166_v13, %v191_v51  ;;  %v2762_v51 = vld [vmem:[%s3607_s0 + $0xc0] sm:$0xff]  }
  0x26   :  { %v184_v10 = vmul.f32 %v2342_v1, %v3158_v9  ;;  %v324_v0 = vmax.f32 %v260_v54, 0.0  ;;  %v193_v2 = vmul.f32 %v2361_v55, %v3158_v9  ;;  %v196_v8 = vmul.f32 %v2366_v63, %v3158_v9 }
  0x27   :  { %v368_v20 = vpack.c.bf16 %v315_v7, %v314_v6  ;;  %v326_v6 = vmax.f32 %v262_v61, 0.0  ;;  %v2390_v61 = vunpack.c.h.bf16 %v2762_v51 }
  0x28   :  { %v255_v22 = vadd.f32 %v3166_v13, %v184_v10  ;;  %v2758_v10 = vld [vmem:[%s3607_s0 + $0xa0] sm:$0xff]   ;;  %v264_v15 = vadd.f32 %v3166_v13, %v193_v2  ;;  %v267_v19 = vadd.f32 %v3166_v13, %v196_v8  ;;  %v2763_v2 = vld [vmem:[%s3607_s0 + $0xc8] sm:$0xff]  }
  0x29   :  { %v2374_v21 = vunpack.c.h.bf16 %v2758_v10 }
  0x2a   :  { %2933 = vmatmul.mubr.bf16.gmra.mrb[4].mxu0 %v361_v16  ;;  %v319_v31 = vmax.f32 %v255_v22, 0.0  ;;  %v328_v24 = vmax.f32 %v264_v15, 0.0  ;;  %v331_v27 = vmax.f32 %v267_v19, 0.0 }
  0x2b   :  { %2936 = vmatprep.mubr.bf16.mxu0 %v362_v23  ;;  %3013 = vmatmul.mubr.bf16.gmra.mrb[4].mxu1 %v361_v16  ;;  %v367_v16 = vpack.c.bf16 %v313_v5, %v312_v4  ;;  %v195_v4 = vmul.f32 %v2365_v59, %v3158_v9  ;;  %v2757_v5 = vld [vmem:[%s3607_s0 + $0x98] sm:$0xff]  }
  0x2c   :  { %3016 = vmatprep.mubr.bf16.mxu1 %v362_v23  ;;  %v2350_v23 = vunpack.c.h.bf16 %v2752_v12  ;;  %v370_v40 = vpack.c.bf16 %v319_v31, %v318_v30  ;;  %v2369_v11 = vunpack.c.l.bf16 %v2757_v5  ;;  %v2370_v12 = vunpack.c.h.bf16 %v2757_v5  ;;  %v2759_v30 = vld [vmem:[%s3607_s0 + $0xa8] sm:$0xff]   ;;  %v2760_v31 = vld [vmem:[%s3607_s0 + $0xb0] sm:$0xff]  }
  0x2d   :  { %v266_v17 = vadd.f32 %v3166_v13, %v195_v4  ;;  %v2377_v35 = vunpack.c.l.bf16 %v2759_v30  ;;  %v2378_v36 = vunpack.c.h.bf16 %v2759_v30  ;;  %v2381_v37 = vunpack.c.l.bf16 %v2760_v31 }
  0x2e   :  { %v188_v32 = vmul.f32 %v2350_v23, %v3158_v9  ;;  %v197_v22 = vmul.f32 %v2369_v11, %v3158_v9  ;;  %v198_v23 = vmul.f32 %v2370_v12, %v3158_v9  ;;  %v2394_v11 = vunpack.c.h.bf16 %v2763_v2 }
  0x2f   :  { %v330_v26 = vmax.f32 %v266_v17, 0.0  ;;  %v201_v44 = vmul.f32 %v2377_v35, %v3158_v9  ;;  %v202_v45 = vmul.f32 %v2378_v36, %v3158_v9  ;;  %v203_v46 = vmul.f32 %v2381_v37, %v3158_v9 }
  0x30   :  { %v259_v41 = vadd.f32 %v3166_v13, %v188_v32  ;;  %v268_v32 = vadd.f32 %v3166_v13, %v197_v22  ;;  %v269_v33 = vadd.f32 %v3166_v13, %v198_v23 }
  0x31   :  { %v272_v54 = vadd.f32 %v3166_v13, %v201_v44  ;;  %v273_v55 = vadd.f32 %v3166_v13, %v202_v45 }
  0x32   :  { %2937 = vmatmul.mubr.bf16.gmra.mrb[8].mxu0 %v363_v38  ;;  %v323_v50 = vmax.f32 %v259_v41, 0.0  ;;  %v2382_v41 = vunpack.c.h.bf16 %v2760_v31  ;;  %v332_v42 = vmax.f32 %v268_v32, 0.0  ;;  %v333_v43 = vmax.f32 %v269_v33, 0.0 }
  0x33   :  { %2940 = vmatprep.mubr.bf16.mxu0 %v364_v39  ;;  %3017 = vmatmul.mubr.bf16.gmra.mrb[8].mxu1 %v363_v38  ;;  %v258_v38 = vadd.f32 %v3166_v13, %v187_v28  ;;  %v336_v63 = vmax.f32 %v272_v54, 0.0 }
  0x34   :  { %3020 = vmatprep.mubr.bf16.mxu1 %v364_v39  ;;  %v2354_v39 = vunpack.c.h.bf16 %v2753_v29  ;;  %v200_v29 = vmul.f32 %v2374_v21, %v3158_v9  ;;  %v210_v21 = vmul.f32 %v2394_v11, %v3158_v9 }
  0x35   :  { %v322_v49 = vmax.f32 %v258_v38, 0.0  ;;  %v376_v38 = vpack.c.bf16 %v331_v27, %v330_v26  ;;  %v2765_v26 = vld [vmem:[%s3607_s0 + $0xd8] sm:$0xff]  }
  0x36   :  { %v190_v47 = vmul.f32 %v2354_v39, %v3158_v9  ;;  %v281_v31 = vadd.f32 %v3166_v13, %v210_v21  ;;  %v2401_v32 = vunpack.c.l.bf16 %v2765_v26  ;;  %v2402_v36 = vunpack.c.h.bf16 %v2765_v26 }
  0x37   :  { %v372_v60 = vpack.c.bf16 %v323_v50, %v322_v49  ;;  %v204_v50 = vmul.f32 %v2382_v41, %v3158_v9 }
  0x38   :  { %v261_v57 = vadd.f32 %v3166_v13, %v190_v47  ;;  %v2761_v47 = vld [vmem:[%s3607_s0 + $0xb8] sm:$0xff]   ;;  %v345_v41 = vmax.f32 %v281_v31, 0.0  ;;  %v214_v45 = vmul.f32 %v2402_v36, %v3158_v9 }
  0x39   :  { %v2385_v53 = vunpack.c.l.bf16 %v2761_v47  ;;  %v275_v59 = vadd.f32 %v3166_v13, %v204_v50 }
  0x3a   :  { %2941 = vmatmul.mubr.bf16.gmra.mrb[12].mxu0 %v365_v58  ;;  %v325_v1 = vmax.f32 %v261_v57, 0.0  ;;  %v2386_v57 = vunpack.c.h.bf16 %v2761_v47 }
  0x3b   :  { %2944 = vmatprep.mubr.bf16.mxu0 %v366_v62  ;;  %3021 = vmatmul.mubr.bf16.gmra.mrb[12].mxu1 %v365_v58  ;;  %v2362_v58 = vunpack.c.h.bf16 %v2755_v48  ;;  %v339_v4 = vmax.f32 %v275_v59, 0.0 }
  0x3c   :  { %3024 = vmatprep.mubr.bf16.mxu1 %v366_v62  ;;  %v263_v62 = vadd.f32 %v3166_v13, %v192_v52  ;;  %v373_v14 = vpack.c.bf16 %v325_v1, %v324_v0  ;;  %v377_v52 = vpack.c.bf16 %v333_v43, %v332_v42  ;;  %v337_v0 = vmax.f32 %v273_v55, 0.0 }
  0x3d   :  { %v194_v3 = vmul.f32 %v2362_v58, %v3158_v9  ;;  %v206_v1 = vmul.f32 %v2386_v57, %v3158_v9  ;;  %v213_v42 = vmul.f32 %v2401_v32, %v3158_v9 }
  0x3e   :  { %v327_v7 = vmax.f32 %v263_v62, 0.0  ;;  %v205_v62 = vmul.f32 %v2385_v53, %v3158_v9  ;;  %v379_v12 = vpack.c.bf16 %v337_v0, %v336_v63  ;;  %v285_v53 = vadd.f32 %v3166_v13, %v214_v45  ;;  %v2769_v0 = vld [vmem:[%s3607_s0 + $0xf8] sm:$0xff]  }
  0x40   :  { %v374_v18 = vpack.c.bf16 %v327_v7, %v326_v6  ;;  %v208_v6 = vmul.f32 %v2390_v61, %v3158_v9  ;;  %v2764_v7 = vld [vmem:[%s3607_s0 + $0xd0] sm:$0xff]   ;;  %v276_v8 = vadd.f32 %v3166_v13, %v205_v62  ;;  %v349_v61 = vmax.f32 %v285_v53, 0.0 }
  0x41   :  { %v2397_v15 = vunpack.c.l.bf16 %v2764_v7 }
  0x42   :  { %2945 = vmatmul.mubr.bf16.gmra.mrb[16].mxu0 %v367_v16  ;;  %v279_v19 = vadd.f32 %v3166_v13, %v208_v6  ;;  %v340_v22 = vmax.f32 %v276_v8, 0.0 }
  0x43   :  { %2948 = vmatprep.mubr.bf16.mxu0 %v368_v20  ;;  %3025 = vmatmul.mubr.bf16.gmra.mrb[16].mxu1 %v367_v16  ;;  %v265_v16 = vadd.f32 %v3166_v13, %v194_v3 }
  0x44   :  { %3028 = vmatprep.mubr.bf16.mxu1 %v368_v20  ;;  %v2373_v20 = vunpack.c.l.bf16 %v2758_v10  ;;  %v2393_v10 = vunpack.c.l.bf16 %v2763_v2 }
  0x45   :  { %v329_v25 = vmax.f32 %v265_v16, 0.0  ;;  %v2398_v16 = vunpack.c.h.bf16 %v2764_v7 }
  0x46   :  { %v199_v28 = vmul.f32 %v2373_v20, %v3158_v9  ;;  %v209_v20 = vmul.f32 %v2393_v10, %v3158_v9  ;;  %v2418_v10 = vunpack.c.h.bf16 %v2769_v0 }
  0x48   :  { %v270_v39 = vadd.f32 %v3166_v13, %v199_v28  ;;  %v343_v28 = vmax.f32 %v279_v19, 0.0  ;;  %v280_v30 = vadd.f32 %v3166_v13, %v209_v20 }
  0x4a   :  { %2949 = vmatmul.mubr.bf16.gmra.mrb[20].mxu0 %v369_v34  ;;  %v334_v48 = vmax.f32 %v270_v39, 0.0 }
  0x4b   :  { %2952 = vmatprep.mubr.bf16.mxu0 %v370_v40  ;;  %3029 = vmatmul.mubr.bf16.gmra.mrb[20].mxu1 %v369_v34  ;;  %v375_v34 = vpack.c.bf16 %v329_v25, %v328_v24  ;;  %v211_v24 = vmul.f32 %v2397_v15, %v3158_v9  ;;  %v212_v25 = vmul.f32 %v2398_v16, %v3158_v9 }
  0x4c   :  { %3032 = vmatprep.mubr.bf16.mxu1 %v370_v40  ;;  %v271_v40 = vadd.f32 %v3166_v13, %v200_v29  ;;  %v2766_v29 = vld [vmem:[%s3607_s0 + $0xe0] sm:$0xff]  }
  0x4d   :  { %v283_v35 = vadd.f32 %v3166_v13, %v212_v25  ;;  %v2406_v39 = vunpack.c.h.bf16 %v2766_v29 }
  0x4e   :  { %v335_v49 = vmax.f32 %v271_v40, 0.0  ;;  %v344_v40 = vmax.f32 %v280_v30, 0.0 }
  0x4f   :  { %v347_v44 = vmax.f32 %v283_v35, 0.0  ;;  %v216_v47 = vmul.f32 %v2406_v39, %v3158_v9 }
  0x50   :  { %v378_v58 = vpack.c.bf16 %v335_v49, %v334_v48  ;;  %v2767_v48 = vld [vmem:[%s3607_s0 + $0xe8] sm:$0xff]   ;;  %v2768_v49 = vld [vmem:[%s3607_s0 + $0xf0] sm:$0xff]   ;;  %v383_v50 = vpack.c.bf16 %v345_v41, %v344_v40 }
  0x51   :  { %v2409_v54 = vunpack.c.l.bf16 %v2767_v48  ;;  %v2410_v55 = vunpack.c.h.bf16 %v2767_v48  ;;  %v287_v57 = vadd.f32 %v3166_v13, %v216_v47  ;;  %v2414_v59 = vunpack.c.h.bf16 %v2768_v49 }
  0x52   :  { %2953 = vmatmul.mubr.bf16.gmra.mrb[24].mxu0 %v371_v56 }
  0x53   :  { %2956 = vmatprep.mubr.bf16.mxu0 %v372_v60  ;;  %3033 = vmatmul.mubr.bf16.gmra.mrb[24].mxu1 %v371_v56  ;;  %v274_v56 = vadd.f32 %v3166_v13, %v203_v46  ;;  %v217_v62 = vmul.f32 %v2409_v54, %v3158_v9  ;;  %v218_v63 = vmul.f32 %v2410_v55, %v3158_v9  ;;  %v351_v2 = vmax.f32 %v287_v57, 0.0 }
  0x54   :  { %3036 = vmatprep.mubr.bf16.mxu1 %v372_v60  ;;  %v2389_v60 = vunpack.c.l.bf16 %v2762_v51  ;;  %v284_v51 = vadd.f32 %v3166_v13, %v213_v42 }
  0x55   :  { %v338_v3 = vmax.f32 %v274_v56, 0.0  ;;  %v288_v7 = vadd.f32 %v3166_v13, %v217_v62  ;;  %v289_v8 = vadd.f32 %v3166_v13, %v218_v63 }
  0x56   :  { %v207_v5 = vmul.f32 %v2389_v60, %v3158_v9  ;;  %v348_v60 = vmax.f32 %v284_v51, 0.0 }
  0x57   :  { %v380_v17 = vpack.c.bf16 %v339_v4, %v338_v3  ;;  %v220_v4 = vmul.f32 %v2414_v59, %v3158_v9  ;;  %v352_v15 = vmax.f32 %v288_v7, 0.0  ;;  %v353_v16 = vmax.f32 %v289_v8, 0.0 }
  0x58   :  { %v385_v6 = vpack.c.bf16 %v349_v61, %v348_v60 }
  0x59   :  { %v387_v21 = vpack.c.bf16 %v353_v16, %v352_v15 }
  0x5a   :  { %2957 = vmatmul.mubr.bf16.gmra.mrb[28].mxu0 %v373_v14 }
  0x5b   :  { %2960 = vmatprep.mubr.bf16.mxu0 %v374_v18  ;;  %3037 = vmatmul.mubr.bf16.gmra.mrb[28].mxu1 %v373_v14  ;;  %v277_v14 = vadd.f32 %v3166_v13, %v206_v1 }
  0x5c   :  { %3040 = vmatprep.mubr.bf16.mxu1 %v374_v18  ;;  %v278_v18 = vadd.f32 %v3166_v13, %v207_v5  ;;  %v2417_v5 = vunpack.c.l.bf16 %v2769_v0 }
  0x5d   :  { %v341_v23 = vmax.f32 %v277_v14, 0.0  ;;  %v291_v14 = vadd.f32 %v3166_v13, %v220_v4 }
  0x5e   :  { %v342_v27 = vmax.f32 %v278_v18, 0.0  ;;  %v222_v18 = vmul.f32 %v2418_v10, %v3158_v9 }
  0x5f   :  { %v381_v33 = vpack.c.bf16 %v341_v23, %v340_v22  ;;  %v355_v20 = vmax.f32 %v291_v14, 0.0 }
  0x60   :  { %v382_v37 = vpack.c.bf16 %v343_v28, %v342_v27  ;;  %v293_v23 = vadd.f32 %v3166_v13, %v222_v18 }
  0x62   :  { %2961 = vmatmul.mubr.bf16.gmra.mrb[32].mxu0 %v375_v34  ;;  %v357_v26 = vmax.f32 %v293_v23, 0.0 }
  0x63   :  { %2964 = vmatprep.mubr.bf16.mxu0 %v376_v38  ;;  %3041 = vmatmul.mubr.bf16.gmra.mrb[32].mxu1 %v375_v34  ;;  %v282_v34 = vadd.f32 %v3166_v13, %v211_v24 }
  0x64   :  { %3044 = vmatprep.mubr.bf16.mxu1 %v376_v38  ;;  %v2405_v38 = vunpack.c.l.bf16 %v2766_v29 }
  0x65   :  { %v346_v43 = vmax.f32 %v282_v34, 0.0 }
  0x66   :  { %v215_v46 = vmul.f32 %v2405_v38, %v3158_v9 }
  0x68   :  { %v286_v56 = vadd.f32 %v3166_v13, %v215_v46 }
  0x6a   :  { %2965 = vmatmul.mubr.bf16.gmra.mrb[36].mxu0 %v377_v52  ;;  %v350_v1 = vmax.f32 %v286_v56, 0.0 }
  0x6b   :  { %2968 = vmatprep.mubr.bf16.mxu0 %v378_v58  ;;  %3045 = vmatmul.mubr.bf16.gmra.mrb[36].mxu1 %v377_v52  ;;  %v384_v52 = vpack.c.bf16 %v347_v44, %v346_v43 }
  0x6c   :  { %3048 = vmatprep.mubr.bf16.mxu1 %v378_v58  ;;  %v2413_v58 = vunpack.c.l.bf16 %v2768_v49  ;;  %v386_v11 = vpack.c.bf16 %v351_v2, %v350_v1 }
  0x6e   :  { %v219_v3 = vmul.f32 %v2413_v58, %v3158_v9 }
  0x72   :  { %2969 = vmatmul.mubr.bf16.gmra.mrb[40].mxu0 %v379_v12 }
  0x73   :  { %2972 = vmatprep.mubr.bf16.mxu0 %v380_v17  ;;  %3049 = vmatmul.mubr.bf16.gmra.mrb[40].mxu1 %v379_v12  ;;  %v290_v12 = vadd.f32 %v3166_v13, %v219_v3 }
  0x74   :  { %3052 = vmatprep.mubr.bf16.mxu1 %v380_v17  ;;  %v221_v17 = vmul.f32 %v2417_v5, %v3158_v9 }
  0x75   :  { %v354_v19 = vmax.f32 %v290_v12, 0.0 }
  0x76   :  { %v292_v22 = vadd.f32 %v3166_v13, %v221_v17 }
  0x77   :  { %v388_v24 = vpack.c.bf16 %v355_v20, %v354_v19 }
  0x78   :  { %v356_v25 = vmax.f32 %v292_v22, 0.0 }
  0x7a   :  { %2973 = vmatmul.mubr.bf16.gmra.mrb[44].mxu0 %v381_v33  ;;  %v389_v27 = vpack.c.bf16 %v357_v26, %v356_v25 }
  0x7b   :  { %2976 = vmatprep.mubr.bf16.mxu0 %v382_v37  ;;  %3053 = vmatmul.mubr.bf16.gmra.mrb[44].mxu1 %v381_v33 }
  0x7c   :  { %3056 = vmatprep.mubr.bf16.mxu1 %v382_v37 }
  0x82   :  { %2977 = vmatmul.mubr.bf16.gmra.mrb[48].mxu0 %v383_v50 }
  0x83   :  { %2980 = vmatprep.mubr.bf16.mxu0 %v384_v52  ;;  %3057 = vmatmul.mubr.bf16.gmra.mrb[48].mxu1 %v383_v50 }
  0x84   :  { %3060 = vmatprep.mubr.bf16.mxu1 %v384_v52 }
  0x8a   :  { %2981 = vmatmul.mubr.bf16.gmra.mrb[52].mxu0 %v385_v6 }
  0x8b   :  { %2984 = vmatprep.mubr.bf16.mxu0 %v386_v11  ;;  %3061 = vmatmul.mubr.bf16.gmra.mrb[52].mxu1 %v385_v6 }
  0x8c   :  { %3064 = vmatprep.mubr.bf16.mxu1 %v386_v11 }
  0x92   :  { %2985 = vmatmul.mubr.bf16.gmra.mrb[56].mxu0 %v387_v21 }
  0x93   :  { %2988 = vmatprep.mubr.bf16.mxu0 %v388_v24  ;;  %3065 = vmatmul.mubr.bf16.gmra.mrb[56].mxu1 %v387_v21 }
  0x94   :  { %3068 = vmatprep.mubr.bf16.mxu1 %v388_v24 }
  0x9a   :  { %2989 = vmatmul.mubr.bf16.gmra.mrb[60].mxu0 %v389_v27 }
  0x9b   :  { %3069 = vmatmul.mubr.bf16.gmra.mrb[60].mxu1 %v389_v27 }
  0xf5   :  { %v2930_v9 = vpop.f32.mrb[0].mxu0 }
  0xf6   :  { %v488_v28 = vpop.f32.mrb[1].mxu0  ;;  %v3010_v35 = vpop.f32.mrb[0].mxu1 }
  0xf7   :  { %v2931_v29 = vpop.f32.mrb[2].mxu0  ;;  %v1430_v36 = vpop.f32.mrb[1].mxu1 }
  0xf8   :  { %v744_v30 = vpack.c.bf16 %v2931_v29, %v2930_v9  ;;  %v491_v31 = vpop.f32.mrb[3].mxu0  ;;  %v3011_v42 = vpop.f32.mrb[2].mxu1 }
  0xf9   :  { %v743_v32 = vpack.c.bf16 %v491_v31, %v488_v28  ;;  %v2587_v44 = vpack.c.bf16 %v3011_v42, %v3010_v35  ;;  %v1433_v45 = vpop.f32.mrb[3].mxu1 }
  0xfa   :  { %2770 = vst [vmem:[%s3610_s5 + $0x8] sm:$0xff] %v744_v30   ;;  %v1065_v13 = vunpack.c.l.bf16 %v744_v30  ;;  %v1066_v37 = vunpack.c.h.bf16 %v744_v30  ;;  %v2582_v50 = vpack.c.bf16 %v1433_v45, %v1430_v36 }
  0xfb   :  { %2423 = vst [vmem:[%s3610_s5] sm:$0xff] %v743_v32   ;;  %v1063_v33 = vunpack.c.l.bf16 %v743_v32  ;;  %v1064_v34 = vunpack.c.h.bf16 %v743_v32  ;;  %2801 = vst [vmem:[%s3611_s6 + $0x8] sm:$0xff] %v2587_v44  }
  0xfc   :  { %v1198_v46 = vmul.f32 %v1065_v13, %v1065_v13  ;;  %v1199_v53 = vmul.f32 %v1066_v37, %v1066_v37  ;;  %2583 = vst [vmem:[%s3611_s6] sm:$0xff] %v2582_v50  }
  0xfd   :  { %v1127_v38 = vadd.f32 %v1064_v34, %v1063_v33  ;;  %v1196_v39 = vmul.f32 %v1063_v33, %v1063_v33  ;;  %v1197_v40 = vmul.f32 %v1064_v34, %v1064_v34  ;;  %v2934_v41 = vpop.f32.mrb[4].mxu0 }
  0xfe   :  { %v504_v43 = vpop.f32.mrb[5].mxu0  ;;  %v3014_v60 = vpop.f32.mrb[4].mxu1 }
  0xff   :  { %v1128_v47 = vadd.f32 %v1127_v38, %v1065_v13  ;;  %v1260_v48 = vadd.f32 %v1197_v40, %v1196_v39  ;;  %v2935_v49 = vpop.f32.mrb[6].mxu0  ;;  %v1446_v61 = vpop.f32.mrb[5].mxu1 }
 0x100   :  { %v746_v51 = vpack.c.bf16 %v2935_v49, %v2934_v41  ;;  %v507_v52 = vpop.f32.mrb[7].mxu0  ;;  %v3015_v2 = vpop.f32.mrb[6].mxu1 }
 0x101   :  { %v1261_v54 = vadd.f32 %v1260_v48, %v1198_v46  ;;  %v745_v55 = vpack.c.bf16 %v507_v52, %v504_v43  ;;  %v1129_v56 = vadd.f32 %v1128_v47, %v1066_v37  ;;  %v2597_v5 = vpack.c.bf16 %v3015_v2, %v3014_v60  ;;  %v1449_v6 = vpop.f32.mrb[7].mxu1 }
 0x102   :  { %2772 = vst [vmem:[%s3610_s5 + $0x18] sm:$0xff] %v746_v51   ;;  %v1069_v62 = vunpack.c.l.bf16 %v746_v51  ;;  %v1070_v3 = vunpack.c.h.bf16 %v746_v51  ;;  %v2592_v12 = vpack.c.bf16 %v1449_v6, %v1446_v61 }
 0x103   :  { %2771 = vst [vmem:[%s3610_s5 + $0x10] sm:$0xff] %v745_v55   ;;  %v1067_v57 = vunpack.c.l.bf16 %v745_v55  ;;  %v1068_v58 = vunpack.c.h.bf16 %v745_v55  ;;  %v1262_v59 = vadd.f32 %v1261_v54, %v1199_v53  ;;  %2803 = vst [vmem:[%s3611_s6 + $0x18] sm:$0xff] %v2597_v5  }
 0x104   :  { %v1202_v16 = vmul.f32 %v1069_v62, %v1069_v62  ;;  %2802 = vst [vmem:[%s3611_s6 + $0x10] sm:$0xff] %v2592_v12   ;;  %v1203_v20 = vmul.f32 %v1070_v3, %v1070_v3 }
 0x105   :  { %v1130_v63 = vadd.f32 %v1129_v56, %v1067_v57  ;;  %v1200_v0 = vmul.f32 %v1067_v57, %v1067_v57  ;;  %v2938_v1 = vpop.f32.mrb[8].mxu0  ;;  %v1201_v8 = vmul.f32 %v1068_v58, %v1068_v58 }
 0x106   :  { %v520_v4 = vpop.f32.mrb[9].mxu0  ;;  %v3018_v25 = vpop.f32.mrb[8].mxu1 }
 0x107   :  { %v1131_v7 = vadd.f32 %v1130_v63, %v1068_v58  ;;  %v1263_v10 = vadd.f32 %v1262_v59, %v1200_v0  ;;  %v2939_v11 = vpop.f32.mrb[10].mxu0  ;;  %v1462_v26 = vpop.f32.mrb[9].mxu1 }
 0x108   :  { %v748_v14 = vpack.c.bf16 %v2939_v11, %v2938_v1  ;;  %v523_v15 = vpop.f32.mrb[11].mxu0  ;;  %v3019_v31 = vpop.f32.mrb[10].mxu1 }
 0x109   :  { %v1132_v17 = vadd.f32 %v1131_v7, %v1069_v62  ;;  %v1264_v18 = vadd.f32 %v1263_v10, %v1201_v8  ;;  %v747_v19 = vpack.c.bf16 %v523_v15, %v520_v4  ;;  %v2607_v33 = vpack.c.bf16 %v3019_v31, %v3018_v25  ;;  %v1465_v34 = vpop.f32.mrb[11].mxu1 }
 0x10a   :  { %2774 = vst [vmem:[%s3610_s5 + $0x28] sm:$0xff] %v748_v14   ;;  %v1073_v27 = vunpack.c.l.bf16 %v748_v14  ;;  %v1074_v32 = vunpack.c.h.bf16 %v748_v14  ;;  %v2602_v39 = vpack.c.bf16 %v1465_v34, %v1462_v26 }
 0x10b   :  { %v1265_v21 = vadd.f32 %v1264_v18, %v1202_v16  ;;  %2773 = vst [vmem:[%s3610_s5 + $0x20] sm:$0xff] %v747_v19   ;;  %v1071_v22 = vunpack.c.l.bf16 %v747_v19  ;;  %v1072_v23 = vunpack.c.h.bf16 %v747_v19  ;;  %v1133_v24 = vadd.f32 %v1132_v17, %v1070_v3  ;;  %2805 = vst [vmem:[%s3611_s6 + $0x28] sm:$0xff] %v2607_v33  }
 0x10c   :  { %v1206_v42 = vmul.f32 %v1073_v27, %v1073_v27  ;;  %2804 = vst [vmem:[%s3611_s6 + $0x20] sm:$0xff] %v2602_v39   ;;  %v1207_v46 = vmul.f32 %v1074_v32, %v1074_v32 }
 0x10d   :  { %v1134_v9 = vadd.f32 %v1133_v24, %v1071_v22  ;;  %v1204_v28 = vmul.f32 %v1071_v22, %v1071_v22  ;;  %v1266_v29 = vadd.f32 %v1265_v21, %v1203_v20  ;;  %v2942_v30 = vpop.f32.mrb[12].mxu0  ;;  %v1205_v36 = vmul.f32 %v1072_v23, %v1072_v23 }
 0x10e   :  { %v536_v13 = vpop.f32.mrb[13].mxu0  ;;  %v3022_v51 = vpop.f32.mrb[12].mxu1 }
 0x10f   :  { %v1135_v35 = vadd.f32 %v1134_v9, %v1072_v23  ;;  %v1267_v37 = vadd.f32 %v1266_v29, %v1204_v28  ;;  %v2943_v38 = vpop.f32.mrb[14].mxu0  ;;  %v1478_v52 = vpop.f32.mrb[13].mxu1 }
 0x110   :  { %v750_v40 = vpack.c.bf16 %v2943_v38, %v2942_v30  ;;  %v539_v41 = vpop.f32.mrb[15].mxu0  ;;  %v3023_v58 = vpop.f32.mrb[14].mxu1 }
 0x111   :  { %v1136_v43 = vadd.f32 %v1135_v35, %v1073_v27  ;;  %v1268_v44 = vadd.f32 %v1267_v37, %v1205_v36  ;;  %v749_v45 = vpack.c.bf16 %v539_v41, %v536_v13  ;;  %v2617_v61 = vpack.c.bf16 %v3023_v58, %v3022_v51  ;;  %v1481_v62 = vpop.f32.mrb[15].mxu1 }
 0x112   :  { %2776 = vst [vmem:[%s3610_s5 + $0x38] sm:$0xff] %v750_v40   ;;  %v1077_v53 = vunpack.c.l.bf16 %v750_v40  ;;  %v1078_v59 = vunpack.c.h.bf16 %v750_v40  ;;  %v2612_v3 = vpack.c.bf16 %v1481_v62, %v1478_v52 }
 0x113   :  { %v1269_v47 = vadd.f32 %v1268_v44, %v1206_v42  ;;  %2775 = vst [vmem:[%s3610_s5 + $0x30] sm:$0xff] %v749_v45   ;;  %v1075_v48 = vunpack.c.l.bf16 %v749_v45  ;;  %v1076_v49 = vunpack.c.h.bf16 %v749_v45  ;;  %v1137_v50 = vadd.f32 %v1136_v43, %v1074_v32  ;;  %2807 = vst [vmem:[%s3611_s6 + $0x38] sm:$0xff] %v2617_v61  }
 0x114   :  { %v1210_v6 = vmul.f32 %v1077_v53, %v1077_v53  ;;  %2806 = vst [vmem:[%s3611_s6 + $0x30] sm:$0xff] %v2612_v3   ;;  %v1211_v11 = vmul.f32 %v1078_v59, %v1078_v59 }
 0x115   :  { %v1138_v54 = vadd.f32 %v1137_v50, %v1075_v48  ;;  %v1208_v55 = vmul.f32 %v1075_v48, %v1075_v48  ;;  %v1270_v56 = vadd.f32 %v1269_v47, %v1207_v46  ;;  %v2946_v57 = vpop.f32.mrb[16].mxu0  ;;  %v1209_v0 = vmul.f32 %v1076_v49, %v1076_v49 }
 0x116   :  { %v552_v60 = vpop.f32.mrb[17].mxu0  ;;  %v3026_v17 = vpop.f32.mrb[16].mxu1 }
 0x117   :  { %v1139_v63 = vadd.f32 %v1138_v54, %v1076_v49  ;;  %v1271_v1 = vadd.f32 %v1270_v56, %v1208_v55  ;;  %v2947_v2 = vpop.f32.mrb[18].mxu0  ;;  %v1494_v18 = vpop.f32.mrb[17].mxu1 }
 0x118   :  { %v752_v4 = vpack.c.bf16 %v2947_v2, %v2946_v57  ;;  %v555_v5 = vpop.f32.mrb[19].mxu0  ;;  %v3027_v24 = vpop.f32.mrb[18].mxu1 }
 0x119   :  { %v1140_v7 = vadd.f32 %v1139_v63, %v1077_v53  ;;  %v1272_v8 = vadd.f32 %v1271_v1, %v1209_v0  ;;  %v751_v10 = vpack.c.bf16 %v555_v5, %v552_v60  ;;  %v2627_v27 = vpack.c.bf16 %v3027_v24, %v3026_v17  ;;  %v1497_v9 = vpop.f32.mrb[19].mxu1 }
 0x11a   :  { %2778 = vst [vmem:[%s3610_s5 + $0x48] sm:$0xff] %v752_v4   ;;  %v1081_v19 = vunpack.c.l.bf16 %v752_v4  ;;  %v1082_v25 = vunpack.c.h.bf16 %v752_v4  ;;  %v2622_v32 = vpack.c.bf16 %v1497_v9, %v1494_v18 }
 0x11b   :  { %v1273_v12 = vadd.f32 %v1272_v8, %v1210_v6  ;;  %2777 = vst [vmem:[%s3610_s5 + $0x40] sm:$0xff] %v751_v10   ;;  %v1079_v14 = vunpack.c.l.bf16 %v751_v10  ;;  %v1080_v15 = vunpack.c.h.bf16 %v751_v10  ;;  %v1141_v16 = vadd.f32 %v1140_v7, %v1078_v59  ;;  %2809 = vst [vmem:[%s3611_s6 + $0x48] sm:$0xff] %v2627_v27  }
 0x11c   :  { %v1214_v34 = vmul.f32 %v1081_v19, %v1081_v19  ;;  %2808 = vst [vmem:[%s3611_s6 + $0x40] sm:$0xff] %v2622_v32   ;;  %v1215_v38 = vmul.f32 %v1082_v25, %v1082_v25 }
 0x11d   :  { %v1142_v20 = vadd.f32 %v1141_v16, %v1079_v14  ;;  %v1212_v21 = vmul.f32 %v1079_v14, %v1079_v14  ;;  %v1274_v22 = vadd.f32 %v1273_v12, %v1211_v11  ;;  %v2950_v23 = vpop.f32.mrb[20].mxu0  ;;  %v1213_v29 = vmul.f32 %v1080_v15, %v1080_v15 }
 0x11e   :  { %v568_v26 = vpop.f32.mrb[21].mxu0  ;;  %v3030_v43 = vpop.f32.mrb[20].mxu1 }
 0x11f   :  { %v1143_v28 = vadd.f32 %v1142_v20, %v1080_v15  ;;  %v1275_v30 = vadd.f32 %v1274_v22, %v1212_v21  ;;  %v2951_v31 = vpop.f32.mrb[22].mxu0  ;;  %v1510_v44 = vpop.f32.mrb[21].mxu1 }
 0x120   :  { %v754_v13 = vpack.c.bf16 %v2951_v31, %v2950_v23  ;;  %v571_v33 = vpop.f32.mrb[23].mxu0  ;;  %v3031_v50 = vpop.f32.mrb[22].mxu1 }
 0x121   :  { %v1144_v35 = vadd.f32 %v1143_v28, %v1081_v19  ;;  %v1276_v36 = vadd.f32 %v1275_v30, %v1213_v29  ;;  %v753_v37 = vpack.c.bf16 %v571_v33, %v568_v26  ;;  %v2637_v53 = vpack.c.bf16 %v3031_v50, %v3030_v43  ;;  %v1513_v54 = vpop.f32.mrb[23].mxu1 }
 0x122   :  { %2780 = vst [vmem:[%s3610_s5 + $0x58] sm:$0xff] %v754_v13   ;;  %v1085_v45 = vunpack.c.l.bf16 %v754_v13  ;;  %v1086_v51 = vunpack.c.h.bf16 %v754_v13  ;;  %v2632_v59 = vpack.c.bf16 %v1513_v54, %v1510_v44 }
 0x123   :  { %v1277_v39 = vadd.f32 %v1276_v36, %v1214_v34  ;;  %2779 = vst [vmem:[%s3610_s5 + $0x50] sm:$0xff] %v753_v37   ;;  %v1083_v40 = vunpack.c.l.bf16 %v753_v37  ;;  %v1084_v41 = vunpack.c.h.bf16 %v753_v37  ;;  %v1145_v42 = vadd.f32 %v1144_v35, %v1082_v25  ;;  %2811 = vst [vmem:[%s3611_s6 + $0x58] sm:$0xff] %v2637_v53  }
 0x124   :  { %v1218_v62 = vmul.f32 %v1085_v45, %v1085_v45  ;;  %2810 = vst [vmem:[%s3611_s6 + $0x50] sm:$0xff] %v2632_v59   ;;  %v1219_v2 = vmul.f32 %v1086_v51, %v1086_v51 }
 0x125   :  { %v1146_v46 = vadd.f32 %v1145_v42, %v1083_v40  ;;  %v1216_v47 = vmul.f32 %v1083_v40, %v1083_v40  ;;  %v1278_v48 = vadd.f32 %v1277_v39, %v1215_v38  ;;  %v2954_v49 = vpop.f32.mrb[24].mxu0  ;;  %v1217_v56 = vmul.f32 %v1084_v41, %v1084_v41 }
 0x126   :  { %v584_v52 = vpop.f32.mrb[25].mxu0  ;;  %v3034_v7 = vpop.f32.mrb[24].mxu1 }
 0x127   :  { %v1147_v55 = vadd.f32 %v1146_v46, %v1084_v41  ;;  %v1279_v57 = vadd.f32 %v1278_v48, %v1216_v47  ;;  %v2955_v58 = vpop.f32.mrb[26].mxu0  ;;  %v1526_v8 = vpop.f32.mrb[25].mxu1 }
 0x128   :  { %v756_v60 = vpack.c.bf16 %v2955_v58, %v2954_v49  ;;  %v587_v61 = vpop.f32.mrb[27].mxu0  ;;  %v3035_v16 = vpop.f32.mrb[26].mxu1 }
 0x129   :  { %v1148_v63 = vadd.f32 %v1147_v55, %v1085_v45  ;;  %v1280_v0 = vadd.f32 %v1279_v57, %v1217_v56  ;;  %v755_v1 = vpack.c.bf16 %v587_v61, %v584_v52  ;;  %v2647_v19 = vpack.c.bf16 %v3035_v16, %v3034_v7  ;;  %v1529_v20 = vpop.f32.mrb[27].mxu1 }
 0x12a   :  { %2782 = vst [vmem:[%s3610_s5 + $0x68] sm:$0xff] %v756_v60   ;;  %v1089_v10 = vunpack.c.l.bf16 %v756_v60  ;;  %v1090_v17 = vunpack.c.h.bf16 %v756_v60  ;;  %v2642_v25 = vpack.c.bf16 %v1529_v20, %v1526_v8 }
 0x12b   :  { %v1281_v3 = vadd.f32 %v1280_v0, %v1218_v62  ;;  %2781 = vst [vmem:[%s3610_s5 + $0x60] sm:$0xff] %v755_v1   ;;  %v1087_v4 = vunpack.c.l.bf16 %v755_v1  ;;  %v1088_v5 = vunpack.c.h.bf16 %v755_v1  ;;  %v1149_v6 = vadd.f32 %v1148_v63, %v1086_v51  ;;  %2813 = vst [vmem:[%s3611_s6 + $0x68] sm:$0xff] %v2647_v19  }
 0x12c   :  { %v1222_v9 = vmul.f32 %v1089_v10, %v1089_v10  ;;  %2812 = vst [vmem:[%s3611_s6 + $0x60] sm:$0xff] %v2642_v25   ;;  %v1223_v31 = vmul.f32 %v1090_v17, %v1090_v17 }
 0x12d   :  { %v1150_v11 = vadd.f32 %v1149_v6, %v1087_v4  ;;  %v1220_v12 = vmul.f32 %v1087_v4, %v1087_v4  ;;  %v1282_v14 = vadd.f32 %v1281_v3, %v1219_v2  ;;  %v2958_v15 = vpop.f32.mrb[28].mxu0  ;;  %v1221_v22 = vmul.f32 %v1088_v5, %v1088_v5 }
 0x12e   :  { %v600_v18 = vpop.f32.mrb[29].mxu0  ;;  %v3038_v35 = vpop.f32.mrb[28].mxu1 }
 0x12f   :  { %v1151_v21 = vadd.f32 %v1150_v11, %v1088_v5  ;;  %v1283_v23 = vadd.f32 %v1282_v14, %v1220_v12  ;;  %v2959_v24 = vpop.f32.mrb[30].mxu0  ;;  %v1542_v36 = vpop.f32.mrb[29].mxu1 }
 0x130   :  { %v758_v26 = vpack.c.bf16 %v2959_v24, %v2958_v15  ;;  %v603_v27 = vpop.f32.mrb[31].mxu0  ;;  %v3039_v42 = vpop.f32.mrb[30].mxu1 }
 0x131   :  { %v1152_v28 = vadd.f32 %v1151_v21, %v1089_v10  ;;  %v1284_v29 = vadd.f32 %v1283_v23, %v1221_v22  ;;  %v757_v30 = vpack.c.bf16 %v603_v27, %v600_v18  ;;  %v2657_v45 = vpack.c.bf16 %v3039_v42, %v3038_v35  ;;  %v1545_v46 = vpop.f32.mrb[31].mxu1 }
 0x132   :  { %2784 = vst [vmem:[%s3610_s5 + $0x78] sm:$0xff] %v758_v26   ;;  %v1093_v37 = vunpack.c.l.bf16 %v758_v26  ;;  %v1094_v43 = vunpack.c.h.bf16 %v758_v26  ;;  %v2652_v51 = vpack.c.bf16 %v1545_v46, %v1542_v36 }
 0x133   :  { %v1285_v32 = vadd.f32 %v1284_v29, %v1222_v9  ;;  %2783 = vst [vmem:[%s3610_s5 + $0x70] sm:$0xff] %v757_v30   ;;  %v1091_v13 = vunpack.c.l.bf16 %v757_v30  ;;  %v1092_v33 = vunpack.c.h.bf16 %v757_v30  ;;  %v1153_v34 = vadd.f32 %v1152_v28, %v1090_v17  ;;  %2815 = vst [vmem:[%s3611_s6 + $0x78] sm:$0xff] %v2657_v45  }
 0x134   :  { %v1226_v54 = vmul.f32 %v1093_v37, %v1093_v37  ;;  %2814 = vst [vmem:[%s3611_s6 + $0x70] sm:$0xff] %v2652_v51   ;;  %v1227_v58 = vmul.f32 %v1094_v43, %v1094_v43 }
 0x135   :  { %v1154_v38 = vadd.f32 %v1153_v34, %v1091_v13  ;;  %v1224_v39 = vmul.f32 %v1091_v13, %v1091_v13  ;;  %v1286_v40 = vadd.f32 %v1285_v32, %v1223_v31  ;;  %v2962_v41 = vpop.f32.mrb[32].mxu0  ;;  %v1225_v48 = vmul.f32 %v1092_v33, %v1092_v33 }
 0x136   :  { %v616_v44 = vpop.f32.mrb[33].mxu0  ;;  %v3042_v63 = vpop.f32.mrb[32].mxu1 }
 0x137   :  { %v1155_v47 = vadd.f32 %v1154_v38, %v1092_v33  ;;  %v1287_v49 = vadd.f32 %v1286_v40, %v1224_v39  ;;  %v2963_v50 = vpop.f32.mrb[34].mxu0  ;;  %v1558_v0 = vpop.f32.mrb[33].mxu1 }
 0x138   :  { %v760_v52 = vpack.c.bf16 %v2963_v50, %v2962_v41  ;;  %v619_v53 = vpop.f32.mrb[35].mxu0  ;;  %v3043_v6 = vpop.f32.mrb[34].mxu1 }
 0x139   :  { %v1156_v55 = vadd.f32 %v1155_v47, %v1093_v37  ;;  %v1288_v56 = vadd.f32 %v1287_v49, %v1225_v48  ;;  %v759_v57 = vpack.c.bf16 %v619_v53, %v616_v44  ;;  %v2667_v10 = vpack.c.bf16 %v3043_v6, %v3042_v63  ;;  %v1561_v11 = vpop.f32.mrb[35].mxu1 }
 0x13a   :  { %2786 = vst [vmem:[%s3610_s5 + $0x88] sm:$0xff] %v760_v52   ;;  %v1097_v1 = vunpack.c.l.bf16 %v760_v52  ;;  %v1098_v7 = vunpack.c.h.bf16 %v760_v52  ;;  %v2662_v17 = vpack.c.bf16 %v1561_v11, %v1558_v0 }
 0x13b   :  { %v1289_v59 = vadd.f32 %v1288_v56, %v1226_v54  ;;  %2785 = vst [vmem:[%s3610_s5 + $0x80] sm:$0xff] %v759_v57   ;;  %v1095_v60 = vunpack.c.l.bf16 %v759_v57  ;;  %v1096_v61 = vunpack.c.h.bf16 %v759_v57  ;;  %v1157_v62 = vadd.f32 %v1156_v55, %v1094_v43  ;;  %2817 = vst [vmem:[%s3611_s6 + $0x88] sm:$0xff] %v2667_v10  }
 0x13c   :  { %v1230_v20 = vmul.f32 %v1097_v1, %v1097_v1  ;;  %2816 = vst [vmem:[%s3611_s6 + $0x80] sm:$0xff] %v2662_v17   ;;  %v1231_v24 = vmul.f32 %v1098_v7, %v1098_v7 }
 0x13d   :  { %v1158_v2 = vadd.f32 %v1157_v62, %v1095_v60  ;;  %v1228_v3 = vmul.f32 %v1095_v60, %v1095_v60  ;;  %v1290_v4 = vadd.f32 %v1289_v59, %v1227_v58  ;;  %v2966_v5 = vpop.f32.mrb[36].mxu0  ;;  %v1229_v14 = vmul.f32 %v1096_v61, %v1096_v61 }
 0x13e   :  { %v632_v8 = vpop.f32.mrb[37].mxu0  ;;  %v3046_v28 = vpop.f32.mrb[36].mxu1 }
 0x13f   :  { %v1159_v12 = vadd.f32 %v1158_v2, %v1096_v61  ;;  %v1291_v15 = vadd.f32 %v1290_v4, %v1228_v3  ;;  %v2967_v16 = vpop.f32.mrb[38].mxu0  ;;  %v1574_v29 = vpop.f32.mrb[37].mxu1 }
 0x140   :  { %v762_v18 = vpack.c.bf16 %v2967_v16, %v2966_v5  ;;  %v635_v19 = vpop.f32.mrb[39].mxu0  ;;  %v3047_v34 = vpop.f32.mrb[38].mxu1 }
 0x141   :  { %v1160_v21 = vadd.f32 %v1159_v12, %v1097_v1  ;;  %v1292_v22 = vadd.f32 %v1291_v15, %v1229_v14  ;;  %v761_v23 = vpack.c.bf16 %v635_v19, %v632_v8  ;;  %v2677_v37 = vpack.c.bf16 %v3047_v34, %v3046_v28  ;;  %v1577_v38 = vpop.f32.mrb[39].mxu1 }
 0x142   :  { %2788 = vst [vmem:[%s3610_s5 + $0x98] sm:$0xff] %v762_v18   ;;  %v1101_v30 = vunpack.c.l.bf16 %v762_v18  ;;  %v1102_v35 = vunpack.c.h.bf16 %v762_v18  ;;  %v2672_v43 = vpack.c.bf16 %v1577_v38, %v1574_v29 }
 0x143   :  { %v1293_v25 = vadd.f32 %v1292_v22, %v1230_v20  ;;  %2787 = vst [vmem:[%s3610_s5 + $0x90] sm:$0xff] %v761_v23   ;;  %v1099_v26 = vunpack.c.l.bf16 %v761_v23  ;;  %v1100_v27 = vunpack.c.h.bf16 %v761_v23  ;;  %v1161_v9 = vadd.f32 %v1160_v21, %v1098_v7  ;;  %2819 = vst [vmem:[%s3611_s6 + $0x98] sm:$0xff] %v2677_v37  }
 0x144   :  { %v1234_v46 = vmul.f32 %v1101_v30, %v1101_v30  ;;  %2818 = vst [vmem:[%s3611_s6 + $0x90] sm:$0xff] %v2672_v43   ;;  %v1235_v50 = vmul.f32 %v1102_v35, %v1102_v35 }
 0x145   :  { %v1162_v31 = vadd.f32 %v1161_v9, %v1099_v26  ;;  %v1232_v32 = vmul.f32 %v1099_v26, %v1099_v26  ;;  %v1294_v13 = vadd.f32 %v1293_v25, %v1231_v24  ;;  %v2970_v33 = vpop.f32.mrb[40].mxu0  ;;  %v1233_v40 = vmul.f32 %v1100_v27, %v1100_v27 }
 0x146   :  { %v648_v36 = vpop.f32.mrb[41].mxu0  ;;  %v3050_v55 = vpop.f32.mrb[40].mxu1 }
 0x147   :  { %v1163_v39 = vadd.f32 %v1162_v31, %v1100_v27  ;;  %v1295_v41 = vadd.f32 %v1294_v13, %v1232_v32  ;;  %v2971_v42 = vpop.f32.mrb[42].mxu0  ;;  %v1590_v56 = vpop.f32.mrb[41].mxu1 }
 0x148   :  { %v764_v44 = vpack.c.bf16 %v2971_v42, %v2970_v33  ;;  %v651_v45 = vpop.f32.mrb[43].mxu0  ;;  %v3051_v62 = vpop.f32.mrb[42].mxu1 }
 0x149   :  { %v1164_v47 = vadd.f32 %v1163_v39, %v1101_v30  ;;  %v1296_v48 = vadd.f32 %v1295_v41, %v1233_v40  ;;  %v763_v49 = vpack.c.bf16 %v651_v45, %v648_v36  ;;  %v2687_v1 = vpack.c.bf16 %v3051_v62, %v3050_v55  ;;  %v1593_v2 = vpop.f32.mrb[43].mxu1 }
 0x14a   :  { %2790 = vst [vmem:[%s3610_s5 + $0xa8] sm:$0xff] %v764_v44   ;;  %v1105_v57 = vunpack.c.l.bf16 %v764_v44  ;;  %v1106_v63 = vunpack.c.h.bf16 %v764_v44  ;;  %v2682_v7 = vpack.c.bf16 %v1593_v2, %v1590_v56 }
 0x14b   :  { %v1297_v51 = vadd.f32 %v1296_v48, %v1234_v46  ;;  %2789 = vst [vmem:[%s3610_s5 + $0xa0] sm:$0xff] %v763_v49   ;;  %v1103_v52 = vunpack.c.l.bf16 %v763_v49  ;;  %v1104_v53 = vunpack.c.h.bf16 %v763_v49  ;;  %v1165_v54 = vadd.f32 %v1164_v47, %v1102_v35  ;;  %2821 = vst [vmem:[%s3611_s6 + $0xa8] sm:$0xff] %v2687_v1  }
 0x14c   :  { %v1238_v11 = vmul.f32 %v1105_v57, %v1105_v57  ;;  %2820 = vst [vmem:[%s3611_s6 + $0xa0] sm:$0xff] %v2682_v7   ;;  %v1239_v16 = vmul.f32 %v1106_v63, %v1106_v63 }
 0x14d   :  { %v1166_v58 = vadd.f32 %v1165_v54, %v1103_v52  ;;  %v1236_v59 = vmul.f32 %v1103_v52, %v1103_v52  ;;  %v1298_v60 = vadd.f32 %v1297_v51, %v1235_v50  ;;  %v2974_v61 = vpop.f32.mrb[44].mxu0  ;;  %v1237_v4 = vmul.f32 %v1104_v53, %v1104_v53 }
 0x14e   :  { %v664_v0 = vpop.f32.mrb[45].mxu0  ;;  %v3054_v21 = vpop.f32.mrb[44].mxu1 }
 0x14f   :  { %v1167_v3 = vadd.f32 %v1166_v58, %v1104_v53  ;;  %v1299_v5 = vadd.f32 %v1298_v60, %v1236_v59  ;;  %v2975_v6 = vpop.f32.mrb[46].mxu0  ;;  %v1606_v22 = vpop.f32.mrb[45].mxu1 }
 0x150   :  { %v766_v8 = vpack.c.bf16 %v2975_v6, %v2974_v61  ;;  %v667_v10 = vpop.f32.mrb[47].mxu0  ;;  %v3055_v9 = vpop.f32.mrb[46].mxu1 }
 0x151   :  { %v1168_v12 = vadd.f32 %v1167_v3, %v1105_v57  ;;  %v1300_v14 = vadd.f32 %v1299_v5, %v1237_v4  ;;  %v765_v15 = vpack.c.bf16 %v667_v10, %v664_v0  ;;  %v2697_v30 = vpack.c.bf16 %v3055_v9, %v3054_v21  ;;  %v1609_v31 = vpop.f32.mrb[47].mxu1 }
 0x152   :  { %2792 = vst [vmem:[%s3610_s5 + $0xb8] sm:$0xff] %v766_v8   ;;  %v1109_v23 = vunpack.c.l.bf16 %v766_v8  ;;  %v1110_v28 = vunpack.c.h.bf16 %v766_v8  ;;  %v2692_v35 = vpack.c.bf16 %v1609_v31, %v1606_v22 }
 0x153   :  { %v1301_v17 = vadd.f32 %v1300_v14, %v1238_v11  ;;  %2791 = vst [vmem:[%s3610_s5 + $0xb0] sm:$0xff] %v765_v15   ;;  %v1107_v18 = vunpack.c.l.bf16 %v765_v15  ;;  %v1108_v19 = vunpack.c.h.bf16 %v765_v15  ;;  %v1169_v20 = vadd.f32 %v1168_v12, %v1106_v63  ;;  %2823 = vst [vmem:[%s3611_s6 + $0xb8] sm:$0xff] %v2697_v30  }
 0x154   :  { %v1242_v38 = vmul.f32 %v1109_v23, %v1109_v23  ;;  %2822 = vst [vmem:[%s3611_s6 + $0xb0] sm:$0xff] %v2692_v35   ;;  %v1243_v42 = vmul.f32 %v1110_v28, %v1110_v28 }
 0x155   :  { %v1170_v24 = vadd.f32 %v1169_v20, %v1107_v18  ;;  %v1240_v25 = vmul.f32 %v1107_v18, %v1107_v18  ;;  %v1302_v26 = vadd.f32 %v1301_v17, %v1239_v16  ;;  %v2978_v27 = vpop.f32.mrb[48].mxu0  ;;  %v1241_v13 = vmul.f32 %v1108_v19, %v1108_v19 }
 0x156   :  { %v680_v29 = vpop.f32.mrb[49].mxu0  ;;  %v3058_v47 = vpop.f32.mrb[48].mxu1 }
 0x157   :  { %v1171_v32 = vadd.f32 %v1170_v24, %v1108_v19  ;;  %v1303_v33 = vadd.f32 %v1302_v26, %v1240_v25  ;;  %v2979_v34 = vpop.f32.mrb[50].mxu0  ;;  %v1622_v48 = vpop.f32.mrb[49].mxu1 }
 0x158   :  { %v768_v36 = vpack.c.bf16 %v2979_v34, %v2978_v27  ;;  %v683_v37 = vpop.f32.mrb[51].mxu0  ;;  %v3059_v54 = vpop.f32.mrb[50].mxu1 }
 0x159   :  { %v1172_v39 = vadd.f32 %v1171_v32, %v1109_v23  ;;  %v1304_v40 = vadd.f32 %v1303_v33, %v1241_v13  ;;  %v767_v41 = vpack.c.bf16 %v683_v37, %v680_v29  ;;  %v2707_v57 = vpack.c.bf16 %v3059_v54, %v3058_v47  ;;  %v1625_v58 = vpop.f32.mrb[51].mxu1 }
 0x15a   :  { %2794 = vst [vmem:[%s3610_s5 + $0xc8] sm:$0xff] %v768_v36   ;;  %v1113_v49 = vunpack.c.l.bf16 %v768_v36  ;;  %v1114_v55 = vunpack.c.h.bf16 %v768_v36  ;;  %v2702_v63 = vpack.c.bf16 %v1625_v58, %v1622_v48 }
 0x15b   :  { %v1305_v43 = vadd.f32 %v1304_v40, %v1242_v38  ;;  %2793 = vst [vmem:[%s3610_s5 + $0xc0] sm:$0xff] %v767_v41   ;;  %v1111_v44 = vunpack.c.l.bf16 %v767_v41  ;;  %v1112_v45 = vunpack.c.h.bf16 %v767_v41  ;;  %v1173_v46 = vadd.f32 %v1172_v39, %v1110_v28  ;;  %2825 = vst [vmem:[%s3611_s6 + $0xc8] sm:$0xff] %v2707_v57  }
 0x15c   :  { %v1246_v2 = vmul.f32 %v1113_v49, %v1113_v49  ;;  %2824 = vst [vmem:[%s3611_s6 + $0xc0] sm:$0xff] %v2702_v63   ;;  %v1247_v6 = vmul.f32 %v1114_v55, %v1114_v55 }
 0x15d   :  { %v1174_v50 = vadd.f32 %v1173_v46, %v1111_v44  ;;  %v1244_v51 = vmul.f32 %v1111_v44, %v1111_v44  ;;  %v1306_v52 = vadd.f32 %v1305_v43, %v1243_v42  ;;  %v2982_v53 = vpop.f32.mrb[52].mxu0  ;;  %v1245_v60 = vmul.f32 %v1112_v45, %v1112_v45 }
 0x15e   :  { %v696_v56 = vpop.f32.mrb[53].mxu0  ;;  %v3062_v12 = vpop.f32.mrb[52].mxu1 }
 0x15f   :  { %v1175_v59 = vadd.f32 %v1174_v50, %v1112_v45  ;;  %v1307_v61 = vadd.f32 %v1306_v52, %v1244_v51  ;;  %v2983_v62 = vpop.f32.mrb[54].mxu0  ;;  %v1638_v14 = vpop.f32.mrb[53].mxu1 }
 0x160   :  { %v770_v0 = vpack.c.bf16 %v2983_v62, %v2982_v53  ;;  %v699_v1 = vpop.f32.mrb[55].mxu0  ;;  %v3063_v20 = vpop.f32.mrb[54].mxu1 }
 0x161   :  { %v1176_v3 = vadd.f32 %v1175_v59, %v1113_v49  ;;  %v1308_v4 = vadd.f32 %v1307_v61, %v1245_v60  ;;  %v769_v5 = vpack.c.bf16 %v699_v1, %v696_v56  ;;  %v2717_v23 = vpack.c.bf16 %v3063_v20, %v3062_v12  ;;  %v1641_v24 = vpop.f32.mrb[55].mxu1 }
 0x162   :  { %2796 = vst [vmem:[%s3610_s5 + $0xd8] sm:$0xff] %v770_v0   ;;  %v1117_v15 = vunpack.c.l.bf16 %v770_v0  ;;  %v1118_v21 = vunpack.c.h.bf16 %v770_v0  ;;  %v2712_v28 = vpack.c.bf16 %v1641_v24, %v1638_v14 }
 0x163   :  { %v1309_v7 = vadd.f32 %v1308_v4, %v1246_v2  ;;  %2795 = vst [vmem:[%s3610_s5 + $0xd0] sm:$0xff] %v769_v5   ;;  %v1115_v8 = vunpack.c.l.bf16 %v769_v5  ;;  %v1116_v10 = vunpack.c.h.bf16 %v769_v5  ;;  %v1177_v11 = vadd.f32 %v1176_v3, %v1114_v55  ;;  %2827 = vst [vmem:[%s3611_s6 + $0xd8] sm:$0xff] %v2717_v23  }
 0x164   :  { %v1250_v31 = vmul.f32 %v1117_v15, %v1117_v15  ;;  %2826 = vst [vmem:[%s3611_s6 + $0xd0] sm:$0xff] %v2712_v28   ;;  %v1251_v34 = vmul.f32 %v1118_v21, %v1118_v21 }
 0x165   :  { %v1178_v16 = vadd.f32 %v1177_v11, %v1115_v8  ;;  %v1248_v17 = vmul.f32 %v1115_v8, %v1115_v8  ;;  %v1310_v18 = vadd.f32 %v1309_v7, %v1247_v6  ;;  %v2986_v19 = vpop.f32.mrb[56].mxu0  ;;  %v1249_v26 = vmul.f32 %v1116_v10, %v1116_v10 }
 0x166   :  { %v712_v22 = vpop.f32.mrb[57].mxu0  ;;  %v3066_v39 = vpop.f32.mrb[56].mxu1 }
 0x167   :  { %v1179_v25 = vadd.f32 %v1178_v16, %v1116_v10  ;;  %v1311_v27 = vadd.f32 %v1310_v18, %v1248_v17  ;;  %v2987_v9 = vpop.f32.mrb[58].mxu0  ;;  %v1654_v40 = vpop.f32.mrb[57].mxu1 }
 0x168   :  { %v772_v29 = vpack.c.bf16 %v2987_v9, %v2986_v19  ;;  %v715_v30 = vpop.f32.mrb[59].mxu0  ;;  %v3067_v46 = vpop.f32.mrb[58].mxu1 }
 0x169   :  { %v1180_v32 = vadd.f32 %v1179_v25, %v1117_v15  ;;  %v1312_v13 = vadd.f32 %v1311_v27, %v1249_v26  ;;  %v771_v33 = vpack.c.bf16 %v715_v30, %v712_v22  ;;  %v2727_v49 = vpack.c.bf16 %v3067_v46, %v3066_v39  ;;  %v1657_v50 = vpop.f32.mrb[59].mxu1 }
 0x16a   :  { %2798 = vst [vmem:[%s3610_s5 + $0xe8] sm:$0xff] %v772_v29   ;;  %v1121_v41 = vunpack.c.l.bf16 %v772_v29  ;;  %v1122_v47 = vunpack.c.h.bf16 %v772_v29  ;;  %v2722_v55 = vpack.c.bf16 %v1657_v50, %v1654_v40 }
 0x16b   :  { %v1313_v35 = vadd.f32 %v1312_v13, %v1250_v31  ;;  %2797 = vst [vmem:[%s3610_s5 + $0xe0] sm:$0xff] %v771_v33   ;;  %v1119_v36 = vunpack.c.l.bf16 %v771_v33  ;;  %v1120_v37 = vunpack.c.h.bf16 %v771_v33  ;;  %v1181_v38 = vadd.f32 %v1180_v32, %v1118_v21  ;;  %2829 = vst [vmem:[%s3611_s6 + $0xe8] sm:$0xff] %v2727_v49  }
 0x16c   :  { %v1254_v58 = vmul.f32 %v1121_v41, %v1121_v41  ;;  %2828 = vst [vmem:[%s3611_s6 + $0xe0] sm:$0xff] %v2722_v55   ;;  %v1255_v62 = vmul.f32 %v1122_v47, %v1122_v47 }
 0x16d   :  { %v1182_v42 = vadd.f32 %v1181_v38, %v1119_v36  ;;  %v1252_v43 = vmul.f32 %v1119_v36, %v1119_v36  ;;  %v1314_v44 = vadd.f32 %v1313_v35, %v1251_v34  ;;  %v2990_v45 = vpop.f32.mrb[60].mxu0  ;;  %v1253_v52 = vmul.f32 %v1120_v37, %v1120_v37 }
 0x16e   :  { %v728_v48 = vpop.f32.mrb[61].mxu0  ;;  %v3070_v3 = vpop.f32.mrb[60].mxu1 }
 0x16f   :  { %v1183_v51 = vadd.f32 %v1182_v42, %v1120_v37  ;;  %v1315_v53 = vadd.f32 %v1314_v44, %v1252_v43  ;;  %v2991_v54 = vpop.f32.mrb[62].mxu0  ;;  %v1670_v4 = vpop.f32.mrb[61].mxu1 }
 0x170   :  { %v774_v56 = vpack.c.bf16 %v2991_v54, %v2990_v45  ;;  %v731_v57 = vpop.f32.mrb[63].mxu0  ;;  %v3071_v10 = vpop.f32.mrb[62].mxu1 }
 0x171   :  { %v1184_v59 = vadd.f32 %v1183_v51, %v1121_v41  ;;  %v1316_v60 = vadd.f32 %v1315_v53, %v1253_v52  ;;  %v773_v61 = vpack.c.bf16 %v731_v57, %v728_v48  ;;  %v2737_v12 = vpack.c.bf16 %v3071_v10, %v3070_v3  ;;  %v1673_v14 = vpop.f32.mrb[63].mxu1 }
 0x172   :  { %2800 = vst [vmem:[%s3610_s5 + $0xf8] sm:$0xff] %v774_v56   ;;  %v1125_v5 = vunpack.c.l.bf16 %v774_v56  ;;  %v1126_v11 = vunpack.c.h.bf16 %v774_v56  ;;  %v2732_v18 = vpack.c.bf16 %v1673_v14, %v1670_v4 }
 0x173   :  { %v1317_v63 = vadd.f32 %v1316_v60, %v1254_v58  ;;  %2799 = vst [vmem:[%s3610_s5 + $0xf0] sm:$0xff] %v773_v61   ;;  %v1123_v0 = vunpack.c.l.bf16 %v773_v61  ;;  %v1124_v1 = vunpack.c.h.bf16 %v773_v61  ;;  %v1185_v2 = vadd.f32 %v1184_v59, %v1122_v47  ;;  %2831 = vst [vmem:[%s3611_s6 + $0xf8] sm:$0xff] %v2737_v12  }
 0x174   :  { %v1258_v19 = vmul.f32 %v1125_v5, %v1125_v5  ;;  %2830 = vst [vmem:[%s3611_s6 + $0xf0] sm:$0xff] %v2732_v18   ;;  %v1259_v22 = vmul.f32 %v1126_v11, %v1126_v11 }
 0x175   :  { %v1186_v6 = vadd.f32 %v1185_v2, %v1123_v0  ;;  %v1256_v7 = vmul.f32 %v1123_v0, %v1123_v0  ;;  %v1318_v8 = vadd.f32 %v1317_v63, %v1255_v62  ;;  %v1257_v16 = vmul.f32 %v1124_v1, %v1124_v1 }
 0x177   :  { %v1187_v15 = vadd.f32 %v1186_v6, %v1124_v1  ;;  %v1319_v17 = vadd.f32 %v1318_v8, %v1256_v7 }
 0x179   :  { %v1188_v20 = vadd.f32 %v1187_v15, %v1125_v5  ;;  %v1320_v21 = vadd.f32 %v1319_v17, %v1257_v16 }
 0x17b   :  { %v1189_v23 = vadd.f32 %v1188_v20, %v1126_v11  ;;  %v1321_v24 = vadd.f32 %v1320_v21, %v1258_v19 }
 0x17d   :  { %v1190_v25 = vrot.slane %v1189_v23, 4  ;;  %v1322_v26 = vadd.f32 %v1321_v24, %v1259_v22 }
 0x17f   :  { %v1191_v27 = vadd.f32 %v1190_v25, %v1189_v23  ;;  %v1323_v9 = vrot.slane %v1322_v26, 4 }
 0x181   :  { %v1192_v28 = vrot.slane %v1191_v27, 2  ;;  %v1324_v29 = vadd.f32 %v1323_v9, %v1322_v26 }
 0x183   :  { %v1193_v30 = vadd.f32 %v1192_v28, %v1191_v27  ;;  %v1325_v31 = vrot.slane %v1324_v29, 2 }
 0x185   :  { %v1194_v32 = vrot.slane %v1193_v30, 1  ;;  %v1326_v13 = vadd.f32 %v1325_v31, %v1324_v29 }
 0x187   :  { %v1327_v33 = vrot.slane %v1326_v13, 1  ;;  %v1195_v34 = vadd.f32 %v1194_v32, %v1193_v30 }
 0x189   :  { %v1328_v35 = vadd.f32 %v1327_v33, %v1326_v13 }
 0x18b   :  { %v1330_v36 = vsel %vm1329_vm0, %v1195_v34, %v1328_v35 }
 0x18c   :  { %1331 = vst [vmem:[%s3612_s7] sm:$0x3] %v1330_v36 }

// kernel: residual_block_forward.6
= control target key start
LH: loop header
LB: loop body
LE: loop exit
PB: predicated region body
PF: predicated region fallthrough
CT: control target
= control target key end

     0   :  { %s4828_s18 = smov 0   ;;  %s6009_s0 = inlined_call_operand.vmem [shape: bf16[2,16,16,128], index: 0, kind: input, shape index: {}]   ;;  %s6010_s1 = inlined_call_operand.vmem [shape: f32[1,128], index: 1, kind: input, shape index: {}]   ;;  %s6011_s2 = inlined_call_operand.vmem [shape: f32[1,128], index: 2, kind: input, shape index: {}]   ;;  %s6012_s3 = inlined_call_operand.vmem [shape: bf16[3,384,128], index: 3, kind: input, shape index: {}]   ;;  %s6013_s4 = inlined_call_operand.vmem [shape: bf16[2,16,16,128], index: 4, kind: output, shape index: {0}]   ;;  %s6014_s5 = inlined_call_operand.vmem [shape: f32[2,2,128], index: 5, kind: output, shape index: {1}]  }
   0x1 LB: > { %s3509_s19 = sadd.s32 4294967295, %s4794_s18   ;;  %p3513_p0 = scmp.ge.s32.totalorder %s4794_s18, 1  ;;  %s4794_s18 = sphi %s4828_s18, %s16_s18  }
   0x2   : > { %p190_p1 = scmp.lt.s32.totalorder %s4794_s18, 3 }
   0x4   : > { %p191_p2 = pnand %p3513_p0, %p190_p1 }
   0x6   : > { %194 = sbr.rel (%p191_p2) target bundleno = 665 (0x299), region = 36 }
   0xd   : > { %v4663_v0 = vld [vmem:[%s6012_s3 + $0x100] sm:$0xff]   ;;  %v4665_v2 = vld [vmem:[%s6012_s3 + $0x108] sm:$0xff]   ;;  %p222_p3 = scmp.lt.s32.totalorder %s3509_s19, 1  ;;  %v4667_v4 = vld [vmem:[%s6012_s3 + $0x110] sm:$0xff]   ;;  %vm427_vm0 = vcmask 1040384   ;;  %vm930_vm5 = vcmask 1043456  }
   0xe   : > { %v4664_v1 = vld [vmem:[%s6012_s3 + $0xc0] sm:$0xff]   ;;  %4043 = vmatprep.subr.bf16.mxu0 %v4663_v0  ;;  %4637 = vmatprep.subr.bf16.mxu1 %v4663_v0  ;;  %v4666_v3 = vld [vmem:[%s6012_s3 + $0xc8] sm:$0xff]   ;;  %v4668_v5 = vld [vmem:[%s6012_s3 + $0xd0] sm:$0xff]   ;;  %vm428_vm1 = vsmask.f32 256  ;;  %vm1300_vm9 = vcmask 1046528  }
   0xf   : > { %4044 = vmatpush3.bf16.msra.mxu0 %v4664_v1  ;;  %4645 = vmatpush3.bf16.msra.mxu1 %v4664_v1  ;;  %s6046_s19 = smov (!%p222_p3, %s3509_s19), 1  ;;  %v4669_v6 = vld [vmem:[%s6012_s3 + $0x118] sm:$0xff]   ;;  %v4671_v8 = vld [vmem:[%s6012_s3 + $0x120] sm:$0xff]   ;;  %v4673_v10 = vld [vmem:[%s6012_s3 + $0x128] sm:$0xff]   ;;  %vm478_vm3 = vsmask.f32 7938 }
  0x10   : > { %4045 = vmatprep.subr.bf16.mxu0 %v4665_v2  ;;  %4638 = vmatprep.subr.bf16.mxu1 %v4665_v2  ;;  %s3803_s9 = sshll.u32 %s6046_s19, 7  ;;  %v4670_v7 = vld [vmem:[%s6012_s3 + $0xd8] sm:$0xff]   ;;  %v4672_v9 = vld [vmem:[%s6012_s3 + $0xe0] sm:$0xff]   ;;  %v4674_v13 = vld [vmem:[%s6012_s3 + $0xe8] sm:$0xff]   ;;  %vm608_vm6 = vsmask.f32 4368 }
  0x11   : > { %s4871_s16 = scalar_lea.vmem %s6009_s0, %s3803_s9  ;;  %v4883_v12 = vld [vmem:[%s6010_s1] ss:$0 sm:$0xff]  ;;  %vm4895_vm2 = vmand %vm427_vm0, %vm428_vm1  ;;  %v480_v19 = vld [vmem:[#allocation2 + $0x8] sm:$0x1]  ;;  %vm4797_vm10 = vmmov 0   ;;  %s5936_s26 = scalar_lea.vmem %s6013_s4, %s3803_s9 }
  0x12   : > { %v3870_v11 = vld [vmem:[%s4871_s16] sm:$0xff]   ;;  %vm4906_vm4 = vmand %vm427_vm0, %vm478_vm3  ;;  %v466_v26 = vld [vmem:[#allocation2 + $0x90] sm:$0x1]  ;;  %s3518_s9 = sshll.u32 %s6046_s19, 1 }
  0x13   : > { %4046 = vmatpush3.bf16.msra.mxu0 %v4666_v3  ;;  %4646 = vmatpush3.bf16.msra.mxu1 %v4666_v3  ;;  %v3871_v14 = vunpack.c.l.bf16 %v3870_v11  ;;  %v3872_v15 = vunpack.c.h.bf16 %v3870_v11  ;;  %v4891_v16 = vld [vmem:[%s6011_s2] ss:$0 sm:$0xff]  ;;  %v516_v27 = vld [vmem:[#allocation2 + $0x98] sm:$0x1]  ;;  %v4675_v28 = vld [vmem:[%s6012_s3 + $0x130] sm:$0xff]   ;;  %v481_v29 = vsel %vm4906_vm4, 0, %v480_v19  ;;  %s235_s29 = scalar_lea.vmem %s6014_s5, %s3518_s9 }
  0x14   : > { %4047 = vmatprep.subr.bf16.mxu0 %v4667_v4  ;;  %4639 = vmatprep.subr.bf16.mxu1 %v4667_v4  ;;  %v430_v17 = vld [vmem:[#allocation2] sm:$0x1]  ;;  %v467_v31 = vsel %vm4895_vm2, 0, %v466_v26  ;;  %v517_v32 = vsel %vm4906_vm4, 0, %v516_v27  ;;  %482 = vst [vmem:[#allocation2 + $0x8] sm:$0x1] %v481_v29  ;;  %vm4954_vm7 = vmor %vm428_vm1, %vm608_vm6 }
  0x15   : > { %v4024_v20 = vld [vmem:[%s4871_s16 + $0x60] sm:$0xff]   ;;  %v308_v21 = vmul.f32 %v3871_v14, %v4883_v12  ;;  %v309_v22 = vmul.f32 %v3872_v15, %v4883_v12  ;;  %v431_v23 = vsel %vm4895_vm2, 0, %v430_v17  ;;  %468 = vst [vmem:[#allocation2 + $0x90] sm:$0x1] %v467_v31  ;;  %518 = vst [vmem:[#allocation2 + $0x98] sm:$0x1] %v517_v32 }
  0x16   : > { %v3919_v25 = vunpack.c.l.bf16 %v4024_v20  ;;  %432 = vst [vmem:[#allocation2] sm:$0x1] %v431_v23  ;;  %v3920_v30 = vunpack.c.h.bf16 %v4024_v20  ;;  %v4676_v37 = vld [vmem:[%s6012_s3 + $0xf0] sm:$0xff]   ;;  %v4013_v41 = vld [vmem:[%s4871_s16 + $0x8] sm:$0xff]   ;;  %v4677_v42 = vld [vmem:[%s6012_s3 + $0x138] sm:$0xff]  }
  0x17   : > { %4048 = vmatpush3.bf16.msra.mxu0 %v4668_v5  ;;  %4647 = vmatpush3.bf16.msra.mxu1 %v4668_v5  ;;  %v347_v33 = vadd.f32 %v4891_v16, %v308_v21  ;;  %v348_v34 = vadd.f32 %v4891_v16, %v309_v22  ;;  %v3875_v44 = vunpack.c.l.bf16 %v4013_v41  ;;  %v3876_v45 = vunpack.c.h.bf16 %v4013_v41  ;;  %v433_v46 = vld [vmem:[#allocation2 + $0xc] sm:$0x1]  ;;  %v4678_v56 = vld [vmem:[%s6012_s3 + $0xf8] sm:$0xff]   ;;  %v4949_v1 = vld [vmem:[%s6012_s3 + $0x140] sm:$0xff]  }
  0x18   : > { %4049 = vmatprep.subr.bf16.mxu0 %v4669_v6  ;;  %4640 = vmatprep.subr.bf16.mxu1 %v4669_v6  ;;  %v332_v35 = vmul.f32 %v3919_v25, %v4883_v12  ;;  %v333_v36 = vmul.f32 %v3920_v30, %v4883_v12  ;;  %v4935_v51 = vld [vmem:[%s4871_s16 + $0x68] sm:$0xff]   ;;  %v434_v55 = vsel %vm4895_vm2, 0, %v433_v46  ;;  %v483_v2 = vld [vmem:[#allocation2 + $0x14] sm:$0x1]  ;;  %vm4963_vm8 = vmand %vm930_vm5, %vm478_vm3  ;;  %v6015_v25 = vmov 0.0  }
  0x19   : > { %v379_v38 = vmax.f32 %v347_v33, 0.0  ;;  %v380_v39 = vmax.f32 %v348_v34, 0.0  ;;  %v310_v53 = vmul.f32 %v3875_v44, %v4883_v12  ;;  %v311_v54 = vmul.f32 %v3876_v45, %v4883_v12  ;;  %435 = vst [vmem:[#allocation2 + $0xc] sm:$0x1] %v434_v55  ;;  %v469_v34 = vld [vmem:[#allocation2 + $0x9c] sm:$0x1] }
  0x1a   : > { %v371_v40 = vadd.f32 %v4891_v16, %v332_v35  ;;  %v372_v43 = vadd.f32 %v4891_v16, %v333_v36  ;;  %v3923_v3 = vunpack.c.l.bf16 %v4935_v51  ;;  %v484_v33 = vsel %vm4906_vm4, 0, %v483_v2  ;;  %v519_v35 = vld [vmem:[#allocation2 + $0xa4] sm:$0x1] }
  0x1b   : > { %4050 = vmatpush3.bf16.msra.mxu0 %v4670_v7  ;;  %4648 = vmatpush3.bf16.msra.mxu1 %v4670_v7  ;;  %v4932_v47 = vpack.c.bf16 %v380_v39, %v379_v38  ;;  %v3805_v48 = vpack.c.bf16 %v379_v38, %v379_v38  ;;  %v3806_v49 = vpack.c.bf16 %v380_v39, %v380_v39  ;;  %v3924_v44 = vunpack.c.h.bf16 %v4935_v51  ;;  %v486_v51 = vld [vmem:[#allocation2 + $0x20] sm:$0x1] }
  0x1c   : > { %4051 = vmatprep.subr.bf16.mxu0 %v4671_v8  ;;  %4641 = vmatprep.subr.bf16.mxu1 %v4671_v8  ;;  %v403_v50 = vmax.f32 %v371_v40, 0.0  ;;  %v404_v52 = vmax.f32 %v372_v43, 0.0  ;;  %v349_v7 = vadd.f32 %v4891_v16, %v310_v53  ;;  %v350_v8 = vadd.f32 %v4891_v16, %v311_v54  ;;  %v1016_v31 = vld [vmem:[#allocation2 + $0x90] sm:$0xf]  ;;  %v1020_v32 = vld [vmem:[#allocation2 + $0x98] sm:$0x1] }
  0x1d   : > { %v611_v57 = vshrl.u32 %v3805_v48, 16  ;;  %v614_v58 = vshll.u32 %v3805_v48, 16  ;;  %v619_v59 = vshrl.u32 %v3806_v49, 16  ;;  %v622_v60 = vshll.u32 %v3806_v49, 16  ;;  %v932_v61 = vld [vmem:[#allocation2] sm:$0xf]  ;;  %1590 = vmatprep.mubr.bf16.mxu0 %v4932_v47 }
  0x1e   : > { %v4944_v62 = vpack.c.bf16 %v404_v52, %v403_v50  ;;  %v3829_v63 = vpack.c.bf16 %v403_v50, %v403_v50  ;;  %v3830_v0 = vpack.c.bf16 %v404_v52, %v404_v52  ;;  %v381_v26 = vmax.f32 %v349_v7, 0.0  ;;  %485 = vst [vmem:[#allocation2 + $0x14] sm:$0x1] %v484_v33  ;;  %v4014_v40 = vld [vmem:[%s4871_s16 + $0x10] sm:$0xff]   ;;  %v436_v50 = vld [vmem:[#allocation2 + $0x18] sm:$0x1] }
  0x1f   : > { %4052 = vmatpush3.bf16.msra.mxu0 %v4672_v9  ;;  %4649 = vmatpush3.bf16.msra.mxu1 %v4672_v9  ;;  %v613_v5 = vrot.slane %v611_v57, 7  ;;  %v621_v6 = vrot.slane %v619_v59, 7  ;;  %v382_v27 = vmax.f32 %v350_v8, 0.0  ;;  %v334_v49 = vmul.f32 %v3923_v3, %v4883_v12  ;;  %v4685_v3 = vld [vmem:[%s6012_s3 + $0x80] sm:$0xff]  }
  0x20   : > { %4053 = vmatprep.subr.bf16.mxu0 %v4673_v10  ;;  %4642 = vmatprep.subr.bf16.mxu1 %v4673_v10  ;;  %v936_v10 = vld [vmem:[#allocation2 + $0x8] sm:$0x1]  ;;  %v815_v11 = vshrl.u32 %v3829_v63, 16  ;;  %v823_v14 = vshrl.u32 %v3830_v0, 16  ;;  %v826_v15 = vshll.u32 %v3830_v0, 16  ;;  %v520_v59 = vsel %vm4906_vm4, 0, %v519_v35 }
  0x21   : > { %1686 = vmatprep.mubr.bf16.mxu1 %v4944_v62  ;;  %v616_v17 = vor.u32 %v614_v58, %v613_v5  ;;  %v617_v19 = vrot.slane %v613_v5, 4  ;;  %v624_v20 = vor.u32 %v622_v60, %v621_v6  ;;  %v626_v21 = vrot.slane %v621_v6, 4  ;;  %521 = vst [vmem:[#allocation2 + $0xa4] sm:$0x1] %v520_v59  ;;  %v4690_v59 = vld [vmem:[%s6012_s3 + $0x150] sm:$0xff]  }
  0x22   : > { %v817_v22 = vrot.slane %v815_v11, 7  ;;  %v825_v23 = vrot.slane %v823_v14, 7  ;;  %v4979_v41 = vpack.c.bf16 %v382_v27, %v381_v26  ;;  %v3808_v43 = vpack.c.bf16 %v382_v27, %v382_v27 }
  0x23   : > { %4054 = vmatpush3.bf16.msra.mxu0 %v4674_v13  ;;  %4650 = vmatpush3.bf16.msra.mxu1 %v4674_v13  ;;  %v818_v13 = vshll.u32 %v3829_v63, 16  ;;  %v933_v29 = vsel %vm4963_vm8, %v616_v17, %v932_v61  ;;  %v937_v30 = vsel %vm4895_vm2, %v626_v21, %v936_v10  ;;  %v373_v57 = vadd.f32 %v4891_v16, %v334_v49  ;;  %v939_v63 = vld [vmem:[#allocation2 + $0xc] sm:$0xf] }
  0x24   : > { %4055 = vmatprep.subr.bf16.mxu0 %v4675_v28  ;;  %4643 = vmatprep.subr.bf16.mxu1 %v4675_v28  ;;  %v625_v28 = vsel %vm4954_vm7, %v617_v19, %v624_v20  ;;  %934 = vst [vmem:[#allocation2] sm:$0xf] %v933_v29  ;;  %938 = vst [vmem:[#allocation2 + $0x8] sm:$0x1] %v937_v30  ;;  %v828_v38 = vor.u32 %v826_v15, %v825_v23  ;;  %v830_v39 = vrot.slane %v825_v23, 4  ;;  %v4026_v19 = vld [vmem:[%s4871_s16 + $0x70] sm:$0xff]  }
  0x25   : > { %935 = vst [vmem:[#allocation2 + $0x4] sm:$0xf] %v625_v28  ;;  %v820_v36 = vor.u32 %v818_v13, %v817_v22  ;;  %v636_v54 = vshrl.u32 %v3808_v43, 16  ;;  %v639_v55 = vshll.u32 %v3808_v43, 16  ;;  %v470_v58 = vsel %vm4895_vm2, 0, %v469_v34 }
  0x26   : > { %v1021_v48 = vsel %vm4895_vm2, %v830_v39, %v1020_v32  ;;  %471 = vst [vmem:[#allocation2 + $0x9c] sm:$0x1] %v470_v58  ;;  %v3879_v0 = vunpack.c.l.bf16 %v4014_v40  ;;  %v3880_v2 = vunpack.c.h.bf16 %v4014_v40  ;;  %v405_v6 = vmax.f32 %v373_v57, 0.0  ;;  %v943_v23 = vld [vmem:[#allocation2 + $0x14] sm:$0x1] }
  0x27   : > { %4056 = vmatpush3.bf16.msra.mxu0 %v4676_v37  ;;  %4651 = vmatpush3.bf16.msra.mxu1 %v4676_v37  ;;  %v821_v37 = vrot.slane %v817_v22, 4  ;;  %v1017_v46 = vsel %vm4963_vm8, %v820_v36, %v1016_v31  ;;  %1022 = vst [vmem:[#allocation2 + $0x98] sm:$0x1] %v1021_v48  ;;  %v638_v61 = vrot.slane %v636_v54, 7  ;;  %v437_v7 = vsel %vm4895_vm2, 0, %v436_v50 }
  0x28   : > { %4057 = vmatprep.subr.bf16.mxu0 %v4677_v42  ;;  %4644 = vmatprep.subr.bf16.mxu1 %v4677_v42  ;;  %v3807_v42 = vpack.c.bf16 %v381_v26, %v381_v26  ;;  %1018 = vst [vmem:[#allocation2 + $0x90] sm:$0xf] %v1017_v46  ;;  %v487_v8 = vsel %vm4906_vm4, 0, %v486_v51  ;;  %v312_v15 = vmul.f32 %v3879_v0, %v4883_v12  ;;  %438 = vst [vmem:[#allocation2 + $0x18] sm:$0x1] %v437_v7  ;;  %v4684_v26 = vld [vmem:[%s6012_s3 + $0x148] sm:$0xff]  }
  0x29   : > { %v829_v45 = vsel %vm4954_vm7, %v821_v37, %v828_v38  ;;  %v641_v14 = vor.u32 %v639_v55, %v638_v61  ;;  %v313_v17 = vmul.f32 %v3880_v2, %v4883_v12  ;;  %488 = vst [vmem:[#allocation2 + $0x20] sm:$0x1] %v487_v8  ;;  %v643_v22 = vrot.slane %v638_v61, 4  ;;  %v472_v37 = vld [vmem:[#allocation2 + $0xa8] sm:$0x1] }
  0x2a   : > { %1019 = vst [vmem:[#allocation2 + $0x94] sm:$0xf] %v829_v45  ;;  %v628_v52 = vshrl.u32 %v3807_v42, 16  ;;  %v631_v53 = vshll.u32 %v3807_v42, 16  ;;  %v3831_v29 = vpack.c.bf16 %v405_v6, %v405_v6  ;;  %v351_v30 = vadd.f32 %v4891_v16, %v312_v15  ;;  %v4697_v42 = vld [vmem:[%s6012_s3 + $0x88] sm:$0xff]  }
  0x2b   : > { %4058 = vmatpush3.bf16.msra.mxu0 %v4678_v56  ;;  %4652 = vmatpush3.bf16.msra.mxu1 %v4678_v56  ;;  %v335_v56 = vmul.f32 %v3924_v44, %v4883_v12  ;;  %v1044_v10 = vld [vmem:[#allocation2] sm:$0xf]  ;;  %v944_v34 = vsel %vm4895_vm2, %v643_v22, %v943_v23  ;;  %v352_v35 = vadd.f32 %v4891_v16, %v313_v17  ;;  %v3927_v36 = vunpack.c.l.bf16 %v4026_v19  ;;  %v1027_v0 = vld [vmem:[#allocation2 + $0xa4] sm:$0x1]  ;;  %v522_v15 = vld [vmem:[#allocation2 + $0xb0] sm:$0x1] }
  0x2c   : > { %4437 = vmatprep.subr.bf16.mxu1 %v4949_v1  ;;  %4485 = vmatprep.subr.bf16.mxu0 %v6015_v25  ;;  %v630_v60 = vrot.slane %v628_v52, 7  ;;  %v5003_v11 = vld [vmem:[#allocation2 + $0x4] sm:$0xf]  ;;  %945 = vst [vmem:[#allocation2 + $0x14] sm:$0x1] %v944_v34  ;;  %v832_v40 = vshrl.u32 %v3831_v29, 16  ;;  %v3928_v46 = vunpack.c.h.bf16 %v4026_v19 }
  0x2d   : > { %v374_v5 = vadd.f32 %v4891_v16, %v335_v56  ;;  %v5009_v20 = vcombine.low %v1044_v10, %v5003_v11  ;;  %v835_v44 = vshll.u32 %v3831_v29, 16  ;;  %v383_v45 = vmax.f32 %v351_v30, 0.0  ;;  %v1023_v55 = vld [vmem:[#allocation2 + $0x9c] sm:$0xf] }
  0x2e   : > { %v633_v13 = vor.u32 %v631_v53, %v630_v60  ;;  %v634_v21 = vrot.slane %v630_v60, 4  ;;  %v834_v48 = vrot.slane %v832_v40, 7  ;;  %v384_v49 = vmax.f32 %v352_v35, 0.0  ;;  %v4691_v22 = vld [vmem:[%s6012_s3 + $0x158] sm:$0xff]  }
  0x2f   : > { %v406_v28 = vmax.f32 %v374_v5, 0.0  ;;  %1591 = vmatmul.mubr.bf16.vlgmr.msra.gmra.mrb[0].mxu0 %v5009_v20  ;;  %v1068_v31 = vld [vmem:[#allocation2 + $0x90] sm:$0xf]  ;;  %v336_v50 = vmul.f32 %v3927_v36, %v4883_v12  ;;  %v473_v52 = vsel %vm4895_vm2, 0, %v472_v37  ;;  %v3809_v51 = vpack.c.bf16 %v383_v45, %v383_v45  ;;  %v4015_v35 = vld [vmem:[%s4871_s16 + $0x18] sm:$0xff]  }
  0x30   : > { %v940_v27 = vsel %vm4963_vm8, %v633_v13, %v939_v63  ;;  %v642_v33 = vsel %vm4954_vm7, %v634_v21, %v641_v14  ;;  %4486 = vmatpush3.bf16.msra.mxu0 %v4685_v3  ;;  %1598 = vmatprep.mubr.bf16.mxu0 %v4979_v41  ;;  %v337_v56 = vmul.f32 %v3928_v46, %v4883_v12  ;;  %v838_v58 = vrot.slane %v834_v48, 4  ;;  %v946_v13 = vld [vmem:[#allocation2 + $0x18] sm:$0xf]  ;;  %v950_v34 = vld [vmem:[#allocation2 + $0x20] sm:$0x1] }
  0x31   : > { %v1069_v32 = vld [vmem:[#allocation2 + $0x94] sm:$0xf]  ;;  %941 = vst [vmem:[#allocation2 + $0xc] sm:$0xf] %v940_v27  ;;  %942 = vst [vmem:[#allocation2 + $0x10] sm:$0xf] %v642_v33  ;;  %v5026_v39 = vpack.c.bf16 %v406_v28, %v405_v6  ;;  %v3832_v43 = vpack.c.bf16 %v406_v28, %v406_v28  ;;  %4487 = vmatprep.subr.bf16.mxu0 %v6015_v25  ;;  %v837_v57 = vor.u32 %v835_v44, %v834_v48 }
  0x32   : > { %v5023_v38 = vcombine.low %v1068_v31, %v1069_v32  ;;  %474 = vst [vmem:[#allocation2 + $0xa8] sm:$0x1] %v473_v52  ;;  %v5042_v60 = vpack.c.bf16 %v384_v49, %v383_v45  ;;  %v3810_v61 = vpack.c.bf16 %v384_v49, %v384_v49  ;;  %v645_v2 = vshrl.u32 %v3809_v51, 16  ;;  %v439_v36 = vld [vmem:[#allocation2 + $0x24] sm:$0x1] }
  0x33   : > { %v840_v53 = vshrl.u32 %v3832_v43, 16  ;;  %v843_v54 = vshll.u32 %v3832_v43, 16  ;;  %v648_v3 = vshll.u32 %v3809_v51, 16  ;;  %v375_v5 = vadd.f32 %v4891_v16, %v336_v50  ;;  %v5072_v43 = vld [vmem:[%s6012_s3 + $0x160] sm:$0xff]   ;;  %v489_v44 = vld [vmem:[#allocation2 + $0x2c] sm:$0x1] }
  0x34   : > { %1687 = vmatmul.mubr.bf16.vlgmr.msra.gmra.mrb[0].mxu1 %v5023_v38  ;;  %4488 = vmatpush3.bf16.msra.mxu0 %v4697_v42  ;;  %v1024_v6 = vsel %vm4963_vm8, %v837_v57, %v1023_v55  ;;  %v653_v8 = vshrl.u32 %v3810_v61, 16  ;;  %v656_v10 = vshll.u32 %v3810_v61, 16  ;;  %v376_v14 = vadd.f32 %v4891_v16, %v337_v56  ;;  %v4027_v50 = vld [vmem:[%s4871_s16 + $0x78] sm:$0xff]   ;;  %v475_v52 = vld [vmem:[#allocation2 + $0xb4] sm:$0x1] }
  0x35   : > { %4438 = vmatpush3.bf16.msra.mxu1 %v4949_v1  ;;  %1694 = vmatprep.mubr.bf16.mxu1 %v5026_v39  ;;  %v4705_v1 = vld [vmem:[%s6012_s3 + $0x90] sm:$0xff]   ;;  %v842_v63 = vrot.slane %v840_v53, 7  ;;  %1025 = vst [vmem:[#allocation2 + $0x9c] sm:$0xf] %v1024_v6  ;;  %v647_v23 = vrot.slane %v645_v2, 7  ;;  %v407_v27 = vmax.f32 %v375_v5, 0.0  ;;  %v3883_v55 = vunpack.c.l.bf16 %v4015_v35 }
  0x36   : > { %4439 = vmatprep.subr.bf16.mxu1 %v4684_v26  ;;  %4489 = vmatprep.subr.bf16.mxu0 %v6015_v25  ;;  %v655_v29 = vrot.slane %v653_v8, 7  ;;  %v408_v30 = vmax.f32 %v376_v14, 0.0  ;;  %v523_v46 = vsel %vm4906_vm4, 0, %v522_v15  ;;  %v3884_v51 = vunpack.c.h.bf16 %v4015_v35  ;;  %v525_v56 = vld [vmem:[#allocation2 + $0xbc] sm:$0x1] }
  0x37   : > { %v845_v17 = vor.u32 %v843_v54, %v842_v63  ;;  %v847_v19 = vrot.slane %v842_v63, 4  ;;  %v650_v32 = vor.u32 %v648_v3, %v647_v23  ;;  %v651_v33 = vrot.slane %v647_v23, 4  ;;  %524 = vst [vmem:[#allocation2 + $0xb0] sm:$0x1] %v523_v46  ;;  %v4717_v63 = vld [vmem:[%s6012_s3 + $0x98] sm:$0xff]   ;;  %v4698_v3 = vld [vmem:[%s6012_s3 + $0x168] sm:$0xff]  }
  0x38   : > { %v1046_v7 = vld [vmem:[#allocation2 + $0xc] sm:$0xf]  ;;  %v5052_v21 = vld [vmem:[#allocation2 + $0x10] sm:$0xf]  ;;  %4490 = vmatpush3.bf16.msra.mxu0 %v4705_v1  ;;  %v658_v37 = vor.u32 %v656_v10, %v655_v29  ;;  %v660_v40 = vrot.slane %v655_v29, 4  ;;  %v5067_v42 = vpack.c.bf16 %v408_v30, %v407_v27  ;;  %v3833_v48 = vpack.c.bf16 %v407_v27, %v407_v27 }
  0x39   : > { %4440 = vmatpush3.bf16.msra.mxu1 %v4684_v26  ;;  %v5058_v28 = vcombine.low %v1046_v7, %v5052_v21  ;;  %v846_v26 = vsel %vm4954_vm7, %v838_v58, %v845_v17  ;;  %v1028_v31 = vsel %vm4895_vm2, %v847_v19, %v1027_v0  ;;  %4491 = vmatprep.subr.bf16.mxu0 %v6015_v25  ;;  %v5084_v57 = vld [vmem:[#allocation2 + $0xc] sm:$0xe]  ;;  %v1030_v2 = vld [vmem:[#allocation2 + $0xa8] sm:$0xf]  ;;  %v440_v7 = vsel %vm4895_vm2, 0, %v439_v36 }
  0x3a   : > { %4441 = vmatprep.subr.bf16.mxu1 %v4690_v59  ;;  %1026 = vst [vmem:[#allocation2 + $0xa0] sm:$0xf] %v846_v26  ;;  %1029 = vst [vmem:[#allocation2 + $0xa4] sm:$0x1] %v1028_v31  ;;  %v947_v45 = vsel %vm4963_vm8, %v650_v32, %v946_v13  ;;  %v3834_v49 = vpack.c.bf16 %v408_v30, %v408_v30  ;;  %v659_v53 = vsel %vm4954_vm7, %v651_v33, %v658_v37  ;;  %v4016_v32 = vld [vmem:[%s4871_s16 + $0x20] sm:$0xff]  }
  0x3b   : > { %1599 = vmatmul.mubr.bf16.gmra.mrb[4].mxu0 %v5058_v28  ;;  %6033 = vst [vmem:[#allocation4_spill] sm:$0xff] %v5067_v42  ;;  %948 = vst [vmem:[#allocation2 + $0x18] sm:$0xf] %v947_v45  ;;  %v951_v54 = vsel %vm4895_vm2, %v660_v40, %v950_v34  ;;  %v849_v58 = vshrl.u32 %v3833_v48, 16  ;;  %v314_v5 = vmul.f32 %v3883_v55, %v4883_v12  ;;  %v490_v8 = vsel %vm4906_vm4, 0, %v489_v44 }
  0x3c   : > { %1606 = vmatprep.mubr.bf16.mxu0 %v5042_v60  ;;  %949 = vst [vmem:[#allocation2 + $0x1c] sm:$0xf] %v659_v53  ;;  %952 = vst [vmem:[#allocation2 + $0x20] sm:$0x1] %v951_v54  ;;  %v857_v61 = vshrl.u32 %v3834_v49, 16  ;;  %v860_v1 = vshll.u32 %v3834_v49, 16  ;;  %v315_v6 = vmul.f32 %v3884_v51, %v4883_v12  ;;  %v3931_v14 = vunpack.c.l.bf16 %v4027_v50  ;;  %4492 = vmatpush3.bf16.msra.mxu0 %v4717_v63 }
  0x3d   : > { %4442 = vmatpush3.bf16.msra.mxu1 %v4690_v59  ;;  %v852_v59 = vshll.u32 %v3833_v48, 16  ;;  %v1070_v0 = vld [vmem:[#allocation2 + $0x9c] sm:$0xf]  ;;  %v851_v10 = vrot.slane %v849_v58, 7  ;;  %441 = vst [vmem:[#allocation2 + $0x24] sm:$0x1] %v440_v7  ;;  %v3932_v15 = vunpack.c.h.bf16 %v4027_v50  ;;  %v353_v17 = vadd.f32 %v4891_v16, %v314_v5  ;;  %4493 = vmatprep.subr.bf16.mxu0 %v6015_v25 }
  0x3e   : > { %4443 = vmatprep.subr.bf16.mxu1 %v4691_v22  ;;  %v859_v13 = vrot.slane %v857_v61, 7  ;;  %491 = vst [vmem:[#allocation2 + $0x2c] sm:$0x1] %v490_v8  ;;  %v354_v19 = vadd.f32 %v4891_v16, %v315_v6  ;;  %v476_v23 = vsel %vm4895_vm2, 0, %v475_v52  ;;  %v5107_v33 = vld [vmem:[#allocation2] sm:$0xe]  ;;  %v3571_v34 = vcombine.low %v5084_v57, %v5052_v21 }
  0x3f   : > { %v854_v29 = vor.u32 %v852_v59, %v851_v10  ;;  %v855_v30 = vrot.slane %v851_v10, 4  ;;  %477 = vst [vmem:[#allocation2 + $0xb4] sm:$0x1] %v476_v23  ;;  %v385_v36 = vmax.f32 %v353_v17, 0.0  ;;  %v1034_v45 = vld [vmem:[#allocation2 + $0xb0] sm:$0x1]  ;;  %v338_v48 = vmul.f32 %v3931_v14, %v4883_v12 }
  0x40   : > { %v862_v26 = vor.u32 %v860_v1, %v859_v13  ;;  %v864_v31 = vrot.slane %v859_v13, 4  ;;  %v386_v37 = vmax.f32 %v354_v19, 0.0  ;;  %v339_v49 = vmul.f32 %v3932_v15, %v4883_v12  ;;  %v4703_v21 = vld [vmem:[%s6012_s3 + $0x170] sm:$0xff]   ;;  %v4704_v7 = vld [vmem:[%s6012_s3 + $0x178] sm:$0xff]  }
  0x41   : > { %4444 = vmatpush3.bf16.msra.mxu1 %v4691_v22  ;;  %v526_v22 = vsel %vm4906_vm4, 0, %v525_v56  ;;  %v1071_v27 = vld [vmem:[#allocation2 + $0xa0] sm:$0xf]  ;;  %v1031_v44 = vsel %vm4963_vm8, %v854_v29, %v1030_v2  ;;  %v3887_v54 = vunpack.c.l.bf16 %v4016_v32  ;;  %v3569_v55 = vcombine.low %v5107_v33, %v5003_v11  ;;  %v1102_v18 = vld [vmem:[#allocation2 + $0x9c] sm:$0xe] }
  0x42   : > { %4445 = vmatprep.subr.bf16.mxu1 %v5072_v43  ;;  %527 = vst [vmem:[#allocation2 + $0xbc] sm:$0x1] %v526_v22  ;;  %v5111_v35 = vcombine.low %v1070_v0, %v1071_v27  ;;  %v863_v40 = vsel %vm4954_vm7, %v855_v30, %v862_v26  ;;  %v1048_v46 = vld [vmem:[#allocation2 + $0x18] sm:$0xf]  ;;  %1032 = vst [vmem:[#allocation2 + $0xa8] sm:$0xf] %v1031_v44  ;;  %v1035_v50 = vsel %vm4895_vm2, %v864_v31, %v1034_v45 }
  0x43   : > { %1033 = vst [vmem:[#allocation2 + $0xac] sm:$0xf] %v863_v40  ;;  %v5126_v52 = vld [vmem:[#allocation2 + $0x1c] sm:$0xf]  ;;  %v5128_v53 = vpack.c.bf16 %v386_v37, %v385_v36  ;;  %1036 = vst [vmem:[#allocation2 + $0xb0] sm:$0x1] %v1035_v50  ;;  %v3812_v56 = vpack.c.bf16 %v386_v37, %v386_v37  ;;  %v377_v57 = vadd.f32 %v4891_v16, %v338_v48  ;;  %v3888_v63 = vunpack.c.h.bf16 %v4016_v32 }
  0x44   : > { %6034 = vst [vmem:[#allocation5_spill] sm:$0xff] %v5111_v35  ;;  %1695 = vmatmul.mubr.bf16.gmra.mrb[4].mxu1 %v5111_v35  ;;  %v5134_v51 = vcombine.low %v1048_v46, %v5126_v52  ;;  %v5137_v58 = vld [vmem:[#allocation2 + $0x18] sm:$0xe]  ;;  %v378_v1 = vadd.f32 %v4891_v16, %v339_v49  ;;  %v442_v0 = vld [vmem:[#allocation2 + $0x30] sm:$0x1]  ;;  %v316_v8 = vmul.f32 %v3887_v54, %v4883_v12  ;;  %v5145_v10 = vrot.slane %v3571_v34, 1 }
  0x45   : > { %4446 = vmatpush3.bf16.msra.mxu1 %v5072_v43  ;;  %v3811_v43 = vpack.c.bf16 %v385_v36, %v385_v36  ;;  %1702 = vmatprep.mubr.bf16.mxu1 %v5067_v42  ;;  %v670_v2 = vshrl.u32 %v3812_v56, 16  ;;  %v673_v5 = vshll.u32 %v3812_v56, 16  ;;  %v409_v6 = vmax.f32 %v377_v57, 0.0  ;;  %v953_v14 = vld [vmem:[#allocation2 + $0x24] sm:$0xf] }
  0x46   : > { %4447 = vmatprep.subr.bf16.mxu1 %v4698_v3  ;;  %1607 = vmatmul.mubr.bf16.gmra.mrb[8].mxu0 %v5134_v51  ;;  %v410_v15 = vmax.f32 %v378_v1, 0.0  ;;  %v317_v17 = vmul.f32 %v3888_v63, %v4883_v12  ;;  %v3573_v19 = vcombine.low %v5137_v58, %v5126_v52  ;;  %v443_v27 = vsel %vm4895_vm2, 0, %v442_v0  ;;  %v492_v32 = vld [vmem:[#allocation2 + $0x38] sm:$0x1]  ;;  %v4725_v34 = vld [vmem:[%s6012_s3 + $0xa0] sm:$0xff]  }
  0x47   : > { %v662_v59 = vshrl.u32 %v3811_v43, 16  ;;  %v665_v61 = vshll.u32 %v3811_v43, 16  ;;  %1614 = vmatprep.mubr.bf16.mxu0 %v5128_v53  ;;  %v672_v23 = vrot.slane %v670_v2, 7  ;;  %v3835_v22 = vpack.c.bf16 %v409_v6, %v409_v6  ;;  %444 = vst [vmem:[#allocation2 + $0x30] sm:$0x1] %v443_v27  ;;  %v4710_v56 = vld [vmem:[%s6012_s3 + $0x40] sm:$0xff]   ;;  %4494 = vmatpush3.bf16.msra.mxu0 %v4725_v34 }
  0x48   : > { %v3836_v26 = vpack.c.bf16 %v410_v15, %v410_v15  ;;  %v355_v31 = vadd.f32 %v4891_v16, %v316_v8  ;;  %v957_v44 = vld [vmem:[#allocation2 + $0x2c] sm:$0x1]  ;;  %v5160_v45 = vpack.c.bf16 %v410_v15, %v409_v6  ;;  %v356_v46 = vadd.f32 %v4891_v16, %v317_v17  ;;  %v4706_v54 = vld [vmem:[#allocation2 + $0x8] ss:$0 sps:$4 sm:$0x11]   ;;  %4495 = vmatprep.subr.bf16.mxu0 %v6015_v25 }
  0x49   : > { %4448 = vmatpush3.bf16.msra.mxu1 %v4698_v3  ;;  %v664_v13 = vrot.slane %v662_v59, 7  ;;  %v5150_v3 = vld [vmem:[%s4871_s16 + $0x28] sm:$0xff]   ;;  %v675_v40 = vor.u32 %v673_v5, %v672_v23  ;;  %v677_v50 = vrot.slane %v672_v23, 4  ;;  %v866_v59 = vshrl.u32 %v3835_v22, 16  ;;  %v1037_v2 = vld [vmem:[#allocation2 + $0xb4] sm:$0xf] }
  0x4a   : > { %4449 = vmatprep.subr.bf16.mxu1 %v4703_v21  ;;  %v1072_v36 = vld [vmem:[#allocation2 + $0xa8] sm:$0xf]  ;;  %v1073_v37 = vld [vmem:[#allocation2 + $0xac] sm:$0xf]  ;;  %6035 = vst [vmem:[#allocation6_spill] sm:$0xff] %v5160_v45  ;;  %v3891_v48 = vunpack.c.l.bf16 %v5150_v3  ;;  %v3892_v57 = vunpack.c.h.bf16 %v5150_v3  ;;  %v874_v1 = vshrl.u32 %v3836_v26, 16 }
  0x4b   : > { %v667_v29 = vor.u32 %v665_v61, %v664_v13  ;;  %v668_v30 = vrot.slane %v664_v13, 4  ;;  %v5164_v49 = vcombine.low %v1072_v36, %v1073_v37  ;;  %v869_v61 = vshll.u32 %v3835_v22, 16  ;;  %v5181_v15 = vld [vmem:[#allocation2 + $0x14] ss:$0 sps:$4 sm:$0x11]  }
  0x4c   : > { %v958_v63 = vsel %vm4895_vm2, %v677_v50, %v957_v44  ;;  %v877_v0 = vshll.u32 %v3836_v26, 16  ;;  %v387_v5 = vmax.f32 %v355_v31, 0.0  ;;  %v388_v6 = vmax.f32 %v356_v46, 0.0  ;;  %v1041_v3 = vld [vmem:[#allocation2 + $0xbc] sm:$0x1] }
  0x4d   : > { %4450 = vmatpush3.bf16.msra.mxu1 %v4703_v21  ;;  %6036 = vst [vmem:[#allocation7_spill] sm:$0xff] %v5164_v49  ;;  %v954_v43 = vsel %vm4963_vm8, %v667_v29, %v953_v14  ;;  %v676_v21 = vsel %vm4954_vm7, %v668_v30, %v675_v40  ;;  %959 = vst [vmem:[#allocation2 + $0x2c] sm:$0x1] %v958_v63  ;;  %v868_v8 = vrot.slane %v866_v59, 7  ;;  %v876_v13 = vrot.slane %v874_v1, 7 }
  0x4e   : > { %4451 = vmatprep.subr.bf16.mxu1 %v4704_v7  ;;  %955 = vst [vmem:[#allocation2 + $0x24] sm:$0xf] %v954_v43  ;;  %1703 = vmatmul.mubr.bf16.gmra.mrb[8].mxu1 %v5164_v49  ;;  %956 = vst [vmem:[#allocation2 + $0x28] sm:$0xf] %v676_v21  ;;  %v493_v14 = vsel %vm4906_vm4, 0, %v492_v32  ;;  %v318_v17 = vmul.f32 %v3891_v48, %v4883_v12  ;;  %v3813_v23 = vpack.c.bf16 %v387_v5, %v387_v5 }
  0x4f   : > { %1710 = vmatprep.mubr.bf16.mxu1 %v5160_v45  ;;  %494 = vst [vmem:[#allocation2 + $0x38] sm:$0x1] %v493_v14  ;;  %v3814_v22 = vpack.c.bf16 %v388_v6, %v388_v6  ;;  %v1301_v27 = vrot.slane %v3569_v55, 1  ;;  %v1302_v29 = vrot.slane %v4706_v54, 1  ;;  %v871_v30 = vor.u32 %v869_v61, %v868_v8  ;;  %v445_v34 = vld [vmem:[#allocation2 + $0x3c] sm:$0x1] }
  0x50   : > { %v872_v26 = vrot.slane %v868_v8, 4  ;;  %v881_v31 = vrot.slane %v876_v13, 4  ;;  %v495_v32 = vld [vmem:[#allocation2 + $0x44] sm:$0x1]  ;;  %v5187_v36 = vpack.c.bf16 %v388_v6, %v387_v5  ;;  %v679_v37 = vshrl.u32 %v3813_v23, 16  ;;  %v4018_v6 = vld [vmem:[%s4871_s16 + $0x30] sm:$0xff]  }
  0x51   : > { %4452 = vmatpush3.bf16.msra.mxu1 %v4704_v7  ;;  %v879_v7 = vor.u32 %v877_v0, %v876_v13  ;;  %v682_v40 = vshll.u32 %v3813_v23, 16  ;;  %v687_v44 = vshrl.u32 %v3814_v22, 16  ;;  %v4712_v46 = vld [vmem:[#allocation2 + $0x20] ss:$0 sps:$4 sm:$0x11]   ;;  %v1038_v11 = vsel %vm4963_vm8, %v871_v30, %v1037_v2 }
  0x52   : > { %4179 = vmatprep.subr.bf16.mxu1 %v4710_v56  ;;  %v1042_v33 = vsel %vm4895_vm2, %v881_v31, %v1041_v3  ;;  %v690_v55 = vshll.u32 %v3814_v22, 16  ;;  %v960_v50 = vld [vmem:[#allocation2 + $0x30] sm:$0xf]  ;;  %1039 = vst [vmem:[#allocation2 + $0xb4] sm:$0xf] %v1038_v11  ;;  %v681_v56 = vrot.slane %v679_v37, 7  ;;  %v319_v59 = vmul.f32 %v3892_v57, %v4883_v12 }
  0x53   : > { %v880_v48 = vsel %vm4954_vm7, %v872_v26, %v879_v7  ;;  %1043 = vst [vmem:[#allocation2 + $0xbc] sm:$0x1] %v1042_v33  ;;  %v689_v21 = vrot.slane %v687_v44, 7  ;;  %v357_v61 = vadd.f32 %v4891_v16, %v318_v17  ;;  %v5198_v63 = vsel %vm1300_vm9, %v1301_v27, %v1302_v29  ;;  %v5209_v17 = vld [vmem:[%s4871_s16 + $0x38] sm:$0xff]   ;;  %v4738_v31 = vld [vmem:[%s6012_s3 + $0xa8] sm:$0xff]  }
  0x54   : > { %1040 = vst [vmem:[#allocation2 + $0xb8] sm:$0xf] %v880_v48  ;;  %v1305_v0 = vrot.slane %v5181_v15, 1  ;;  %v446_v2 = vsel %vm4895_vm2, 0, %v445_v34  ;;  %v496_v5 = vsel %vm4906_vm4, 0, %v495_v32  ;;  %v684_v14 = vor.u32 %v682_v40, %v681_v56  ;;  %4496 = vmatpush3.bf16.msra.mxu0 %v4738_v31 }
  0x55   : > { %v1050_v43 = vld [vmem:[#allocation2 + $0x24] sm:$0xf]  ;;  %v1051_v1 = vld [vmem:[#allocation2 + $0x28] sm:$0xf]  ;;  %v685_v12 = vrot.slane %v681_v56, 4  ;;  %v692_v3 = vor.u32 %v690_v55, %v689_v21  ;;  %v694_v23 = vrot.slane %v689_v21, 4  ;;  %v358_v22 = vadd.f32 %v4891_v16, %v319_v59  ;;  %4497 = vmatprep.subr.bf16.mxu0 %v6015_v25 }
  0x56   : > { %v1082_v54 = vld [vmem:[#allocation2 + $0x24] sm:$0xe]  ;;  %v5206_v8 = vcombine.low %v1050_v43, %v1051_v1  ;;  %447 = vst [vmem:[#allocation2 + $0x3c] sm:$0x1] %v446_v2  ;;  %497 = vst [vmem:[#allocation2 + $0x44] sm:$0x1] %v496_v5  ;;  %v961_v29 = vsel %vm4963_vm8, %v684_v14, %v960_v50  ;;  %v3895_v37 = vunpack.c.l.bf16 %v4018_v6  ;;  %v3896_v40 = vunpack.c.h.bf16 %v4018_v6 }
  0x57   : > { %v3575_v13 = vcombine.low %v1082_v54, %v1051_v1  ;;  %v4715_v57 = vld [vmem:[#allocation2 + $0x2c] ss:$0 sps:$4 sm:$0x11]   ;;  %v964_v15 = vld [vmem:[#allocation2 + $0x38] sm:$0x1]  ;;  %v1307_v27 = vrot.slane %v3573_v19, 1  ;;  %v693_v34 = vsel %vm4954_vm7, %v685_v12, %v692_v3  ;;  %v5228_v19 = vsel %vm1300_vm9, %v5145_v10, %v1305_v0 }
  0x58   : > { %1615 = vmatmul.mubr.bf16.gmra.mrb[12].mxu0 %v5206_v8  ;;  %v389_v30 = vmax.f32 %v357_v61, 0.0  ;;  %v1308_v26 = vrot.slane %v4712_v46, 1  ;;  %962 = vst [vmem:[#allocation2 + $0x30] sm:$0xf] %v961_v29  ;;  %v965_v16 = vsel %vm4895_vm2, %v694_v23, %v964_v15  ;;  %v390_v52 = vmax.f32 %v358_v22, 0.0 }
  0x59   : > { %v1310_v7 = vrot.slane %v3575_v13, 1  ;;  %1622 = vmatprep.mubr.bf16.mxu0 %v5187_v36  ;;  %v1311_v58 = vrot.slane %v4715_v57, 1  ;;  %963 = vst [vmem:[#allocation2 + $0x34] sm:$0xf] %v693_v34  ;;  %966 = vst [vmem:[#allocation2 + $0x38] sm:$0x1] %v965_v16  ;;  %v3899_v43 = vunpack.c.l.bf16 %v5209_v17  ;;  %v3900_v57 = vunpack.c.h.bf16 %v5209_v17 }
  0x5a   : > { %v3815_v32 = vpack.c.bf16 %v389_v30, %v389_v30  ;;  %v448_v44 = vld [vmem:[#allocation2 + $0x48] sm:$0x1]  ;;  %v1074_v46 = vld [vmem:[#allocation2 + $0xb4] sm:$0xf]  ;;  %v5232_v11 = vpack.c.bf16 %v390_v52, %v389_v30  ;;  %v3816_v33 = vpack.c.bf16 %v390_v52, %v390_v52  ;;  %v5235_v55 = vsel %vm1300_vm9, %v1307_v27, %v1308_v26  ;;  %v498_v50 = vld [vmem:[#allocation2 + $0x50] sm:$0x1] }
  0x5b   : > { %v5230_v48 = vld [vmem:[#allocation2 + $0xb8] sm:$0xf]  ;;  %v5243_v21 = vsel %vm1300_vm9, %v1310_v7, %v1311_v58  ;;  %v5248_v1 = vld [vmem:[%s6010_s1] ss:$0 sm:$0xff]  ;;  %v451_v5 = vld [vmem:[#allocation2 + $0x54] sm:$0x1] }
  0x5c   : > { %v5240_v10 = vcombine.low %v1074_v46, %v5230_v48  ;;  %v696_v54 = vshrl.u32 %v3815_v32, 16  ;;  %v699_v56 = vshll.u32 %v3815_v32, 16  ;;  %v704_v59 = vshrl.u32 %v3816_v33, 16  ;;  %v5262_v15 = vld [vmem:[%s6011_s2] ss:$0 sm:$0xff]  ;;  %v4747_v17 = vld [vmem:[%s6012_s3 + $0xb0] sm:$0xff]  }
  0x5d   : > { %v707_v61 = vshll.u32 %v3816_v33, 16  ;;  %v320_v0 = vmul.f32 %v5248_v1, %v3895_v37  ;;  %v321_v2 = vmul.f32 %v5248_v1, %v3896_v40  ;;  %v967_v13 = vld [vmem:[#allocation2 + $0x3c] sm:$0xf]  ;;  %v449_v14 = vsel %vm4895_vm2, 0, %v448_v44  ;;  %v971_v23 = vld [vmem:[#allocation2 + $0x44] sm:$0x1]  ;;  %4498 = vmatpush3.bf16.msra.mxu0 %v4747_v17 }
  0x5e   : > { %6037 = vst [vmem:[#allocation8_spill] sm:$0xff] %v5240_v10  ;;  %1711 = vmatmul.mubr.bf16.gmra.mrb[12].mxu1 %v5240_v10  ;;  %v698_v6 = vrot.slane %v696_v54, 7  ;;  %v499_v12 = vsel %vm4906_vm4, 0, %v498_v50  ;;  %v706_v3 = vrot.slane %v704_v59, 7  ;;  %450 = vst [vmem:[#allocation2 + $0x48] sm:$0x1] %v449_v14  ;;  %v322_v29 = vmul.f32 %v5248_v1, %v3899_v43  ;;  %4499 = vmatprep.subr.bf16.mxu0 %v6015_v25 }
  0x5f   : > { %4453 = vmatprep.mubr.bf16.mxu1 %v5198_v63  ;;  %v359_v22 = vadd.f32 %v5262_v15, %v320_v0  ;;  %v360_v27 = vadd.f32 %v5262_v15, %v321_v2  ;;  %500 = vst [vmem:[#allocation2 + $0x50] sm:$0x1] %v499_v12  ;;  %v1052_v30 = vld [vmem:[#allocation2 + $0x30] sm:$0xf]  ;;  %v323_v34 = vmul.f32 %v5248_v1, %v3900_v57  ;;  %v452_v16 = vsel %vm4895_vm2, 0, %v451_v5  ;;  %v4711_v32 = vld [vmem:[%s6012_s3] sm:$0xff]  }
  0x60   : > { %v1084_v26 = vld [vmem:[#allocation2 + $0x30] sm:$0xe]  ;;  %v701_v7 = vor.u32 %v699_v56, %v698_v6  ;;  %v702_v31 = vrot.slane %v698_v6, 4  ;;  %v501_v52 = vld [vmem:[#allocation2 + $0x5c] sm:$0x1]  ;;  %v709_v37 = vor.u32 %v707_v61, %v706_v3  ;;  %v711_v40 = vrot.slane %v706_v3, 4 }
  0x61   : > { %v1053_v58 = vld [vmem:[#allocation2 + $0x34] sm:$0xf]  ;;  %v391_v44 = vmax.f32 %v359_v22, 0.0  ;;  %v392_v46 = vmax.f32 %v360_v27, 0.0  ;;  %453 = vst [vmem:[#allocation2 + $0x54] sm:$0x1] %v452_v16  ;;  %v361_v59 = vadd.f32 %v5262_v15, %v322_v29  ;;  %v362_v22 = vadd.f32 %v5262_v15, %v323_v34 }
  0x62   : > { %v5276_v33 = vcombine.low %v1052_v30, %v1053_v58  ;;  %v3577_v50 = vcombine.low %v1084_v26, %v1053_v58  ;;  %v968_v43 = vsel %vm4963_vm8, %v701_v7, %v967_v13  ;;  %v4716_v54 = vld [vmem:[%s6012_s3 + $0x48] sm:$0xff]   ;;  %v4719_v56 = vld [vmem:[#allocation2 + $0x38] ss:$0 sps:$4 sm:$0x11]   ;;  %v4020_v0 = vld [vmem:[%s4871_s16 + $0x40] sm:$0xff]   ;;  %v710_v61 = vsel %vm4954_vm7, %v702_v31, %v709_v37 }
  0x63   : > { %969 = vst [vmem:[#allocation2 + $0x3c] sm:$0xf] %v968_v43  ;;  %v972_v2 = vsel %vm4895_vm2, %v711_v40, %v971_v23  ;;  %v5290_v5 = vpack.c.bf16 %v392_v46, %v391_v44  ;;  %v3817_v6 = vpack.c.bf16 %v391_v44, %v391_v44  ;;  %v454_v13 = vld [vmem:[#allocation2 + $0x60] sm:$0x1]  ;;  %v504_v14 = vld [vmem:[#allocation2 + $0x68] sm:$0x1]  ;;  %v3818_v12 = vpack.c.bf16 %v392_v46, %v392_v46 }
  0x64   : > { %1623 = vmatmul.mubr.bf16.gmra.mrb[16].mxu0 %v5276_v33  ;;  %970 = vst [vmem:[#allocation2 + $0x40] sm:$0xf] %v710_v61  ;;  %973 = vst [vmem:[#allocation2 + $0x44] sm:$0x1] %v972_v2  ;;  %v1313_v57 = vrot.slane %v3577_v50, 1  ;;  %v1314_v3 = vrot.slane %v4719_v56, 1  ;;  %v3903_v31 = vunpack.c.l.bf16 %v4020_v0  ;;  %v3904_v40 = vunpack.c.h.bf16 %v4020_v0 }
  0x65   : > { %1630 = vmatprep.mubr.bf16.mxu0 %v5232_v11  ;;  %v713_v27 = vshrl.u32 %v3817_v6, 16  ;;  %v716_v29 = vshll.u32 %v3817_v6, 16  ;;  %v393_v17 = vmax.f32 %v361_v59, 0.0  ;;  %v502_v23 = vsel %vm4906_vm4, 0, %v501_v52  ;;  %v4718_v34 = vld [vmem:[%s6012_s3 + $0x8] sm:$0xff]   ;;  %v4723_v52 = vld [vmem:[%s6012_s3 + $0x50] sm:$0xff]  }
  0x66   : > { %4454 = vmatmul.mubr.bf16.vlgmr.msra.gmra.mrb[16].mxu1 %v5228_v19  ;;  %v721_v30 = vshrl.u32 %v3818_v12, 16  ;;  %v724_v26 = vshll.u32 %v3818_v12, 16  ;;  %v5299_v7 = vsel %vm1300_vm9, %v1313_v57, %v1314_v3  ;;  %503 = vst [vmem:[#allocation2 + $0x5c] sm:$0x1] %v502_v23  ;;  %v394_v58 = vmax.f32 %v362_v22, 0.0  ;;  %v4757_v56 = vld [vmem:[%s6012_s3 + $0xb8] sm:$0xff]  }
  0x67   : > { %4180 = vmatpush3.bf16.msra.mxu1 %v4711_v32  ;;  %4457 = vmatprep.mubr.bf16.mxu1 %v5235_v55  ;;  %v715_v16 = vrot.slane %v713_v27, 7  ;;  %v3819_v37 = vpack.c.bf16 %v393_v17, %v393_v17  ;;  %v974_v46 = vld [vmem:[#allocation2 + $0x48] sm:$0xf]  ;;  %v324_v32 = vmul.f32 %v5248_v1, %v3903_v31  ;;  %v455_v50 = vsel %vm4895_vm2, 0, %v454_v13  ;;  %v978_v2 = vld [vmem:[#allocation2 + $0x50] sm:$0x1] }
  0x68   : > { %4181 = vmatprep.subr.bf16.mxu1 %v4716_v54  ;;  %v723_v44 = vrot.slane %v721_v30, 7  ;;  %v505_v43 = vsel %vm4906_vm4, 0, %v504_v14  ;;  %v5316_v6 = vpack.c.bf16 %v394_v58, %v393_v17  ;;  %v3820_v54 = vpack.c.bf16 %v394_v58, %v394_v58  ;;  %456 = vst [vmem:[#allocation2 + $0x60] sm:$0x1] %v455_v50  ;;  %v5319_v0 = vld [vmem:[%s4871_s16 + $0x48] sm:$0xff]   ;;  %4500 = vmatpush3.bf16.msra.mxu0 %v4757_v56  ;;  %v4023_v10 = vld [vmem:[%s4871_s16 + $0x58] sm:$0xff]  }
  0x69   : > { %v718_v59 = vor.u32 %v716_v29, %v715_v16  ;;  %v719_v61 = vrot.slane %v715_v16, 4  ;;  %506 = vst [vmem:[#allocation2 + $0x68] sm:$0x1] %v505_v43  ;;  %v730_v22 = vshrl.u32 %v3819_v37, 16  ;;  %v325_v14 = vmul.f32 %v5248_v1, %v3904_v40  ;;  %4561 = vmatprep.subr.bf16.mxu0 %v6015_v25  ;;  %v981_v40 = vld [vmem:[#allocation2 + $0x54] sm:$0xf] }
  0x6a   : > { %v1054_v12 = vld [vmem:[#allocation2 + $0x3c] sm:$0xf]  ;;  %v726_v13 = vor.u32 %v724_v26, %v723_v44  ;;  %v728_v3 = vrot.slane %v723_v44, 4  ;;  %v733_v17 = vshll.u32 %v3819_v37, 16  ;;  %v738_v23 = vshrl.u32 %v3820_v54, 16  ;;  %v4724_v37 = vld [vmem:[%s6012_s3 + $0x10] sm:$0xff]  }
  0x6b   : > { %v1086_v57 = vld [vmem:[#allocation2 + $0x3c] sm:$0xe]  ;;  %v1055_v27 = vld [vmem:[#allocation2 + $0x40] sm:$0xf]  ;;  %4182 = vmatpush3.bf16.msra.mxu1 %v4718_v34  ;;  %v975_v29 = vsel %vm4963_vm8, %v718_v59, %v974_v46  ;;  %v363_v30 = vadd.f32 %v5262_v15, %v324_v32  ;;  %v732_v44 = vrot.slane %v730_v22, 7  ;;  %v741_v32 = vshll.u32 %v3820_v54, 16 }
  0x6c   : > { %v5326_v31 = vcombine.low %v1054_v12, %v1055_v27  ;;  %v3579_v16 = vcombine.low %v1086_v57, %v1055_v27  ;;  %v727_v26 = vsel %vm4954_vm7, %v719_v61, %v726_v13  ;;  %976 = vst [vmem:[#allocation2 + $0x48] sm:$0xf] %v975_v29  ;;  %v979_v58 = vsel %vm4895_vm2, %v728_v3, %v978_v2  ;;  %v4722_v34 = vld [vmem:[#allocation2 + $0x44] ss:$0 sps:$4 sm:$0x11]   ;;  %v4730_v43 = vld [vmem:[%s6012_s3 + $0x58] sm:$0xff]  }
  0x6d   : > { %4183 = vmatprep.subr.bf16.mxu1 %v4723_v52  ;;  %977 = vst [vmem:[#allocation2 + $0x4c] sm:$0xf] %v727_v26  ;;  %980 = vst [vmem:[#allocation2 + $0x50] sm:$0x1] %v979_v58  ;;  %v740_v46 = vrot.slane %v738_v23, 7  ;;  %v364_v56 = vadd.f32 %v5262_v15, %v325_v14  ;;  %v1317_v59 = vrot.slane %v4722_v34, 1  ;;  %v3907_v2 = vunpack.c.l.bf16 %v5319_v0 }
  0x6e   : > { %v985_v50 = vld [vmem:[#allocation2 + $0x5c] sm:$0x1]  ;;  %1631 = vmatmul.mubr.bf16.gmra.mrb[20].mxu0 %v5326_v31  ;;  %4458 = vmatmul.mubr.bf16.gmra.mrb[20].mxu1 %v5243_v21  ;;  %v1316_v52 = vrot.slane %v3579_v16, 1  ;;  %v395_v61 = vmax.f32 %v363_v30, 0.0  ;;  %v735_v54 = vor.u32 %v733_v17, %v732_v44  ;;  %v736_v12 = vrot.slane %v732_v44, 4  ;;  %v4737_v34 = vld [vmem:[%s6012_s3 + $0x60] sm:$0xff]  }
  0x6f   : > { %1638 = vmatprep.mubr.bf16.mxu0 %v5290_v5  ;;  %4461 = vmatprep.mubr.bf16.mxu1 %v5299_v7  ;;  %v743_v57 = vor.u32 %v741_v32, %v740_v46  ;;  %v745_v13 = vrot.slane %v740_v46, 4  ;;  %v4731_v22 = vld [vmem:[%s6012_s3 + $0x18] sm:$0xff]   ;;  %v396_v14 = vmax.f32 %v364_v56, 0.0  ;;  %v3908_v29 = vunpack.c.h.bf16 %v5319_v0  ;;  %v457_v23 = vld [vmem:[#allocation2 + $0x6c] sm:$0x1] }
  0x70   : > { %v5345_v3 = vsel %vm1300_vm9, %v1316_v52, %v1317_v59  ;;  %4184 = vmatpush3.bf16.msra.mxu1 %v4724_v37  ;;  %v3821_v27 = vpack.c.bf16 %v395_v61, %v395_v61  ;;  %v507_v30 = vld [vmem:[#allocation2 + $0x74] sm:$0x1]  ;;  %v982_v16 = vsel %vm4963_vm8, %v735_v54, %v981_v40  ;;  %v326_v58 = vmul.f32 %v5248_v1, %v3907_v2  ;;  %v4739_v40 = vld [vmem:[%s6012_s3 + $0x20] sm:$0xff]   ;;  %v4745_v54 = vld [vmem:[%s6012_s3 + $0x68] sm:$0xff]  }
  0x71   : > { %v744_v17 = vsel %vm4954_vm7, %v736_v12, %v743_v57  ;;  %v986_v26 = vsel %vm4895_vm2, %v745_v13, %v985_v50  ;;  %4185 = vmatprep.subr.bf16.mxu1 %v4730_v43  ;;  %v4022_v37 = vld [vmem:[%s4871_s16 + $0x50] sm:$0xff]   ;;  %983 = vst [vmem:[#allocation2 + $0x54] sm:$0xf] %v982_v16  ;;  %v5362_v0 = vpack.c.bf16 %v396_v14, %v395_v61  ;;  %v988_v56 = vld [vmem:[#allocation2 + $0x60] sm:$0xf]  ;;  %v458_v2 = vsel %vm4895_vm2, 0, %v457_v23 }
  0x72   : > { %984 = vst [vmem:[#allocation2 + $0x58] sm:$0xf] %v744_v17  ;;  %987 = vst [vmem:[#allocation2 + $0x5c] sm:$0x1] %v986_v26  ;;  %v3822_v44 = vpack.c.bf16 %v396_v14, %v396_v14  ;;  %v747_v46 = vshrl.u32 %v3821_v27, 16  ;;  %v750_v32 = vshll.u32 %v3821_v27, 16  ;;  %v327_v52 = vmul.f32 %v5248_v1, %v3908_v29 }
  0x73   : > { %v1056_v50 = vld [vmem:[#allocation2 + $0x48] sm:$0xf]  ;;  %v365_v59 = vadd.f32 %v5262_v15, %v326_v58  ;;  %v508_v61 = vsel %vm4906_vm4, 0, %v507_v30  ;;  %459 = vst [vmem:[#allocation2 + $0x6c] sm:$0x1] %v458_v2  ;;  %v3911_v14 = vunpack.c.l.bf16 %v4022_v37  ;;  %v3912_v27 = vunpack.c.h.bf16 %v4022_v37 }
  0x74   : > { %v1088_v43 = vld [vmem:[#allocation2 + $0x48] sm:$0xe]  ;;  %v1057_v12 = vld [vmem:[#allocation2 + $0x4c] sm:$0xf]  ;;  %4186 = vmatpush3.bf16.msra.mxu1 %v4731_v22  ;;  %v749_v57 = vrot.slane %v747_v46, 7  ;;  %v755_v13 = vshrl.u32 %v3822_v44, 16  ;;  %v366_v26 = vadd.f32 %v5262_v15, %v327_v52 }
  0x75   : > { %509 = vst [vmem:[#allocation2 + $0x74] sm:$0x1] %v508_v61  ;;  %v5376_v29 = vcombine.low %v1056_v50, %v1057_v12  ;;  %v3581_v17 = vcombine.low %v1088_v43, %v1057_v12  ;;  %v4726_v16 = vld [vmem:[#allocation2 + $0x50] ss:$0 sps:$4 sm:$0x11]   ;;  %v758_v23 = vshll.u32 %v3822_v44, 16  ;;  %4187 = vmatprep.subr.bf16.mxu1 %v4737_v34  ;;  %v328_v50 = vmul.f32 %v5248_v1, %v3911_v14 }
  0x76   : > { %4462 = vmatmul.mubr.bf16.gmra.mrb[24].mxu1 %v5345_v3  ;;  %v752_v30 = vor.u32 %v750_v32, %v749_v57  ;;  %v753_v58 = vrot.slane %v749_v57, 4  ;;  %v757_v25 = vrot.slane %v755_v13, 7  ;;  %v992_v22 = vld [vmem:[#allocation2 + $0x68] sm:$0x1]  ;;  %v397_v46 = vmax.f32 %v365_v59, 0.0  ;;  %v4751_v57 = vld [vmem:[%s6012_s3 + $0x70] sm:$0xff]  }
  0x77   : > { %1639 = vmatmul.mubr.bf16.gmra.mrb[24].mxu0 %v5376_v29  ;;  %v1319_v2 = vrot.slane %v3581_v17, 1  ;;  %v1320_v61 = vrot.slane %v4726_v16, 1  ;;  %v398_v37 = vmax.f32 %v366_v26, 0.0  ;;  %v4746_v44 = vld [vmem:[%s6012_s3 + $0x28] sm:$0xff]   ;;  %v460_v59 = vld [vmem:[#allocation2 + $0x78] sm:$0x1] }
  0x78   : > { %1646 = vmatprep.mubr.bf16.mxu0 %v5316_v6  ;;  %v760_v34 = vor.u32 %v758_v23, %v757_v25  ;;  %v762_v43 = vrot.slane %v757_v25, 4  ;;  %v989_v32 = vsel %vm4963_vm8, %v752_v30, %v988_v56  ;;  %v3823_v52 = vpack.c.bf16 %v397_v46, %v397_v46  ;;  %4188 = vmatpush3.bf16.msra.mxu1 %v4739_v40  ;;  %v510_v12 = vld [vmem:[#allocation2 + $0x80] sm:$0x1]  ;;  %v1058_v14 = vld [vmem:[#allocation2 + $0x54] sm:$0xf] }
  0x79   : > { %v5392_v13 = vsel %vm1300_vm9, %v1319_v2, %v1320_v61  ;;  %v1059_v17 = vld [vmem:[#allocation2 + $0x58] sm:$0xf]  ;;  %v1090_v16 = vld [vmem:[#allocation2 + $0x54] sm:$0xe]  ;;  %990 = vst [vmem:[#allocation2 + $0x60] sm:$0xf] %v989_v32  ;;  %v3824_v25 = vpack.c.bf16 %v398_v37, %v398_v37  ;;  %v5394_v23 = vpack.c.bf16 %v398_v37, %v397_v46  ;;  %v329_v56 = vmul.f32 %v5248_v1, %v3912_v27 }
  0x7a   : > { %4189 = vmatprep.subr.bf16.mxu1 %v4745_v54  ;;  %4465 = vmatprep.mubr.bf16.mxu1 %v5392_v13  ;;  %v5398_v40 = vcombine.low %v1058_v14, %v1059_v17  ;;  %v3583_v26 = vcombine.low %v1090_v16, %v1059_v17  ;;  %v4729_v30 = vld [vmem:[#allocation2 + $0x5c] ss:$0 sps:$4 sm:$0x11]   ;;  %v761_v2 = vsel %vm4954_vm7, %v753_v58, %v760_v34  ;;  %v764_v46 = vshrl.u32 %v3823_v52, 16  ;;  %v4752_v54 = vld [vmem:[%s6012_s3 + $0x30] sm:$0xff]  }
  0x7b   : > { %v993_v61 = vsel %vm4895_vm2, %v762_v43, %v992_v22  ;;  %991 = vst [vmem:[#allocation2 + $0x64] sm:$0xf] %v761_v2  ;;  %v767_v37 = vshll.u32 %v3823_v52, 16  ;;  %v772_v32 = vshrl.u32 %v3824_v25, 16  ;;  %v775_v27 = vshll.u32 %v3824_v25, 16  ;;  %v4756_v14 = vld [vmem:[%s6012_s3 + $0x78] sm:$0xff]  }
  0x7c   : > { %994 = vst [vmem:[#allocation2 + $0x68] sm:$0x1] %v993_v61  ;;  %v1322_v17 = vrot.slane %v3583_v26, 1  ;;  %v1323_v58 = vrot.slane %v4729_v30, 1  ;;  %v995_v34 = vld [vmem:[#allocation2 + $0x6c] sm:$0xf]  ;;  %v367_v22 = vadd.f32 %v5262_v15, %v328_v50  ;;  %v368_v43 = vadd.f32 %v5262_v15, %v329_v56  ;;  %4190 = vmatpush3.bf16.msra.mxu1 %v4746_v44 }
  0x7d   : > { %v999_v16 = vld [vmem:[#allocation2 + $0x74] sm:$0x1]  ;;  %v463_v2 = vld [vmem:[#allocation2 + $0x84] sm:$0x1]  ;;  %v766_v52 = vrot.slane %v764_v46, 7  ;;  %v774_v25 = vrot.slane %v772_v32, 7  ;;  %4191 = vmatprep.subr.bf16.mxu1 %v4751_v57  ;;  %v3915_v50 = vunpack.c.l.bf16 %v4023_v10 }
  0x7e   : > { %v461_v61 = vsel %vm4895_vm2, 0, %v460_v59  ;;  %v511_v45 = vsel %vm4906_vm4, 0, %v510_v12  ;;  %v5418_v26 = vsel %vm1300_vm9, %v1322_v17, %v1323_v58  ;;  %v5420_v30 = vmax.f32 %v367_v22, 0.0  ;;  %v4758_v44 = vld [vmem:[%s6012_s3 + $0x38] sm:$0xff]   ;;  %v513_v46 = vld [vmem:[#allocation2 + $0x8c] sm:$0x1] }
  0x7f   : > { %v5422_v49 = vmax.f32 %v368_v43, 0.0  ;;  %462 = vst [vmem:[#allocation2 + $0x78] sm:$0x1] %v461_v61  ;;  %512 = vst [vmem:[#allocation2 + $0x80] sm:$0x1] %v511_v45  ;;  %1647 = vmatmul.mubr.bf16.gmra.mrb[28].mxu0 %v5398_v40  ;;  %4466 = vmatmul.mubr.bf16.gmra.mrb[28].mxu1 %v5418_v26  ;;  %v769_v59 = vor.u32 %v767_v37, %v766_v52  ;;  %v770_v12 = vrot.slane %v766_v52, 4  ;;  %v3916_v22 = vunpack.c.h.bf16 %v4023_v10 }
  0x80   : > { %v777_v57 = vor.u32 %v775_v27, %v774_v25  ;;  %v779_v56 = vrot.slane %v774_v25, 4  ;;  %1654 = vmatprep.mubr.bf16.mxu0 %v5362_v0  ;;  %v1092_v32 = vld [vmem:[#allocation2 + $0x60] sm:$0xe]  ;;  %v3825_v45 = vpack.c.bf16 %v5420_v30, %v5420_v30  ;;  %v330_v43 = vmul.f32 %v5248_v1, %v3915_v50  ;;  %4192 = vmatpush3.bf16.msra.mxu1 %v4752_v54 }
  0x81   : > { %v1060_v17 = vld [vmem:[#allocation2 + $0x60] sm:$0xf]  ;;  %v3826_v58 = vpack.c.bf16 %v5422_v49, %v5422_v49  ;;  %v996_v27 = vsel %vm4963_vm8, %v769_v59, %v995_v34  ;;  %v464_v25 = vsel %vm4895_vm2, 0, %v463_v2  ;;  %4193 = vmatprep.subr.bf16.mxu1 %v4756_v14 }
  0x82   : > { %v778_v37 = vsel %vm4954_vm7, %v770_v12, %v777_v57  ;;  %v1000_v52 = vsel %vm4895_vm2, %v779_v56, %v999_v16  ;;  %v4759_v10 = vld [vmem:[%s6012_s3 + $0x1c0] sm:$0xff]   ;;  %997 = vst [vmem:[#allocation2 + $0x6c] sm:$0xf] %v996_v27  ;;  %v781_v54 = vshrl.u32 %v3825_v45, 16  ;;  %v784_v50 = vshll.u32 %v3825_v45, 16 }
  0x83   : > { %v1061_v61 = vld [vmem:[#allocation2 + $0x64] sm:$0xf]  ;;  %998 = vst [vmem:[#allocation2 + $0x70] sm:$0xf] %v778_v37  ;;  %1001 = vst [vmem:[#allocation2 + $0x74] sm:$0x1] %v1000_v52  ;;  %v331_v12 = vmul.f32 %v5248_v1, %v3916_v22  ;;  %v369_v34 = vadd.f32 %v5262_v15, %v330_v43 }
  0x84   : > { %465 = vst [vmem:[#allocation2 + $0x84] sm:$0x1] %v464_v25  ;;  %v3585_v16 = vcombine.low %v1092_v32, %v1061_v61  ;;  %v4733_v59 = vld [vmem:[#allocation2 + $0x68] ss:$0 sps:$4 sm:$0x11]   ;;  %v5448_v57 = vcombine.low %v1060_v17, %v1061_v61  ;;  %v789_v14 = vshrl.u32 %v3826_v58, 16  ;;  %4194 = vmatpush3.bf16.msra.mxu1 %v4758_v44 }
  0x85   : > { %v792_v2 = vshll.u32 %v3826_v58, 16  ;;  %v783_v56 = vrot.slane %v781_v54, 7  ;;  %v370_v42 = vadd.f32 %v5262_v15, %v331_v12  ;;  %v5451_v35 = vmax.f32 %v369_v34, 0.0  ;;  %4308 = vmatprep.subr.bf16.mxu1 %v4759_v10 }
  0x86   : > { %v514_v37 = vsel %vm4906_vm4, 0, %v513_v46  ;;  %v1325_v45 = vrot.slane %v3585_v16, 1  ;;  %v1326_v1 = vrot.slane %v4733_v59, 1  ;;  %v791_v22 = vrot.slane %v789_v14, 7  ;;  %v1002_v43 = vld [vmem:[#allocation2 + $0x78] sm:$0xf] }
  0x87   : > { %515 = vst [vmem:[#allocation2 + $0x8c] sm:$0x1] %v514_v37  ;;  %v786_v32 = vor.u32 %v784_v50, %v783_v56  ;;  %v787_v17 = vrot.slane %v783_v56, 4  ;;  %v1006_v27 = vld [vmem:[#allocation2 + $0x80] sm:$0x1]  ;;  %v402_v52 = vmax.f32 %v370_v42, 0.0  ;;  %v3827_v58 = vpack.c.bf16 %v5451_v35, %v5451_v35  ;;  %1655 = vmatmul.mubr.bf16.gmra.mrb[32].mxu0 %v5448_v57 }
  0x88   : > { %v5458_v15 = vsel %vm1300_vm9, %v1325_v45, %v1326_v1  ;;  %v794_v24 = vor.u32 %v792_v2, %v791_v22  ;;  %v796_v44 = vrot.slane %v791_v22, 4  ;;  %1662 = vmatprep.mubr.bf16.mxu0 %v5394_v23 }
  0x89   : > { %4469 = vmatprep.mubr.bf16.mxu1 %v5458_v15  ;;  %v1003_v46 = vsel %vm4963_vm8, %v786_v32, %v1002_v43  ;;  %v3828_v25 = vpack.c.bf16 %v402_v52, %v402_v52  ;;  %v798_v10 = vshrl.u32 %v3827_v58, 16  ;;  %v801_v42 = vshll.u32 %v3827_v58, 16  ;;  %v1094_v54 = vld [vmem:[#allocation2 + $0x6c] sm:$0xe] }
  0x8a   : > { %v1063_v61 = vld [vmem:[#allocation2 + $0x70] sm:$0xf]  ;;  %v795_v50 = vsel %vm4954_vm7, %v787_v17, %v794_v24  ;;  %1004 = vst [vmem:[#allocation2 + $0x78] sm:$0xf] %v1003_v46  ;;  %v1007_v12 = vsel %vm4895_vm2, %v796_v44, %v1006_v27  ;;  %v1062_v59 = vld [vmem:[#allocation2 + $0x6c] sm:$0xf]  ;;  %v5473_v32 = vpack.c.bf16 %v5422_v49, %v5420_v30 }
  0x8b   : > { %v3587_v34 = vcombine.low %v1094_v54, %v1063_v61  ;;  %v4736_v16 = vld [vmem:[#allocation2 + $0x74] ss:$0 sps:$4 sm:$0x11]   ;;  %1005 = vst [vmem:[#allocation2 + $0x7c] sm:$0xf] %v795_v50  ;;  %v800_v14 = vrot.slane %v798_v10, 7  ;;  %v5469_v2 = vcombine.low %v1062_v59, %v1063_v61 }
  0x8c   : > { %1008 = vst [vmem:[#allocation2 + $0x80] sm:$0x1] %v1007_v12  ;;  %v806_v56 = vshrl.u32 %v3828_v25, 16  ;;  %v809_v37 = vshll.u32 %v3828_v25, 16  ;;  %v1009_v45 = vld [vmem:[#allocation2 + $0x84] sm:$0xf] }
  0x8d   : > { %v1328_v1 = vrot.slane %v3587_v34, 1  ;;  %v1329_v22 = vrot.slane %v4736_v16, 1  ;;  %v803_v43 = vor.u32 %v801_v42, %v800_v14  ;;  %v1100_v17 = vld [vmem:[#allocation2 + $0x90] sm:$0xe]  ;;  %v804_v27 = vrot.slane %v800_v14, 4 }
  0x8e   : > { %v808_v58 = vrot.slane %v806_v56, 7  ;;  %v1013_v46 = vld [vmem:[#allocation2 + $0x8c] sm:$0x1]  ;;  %v4748_v49 = vld [vmem:[#allocation2 + $0x98] ss:$0 sps:$4 sm:$0x11]  }
  0x8f   : > { %v5476_v24 = vsel %vm1300_vm9, %v1328_v1, %v1329_v22  ;;  %v1010_v44 = vsel %vm4963_vm8, %v803_v43, %v1009_v45  ;;  %1663 = vmatmul.mubr.bf16.gmra.mrb[36].mxu0 %v5469_v2  ;;  %v4785_v50 = vld [vmem:[#allocation2 + $0x94] sm:$0xf]  ;;  %v1338_v1 = vrot.slane %v4748_v49, 1  ;;  %v1104_v43 = vld [vmem:[#allocation2 + $0xa8] sm:$0xe] }
  0x90   : > { %4470 = vmatmul.mubr.bf16.gmra.mrb[32].mxu1 %v5476_v24  ;;  %v811_v25 = vor.u32 %v809_v37, %v808_v58  ;;  %v813_v10 = vrot.slane %v808_v58, 4  ;;  %1011 = vst [vmem:[#allocation2 + $0x84] sm:$0xf] %v1010_v44  ;;  %1670 = vmatprep.mubr.bf16.mxu0 %v5473_v32  ;;  %v3593_v12 = vcombine.low %v1100_v17, %v4785_v50 }
  0x91   : > { %v1096_v42 = vld [vmem:[#allocation2 + $0x78] sm:$0xe]  ;;  %v5490_v37 = vpack.c.bf16 %v402_v52, %v5451_v35  ;;  %v4750_v35 = vld [vmem:[#allocation2 + $0xa4] ss:$0 sps:$4 sm:$0x11]  }
  0x92   : > { %v1064_v30 = vld [vmem:[#allocation2 + $0x78] sm:$0xf]  ;;  %v1065_v61 = vld [vmem:[#allocation2 + $0x7c] sm:$0xf]  ;;  %v812_v54 = vsel %vm4954_vm7, %v804_v27, %v811_v25  ;;  %v1014_v9 = vsel %vm4895_vm2, %v813_v10, %v1013_v46  ;;  %v1337_v4 = vrot.slane %v3593_v12, 1  ;;  %v1341_v12 = vrot.slane %v4750_v35, 1 }
  0x93   : > { %v3589_v34 = vcombine.low %v1096_v42, %v1065_v61  ;;  %v4741_v16 = vld [vmem:[#allocation2 + $0x80] ss:$0 sps:$4 sm:$0x11]   ;;  %1012 = vst [vmem:[#allocation2 + $0x88] sm:$0xf] %v812_v54  ;;  %v5487_v59 = vcombine.low %v1064_v30, %v1065_v61 }
  0x94   : > { %1015 = vst [vmem:[#allocation2 + $0x8c] sm:$0x1] %v1014_v9  ;;  %v1332_v56 = vrot.slane %v4741_v16, 1  ;;  %v4753_v52 = vld [vmem:[#allocation2 + $0xb0] ss:$0 sps:$4 sm:$0x11]   ;;  %v5501_v54 = vsel %vm1300_vm9, %v1337_v4, %v1338_v1 }
  0x95   : > { %v1331_v14 = vrot.slane %v3589_v34, 1  ;;  %v4786_v25 = vld [vmem:[#allocation2 + $0xa0] sm:$0xf]  ;;  %v4787_v30 = vld [vmem:[#allocation2 + $0xac] sm:$0xf]  ;;  %v6038_v34 = vmov 0.0  }
  0x96   : > { %v3595_v10 = vcombine.low %v1102_v18, %v4786_v25  ;;  %v3597_v61 = vcombine.low %v1104_v43, %v4787_v30  ;;  %v1106_v16 = vld [vmem:[#allocation2 + $0xb4] sm:$0xe]  ;;  %v4755_v18 = vld [vmem:[#allocation2 + $0xbc] ss:$0 sps:$4 sm:$0x11]   ;;  %v4760_v35 = vld [vmem:[%s6012_s3 + $0x180] sm:$0xff]  }
  0x97   : > { %v5493_v45 = vsel %vm1300_vm9, %v1331_v14, %v1332_v56  ;;  %v1098_v22 = vld [vmem:[#allocation2 + $0x84] sm:$0xe]  ;;  %1671 = vmatmul.mubr.bf16.gmra.mrb[40].mxu0 %v5487_v59  ;;  %v1344_v56 = vrot.slane %v4753_v52, 1  ;;  %v3599_v4 = vcombine.low %v1106_v16, %v5230_v48  ;;  %v4764_v48 = vld [vmem:[%s6012_s3 + $0x208] sm:$0xff]   ;;  %v4779_v30 = vld [vmem:[%s6012_s3 + $0x230] sm:$0xff]  }
  0x98   : > { %4473 = vmatprep.mubr.bf16.mxu1 %v5493_v45  ;;  %1678 = vmatprep.mubr.bf16.mxu0 %v5490_v37  ;;  %v1066_v17 = vld [vmem:[#allocation2 + $0x84] sm:$0xf]  ;;  %v1340_v50 = vrot.slane %v3595_v10, 1  ;;  %v1343_v14 = vrot.slane %v3597_v61, 1  ;;  %v4762_v52 = vld [vmem:[%s6012_s3 + $0x1c8] sm:$0xff]   ;;  %v4765_v10 = vld [vmem:[%s6012_s3 + $0x1d0] sm:$0xff]  }
  0x99   : > { %v4763_v25 = vld [vmem:[%s6012_s3 + $0x188] sm:$0xff]   ;;  %v4769_v61 = vld [vmem:[%s6012_s3 + $0x198] sm:$0xff]  }
  0x9a   : > { %v1067_v27 = vld [vmem:[#allocation2 + $0x88] sm:$0xf]  ;;  %v5513_v1 = vsel %vm1300_vm9, %v1340_v50, %v1341_v12  ;;  %v5519_v43 = vsel %vm1300_vm9, %v1343_v14, %v1344_v56  ;;  %v4771_v50 = vld [vmem:[%s6012_s3 + $0x1e0] sm:$0xff]   ;;  %v4782_v16 = vld [vmem:[%s6012_s3 + $0x238] sm:$0xff]  }
  0x9b   : > { %v3591_v58 = vcombine.low %v1098_v22, %v1067_v27  ;;  %v4744_v44 = vld [vmem:[#allocation2 + $0x8c] ss:$0 sps:$4 sm:$0x11]   ;;  %v5498_v46 = vcombine.low %v1066_v17, %v1067_v27  ;;  %v4761_v22 = vld [vmem:[%s6012_s3 + $0x200] sm:$0xff]   ;;  %v1346_v17 = vrot.slane %v3599_v4, 1  ;;  %v1347_v27 = vrot.slane %v4755_v18, 1 }
  0x9c   : > { %v1335_v49 = vrot.slane %v4744_v44, 1  ;;  %v4770_v44 = vld [vmem:[%s6012_s3 + $0x218] sm:$0xff]   ;;  %v4772_v12 = vld [vmem:[%s6012_s3 + $0x1a0] sm:$0xff]   ;;  %v4774_v14 = vld [vmem:[%s6012_s3 + $0x1e8] sm:$0xff]  }
  0x9d   : > { %v1334_v42 = vrot.slane %v3591_v58, 1  ;;  %v5531_v58 = vsel %vm1300_vm9, %v1346_v17, %v1347_v27  ;;  %v4775_v56 = vld [vmem:[%s6012_s3 + $0x1a8] sm:$0xff]   ;;  %v4777_v4 = vld [vmem:[%s6012_s3 + $0x1f0] sm:$0xff]   ;;  %v4781_v17 = vld [vmem:[%s6012_s3 + $0x1b8] sm:$0xff]  }
  0x9e   : > { %v4778_v18 = vld [vmem:[%s6012_s3 + $0x1b0] sm:$0xff]  }
  0x9f   : > { %v5504_v9 = vsel %vm1300_vm9, %v1334_v42, %v1335_v49  ;;  %1679 = vmatmul.mubr.bf16.gmra.mrb[44].mxu0 %v5498_v46  ;;  %v4766_v42 = vld [vmem:[%s6012_s3 + $0x190] sm:$0xff]   ;;  %v4768_v49 = vld [vmem:[%s6012_s3 + $0x1d8] sm:$0xff]  }
  0xa0   : > { %4474 = vmatmul.mubr.bf16.gmra.mrb[36].mxu1 %v5504_v9  ;;  %4501 = vmatprep.mubr.msk.bf16.mxu0 %vm4797_vm10, %v6038_v34 }
  0xa1   : > { %4477 = vmatprep.mubr.bf16.mxu1 %v5501_v54 }
  0xa7   : > { %4502 = vmatmul.mubr.bf16.vlgmr.msra.gmra.mrb[48].mxu0 %v5198_v63  ;;  %v4767_v63 = vld [vmem:[%s6012_s3 + $0x210] sm:$0xff]  }
  0xa8   : > { %4478 = vmatmul.mubr.bf16.gmra.mrb[40].mxu1 %v5513_v1  ;;  %4562 = vmatpush3.bf16.msra.mxu0 %v4761_v22  ;;  %v4780_v22 = vld [vmem:[%s6012_s3 + $0x1f8] sm:$0xff]  }
  0xa9   : > { %4481 = vmatprep.mubr.bf16.mxu1 %v5519_v43  ;;  %4505 = vmatprep.mubr.msk.bf16.mxu0 %vm4797_vm10, %v6038_v34 }
  0xaa   : > { %4563 = vmatprep.subr.bf16.mxu0 %v6038_v34 }
  0xac   : > { %4564 = vmatpush3.bf16.msra.mxu0 %v4764_v48 }
  0xad   : > { %4565 = vmatprep.subr.bf16.mxu0 %v6038_v34 }
  0xaf   : > { %4506 = vmatmul.mubr.bf16.gmra.mrb[52].mxu0 %v5228_v19 }
  0xb0   : > { %4482 = vmatmul.mubr.bf16.gmra.mrb[44].mxu1 %v5531_v58  ;;  %4509 = vmatprep.mubr.msk.bf16.mxu0 %vm4797_vm10, %v6038_v34 }
  0xb1   : > { %2136 = vmatprep.mubr.bf16.mxu1 %v4932_v47  ;;  %4566 = vmatpush3.bf16.msra.mxu0 %v4767_v63  ;;  %v4773_v47 = vld [vmem:[%s6012_s3 + $0x220] sm:$0xff]  }
  0xb2   : > { %4567 = vmatprep.subr.bf16.mxu0 %v6038_v34 }
  0xb5   : > { %4568 = vmatpush3.bf16.msra.mxu0 %v4770_v44 }
  0xb6   : > { %4569 = vmatprep.subr.bf16.mxu0 %v6038_v34 }
  0xb7   : > { %4510 = vmatmul.mubr.bf16.gmra.mrb[56].mxu0 %v5235_v55 }
  0xb8   : > { %2137 = vmatmul.mubr.bf16.vlgmr.msra.gmra.mrb[48].mxu1 %v5009_v20  ;;  %4513 = vmatprep.mubr.msk.bf16.mxu0 %vm4797_vm10, %v6038_v34  ;;  %v4776_v20 = vld [vmem:[%s6012_s3 + $0x228] sm:$0xff]  }
  0xb9   : > { %4309 = vmatpush3.bf16.msra.mxu1 %v4760_v35  ;;  %2144 = vmatprep.mubr.bf16.mxu1 %v4979_v41 }
  0xba   : > { %4310 = vmatprep.subr.bf16.mxu1 %v4762_v52  ;;  %4570 = vmatpush3.bf16.msra.mxu0 %v4773_v47 }
  0xbb   : > { %4571 = vmatprep.subr.bf16.mxu0 %v6038_v34 }
  0xbd   : > { %4311 = vmatpush3.bf16.msra.mxu1 %v4763_v25 }
  0xbe   : > { %4312 = vmatprep.subr.bf16.mxu1 %v4765_v10  ;;  %4572 = vmatpush3.bf16.msra.mxu0 %v4776_v20 }
  0xbf   : > { %4514 = vmatmul.mubr.bf16.gmra.mrb[60].mxu0 %v5243_v21  ;;  %4573 = vmatprep.subr.bf16.mxu0 %v6038_v34 }
  0xc0   : > { %2145 = vmatmul.mubr.bf16.gmra.mrb[52].mxu1 %v5058_v28  ;;  %4517 = vmatprep.mubr.msk.bf16.mxu0 %vm4797_vm10, %v6038_v34 }
  0xc1   : > { %2152 = vmatprep.mubr.bf16.mxu1 %v5042_v60  ;;  %4313 = vmatpush3.bf16.msra.mxu1 %v4766_v42 }
  0xc2   : > { %4314 = vmatprep.subr.bf16.mxu1 %v4768_v49  ;;  %4574 = vmatpush3.bf16.msra.mxu0 %v4779_v30 }
  0xc3   : > { %4575 = vmatprep.subr.bf16.mxu0 %v6038_v34 }
  0xc5   : > { %4315 = vmatpush3.bf16.msra.mxu1 %v4769_v61 }
  0xc6   : > { %4316 = vmatprep.subr.bf16.mxu1 %v4771_v50  ;;  %4576 = vmatpush3.bf16.msra.mxu0 %v4782_v16 }
  0xc7   : > { %4518 = vmatmul.mubr.bf16.gmra.mrb[64].mxu0 %v5299_v7 }
  0xc8   : > { %2153 = vmatmul.mubr.bf16.gmra.mrb[56].mxu1 %v5134_v51  ;;  %4521 = vmatprep.mubr.msk.bf16.mxu0 %vm4797_vm10, %v6038_v34 }
  0xc9   : > { %2160 = vmatprep.mubr.bf16.mxu1 %v5128_v53  ;;  %4317 = vmatpush3.bf16.msra.mxu1 %v4772_v12 }
  0xca   : > { %4318 = vmatprep.subr.bf16.mxu1 %v4774_v14 }
  0xcd   : > { %4319 = vmatpush3.bf16.msra.mxu1 %v4775_v56 }
  0xce   : > { %4320 = vmatprep.subr.bf16.mxu1 %v4777_v4 }
  0xcf   : > { %4522 = vmatmul.mubr.bf16.gmra.mrb[68].mxu0 %v5345_v3 }
  0xd0   : > { %2161 = vmatmul.mubr.bf16.gmra.mrb[60].mxu1 %v5206_v8  ;;  %4525 = vmatprep.mubr.msk.bf16.mxu0 %vm4797_vm10, %v6038_v34 }
  0xd1   : > { %2168 = vmatprep.mubr.bf16.mxu1 %v5187_v36  ;;  %4321 = vmatpush3.bf16.msra.mxu1 %v4778_v18 }
  0xd2   : > { %4322 = vmatprep.subr.bf16.mxu1 %v4780_v22 }
  0xd5   : > { %4323 = vmatpush3.bf16.msra.mxu1 %v4781_v17 }
  0xd7   : > { %4526 = vmatmul.mubr.bf16.gmra.mrb[72].mxu0 %v5392_v13 }
  0xd8   : > { %2169 = vmatmul.mubr.bf16.gmra.mrb[64].mxu1 %v5276_v33  ;;  %4529 = vmatprep.mubr.msk.bf16.mxu0 %vm4797_vm10, %v6038_v34 }
  0xd9   : > { %2176 = vmatprep.mubr.bf16.mxu1 %v5232_v11 }
  0xdf   : > { %4530 = vmatmul.mubr.bf16.gmra.mrb[76].mxu0 %v5418_v26 }
  0xe0   : > { %2177 = vmatmul.mubr.bf16.gmra.mrb[68].mxu1 %v5326_v31  ;;  %4533 = vmatprep.mubr.msk.bf16.mxu0 %vm4797_vm10, %v6038_v34 }
  0xe1   : > { %2184 = vmatprep.mubr.bf16.mxu1 %v5290_v5 }
  0xe7   : > { %4534 = vmatmul.mubr.bf16.gmra.mrb[80].mxu0 %v5458_v15 }
  0xe8   : > { %2185 = vmatmul.mubr.bf16.gmra.mrb[72].mxu1 %v5376_v29  ;;  %4537 = vmatprep.mubr.msk.bf16.mxu0 %vm4797_vm10, %v6038_v34 }
  0xe9   : > { %2192 = vmatprep.mubr.bf16.mxu1 %v5316_v6 }
  0xef   : > { %4538 = vmatmul.mubr.bf16.gmra.mrb[84].mxu0 %v5476_v24 }
  0xf0   : > { %2193 = vmatmul.mubr.bf16.gmra.mrb[76].mxu1 %v5398_v40  ;;  %4541 = vmatprep.mubr.msk.bf16.mxu0 %vm4797_vm10, %v6038_v34 }
  0xf1   : > { %2200 = vmatprep.mubr.bf16.mxu1 %v5362_v0 }
  0xf7   : > { %4542 = vmatmul.mubr.bf16.gmra.mrb[88].mxu0 %v5493_v45 }
  0xf8   : > { %2201 = vmatmul.mubr.bf16.gmra.mrb[80].mxu1 %v5448_v57  ;;  %4545 = vmatprep.mubr.msk.bf16.mxu0 %vm4797_vm10, %v6038_v34 }
  0xf9   : > { %2208 = vmatprep.mubr.bf16.mxu1 %v5394_v23 }
  0xff   : > { %4546 = vmatmul.mubr.bf16.gmra.mrb[92].mxu0 %v5504_v9 }
 0x100   : > { %2209 = vmatmul.mubr.bf16.gmra.mrb[84].mxu1 %v5469_v2  ;;  %4549 = vmatprep.mubr.msk.bf16.mxu0 %vm4797_vm10, %v6038_v34 }
 0x101   : > { %2216 = vmatprep.mubr.bf16.mxu1 %v5473_v32 }
 0x102   : > { %v4059_v27 = vpop.f32.mrb[0].mxu0 }
 0x103   : > { %v4060_v48 = vpop.f32.mrb[1].mxu0 }
 0x104   : > { %v5657_v63 = vadd.f32 %v4060_v48, %v4059_v27  ;;  %v4062_v44 = vpop.f32.mrb[2].mxu0 }
 0x105   : > { %v4063_v52 = vpop.f32.mrb[3].mxu0 }
 0x106   : > { %v5659_v25 = vadd.f32 %v4063_v52, %v4062_v44 }
 0x107   : > { %v4131_v35 = vpop.f32.mrb[0].mxu1  ;;  %4550 = vmatmul.mubr.bf16.gmra.mrb[96].mxu0 %v5501_v54 }
 0x108   : > { %v4132_v47 = vpop.f32.mrb[1].mxu1  ;;  %2217 = vmatmul.mubr.bf16.gmra.mrb[88].mxu1 %v5487_v59  ;;  %4553 = vmatprep.mubr.msk.bf16.mxu0 %vm4797_vm10, %v6038_v34 }
 0x109   : > { %v5663_v10 = vadd.f32 %v4132_v47, %v4131_v35  ;;  %v4134_v20 = vpop.f32.mrb[2].mxu1  ;;  %2224 = vmatprep.mubr.bf16.mxu1 %v5490_v37 }
 0x10a   : > { %v4135_v42 = vpop.f32.mrb[3].mxu1 }
 0x10b   : > { %v5668_v49 = vadd.f32 %v4135_v42, %v4134_v20  ;;  %v6039_v42 = vld [vmem:[#allocation5_spill] sm:$0xff] }
 0x10e   : > { %v4065_v30 = vpop.f32.mrb[4].mxu0 }
 0x10f   : > { %v4066_v61 = vpop.f32.mrb[5].mxu0  ;;  %4554 = vmatmul.mubr.bf16.gmra.mrb[100].mxu0 %v5513_v1 }
 0x110   : > { %2225 = vmatmul.mubr.bf16.gmra.mrb[92].mxu1 %v5498_v46  ;;  %v4067_v50 = vadd.f32 %v4066_v61, %v4065_v30  ;;  %v4068_v12 = vpop.f32.mrb[6].mxu0  ;;  %4557 = vmatprep.mubr.msk.bf16.mxu0 %vm4797_vm10, %v6038_v34  ;;  %v6040_v30 = vld [vmem:[#allocation4_spill] sm:$0xff] }
 0x111   : > { %2232 = vmatprep.mubr.bf16.mxu1 %v4944_v62  ;;  %v4069_v16 = vpop.f32.mrb[7].mxu0 }
 0x112   : > { %v4070_v14 = vadd.f32 %v4069_v16, %v4068_v12 }
 0x117   : > { %4558 = vmatmul.mubr.bf16.gmra.mrb[104].mxu0 %v5519_v43  ;;  %v4137_v56 = vpop.f32.mrb[4].mxu1 }
 0x118   : > { %2233 = vmatmul.mubr.bf16.gmra.mrb[96].mxu1 %v5023_v38  ;;  %4577 = vmatprep.mubr.msk.bf16.mxu0 %vm4797_vm10, %v6038_v34  ;;  %v4138_v4 = vpop.f32.mrb[5].mxu1 }
 0x119   : > { %2240 = vmatprep.mubr.bf16.mxu1 %v5026_v39  ;;  %v5680_v18 = vadd.f32 %v4138_v4, %v4137_v56  ;;  %v4140_v22 = vpop.f32.mrb[6].mxu1  ;;  %v4071_v27 = vpop.f32.mrb[8].mxu0 }
 0x11a   : > { %v4141_v17 = vpop.f32.mrb[7].mxu1  ;;  %v4072_v44 = vpop.f32.mrb[9].mxu0 }
 0x11b   : > { %v5682_v48 = vadd.f32 %v4141_v17, %v4140_v22  ;;  %v4073_v35 = vadd.f32 %v4072_v44, %v4071_v27  ;;  %v4074_v52 = vpop.f32.mrb[10].mxu0  ;;  %v6041_v17 = vld [vmem:[#allocation7_spill] sm:$0xff] }
 0x11c   : > { %v4075_v47 = vpop.f32.mrb[11].mxu0 }
 0x11d   : > { %v5684_v20 = vadd.f32 %v4075_v47, %v4074_v52 }
 0x11f   : > { %4578 = vmatmul.mubr.bf16.vlgmr.msra.gmra.mrb[108].mxu0 %v5228_v19 }
 0x120   : > { %2241 = vmatmul.mubr.bf16.gmra.mrb[100].mxu1 %v6039_v42  ;;  %4581 = vmatprep.mubr.msk.bf16.mxu0 %vm4797_vm10, %v6038_v34 }
 0x121   : > { %2248 = vmatprep.mubr.bf16.mxu1 %v6040_v30  ;;  %v4143_v61 = vpop.f32.mrb[8].mxu1 }
 0x122   : > { %v4144_v12 = vpop.f32.mrb[9].mxu1 }
 0x123   : > { %v5691_v16 = vadd.f32 %v4144_v12, %v4143_v61  ;;  %v4146_v56 = vpop.f32.mrb[10].mxu1 }
 0x124   : > { %v4147_v4 = vpop.f32.mrb[11].mxu1 }
 0x125   : > { %v5693_v22 = vadd.f32 %v4147_v4, %v4146_v56 }
 0x127   : > { %4582 = vmatmul.mubr.bf16.gmra.mrb[112].mxu0 %v5235_v55 }
 0x128   : > { %2249 = vmatmul.mubr.bf16.gmra.mrb[104].mxu1 %v6041_v17  ;;  %4585 = vmatprep.mubr.msk.bf16.mxu0 %vm4797_vm10, %v6038_v34 }
 0x129   : > { %2726 = vmatprep.mubr.bf16.mxu1 %v4979_v41 }
 0x12b   : > { %v4077_v19 = vpop.f32.mrb[12].mxu0 }
 0x12c   : > { %v4078_v27 = vpop.f32.mrb[13].mxu0 }
 0x12d   : > { %v4079_v44 = vadd.f32 %v4078_v27, %v4077_v19  ;;  %v4080_v52 = vpop.f32.mrb[14].mxu0 }
 0x12e   : > { %v4081_v47 = vpop.f32.mrb[15].mxu0 }
 0x12f   : > { %4586 = vmatmul.mubr.bf16.gmra.mrb[116].mxu0 %v5243_v21  ;;  %v4082_v61 = vadd.f32 %v4081_v47, %v4080_v52 }
 0x130   : > { %2727 = vmatmul.mubr.bf16.vlgmr.msra.gmra.mrb[108].mxu1 %v5058_v28  ;;  %4589 = vmatprep.mubr.msk.bf16.mxu0 %vm4797_vm10, %v6038_v34 }
 0x131   : > { %2734 = vmatprep.mubr.bf16.mxu1 %v5042_v60  ;;  %v4149_v55 = vpop.f32.mrb[12].mxu1 }
 0x132   : > { %v4150_v41 = vpop.f32.mrb[13].mxu1 }
 0x133   : > { %v5705_v12 = vadd.f32 %v4150_v41, %v4149_v55  ;;  %v4152_v56 = vpop.f32.mrb[14].mxu1 }
 0x134   : > { %v4153_v4 = vpop.f32.mrb[15].mxu1 }
 0x135   : > { %v5707_v17 = vadd.f32 %v4153_v4, %v4152_v56 }
 0x137   : > { %4590 = vmatmul.mubr.bf16.gmra.mrb[120].mxu0 %v5299_v7  ;;  %v4083_v28 = vpop.f32.mrb[16].mxu0 }
 0x138   : > { %2735 = vmatmul.mubr.bf16.gmra.mrb[112].mxu1 %v5134_v51  ;;  %v4084_v21 = vpop.f32.mrb[17].mxu0  ;;  %4593 = vmatprep.mubr.msk.bf16.mxu0 %vm4797_vm10, %v6038_v34 }
 0x139   : > { %2742 = vmatprep.mubr.bf16.mxu1 %v5128_v53  ;;  %v4455_v60 = vpop.f32.mrb[16].mxu1  ;;  %v4085_v19 = vadd.f32 %v4084_v21, %v4083_v28  ;;  %v4086_v27 = vpop.f32.mrb[18].mxu0 }
 0x13a   : > { %v5714_v52 = vadd.f32 %v4455_v60, %v4067_v50  ;;  %v1753_v47 = vpop.f32.mrb[17].mxu1  ;;  %v4087_v55 = vpop.f32.mrb[19].mxu0 }
 0x13b   : > { %v5717_v41 = vadd.f32 %v5657_v63, %v1753_v47  ;;  %v4456_v51 = vpop.f32.mrb[18].mxu1  ;;  %v4088_v56 = vadd.f32 %v4087_v55, %v4086_v27 }
 0x13c   : > { %v5719_v7 = vadd.f32 %v4456_v51, %v4070_v14  ;;  %v1756_v4 = vpop.f32.mrb[19].mxu1 }
 0x13d   : > { %v5722_v53 = vadd.f32 %v5659_v25, %v1756_v4 }
 0x13f   : > { %4594 = vmatmul.mubr.bf16.gmra.mrb[124].mxu0 %v5345_v3 }
 0x140   : > { %2743 = vmatmul.mubr.bf16.gmra.mrb[116].mxu1 %v5206_v8  ;;  %4597 = vmatprep.mubr.msk.bf16.mxu0 %vm4797_vm10, %v6038_v34 }
 0x141   : > { %2750 = vmatprep.mubr.bf16.mxu1 %v5187_v36  ;;  %v4459_v50 = vpop.f32.mrb[20].mxu1  ;;  %v4089_v63 = vpop.f32.mrb[20].mxu0 }
 0x142   : > { %v5729_v28 = vadd.f32 %v4459_v50, %v4079_v44  ;;  %v1769_v21 = vpop.f32.mrb[21].mxu1  ;;  %v4090_v14 = vpop.f32.mrb[21].mxu0 }
 0x143   : > { %v5731_v60 = vadd.f32 %v4073_v35, %v1769_v21  ;;  %v4091_v27 = vadd.f32 %v4090_v14, %v4089_v63  ;;  %v4460_v25 = vpop.f32.mrb[22].mxu1  ;;  %v4092_v47 = vpop.f32.mrb[22].mxu0 }
 0x144   : > { %v5733_v55 = vadd.f32 %v4460_v25, %v4082_v61  ;;  %v1772_v8 = vpop.f32.mrb[23].mxu1  ;;  %v4093_v3 = vpop.f32.mrb[23].mxu0 }
 0x145   : > { %v5736_v36 = vadd.f32 %v5684_v20, %v1772_v8  ;;  %v4094_v51 = vadd.f32 %v4093_v3, %v4092_v47 }
 0x147   : > { %4598 = vmatmul.mubr.bf16.gmra.mrb[128].mxu0 %v5392_v13 }
 0x148   : > { %2751 = vmatmul.mubr.bf16.gmra.mrb[120].mxu1 %v5276_v33  ;;  %4601 = vmatprep.mubr.msk.bf16.mxu0 %vm4797_vm10, %v6038_v34 }
 0x149   : > { %2758 = vmatprep.mubr.bf16.mxu1 %v5232_v11  ;;  %v4463_v35 = vpop.f32.mrb[24].mxu1 }
 0x14a   : > { %v5743_v44 = vadd.f32 %v4463_v35, %v4091_v27  ;;  %v4095_v61 = vpop.f32.mrb[24].mxu0  ;;  %v1785_v4 = vpop.f32.mrb[25].mxu1 }
 0x14b   : > { %v5745_v50 = vadd.f32 %v4085_v19, %v1785_v4  ;;  %v4096_v63 = vpop.f32.mrb[25].mxu0  ;;  %v4464_v20 = vpop.f32.mrb[26].mxu1 }
 0x14c   : > { %v4097_v21 = vadd.f32 %v4096_v63, %v4095_v61  ;;  %v5747_v14 = vadd.f32 %v4464_v20, %v4094_v51  ;;  %v4098_v33 = vpop.f32.mrb[26].mxu0  ;;  %v1788_v25 = vpop.f32.mrb[27].mxu1 }
 0x14d   : > { %v5749_v13 = vadd.f32 %v4088_v56, %v1788_v25  ;;  %v4099_v11 = vpop.f32.mrb[27].mxu0 }
 0x14e   : > { %v4100_v47 = vadd.f32 %v4099_v11, %v4098_v33 }
 0x14f   : > { %4602 = vmatmul.mubr.bf16.gmra.mrb[132].mxu0 %v5418_v26 }
 0x150   : > { %2759 = vmatmul.mubr.bf16.gmra.mrb[124].mxu1 %v5326_v31  ;;  %4605 = vmatprep.mubr.msk.bf16.mxu0 %vm4797_vm10, %v6038_v34 }
 0x151   : > { %2766 = vmatprep.mubr.bf16.mxu1 %v5290_v5 }
 0x152   : > { %v4101_v19 = vpop.f32.mrb[28].mxu0  ;;  %v4467_v27 = vpop.f32.mrb[28].mxu1 }
 0x153   : > { %v4102_v8 = vpop.f32.mrb[29].mxu0  ;;  %v1801_v3 = vpop.f32.mrb[29].mxu1 }
 0x154   : > { %v4103_v51 = vadd.f32 %v4102_v8, %v4101_v19  ;;  %v5756_v35 = vadd.f32 %v4097_v21, %v1801_v3  ;;  %v4104_v56 = vpop.f32.mrb[30].mxu0  ;;  %v4468_v61 = vpop.f32.mrb[30].mxu1 }
 0x155   : > { %v4105_v4 = vpop.f32.mrb[31].mxu0  ;;  %v1804_v63 = vpop.f32.mrb[31].mxu1 }
 0x156   : > { %v5758_v20 = vadd.f32 %v4467_v27, %v4103_v51  ;;  %v4106_v31 = vadd.f32 %v4105_v4, %v4104_v56  ;;  %v5760_v26 = vadd.f32 %v4100_v47, %v1804_v63 }
 0x157   : > { %4606 = vmatmul.mubr.bf16.gmra.mrb[136].mxu0 %v5458_v15 }
 0x158   : > { %2767 = vmatmul.mubr.bf16.gmra.mrb[128].mxu1 %v5376_v29  ;;  %v5765_v5 = vadd.f32 %v4468_v61, %v4106_v31  ;;  %4609 = vmatprep.mubr.msk.bf16.mxu0 %vm4797_vm10, %v6038_v34 }
 0x159   : > { %2774 = vmatprep.mubr.bf16.mxu1 %v5316_v6 }
 0x15a   : > { %v4107_v21 = vpop.f32.mrb[32].mxu0 }
 0x15b   : > { %v4108_v33 = vpop.f32.mrb[33].mxu0 }
 0x15c   : > { %v4109_v25 = vadd.f32 %v4108_v33, %v4107_v21  ;;  %v4110_v11 = vpop.f32.mrb[34].mxu0 }
 0x15d   : > { %v4111_v19 = vpop.f32.mrb[35].mxu0 }
 0x15e   : > { %v4112_v27 = vadd.f32 %v4111_v19, %v4110_v11 }
 0x15f   : > { %4610 = vmatmul.mubr.bf16.gmra.mrb[140].mxu0 %v5476_v24 }
 0x160   : > { %2775 = vmatmul.mubr.bf16.gmra.mrb[132].mxu1 %v5398_v40  ;;  %4613 = vmatprep.mubr.msk.bf16.mxu0 %vm4797_vm10, %v6038_v34 }
 0x161   : > { %2782 = vmatprep.mubr.bf16.mxu1 %v5362_v0 }
 0x162   : > { %v4113_v29 = vpop.f32.mrb[36].mxu0 }
 0x163   : > { %v4471_v6 = vpop.f32.mrb[32].mxu1  ;;  %v4114_v47 = vpop.f32.mrb[37].mxu0 }
 0x164   : > { %v1817_v15 = vpop.f32.mrb[33].mxu1  ;;  %v4115_v51 = vadd.f32 %v4114_v47, %v4113_v29  ;;  %v4116_v56 = vpop.f32.mrb[38].mxu0 }
 0x165   : > { %v5774_v8 = vadd.f32 %v4109_v25, %v1817_v15  ;;  %v4472_v3 = vpop.f32.mrb[34].mxu1  ;;  %v4117_v4 = vpop.f32.mrb[39].mxu0 }
 0x166   : > { %v1820_v61 = vpop.f32.mrb[35].mxu1  ;;  %v5778_v40 = vadd.f32 %v4471_v6, %v4115_v51  ;;  %v4118_v24 = vadd.f32 %v4117_v4, %v4116_v56 }
 0x167   : > { %v5776_v63 = vadd.f32 %v4112_v27, %v1820_v61  ;;  %4614 = vmatmul.mubr.bf16.gmra.mrb[144].mxu0 %v5493_v45 }
 0x168   : > { %2783 = vmatmul.mubr.bf16.gmra.mrb[136].mxu1 %v5448_v57  ;;  %v5783_v0 = vadd.f32 %v4472_v3, %v4118_v24  ;;  %4617 = vmatprep.mubr.msk.bf16.mxu0 %vm4797_vm10, %v6038_v34 }
 0x169   : > { %2790 = vmatprep.mubr.bf16.mxu1 %v5394_v23 }
 0x16a   : > { %v4119_v31 = vpop.f32.mrb[40].mxu0 }
 0x16b   : > { %v4120_v21 = vpop.f32.mrb[41].mxu0 }
 0x16c   : > { %v4121_v33 = vadd.f32 %v4120_v21, %v4119_v31  ;;  %v4122_v25 = vpop.f32.mrb[42].mxu0 }
 0x16d   : > { %v4123_v11 = vpop.f32.mrb[43].mxu0 }
 0x16e   : > { %v4124_v19 = vadd.f32 %v4123_v11, %v4122_v25 }
 0x16f   : > { %4618 = vmatmul.mubr.bf16.gmra.mrb[148].mxu0 %v5504_v9 }
 0x170   : > { %2791 = vmatmul.mubr.bf16.gmra.mrb[140].mxu1 %v5469_v2  ;;  %4621 = vmatprep.mubr.msk.bf16.mxu0 %vm4797_vm10, %v6038_v34 }
 0x171   : > { %2798 = vmatprep.mubr.bf16.mxu1 %v5473_v32 }
 0x172   : > { %v4125_v57 = vpop.f32.mrb[44].mxu0 }
 0x173   : > { %v4475_v23 = vpop.f32.mrb[36].mxu1  ;;  %v4126_v27 = vpop.f32.mrb[45].mxu0 }
 0x174   : > { %v1833_v45 = vpop.f32.mrb[37].mxu1  ;;  %v4127_v15 = vadd.f32 %v4126_v27, %v4125_v57  ;;  %v4128_v47 = vpop.f32.mrb[46].mxu0 }
 0x175   : > { %v4476_v6 = vpop.f32.mrb[38].mxu1  ;;  %v5792_v29 = vadd.f32 %v4121_v33, %v1833_v45  ;;  %v4129_v51 = vpop.f32.mrb[47].mxu0 }
 0x176   : > { %v1836_v3 = vpop.f32.mrb[39].mxu1  ;;  %v5796_v2 = vadd.f32 %v4475_v23, %v4127_v15  ;;  %v4130_v9 = vadd.f32 %v4129_v51, %v4128_v47 }
 0x177   : > { %v5794_v56 = vadd.f32 %v4124_v19, %v1836_v3  ;;  %4622 = vmatmul.mubr.bf16.gmra.mrb[152].mxu0 %v5501_v54 }
 0x178   : > { %2799 = vmatmul.mubr.bf16.gmra.mrb[144].mxu1 %v5487_v59  ;;  %v5801_v32 = vadd.f32 %v4476_v6, %v4130_v9  ;;  %4625 = vmatprep.mubr.msk.bf16.mxu0 %vm4797_vm10, %v6038_v34 }
 0x179   : > { %2806 = vmatprep.mubr.bf16.mxu1 %v5490_v37 }
 0x17a   : > { %v2291_v4 = vpop.f32.mrb[48].mxu0 }
 0x17b   : > { %v4479_v61 = vpop.f32.mrb[40].mxu1  ;;  %v4503_v21 = vpop.f32.mrb[49].mxu0 }
 0x17c   : > { %v5806_v24 = vadd.f32 %v4479_v61, %v5680_v18  ;;  %v1849_v31 = vpop.f32.mrb[41].mxu1  ;;  %v2294_v25 = vpop.f32.mrb[50].mxu0 }
 0x17d   : > { %v5809_v33 = vadd.f32 %v5663_v10, %v1849_v31  ;;  %v4480_v59 = vpop.f32.mrb[42].mxu1  ;;  %v4504_v11 = vpop.f32.mrb[51].mxu0 }
 0x17e   : > { %v5812_v54 = vadd.f32 %v4480_v59, %v5682_v48  ;;  %v1852_v37 = vpop.f32.mrb[43].mxu1 }
 0x17f   : > { %v5815_v19 = vadd.f32 %v5668_v49, %v1852_v37  ;;  %4626 = vmatmul.mubr.bf16.gmra.mrb[156].mxu0 %v5513_v1 }
 0x180   : > { %2807 = vmatmul.mubr.bf16.gmra.mrb[148].mxu1 %v5498_v46  ;;  %4629 = vmatprep.mubr.msk.bf16.mxu0 %vm4797_vm10, %v6038_v34 }
 0x181   : > { %2814 = vmatprep.mubr.bf16.mxu1 %v4944_v62 }
 0x182   : > { %v2299_v18 = vpop.f32.mrb[52].mxu0 }
 0x183   : > { %v4483_v10 = vpop.f32.mrb[44].mxu1  ;;  %v4507_v57 = vpop.f32.mrb[53].mxu0 }
 0x184   : > { %v5823_v23 = vadd.f32 %v4483_v10, %v5705_v12  ;;  %v1865_v48 = vpop.f32.mrb[45].mxu1  ;;  %v2302_v27 = vpop.f32.mrb[54].mxu0 }
 0x185   : > { %v5826_v45 = vadd.f32 %v5691_v16, %v1865_v48  ;;  %v4484_v49 = vpop.f32.mrb[46].mxu1  ;;  %v4508_v62 = vpop.f32.mrb[55].mxu0 }
 0x186   : > { %v5829_v46 = vadd.f32 %v4484_v49, %v5707_v17  ;;  %v1868_v1 = vpop.f32.mrb[47].mxu1  ;;  %v6042_v49 = vld [vmem:[#allocation7_spill] sm:$0xff] }
 0x187   : > { %v5832_v6 = vadd.f32 %v5693_v22, %v1868_v1  ;;  %4630 = vmatmul.mubr.bf16.gmra.mrb[160].mxu0 %v5519_v43 }
 0x188   : > { %2815 = vmatmul.mubr.bf16.gmra.mrb[152].mxu1 %v5023_v38  ;;  %4633 = vmatprep.mubr.msk.bf16.mxu0 %vm4797_vm10, %v6038_v34 }
 0x189   : > { %2822 = vmatprep.mubr.bf16.mxu1 %v5026_v39 }
 0x18a   : > { %v2307_v12 = vpop.f32.mrb[56].mxu0 }
 0x18b   : > { %v4195_v16 = vpop.f32.mrb[48].mxu1  ;;  %v4511_v47 = vpop.f32.mrb[57].mxu0 }
 0x18c   : > { %v4196_v15 = vpop.f32.mrb[49].mxu1  ;;  %v2310_v51 = vpop.f32.mrb[58].mxu0 }
 0x18d   : > { %v4197_v17 = vadd.f32 %v4196_v15, %v4195_v16  ;;  %v4198_v3 = vpop.f32.mrb[50].mxu1  ;;  %v4512_v61 = vpop.f32.mrb[59].mxu0 }
 0x18e   : > { %v4199_v9 = vpop.f32.mrb[51].mxu1 }
 0x18f   : > { %v2292_v22 = vadd.f32 %v4197_v17, %v2291_v4  ;;  %v4200_v31 = vadd.f32 %v4199_v9, %v4198_v3  ;;  %4634 = vmatmul.mubr.bf16.gmra.mrb[164].mxu0 %v5531_v58 }
 0x190   : > { %2823 = vmatmul.mubr.bf16.gmra.mrb[156].mxu1 %v6039_v42 }
 0x191   : > { %v5842_v38 = vadd.f32 %v2292_v22, %v5714_v52  ;;  %v2295_v39 = vadd.f32 %v4200_v31, %v2294_v25  ;;  %2830 = vmatprep.mubr.bf16.mxu1 %v6040_v30  ;;  %v6043_v25 = vld [vmem:[#allocation6_spill] sm:$0xff]  ;;  %v6044_v31 = vld [vmem:[#allocation8_spill] sm:$0xff] }
 0x192   : > { %v2315_v21 = vpop.f32.mrb[60].mxu0 }
 0x193   : > { %v5846_v34 = vadd.f32 %v2295_v39, %v5719_v7  ;;  %v4201_v43 = vpop.f32.mrb[52].mxu1  ;;  %v4515_v37 = vpop.f32.mrb[61].mxu0 }
 0x194   : > { %v4202_v59 = vpop.f32.mrb[53].mxu1  ;;  %v2318_v10 = vpop.f32.mrb[62].mxu0 }
 0x195   : > { %v4203_v11 = vadd.f32 %v4202_v59, %v4201_v43  ;;  %v4204_v4 = vpop.f32.mrb[54].mxu1  ;;  %v4516_v42 = vpop.f32.mrb[63].mxu0 }
 0x196   : > { %v4205_v48 = vpop.f32.mrb[55].mxu1 }
 0x197   : > { %v2300_v57 = vadd.f32 %v4203_v11, %v2299_v18  ;;  %v4206_v58 = vadd.f32 %v4205_v48, %v4204_v4 }
 0x198   : > { %2831 = vmatmul.mubr.bf16.gmra.mrb[160].mxu1 %v6042_v49 }
 0x199   : > { %v5850_v52 = vadd.f32 %v2300_v57, %v5731_v60  ;;  %v2303_v30 = vadd.f32 %v4206_v58, %v2302_v27  ;;  %2838 = vmatprep.mubr.bf16.mxu1 %v6043_v25 }
 0x19a   : > { %v2323_v62 = vpop.f32.mrb[64].mxu0 }
 0x19b   : > { %v5854_v7 = vadd.f32 %v2303_v30, %v5736_v36  ;;  %v4207_v1 = vpop.f32.mrb[56].mxu1  ;;  %v4519_v15 = vpop.f32.mrb[65].mxu0 }
 0x19c   : > { %v4208_v16 = vpop.f32.mrb[57].mxu1  ;;  %v2326_v3 = vpop.f32.mrb[66].mxu0 }
 0x19d   : > { %v4209_v47 = vadd.f32 %v4208_v16, %v4207_v1  ;;  %v4210_v17 = vpop.f32.mrb[58].mxu1  ;;  %v4520_v9 = vpop.f32.mrb[67].mxu0 }
 0x19e   : > { %v4211_v18 = vpop.f32.mrb[59].mxu1 }
 0x19f   : > { %v2308_v61 = vadd.f32 %v4209_v47, %v2307_v12  ;;  %v4212_v22 = vadd.f32 %v4211_v18, %v4210_v17 }
 0x1a0   : > { %2839 = vmatmul.mubr.bf16.gmra.mrb[164].mxu1 %v6044_v31 }
 0x1a1   : > { %v5858_v60 = vadd.f32 %v2308_v61, %v5729_v28  ;;  %v2311_v27 = vadd.f32 %v4212_v22, %v2310_v51 }
 0x1a2   : > { %v2331_v43 = vpop.f32.mrb[68].mxu0 }
 0x1a3   : > { %v5861_v36 = vadd.f32 %v2311_v27, %v5733_v55  ;;  %v4213_v39 = vpop.f32.mrb[60].mxu1  ;;  %v4523_v37 = vpop.f32.mrb[69].mxu0 }
 0x1a4   : > { %v4214_v59 = vpop.f32.mrb[61].mxu1  ;;  %v2334_v48 = vpop.f32.mrb[70].mxu0 }
 0x1a5   : > { %v4215_v11 = vadd.f32 %v4214_v59, %v4213_v39  ;;  %v4216_v4 = vpop.f32.mrb[62].mxu1  ;;  %v4524_v57 = vpop.f32.mrb[71].mxu0 }
 0x1a6   : > { %v4217_v42 = vpop.f32.mrb[63].mxu1 }
 0x1a7   : > { %v2316_v12 = vadd.f32 %v4215_v11, %v2315_v21  ;;  %v4218_v58 = vadd.f32 %v4217_v42, %v4216_v4 }
 0x1a9   : > { %v5864_v49 = vadd.f32 %v2316_v12, %v5745_v50  ;;  %v2319_v28 = vadd.f32 %v4218_v58, %v2318_v10 }
 0x1aa   : > { %v2339_v30 = vpop.f32.mrb[72].mxu0 }
 0x1ab   : > { %v5867_v51 = vadd.f32 %v2319_v28, %v5749_v13  ;;  %v4219_v55 = vpop.f32.mrb[64].mxu1  ;;  %v4527_v1 = vpop.f32.mrb[73].mxu0 }
 0x1ac   : > { %v4220_v25 = vpop.f32.mrb[65].mxu1  ;;  %v2342_v47 = vpop.f32.mrb[74].mxu0 }
 0x1ad   : > { %v4221_v16 = vadd.f32 %v4220_v25, %v4219_v55  ;;  %v4222_v15 = vpop.f32.mrb[66].mxu1  ;;  %v4528_v18 = vpop.f32.mrb[75].mxu0 }
 0x1ae   : > { %v4223_v17 = vpop.f32.mrb[67].mxu1 }
 0x1af   : > { %v2324_v9 = vadd.f32 %v4221_v16, %v2323_v62  ;;  %v4224_v61 = vadd.f32 %v4223_v17, %v4222_v15 }
 0x1b1   : > { %v5870_v21 = vadd.f32 %v2324_v9, %v5743_v44  ;;  %v2327_v50 = vadd.f32 %v4224_v61, %v2326_v3 }
 0x1b2   : > { %v2347_v22 = vpop.f32.mrb[76].mxu0 }
 0x1b3   : > { %v5873_v10 = vadd.f32 %v2327_v50, %v5747_v14  ;;  %v4225_v13 = vpop.f32.mrb[68].mxu1  ;;  %v4531_v27 = vpop.f32.mrb[77].mxu0 }
 0x1b4   : > { %v4226_v31 = vpop.f32.mrb[69].mxu1  ;;  %v2350_v37 = vpop.f32.mrb[78].mxu0 }
 0x1b5   : > { %v4227_v39 = vadd.f32 %v4226_v31, %v4225_v13  ;;  %v4228_v59 = vpop.f32.mrb[70].mxu1  ;;  %v4532_v4 = vpop.f32.mrb[79].mxu0 }
 0x1b6   : > { %v4229_v11 = vpop.f32.mrb[71].mxu1 }
 0x1b7   : > { %v2332_v42 = vadd.f32 %v4227_v39, %v2331_v43  ;;  %v4230_v57 = vadd.f32 %v4229_v11, %v4228_v59 }
 0x1b9   : > { %v5876_v62 = vadd.f32 %v2332_v42, %v5756_v35  ;;  %v2335_v44 = vadd.f32 %v4230_v57, %v2334_v48 }
 0x1ba   : > { %v2355_v12 = vpop.f32.mrb[80].mxu0 }
 0x1bb   : > { %v5879_v3 = vadd.f32 %v2335_v44, %v5760_v26  ;;  %v4231_v14 = vpop.f32.mrb[72].mxu1  ;;  %v4535_v28 = vpop.f32.mrb[81].mxu0 }
 0x1bc   : > { %v4232_v58 = vpop.f32.mrb[73].mxu1  ;;  %v2358_v1 = vpop.f32.mrb[82].mxu0 }
 0x1bd   : > { %v4233_v55 = vadd.f32 %v4232_v58, %v4231_v14  ;;  %v4234_v25 = vpop.f32.mrb[74].mxu1  ;;  %v4536_v15 = vpop.f32.mrb[83].mxu0 }
 0x1be   : > { %v4235_v16 = vpop.f32.mrb[75].mxu1 }
 0x1bf   : > { %v2340_v17 = vadd.f32 %v4233_v55, %v2339_v30  ;;  %v4236_v18 = vadd.f32 %v4235_v16, %v4234_v25 }
 0x1c1   : > { %v5882_v43 = vadd.f32 %v2340_v17, %v5758_v20  ;;  %v2343_v35 = vadd.f32 %v4236_v18, %v2342_v47 }
 0x1c2   : > { %v2363_v9 = vpop.f32.mrb[84].mxu0 }
 0x1c3   : > { %v5885_v48 = vadd.f32 %v2343_v35, %v5765_v5  ;;  %v4237_v26 = vpop.f32.mrb[76].mxu1  ;;  %v4539_v50 = vpop.f32.mrb[85].mxu0 }
 0x1c4   : > { %v4238_v61 = vpop.f32.mrb[77].mxu1  ;;  %v2366_v27 = vpop.f32.mrb[86].mxu0 }
 0x1c5   : > { %v4239_v13 = vadd.f32 %v4238_v61, %v4237_v26  ;;  %v4240_v31 = vpop.f32.mrb[78].mxu1  ;;  %v4540_v59 = vpop.f32.mrb[87].mxu0 }
 0x1c6   : > { %v4241_v39 = vpop.f32.mrb[79].mxu1 }
 0x1c7   : > { %v2348_v11 = vadd.f32 %v4239_v13, %v2347_v22  ;;  %v4242_v4 = vadd.f32 %v4241_v39, %v4240_v31 }
 0x1c9   : > { %v5888_v30 = vadd.f32 %v2348_v11, %v5774_v8  ;;  %v2351_v20 = vadd.f32 %v4242_v4, %v2350_v37 }
 0x1ca   : > { %v2371_v42 = vpop.f32.mrb[88].mxu0 }
 0x1cb   : > { %v5891_v47 = vadd.f32 %v2351_v20, %v5776_v63  ;;  %v4243_v5 = vpop.f32.mrb[80].mxu1  ;;  %v4543_v44 = vpop.f32.mrb[89].mxu0 }
 0x1cc   : > { %v4244_v57 = vpop.f32.mrb[81].mxu1  ;;  %v2374_v28 = vpop.f32.mrb[90].mxu0 }
 0x1cd   : > { %v4245_v14 = vadd.f32 %v4244_v57, %v4243_v5  ;;  %v4246_v58 = vpop.f32.mrb[82].mxu1  ;;  %v4544_v25 = vpop.f32.mrb[91].mxu0 }
 0x1ce   : > { %v4247_v55 = vpop.f32.mrb[83].mxu1 }
 0x1cf   : > { %v2356_v16 = vadd.f32 %v4245_v14, %v2355_v12  ;;  %v4248_v15 = vadd.f32 %v4247_v55, %v4246_v58 }
 0x1d1   : > { %v5894_v22 = vadd.f32 %v2356_v16, %v5778_v40  ;;  %v2359_v8 = vadd.f32 %v4248_v15, %v2358_v1 }
 0x1d2   : > { %v2379_v17 = vpop.f32.mrb[92].mxu0 }
 0x1d3   : > { %v5897_v37 = vadd.f32 %v2359_v8, %v5783_v0  ;;  %v4249_v63 = vpop.f32.mrb[84].mxu1  ;;  %v4547_v35 = vpop.f32.mrb[93].mxu0 }
 0x1d4   : > { %v4250_v18 = vpop.f32.mrb[85].mxu1  ;;  %v2382_v50 = vpop.f32.mrb[94].mxu0 }
 0x1d5   : > { %v4251_v26 = vadd.f32 %v4250_v18, %v4249_v63  ;;  %v4252_v61 = vpop.f32.mrb[86].mxu1  ;;  %v4548_v31 = vpop.f32.mrb[95].mxu0 }
 0x1d6   : > { %v4253_v13 = vpop.f32.mrb[87].mxu1 }
 0x1d7   : > { %v2364_v39 = vadd.f32 %v4251_v26, %v2363_v9  ;;  %v4254_v59 = vadd.f32 %v4253_v13, %v4252_v61 }
 0x1d9   : > { %v5900_v12 = vadd.f32 %v2364_v39, %v5792_v29  ;;  %v2367_v40 = vadd.f32 %v4254_v59, %v2366_v27 }
 0x1da   : > { %v2387_v11 = vpop.f32.mrb[96].mxu0 }
 0x1db   : > { %v5903_v1 = vadd.f32 %v2367_v40, %v5794_v56  ;;  %v4255_v0 = vpop.f32.mrb[88].mxu1  ;;  %v4551_v20 = vpop.f32.mrb[97].mxu0 }
 0x1dc   : > { %v4256_v4 = vpop.f32.mrb[89].mxu1  ;;  %v2390_v44 = vpop.f32.mrb[98].mxu0 }
 0x1dd   : > { %v4257_v5 = vadd.f32 %v4256_v4, %v4255_v0  ;;  %v4258_v57 = vpop.f32.mrb[90].mxu1  ;;  %v4552_v58 = vpop.f32.mrb[99].mxu0 }
 0x1de   : > { %v4259_v14 = vpop.f32.mrb[91].mxu1 }
 0x1df   : > { %v2372_v55 = vadd.f32 %v4257_v5, %v2371_v42  ;;  %v4260_v25 = vadd.f32 %v4259_v14, %v4258_v57 }
 0x1e1   : > { %v5906_v9 = vadd.f32 %v2372_v55, %v5796_v2  ;;  %v2375_v29 = vadd.f32 %v4260_v25, %v2374_v28 }
 0x1e2   : > { %v2395_v16 = vpop.f32.mrb[100].mxu0 }
 0x1e3   : > { %v5909_v27 = vadd.f32 %v2375_v29, %v5801_v32  ;;  %v4261_v56 = vpop.f32.mrb[92].mxu1  ;;  %v4555_v8 = vpop.f32.mrb[101].mxu0 }
 0x1e4   : > { %v4262_v15 = vpop.f32.mrb[93].mxu1  ;;  %v2398_v35 = vpop.f32.mrb[102].mxu0 }
 0x1e5   : > { %v4263_v63 = vadd.f32 %v4262_v15, %v4261_v56  ;;  %v4264_v18 = vpop.f32.mrb[94].mxu1  ;;  %v4556_v61 = vpop.f32.mrb[103].mxu0 }
 0x1e6   : > { %v4265_v26 = vpop.f32.mrb[95].mxu1 }
 0x1e7   : > { %v2380_v13 = vadd.f32 %v4263_v63, %v2379_v17  ;;  %v4266_v31 = vadd.f32 %v4265_v26, %v4264_v18 }
 0x1e9   : > { %v5912_v42 = vadd.f32 %v2380_v13, %v5809_v33  ;;  %v2383_v2 = vadd.f32 %v4266_v31, %v2382_v50 }
 0x1ea   : > { %v2403_v39 = vpop.f32.mrb[104].mxu0 }
 0x1eb   : > { %v5915_v28 = vadd.f32 %v2383_v2, %v5815_v19  ;;  %v4267_v32 = vpop.f32.mrb[96].mxu1  ;;  %v4559_v40 = vpop.f32.mrb[105].mxu0 }
 0x1ec   : > { %v4268_v59 = vpop.f32.mrb[97].mxu1  ;;  %v2406_v20 = vpop.f32.mrb[106].mxu0 }
 0x1ed   : > { %v4269_v0 = vadd.f32 %v4268_v59, %v4267_v32  ;;  %v4270_v4 = vpop.f32.mrb[98].mxu1  ;;  %v4560_v57 = vpop.f32.mrb[107].mxu0 }
 0x1ee   : > { %v4271_v5 = vpop.f32.mrb[99].mxu1 }
 0x1ef   : > { %v2388_v14 = vadd.f32 %v4269_v0, %v2387_v11  ;;  %v4272_v58 = vadd.f32 %v4271_v5, %v4270_v4 }
 0x1f1   : > { %v5918_v17 = vadd.f32 %v2388_v14, %v5806_v24  ;;  %v2391_v33 = vadd.f32 %v4272_v58, %v2390_v44 }
 0x1f2   : > { %v2881_v55 = vpop.f32.mrb[108].mxu0 }
 0x1f3   : > { %v5921_v50 = vadd.f32 %v2391_v33, %v5812_v54  ;;  %v4273_v19 = vpop.f32.mrb[100].mxu1  ;;  %v4579_v29 = vpop.f32.mrb[109].mxu0 }
 0x1f4   : > { %v4274_v25 = vpop.f32.mrb[101].mxu1  ;;  %v2884_v8 = vpop.f32.mrb[110].mxu0 }
 0x1f5   : > { %v4275_v56 = vadd.f32 %v4274_v25, %v4273_v19  ;;  %v4276_v15 = vpop.f32.mrb[102].mxu1  ;;  %v4580_v18 = vpop.f32.mrb[111].mxu0 }
 0x1f6   : > { %v4277_v63 = vpop.f32.mrb[103].mxu1 }
 0x1f7   : > { %v2396_v26 = vadd.f32 %v4275_v56, %v2395_v16  ;;  %v4278_v61 = vadd.f32 %v4277_v63, %v4276_v15 }
 0x1f9   : > { %v5924_v11 = vadd.f32 %v2396_v26, %v5826_v45  ;;  %v2399_v24 = vadd.f32 %v4278_v61, %v2398_v35 }
 0x1fa   : > { %v2889_v13 = vpop.f32.mrb[112].mxu0 }
 0x1fb   : > { %v5927_v44 = vadd.f32 %v2399_v24, %v5832_v6  ;;  %v4279_v54 = vpop.f32.mrb[104].mxu1  ;;  %v4583_v2 = vpop.f32.mrb[113].mxu0 }
 0x1fc   : > { %v4280_v31 = vpop.f32.mrb[105].mxu1  ;;  %v2892_v40 = vpop.f32.mrb[114].mxu0 }
 0x1fd   : > { %v4281_v32 = vadd.f32 %v4280_v31, %v4279_v54  ;;  %v4282_v59 = vpop.f32.mrb[106].mxu1  ;;  %v4584_v4 = vpop.f32.mrb[115].mxu0 }
 0x1fe   : > { %v4283_v0 = vpop.f32.mrb[107].mxu1 }
 0x1ff   : > { %v2404_v5 = vadd.f32 %v4281_v32, %v2403_v39  ;;  %v4284_v16 = vadd.f32 %v4283_v0, %v4282_v59 }
 0x201   : > { %v2469_v57 = vadd.f32 %v2404_v5, %v5823_v23  ;;  %v2407_v45 = vadd.f32 %v4284_v16, %v2406_v20 }
 0x202   : > { %v2897_v6 = vpop.f32.mrb[116].mxu0 }
 0x203   : > { %v2470_v35 = vadd.f32 %v2407_v45, %v5829_v46  ;;  %v4324_v14 = vpop.f32.mrb[108].mxu1  ;;  %v4587_v33 = vpop.f32.mrb[117].mxu0 }
 0x204   : > { %v4325_v58 = vpop.f32.mrb[109].mxu1  ;;  %v2900_v29 = vpop.f32.mrb[118].mxu0 }
 0x205   : > { %v5938_v19 = vpack.c.bf16 %v2470_v35, %v2469_v57  ;;  %v4326_v39 = vadd.f32 %v4325_v58, %v4324_v14  ;;  %v4327_v25 = vpop.f32.mrb[110].mxu1  ;;  %v4588_v20 = vpop.f32.mrb[119].mxu0 }
 0x206   : > { %v4328_v23 = vpop.f32.mrb[111].mxu1 }
 0x207   : > { %4042 = vst [vmem:[%s5936_s26 + $0x78] sm:$0xff] %v5938_v19   ;;  %v2882_v46 = vadd.f32 %v4326_v39, %v2881_v55  ;;  %v4329_v56 = vadd.f32 %v4328_v23, %v4327_v25 }
 0x209   : > { %v3030_v15 = vadd.f32 %v2882_v46, %v5717_v41  ;;  %v2885_v63 = vadd.f32 %v4329_v56, %v2884_v8 }
 0x20a   : > { %v2905_v61 = vpop.f32.mrb[120].mxu0 }
 0x20b   : > { %v3031_v18 = vadd.f32 %v2885_v63, %v5722_v53  ;;  %v4330_v26 = vpop.f32.mrb[112].mxu1  ;;  %v4591_v54 = vpop.f32.mrb[121].mxu0 }
 0x20c   : > { %v4331_v24 = vpop.f32.mrb[113].mxu1  ;;  %v2908_v59 = vpop.f32.mrb[122].mxu0 }
 0x20d   : > { %v3122_v31 = vpack.c.bf16 %v3031_v18, %v3030_v15  ;;  %v4332_v2 = vadd.f32 %v4331_v24, %v4330_v26  ;;  %v4333_v32 = vpop.f32.mrb[114].mxu1  ;;  %v4592_v4 = vpop.f32.mrb[123].mxu0 }
 0x20e   : > { %v4334_v0 = vpop.f32.mrb[115].mxu1 }
 0x20f   : > { %3937 = vst [vmem:[%s5936_s26] sm:$0xff] %v3122_v31   ;;  %v2890_v5 = vadd.f32 %v4332_v2, %v2889_v13  ;;  %v4335_v16 = vadd.f32 %v4334_v0, %v4333_v32  ;;  %v3282_v57 = vunpack.c.l.bf16 %v3122_v31  ;;  %v3283_v41 = vunpack.c.h.bf16 %v3122_v31 }
 0x211   : > { %v3032_v55 = vadd.f32 %v2890_v5, %v5842_v38  ;;  %v2893_v8 = vadd.f32 %v4335_v16, %v2892_v40  ;;  %v3351_v23 = vmul.f32 %v3282_v57, %v3282_v57  ;;  %v3352_v20 = vmul.f32 %v3283_v41, %v3283_v41 }
 0x212   : > { %v2913_v53 = vpop.f32.mrb[124].mxu0  ;;  %v3314_v63 = vadd.f32 %v3283_v41, %v3282_v57 }
 0x213   : > { %v4336_v45 = vpop.f32.mrb[116].mxu1  ;;  %v3033_v35 = vadd.f32 %v2893_v8, %v5846_v34  ;;  %v4595_v58 = vpop.f32.mrb[125].mxu0  ;;  %v3383_v34 = vadd.f32 %v3352_v20, %v3351_v23 }
 0x214   : > { %v4337_v14 = vpop.f32.mrb[117].mxu1  ;;  %v2916_v25 = vpop.f32.mrb[126].mxu0 }
 0x215   : > { %v4338_v33 = vadd.f32 %v4337_v14, %v4336_v45  ;;  %v4339_v39 = vpop.f32.mrb[118].mxu1  ;;  %v3123_v46 = vpack.c.bf16 %v3033_v35, %v3032_v55  ;;  %v4596_v56 = vpop.f32.mrb[127].mxu0 }
 0x216   : > { %v4340_v13 = vpop.f32.mrb[119].mxu1 }
 0x217   : > { %v2898_v15 = vadd.f32 %v4338_v33, %v2897_v6  ;;  %v4341_v38 = vadd.f32 %v4340_v13, %v4339_v39  ;;  %4028 = vst [vmem:[%s5936_s26 + $0x8] sm:$0xff] %v3123_v46   ;;  %v3284_v40 = vunpack.c.l.bf16 %v3123_v46  ;;  %v3285_v18 = vunpack.c.h.bf16 %v3123_v46 }
 0x219   : > { %v3034_v26 = vadd.f32 %v2898_v15, %v5850_v52  ;;  %v2901_v24 = vadd.f32 %v4341_v38, %v2900_v29  ;;  %v3315_v54 = vadd.f32 %v3314_v63, %v3284_v40  ;;  %v3353_v31 = vmul.f32 %v3284_v40, %v3284_v40 }
 0x21a   : > { %v5950_v0 = vpop.f32.mrb[128].mxu0  ;;  %v3354_v5 = vmul.f32 %v3285_v18, %v3285_v18 }
 0x21b   : > { %v3035_v2 = vadd.f32 %v2901_v24, %v5854_v7  ;;  %v4342_v32 = vpop.f32.mrb[120].mxu1  ;;  %v3316_v4 = vadd.f32 %v3315_v54, %v3285_v18  ;;  %v3384_v6 = vadd.f32 %v3383_v34, %v3353_v31  ;;  %v4599_v55 = vpop.f32.mrb[129].mxu0 }
 0x21c   : > { %v4343_v16 = vpop.f32.mrb[121].mxu1  ;;  %v2924_v45 = vpop.f32.mrb[130].mxu0 }
 0x21d   : > { %v3124_v57 = vpack.c.bf16 %v3035_v2, %v3034_v26  ;;  %v4344_v41 = vadd.f32 %v4343_v16, %v4342_v32  ;;  %v4345_v8 = vpop.f32.mrb[122].mxu1  ;;  %v3385_v52 = vadd.f32 %v3384_v6, %v3354_v5  ;;  %v4600_v35 = vpop.f32.mrb[131].mxu0 }
 0x21e   : > { %v4346_v29 = vpop.f32.mrb[123].mxu1 }
 0x21f   : > { %4029 = vst [vmem:[%s5936_s26 + $0x10] sm:$0xff] %v3124_v57   ;;  %v3286_v14 = vunpack.c.l.bf16 %v3124_v57  ;;  %v3287_v58 = vunpack.c.h.bf16 %v3124_v57  ;;  %v2906_v33 = vadd.f32 %v4344_v41, %v2905_v61  ;;  %v4347_v7 = vadd.f32 %v4346_v29, %v4345_v8 }
 0x221   : > { %v3317_v39 = vadd.f32 %v3316_v4, %v3286_v14  ;;  %v3355_v23 = vmul.f32 %v3286_v14, %v3286_v14  ;;  %v3036_v20 = vadd.f32 %v2906_v33, %v5858_v60  ;;  %v2909_v46 = vadd.f32 %v4347_v7, %v2908_v59 }
 0x222   : > { %v3356_v56 = vmul.f32 %v3287_v58, %v3287_v58  ;;  %v2929_v63 = vpop.f32.mrb[132].mxu0 }
 0x223   : > { %v3318_v13 = vadd.f32 %v3317_v39, %v3287_v58  ;;  %v3386_v15 = vadd.f32 %v3385_v52, %v3355_v23  ;;  %v4348_v38 = vpop.f32.mrb[124].mxu1  ;;  %v3037_v40 = vadd.f32 %v2909_v46, %v5861_v36  ;;  %v4603_v26 = vpop.f32.mrb[133].mxu0 }
 0x224   : > { %v4349_v18 = vpop.f32.mrb[125].mxu1  ;;  %v2932_v61 = vpop.f32.mrb[134].mxu0 }
 0x225   : > { %v3387_v24 = vadd.f32 %v3386_v15, %v3356_v56  ;;  %v4350_v34 = vadd.f32 %v4349_v18, %v4348_v38  ;;  %v4351_v54 = vpop.f32.mrb[126].mxu1  ;;  %v3125_v31 = vpack.c.bf16 %v3037_v40, %v3036_v20  ;;  %v4604_v32 = vpop.f32.mrb[135].mxu0 }
 0x226   : > { %v4352_v2 = vpop.f32.mrb[127].mxu1 }
 0x227   : > { %v2914_v4 = vadd.f32 %v4350_v34, %v2913_v53  ;;  %v4353_v60 = vadd.f32 %v4352_v2, %v4351_v54  ;;  %4030 = vst [vmem:[%s5936_s26 + $0x18] sm:$0xff] %v3125_v31   ;;  %v3288_v59 = vunpack.c.l.bf16 %v3125_v31  ;;  %v3289_v5 = vunpack.c.h.bf16 %v3125_v31 }
 0x229   : > { %v3038_v6 = vadd.f32 %v2914_v4, %v5864_v49  ;;  %v2917_v16 = vadd.f32 %v4353_v60, %v2916_v25  ;;  %v3319_v55 = vadd.f32 %v3318_v13, %v3288_v59  ;;  %v3357_v57 = vmul.f32 %v3288_v59, %v3288_v59 }
 0x22a   : > { %v5958_v8 = vpop.f32.mrb[136].mxu0  ;;  %v3358_v29 = vmul.f32 %v3289_v5, %v3289_v5 }
 0x22b   : > { %v3039_v36 = vadd.f32 %v2917_v16, %v5867_v51  ;;  %v4354_v41 = vpop.f32.mrb[128].mxu1  ;;  %v3320_v52 = vadd.f32 %v3319_v55, %v3289_v5  ;;  %v3388_v35 = vadd.f32 %v3387_v24, %v3357_v57  ;;  %v4607_v53 = vpop.f32.mrb[137].mxu0 }
 0x22c   : > { %v4355_v14 = vpop.f32.mrb[129].mxu1  ;;  %v2940_v39 = vpop.f32.mrb[138].mxu0 }
 0x22d   : > { %v3126_v58 = vpack.c.bf16 %v3039_v36, %v3038_v6  ;;  %v4356_v33 = vadd.f32 %v4355_v14, %v4354_v41  ;;  %v4357_v7 = vpop.f32.mrb[130].mxu1  ;;  %v3389_v23 = vadd.f32 %v3388_v35, %v3358_v29  ;;  %v4608_v25 = vpop.f32.mrb[139].mxu0 }
 0x22e   : > { %v4358_v49 = vpop.f32.mrb[131].mxu1 }
 0x22f   : > { %4031 = vst [vmem:[%s5936_s26 + $0x20] sm:$0xff] %v3126_v58   ;;  %v3290_v20 = vunpack.c.l.bf16 %v3126_v58  ;;  %v3291_v46 = vunpack.c.h.bf16 %v3126_v58  ;;  %v2922_v51 = vadd.f32 %v4356_v33, %v5950_v0  ;;  %v4359_v13 = vadd.f32 %v4358_v49, %v4357_v7 }
 0x231   : > { %v3321_v56 = vadd.f32 %v3320_v52, %v3290_v20  ;;  %v3359_v15 = vmul.f32 %v3290_v20, %v3290_v20  ;;  %v3040_v38 = vadd.f32 %v2922_v51, %v5870_v21  ;;  %v2925_v40 = vadd.f32 %v4359_v13, %v2924_v45 }
 0x232   : > { %v3360_v26 = vmul.f32 %v3291_v46, %v3291_v46  ;;  %v2945_v54 = vpop.f32.mrb[140].mxu0 }
 0x233   : > { %v3322_v18 = vadd.f32 %v3321_v56, %v3291_v46  ;;  %v3390_v24 = vadd.f32 %v3389_v23, %v3359_v15  ;;  %v4360_v34 = vpop.f32.mrb[132].mxu1  ;;  %v3041_v31 = vadd.f32 %v2925_v40, %v5873_v10  ;;  %v4611_v32 = vpop.f32.mrb[141].mxu0 }
 0x234   : > { %v4361_v2 = vpop.f32.mrb[133].mxu1  ;;  %v2948_v0 = vpop.f32.mrb[142].mxu0 }
 0x235   : > { %v3391_v4 = vadd.f32 %v3390_v24, %v3360_v26  ;;  %v4362_v60 = vadd.f32 %v4361_v2, %v4360_v34  ;;  %v4363_v59 = vpop.f32.mrb[134].mxu1  ;;  %v3127_v5 = vpack.c.bf16 %v3041_v31, %v3040_v38  ;;  %v4612_v16 = vpop.f32.mrb[143].mxu0 }
 0x236   : > { %v4364_v6 = vpop.f32.mrb[135].mxu1 }
 0x237   : > { %v2930_v55 = vadd.f32 %v4362_v60, %v2929_v63  ;;  %v4365_v21 = vadd.f32 %v4364_v6, %v4363_v59  ;;  %4032 = vst [vmem:[%s5936_s26 + $0x28] sm:$0xff] %v3127_v5   ;;  %v3292_v45 = vunpack.c.l.bf16 %v3127_v5  ;;  %v3293_v57 = vunpack.c.h.bf16 %v3127_v5 }
 0x239   : > { %v3042_v36 = vadd.f32 %v2930_v55, %v5876_v62  ;;  %v2933_v41 = vadd.f32 %v4365_v21, %v2932_v61  ;;  %v3323_v52 = vadd.f32 %v3322_v18, %v3292_v45  ;;  %v3361_v29 = vmul.f32 %v3292_v45, %v3292_v45 }
 0x23a   : > { %v5967_v14 = vpop.f32.mrb[144].mxu0  ;;  %v3362_v58 = vmul.f32 %v3293_v57, %v3293_v57 }
 0x23b   : > { %v3043_v10 = vadd.f32 %v2933_v41, %v5879_v3  ;;  %v4366_v35 = vpop.f32.mrb[136].mxu1  ;;  %v3324_v53 = vadd.f32 %v3323_v52, %v3293_v57  ;;  %v3392_v33 = vadd.f32 %v3391_v4, %v3361_v29  ;;  %v4615_v63 = vpop.f32.mrb[145].mxu0 }
 0x23c   : > { %v4367_v7 = vpop.f32.mrb[137].mxu1  ;;  %v2956_v20 = vpop.f32.mrb[146].mxu0 }
 0x23d   : > { %v3128_v23 = vpack.c.bf16 %v3043_v10, %v3042_v36  ;;  %v4368_v49 = vadd.f32 %v4367_v7, %v4366_v35  ;;  %v4369_v25 = vpop.f32.mrb[138].mxu1  ;;  %v3393_v46 = vadd.f32 %v3392_v33, %v3362_v58  ;;  %v4616_v61 = vpop.f32.mrb[147].mxu0 }
 0x23e   : > { %v4370_v62 = vpop.f32.mrb[139].mxu1 }
 0x23f   : > { %4033 = vst [vmem:[%s5936_s26 + $0x30] sm:$0xff] %v3128_v23   ;;  %v3294_v51 = vunpack.c.l.bf16 %v3128_v23  ;;  %v3295_v13 = vunpack.c.h.bf16 %v3128_v23  ;;  %v2938_v3 = vadd.f32 %v4368_v49, %v5958_v8  ;;  %v4371_v56 = vadd.f32 %v4370_v62, %v4369_v25 }
 0x241   : > { %v3325_v15 = vadd.f32 %v3324_v53, %v3294_v51  ;;  %v3363_v38 = vmul.f32 %v3294_v51, %v3294_v51  ;;  %v3044_v40 = vadd.f32 %v2938_v3, %v5882_v43  ;;  %v2941_v18 = vadd.f32 %v4371_v56, %v2940_v39 }
 0x242   : > { %v3364_v24 = vmul.f32 %v3295_v13, %v3295_v13  ;;  %v2961_v2 = vpop.f32.mrb[148].mxu0 }
 0x243   : > { %v3326_v26 = vadd.f32 %v3325_v15, %v3295_v13  ;;  %v3394_v34 = vadd.f32 %v3393_v46, %v3363_v38  ;;  %v4372_v31 = vpop.f32.mrb[140].mxu1  ;;  %v3045_v32 = vadd.f32 %v2941_v18, %v5885_v48  ;;  %v4619_v60 = vpop.f32.mrb[149].mxu0 }
 0x244   : > { %v4373_v4 = vpop.f32.mrb[141].mxu1  ;;  %v2964_v8 = vpop.f32.mrb[150].mxu0 }
 0x245   : > { %v3395_v59 = vadd.f32 %v3394_v34, %v3364_v24  ;;  %v4374_v5 = vadd.f32 %v4373_v4, %v4372_v31  ;;  %v4375_v6 = vpop.f32.mrb[142].mxu1  ;;  %v3129_v16 = vpack.c.bf16 %v3045_v32, %v3044_v40  ;;  %v4620_v21 = vpop.f32.mrb[151].mxu0 }
 0x246   : > { %v4376_v55 = vpop.f32.mrb[143].mxu1 }
 0x247   : > { %v2946_v45 = vadd.f32 %v4374_v5, %v2945_v54  ;;  %v4377_v43 = vadd.f32 %v4376_v55, %v4375_v6  ;;  %4034 = vst [vmem:[%s5936_s26 + $0x38] sm:$0xff] %v3129_v16   ;;  %v3296_v39 = vunpack.c.l.bf16 %v3129_v16  ;;  %v3297_v57 = vunpack.c.h.bf16 %v3129_v16 }
 0x249   : > { %v3046_v36 = vadd.f32 %v2946_v45, %v5888_v30  ;;  %v2949_v41 = vadd.f32 %v4377_v43, %v2948_v0  ;;  %v3327_v52 = vadd.f32 %v3326_v26, %v3296_v39  ;;  %v3365_v29 = vmul.f32 %v3296_v39, %v3296_v39 }
 0x24a   : > { %v5976_v35 = vpop.f32.mrb[152].mxu0  ;;  %v3366_v58 = vmul.f32 %v3297_v57, %v3297_v57 }
 0x24b   : > { %v3047_v48 = vadd.f32 %v2949_v41, %v5891_v47  ;;  %v4378_v10 = vpop.f32.mrb[144].mxu1  ;;  %v3328_v53 = vadd.f32 %v3327_v52, %v3297_v57  ;;  %v3396_v33 = vadd.f32 %v3395_v59, %v3365_v29  ;;  %v4623_v54 = vpop.f32.mrb[153].mxu0 }
 0x24c   : > { %v4379_v7 = vpop.f32.mrb[145].mxu1  ;;  %v2972_v25 = vpop.f32.mrb[154].mxu0 }
 0x24d   : > { %v3130_v63 = vpack.c.bf16 %v3047_v48, %v3046_v36  ;;  %v4380_v23 = vadd.f32 %v4379_v7, %v4378_v10  ;;  %v4381_v49 = vpop.f32.mrb[146].mxu1  ;;  %v3397_v46 = vadd.f32 %v3396_v33, %v3366_v58  ;;  %v4624_v0 = vpop.f32.mrb[155].mxu0 }
 0x24e   : > { %v4382_v30 = vpop.f32.mrb[147].mxu1 }
 0x24f   : > { %4035 = vst [vmem:[%s5936_s26 + $0x40] sm:$0xff] %v3130_v63   ;;  %v3298_v62 = vunpack.c.l.bf16 %v3130_v63  ;;  %v3299_v61 = vunpack.c.h.bf16 %v3130_v63  ;;  %v2954_v47 = vadd.f32 %v4380_v23, %v5967_v14  ;;  %v4383_v51 = vadd.f32 %v4382_v30, %v4381_v49 }
 0x251   : > { %v3329_v13 = vadd.f32 %v3328_v53, %v3298_v62  ;;  %v3367_v3 = vmul.f32 %v3298_v62, %v3298_v62  ;;  %v3048_v56 = vadd.f32 %v2954_v47, %v5894_v22  ;;  %v2957_v15 = vadd.f32 %v4383_v51, %v2956_v20 }
 0x252   : > { %v3368_v40 = vmul.f32 %v3299_v61, %v3299_v61  ;;  %v2977_v24 = vpop.f32.mrb[156].mxu0 }
 0x253   : > { %v3330_v38 = vadd.f32 %v3329_v13, %v3299_v61  ;;  %v3398_v18 = vadd.f32 %v3397_v46, %v3367_v3  ;;  %v4384_v26 = vpop.f32.mrb[148].mxu1  ;;  %v3049_v34 = vadd.f32 %v2957_v15, %v5897_v37  ;;  %v4627_v32 = vpop.f32.mrb[157].mxu0 }
 0x254   : > { %v4385_v31 = vpop.f32.mrb[149].mxu1  ;;  %v2980_v14 = vpop.f32.mrb[158].mxu0 }
 0x255   : > { %v3399_v4 = vadd.f32 %v3398_v18, %v3368_v40  ;;  %v4386_v60 = vadd.f32 %v4385_v31, %v4384_v26  ;;  %v4387_v59 = vpop.f32.mrb[150].mxu1  ;;  %v3131_v5 = vpack.c.bf16 %v3049_v34, %v3048_v56  ;;  %v4628_v16 = vpop.f32.mrb[159].mxu0 }
 0x256   : > { %v4388_v6 = vpop.f32.mrb[151].mxu1 }
 0x257   : > { %v2962_v55 = vadd.f32 %v4386_v60, %v2961_v2  ;;  %v4389_v22 = vadd.f32 %v4388_v6, %v4387_v59  ;;  %4036 = vst [vmem:[%s5936_s26 + $0x48] sm:$0xff] %v3131_v5   ;;  %v3300_v20 = vunpack.c.l.bf16 %v3131_v5  ;;  %v3301_v21 = vunpack.c.h.bf16 %v3131_v5 }
 0x259   : > { %v3050_v45 = vadd.f32 %v2962_v55, %v5900_v12  ;;  %v2965_v43 = vadd.f32 %v4389_v22, %v2964_v8  ;;  %v3331_v39 = vadd.f32 %v3330_v38, %v3300_v20  ;;  %v3369_v57 = vmul.f32 %v3300_v20, %v3300_v20 }
 0x25a   : > { %v2985_v41 = vpop.f32.mrb[160].mxu0  ;;  %v3370_v29 = vmul.f32 %v3301_v21, %v3301_v21 }
 0x25b   : > { %v3051_v37 = vadd.f32 %v2965_v43, %v5903_v1  ;;  %v4390_v36 = vpop.f32.mrb[152].mxu1  ;;  %v3332_v52 = vadd.f32 %v3331_v39, %v3301_v21  ;;  %v3400_v48 = vadd.f32 %v3399_v4, %v3369_v57  ;;  %v4631_v53 = vpop.f32.mrb[161].mxu0 }
 0x25c   : > { %v4391_v10 = vpop.f32.mrb[153].mxu1  ;;  %v2988_v7 = vpop.f32.mrb[162].mxu0 }
 0x25d   : > { %v3132_v2 = vpack.c.bf16 %v3051_v37, %v3050_v45  ;;  %v4392_v58 = vadd.f32 %v4391_v10, %v4390_v36  ;;  %v4393_v33 = vpop.f32.mrb[154].mxu1  ;;  %v3401_v54 = vadd.f32 %v3400_v48, %v3370_v29  ;;  %v4632_v12 = vpop.f32.mrb[163].mxu0 }
 0x25e   : > { %v4394_v63 = vpop.f32.mrb[155].mxu1 }
 0x25f   : > { %4037 = vst [vmem:[%s5936_s26 + $0x50] sm:$0xff] %v3132_v2   ;;  %v3302_v8 = vunpack.c.l.bf16 %v3132_v2  ;;  %v3303_v23 = vunpack.c.h.bf16 %v3132_v2  ;;  %v2970_v49 = vadd.f32 %v4392_v58, %v5976_v35  ;;  %v4395_v1 = vadd.f32 %v4394_v63, %v4393_v33 }
 0x261   : > { %v3333_v46 = vadd.f32 %v3332_v52, %v3302_v8  ;;  %v3371_v30 = vmul.f32 %v3302_v8, %v3302_v8  ;;  %v3052_v0 = vadd.f32 %v2970_v49, %v5906_v9  ;;  %v2973_v62 = vadd.f32 %v4395_v1, %v2972_v25 }
 0x262   : > { %v3372_v47 = vmul.f32 %v3303_v23, %v3303_v23  ;;  %v2993_v3 = vpop.f32.mrb[164].mxu0 }
 0x263   : > { %v3334_v61 = vadd.f32 %v3333_v46, %v3303_v23  ;;  %v3402_v51 = vadd.f32 %v3401_v54, %v3371_v30  ;;  %v4396_v13 = vpop.f32.mrb[156].mxu1  ;;  %v3053_v56 = vadd.f32 %v2973_v62, %v5909_v27  ;;  %v4635_v38 = vpop.f32.mrb[165].mxu0 }
 0x264   : > { %v4397_v15 = vpop.f32.mrb[157].mxu1  ;;  %v2996_v35 = vpop.f32.mrb[166].mxu0 }
 0x265   : > { %v3403_v40 = vadd.f32 %v3402_v51, %v3372_v47  ;;  %v4398_v18 = vadd.f32 %v4397_v15, %v4396_v13  ;;  %v4399_v26 = vpop.f32.mrb[158].mxu1  ;;  %v3133_v34 = vpack.c.bf16 %v3053_v56, %v3052_v0  ;;  %v4636_v32 = vpop.f32.mrb[167].mxu0 }
 0x266   : > { %v4400_v31 = vpop.f32.mrb[159].mxu1 }
 0x267   : > { %v2978_v4 = vadd.f32 %v4398_v18, %v2977_v24  ;;  %v4401_v9 = vadd.f32 %v4400_v31, %v4399_v26  ;;  %4038 = vst [vmem:[%s5936_s26 + $0x58] sm:$0xff] %v3133_v34   ;;  %v3304_v25 = vunpack.c.l.bf16 %v3133_v34  ;;  %v3305_v60 = vunpack.c.h.bf16 %v3133_v34 }
 0x268   : > { %v3313_v34 = vunpack.c.h.bf16 %v5938_v19 }
 0x269   : > { %v3054_v59 = vadd.f32 %v2978_v4, %v5912_v42  ;;  %v2981_v5 = vadd.f32 %v4401_v9, %v2980_v14  ;;  %v3335_v6 = vadd.f32 %v3334_v61, %v3304_v25  ;;  %v3373_v27 = vmul.f32 %v3304_v25, %v3304_v25 }
 0x26a   : > { %v3374_v20 = vmul.f32 %v3305_v60, %v3305_v60  ;;  %v3382_v9 = vmul.f32 %v3313_v34, %v3313_v34 }
 0x26b   : > { %v3055_v16 = vadd.f32 %v2981_v5, %v5915_v28  ;;  %v4402_v55 = vpop.f32.mrb[160].mxu1  ;;  %v3336_v22 = vadd.f32 %v3335_v6, %v3305_v60  ;;  %v3404_v21 = vadd.f32 %v3403_v40, %v3373_v27 }
 0x26c   : > { %v4403_v45 = vpop.f32.mrb[161].mxu1 }
 0x26d   : > { %v3134_v43 = vpack.c.bf16 %v3055_v16, %v3054_v59  ;;  %v4404_v39 = vadd.f32 %v4403_v45, %v4402_v55  ;;  %v4405_v24 = vpop.f32.mrb[162].mxu1  ;;  %v3405_v57 = vadd.f32 %v3404_v21, %v3374_v20 }
 0x26e   : > { %v4406_v37 = vpop.f32.mrb[163].mxu1 }
 0x26f   : > { %4039 = vst [vmem:[%s5936_s26 + $0x60] sm:$0xff] %v3134_v43   ;;  %v3306_v36 = vunpack.c.l.bf16 %v3134_v43  ;;  %v3307_v52 = vunpack.c.h.bf16 %v3134_v43  ;;  %v2986_v29 = vadd.f32 %v4404_v39, %v2985_v41  ;;  %v4407_v42 = vadd.f32 %v4406_v37, %v4405_v24 }
 0x271   : > { %v3337_v14 = vadd.f32 %v3336_v22, %v3306_v36  ;;  %v3375_v48 = vmul.f32 %v3306_v36, %v3306_v36  ;;  %v3056_v28 = vadd.f32 %v2986_v29, %v5918_v17  ;;  %v2989_v10 = vadd.f32 %v4407_v42, %v2988_v7 }
 0x272   : > { %v3376_v2 = vmul.f32 %v3307_v52, %v3307_v52 }
 0x273   : > { %v3338_v53 = vadd.f32 %v3337_v14, %v3307_v52  ;;  %v3406_v58 = vadd.f32 %v3405_v57, %v3375_v48  ;;  %v4408_v33 = vpop.f32.mrb[164].mxu1  ;;  %v3057_v54 = vadd.f32 %v2989_v10, %v5921_v50 }
 0x274   : > { %v4409_v63 = vpop.f32.mrb[165].mxu1 }
 0x275   : > { %v3407_v12 = vadd.f32 %v3406_v58, %v3376_v2  ;;  %v4410_v8 = vadd.f32 %v4409_v63, %v4408_v33  ;;  %v4411_v23 = vpop.f32.mrb[166].mxu1  ;;  %v3135_v49 = vpack.c.bf16 %v3057_v54, %v3056_v28 }
 0x276   : > { %v4412_v1 = vpop.f32.mrb[167].mxu1 }
 0x277   : > { %v2994_v41 = vadd.f32 %v4410_v8, %v2993_v3  ;;  %v4413_v46 = vadd.f32 %v4412_v1, %v4411_v23  ;;  %4040 = vst [vmem:[%s5936_s26 + $0x68] sm:$0xff] %v3135_v49   ;;  %v3308_v30 = vunpack.c.l.bf16 %v3135_v49  ;;  %v3309_v0 = vunpack.c.h.bf16 %v3135_v49 }
 0x278   : > { %v3312_v3 = vunpack.c.l.bf16 %v5938_v19 }
 0x279   : > { %v3058_v17 = vadd.f32 %v2994_v41, %v5924_v11  ;;  %v2997_v7 = vadd.f32 %v4413_v46, %v2996_v35  ;;  %v3339_v62 = vadd.f32 %v3338_v53, %v3308_v30  ;;  %v3377_v61 = vmul.f32 %v3308_v30, %v3308_v30 }
 0x27a   : > { %v3378_v51 = vmul.f32 %v3309_v0, %v3309_v0  ;;  %v3381_v32 = vmul.f32 %v3312_v3, %v3312_v3 }
 0x27b   : > { %v3059_v47 = vadd.f32 %v2997_v7, %v5927_v44  ;;  %v3340_v50 = vadd.f32 %v3339_v62, %v3309_v0  ;;  %v3408_v13 = vadd.f32 %v3407_v12, %v3377_v61 }
 0x27d   : > { %v3136_v56 = vpack.c.bf16 %v3059_v47, %v3058_v17  ;;  %v3409_v15 = vadd.f32 %v3408_v13, %v3378_v51 }
 0x27f   : > { %4041 = vst [vmem:[%s5936_s26 + $0x70] sm:$0xff] %v3136_v56   ;;  %v3310_v38 = vunpack.c.l.bf16 %v3136_v56  ;;  %v3311_v40 = vunpack.c.h.bf16 %v3136_v56 }
 0x281   : > { %v3341_v18 = vadd.f32 %v3340_v50, %v3310_v38  ;;  %v3379_v26 = vmul.f32 %v3310_v38, %v3310_v38  ;;  %v3380_v35 = vmul.f32 %v3311_v40, %v3311_v40 }
 0x283   : > { %v3342_v11 = vadd.f32 %v3341_v18, %v3311_v40  ;;  %v3410_v31 = vadd.f32 %v3409_v15, %v3379_v26 }
 0x285   : > { %v3343_v44 = vadd.f32 %v3342_v11, %v3312_v3  ;;  %v3411_v4 = vadd.f32 %v3410_v31, %v3380_v35 }
 0x287   : > { %v3344_v25 = vadd.f32 %v3343_v44, %v3313_v34  ;;  %v3412_v60 = vadd.f32 %v3411_v4, %v3381_v32 }
 0x289   : > { %v3345_v59 = vrot.slane %v3344_v25, 4  ;;  %v3413_v5 = vadd.f32 %v3412_v60, %v3382_v9 }
 0x28b   : > { %v3346_v6 = vadd.f32 %v3345_v59, %v3344_v25  ;;  %v3414_v27 = vrot.slane %v3413_v5, 4 }
 0x28d   : > { %v3347_v16 = vrot.slane %v3346_v6, 2  ;;  %v3415_v55 = vadd.f32 %v3414_v27, %v3413_v5 }
 0x28f   : > { %v3348_v22 = vadd.f32 %v3347_v16, %v3346_v6  ;;  %v3416_v20 = vrot.slane %v3415_v55, 2 }
 0x291   : > { %v3349_v21 = vrot.slane %v3348_v22, 1  ;;  %v3417_v19 = vadd.f32 %v3416_v20, %v3415_v55 }
 0x293   : > { %v3418_v45 = vrot.slane %v3417_v19, 1  ;;  %v3350_v43 = vadd.f32 %v3349_v21, %v3348_v22 }
 0x295   : > { %v3419_v39 = vadd.f32 %v3418_v45, %v3417_v19 }
 0x297   : > { %v3421_v24 = vsel %vm427_vm0, %v3350_v43, %v3419_v39 }
 0x298   : > { %3422 = vst [vmem:[%s235_s29] sm:$0x3] %v3421_v24 }
 0x299 PF: > { %s16_s18 = sadd.s32 1, %s4794_s18  }
 0x29a   : > { %p13_p4 = scmp.ge.s32.totalorder %s16_s18, 4  }
 0x29c   :  { %15 = sbr.rel (!%p13_p4) target bundleno = 1 (0x1), region = 81 }

</bundles_post_ra>
